<compile_context>
chip_gen: v7x
topology: tpu7x:2x2x1
jax: 0.10.0
libtpu: 0.0.40
codegen_flags: <defaults>
</compile_context>

<pallas_src>
import functools

import jax
import jax.numpy as jnp
from jax.experimental import pallas as pl
from jax.experimental.pallas import tpu as pltpu


# ----------------------------------------------------------------------------
# Fused Pallas kernel: backbone (2x conv3x3) + RPN conv3x3 + 1x1 heads
# ----------------------------------------------------------------------------
def _fused_rcnn_kernel(x_ref, w1_ref, b1_ref, w2_ref, b2_ref, w3_ref, b3_ref,
                       wh_ref, bh_ref, feat_ref, head_ref, *, TH, H, W):
    """Process one (batch, row-tile) of the network.

    Flat-coordinate convention for the tile: flat index p <-> (h0, w0) =
    divmod(p, Wp); global row = t*TH - 4 + h0; global col = w0 - 3.

    x_ref : (R0*Wp, Cin)  bf16  halo'd input tile (R0 = TH+8, Wp = W+6)
    wN    : (9*C, Cout)   bf16  tap-folded conv weights
    bN    : (1, Cout)     f32   biases
    wh/bh : (U, HC)/(1,HC)      fused cls+box head (HC is lane-padded)
    feat_ref : (TH*W, U)  bf16  backbone features (conv2 output)
    head_ref : (TH*W, HC) f32   objectness(0:A) + bbox deltas(A:5A)
    """
    Wp = W + 6
    t = pl.program_id(1)

    # stored flat ranges per layer (start S, length L)
    L3 = TH * Wp
    L2 = L3 + 2 * (Wp + 1)
    L1 = L2 + 2 * (Wp + 1)
    S1 = 2 * Wp - 2
    S2 = 3 * Wp - 1
    S3 = 4 * Wp

    inv_wp = 1.0 / float(Wp)

    def inside_mask(S, L):
        # True where the flat position lies inside the real image.
        p = jax.lax.broadcasted_iota(jnp.int32, (L, 1), 0) + S
        # divmod by Wp without vector integer division (float trick is exact
        # here because p is a small integer).
        h0 = jnp.floor((p.astype(jnp.float32) + 0.5) * inv_wp).astype(jnp.int32)
        w0 = p - h0 * Wp
        r = t * TH - 4 + h0
        c = w0 - 3
        return jnp.logical_and(jnp.logical_and(r >= 0, r < H),
                               jnp.logical_and(c >= 0, c < W))

    def conv_step(a_in, s_in, s_out, l_out, w_ref, b_ref, mask):
        """3x3 conv as ONE matmul with K = 9*C (taps folded into K)."""
        base = s_out - s_in - Wp - 1
        taps = [a_in[base + kh * Wp + kw: base + kh * Wp + kw + l_out, :]
                for kh in range(3) for kw in range(3)]
        patches = jnp.concatenate(taps, axis=1)              # (l_out, 9*C) bf16
        y = jnp.dot(patches, w_ref[...],
                    preferred_element_type=jnp.float32)      # MXU, f32 acc
        y = jnp.maximum(y + b_ref[...], 0.0)                 # bias + ReLU
        if mask:
            # zero out-of-image positions -> reproduces per-layer SAME padding
            y = jnp.where(inside_mask(s_out, l_out), y, 0.0)
        return y                                             # (l_out, Cout) f32

    x0 = x_ref[...]                                          # (N0, Cin) bf16

    a1 = conv_step(x0, 0, S1, L1, w1_ref, b1_ref, True).astype(jnp.bfloat16)
    a2 = conv_step(a1, S1, S2, L2, w2_ref, b2_ref, True)     # f32 (features)
    a3 = conv_step(a2.astype(jnp.bfloat16), S2, S3, L3, w3_ref, b3_ref, False)

    # fused 1x1 heads (cls + box) on the RPN conv output
    heads = jnp.dot(a3.astype(jnp.bfloat16), wh_ref[...],
                    preferred_element_type=jnp.float32) + bh_ref[...]

    # extract the valid (in-image) columns row by row and store
    for i in range(TH):
        fsrc = (i + 1) * Wp + 4          # conv2 output, global row t*TH+i
        hsrc = i * Wp + 3                # conv3/head output, global row t*TH+i
        feat_ref[i * W:(i + 1) * W, :] = a2[fsrc:fsrc + W, :].astype(feat_ref.dtype)
        head_ref[i * W:(i + 1) * W, :] = heads[hsrc:hsrc + W, :]


# ----------------------------------------------------------------------------
# Host wrapper: halo row-tiling, weight folding, pallas_call
# ----------------------------------------------------------------------------
def _pick_tile_h(H):
    # Largest tile height (<=32 rows) dividing H.  Small enough to keep the
    # per-step VMEM footprint well under v7x's 64 MiB budget at typical
    # detection widths; increase for v5e/v6e if W is small.
    for cand in (32, 16, 8, 4, 2, 1):
        if H % cand == 0:
            return cand
    return 1


def fasterrcnn_forward(params, x_nhwc, *, tile_h=None):
    """x_nhwc: (B, H, W, Cin) float -> dict of NHWC outputs.

    Layout note: inputs/outputs are NHWC (channels on the TPU lane dim); the
    NCHW<->NHWC transposes of the original wrapper are dropped on purpose
    (they are pure extra HBM traffic).
    """
    B, H, W, Cin = x_nhwc.shape
    U = params["bb1_w"].shape[-1]
    A = params["cls_w"].shape[-1]

    TH = tile_h if tile_h is not None else _pick_tile_h(H)
    assert H % TH == 0, "tile_h must divide H (pad H on the host otherwise)"
    n_t = H // TH
    if n_t > 1:
        assert (TH * W) % 8 == 0, "TH*W must be a multiple of 8"

    Wp = W + 6
    R0 = TH + 8
    N0 = R0 * Wp

    # --- input: zero-pad (rows 4/4, cols 3/3) and cut halo'd row tiles ------
    xpad = jnp.pad(x_nhwc, ((0, 0), (4, 4), (3, 3), (0, 0)))
    xtiles = jnp.stack([xpad[:, t * TH:t * TH + R0, :, :] for t in range(n_t)],
                       axis=1)                                # (B,n_t,R0,Wp,C)
    xtiles = xtiles.reshape(B, n_t, N0, Cin).astype(jnp.bfloat16)

    # --- weights: fold the 9 taps into the contraction dim, cast to bf16 ----
    w1f = params["bb1_w"].reshape(9 * Cin, U).astype(jnp.bfloat16)
    w2f = params["bb2_w"].reshape(9 * U, U).astype(jnp.bfloat16)
    w3f = params["rpn_w"].reshape(9 * U, U).astype(jnp.bfloat16)
    b1 = params["bb1_b"].reshape(1, U).astype(jnp.float32)
    b2 = params["bb2_b"].reshape(1, U).astype(jnp.float32)
    b3 = params["rpn_b"].reshape(1, U).astype(jnp.float32)

    # fused heads: [cls | box], lane-padded to a multiple of 8
    wh_raw = jnp.concatenate([params["cls_w"], params["box_w"]], axis=1)
    bh_raw = jnp.concatenate([params["cls_b"], params["box_b"]], axis=0)
    hc_raw = wh_raw.shape[1]                                  # 5*A
    HC = ((hc_raw + 7) // 8) * 8
    wh = jnp.pad(wh_raw, ((0, 0), (0, HC - hc_raw))).astype(jnp.bfloat16)
    bh = jnp.pad(bh_raw, (0, HC - hc_raw)).reshape(1, HC).astype(jnp.float32)

    kernel = functools.partial(_fused_rcnn_kernel, TH=TH, H=H, W=W)

    feat, heads = pl.pallas_call(
        kernel,
        out_shape=(jax.ShapeDtypeStruct((B, H * W, U), jnp.bfloat16),
                   jax.ShapeDtypeStruct((B, H * W, HC), jnp.float32)),
        grid=(B, n_t),
        in_specs=[
            pl.BlockSpec((None, None, N0, Cin), lambda b, t: (b, t, 0, 0)),
            pl.BlockSpec((9 * Cin, U), lambda b, t: (0, 0)),
            pl.BlockSpec((1, U), lambda b, t: (0, 0)),
            pl.BlockSpec((9 * U, U), lambda b, t: (0, 0)),
            pl.BlockSpec((1, U), lambda b, t: (0, 0)),
            pl.BlockSpec((9 * U, U), lambda b, t: (0, 0)),
            pl.BlockSpec((1, U), lambda b, t: (0, 0)),
            pl.BlockSpec((U, HC), lambda b, t: (0, 0)),
            pl.BlockSpec((1, HC), lambda b, t: (0, 0)),
        ],
        out_specs=(
            pl.BlockSpec((None, TH * W, U), lambda b, t: (b, t, 0)),
            pl.BlockSpec((None, TH * W, HC), lambda b, t: (b, t, 0)),
        ),
        compiler_params=pltpu.CompilerParams(
            dimension_semantics=("parallel", "parallel")),
    )(xtiles, w1f, b1, w2f, b2, w3f, b3, wh, bh)

    features = feat.reshape(B, H, W, U)
    heads = heads.reshape(B, H, W, HC)
    # TODO(synk): anchor generation, proposal decoding, NMS and ROI heads are
    # dynamic-shape / host-side logic with no clean Pallas equivalent.
    # TODO(synk): the module's forward() (SGD training loop, data loaders,
    # checkpoint save/load) is host-side orchestration, not kernel compute.
    return {
        "features": features,                       # (B,H,W,U)  bf16
        "objectness": heads[..., :A],               # (B,H,W,A)  f32
        "bbox_deltas": heads[..., A:5 * A],         # (B,H,W,4A) f32
    }


# ----------------------------------------------------------------------------
# Parameters
# ----------------------------------------------------------------------------
def init_params(key, in_ch=3, usize=32, num_anchors=3):
    ks = jax.random.split(key, 10)
    s = 0.1
    return {
        "bb1_w": s * jax.random.normal(ks[0], (3, 3, in_ch, usize), jnp.float32),
        "bb1_b": 0.1 * jax.random.normal(ks[5], (usize,), jnp.float32),
        "bb2_w": s * jax.random.normal(ks[1], (3, 3, usize, usize), jnp.float32),
        "bb2_b": 0.1 * jax.random.normal(ks[6], (usize,), jnp.float32),
        "rpn_w": s * jax.random.normal(ks[2], (3, 3, usize, usize), jnp.float32),
        "rpn_b": 0.1 * jax.random.normal(ks[7], (usize,), jnp.float32),
        "cls_w": s * jax.random.normal(ks[3], (usize, num_anchors), jnp.float32),
        "cls_b": 0.1 * jax.random.normal(ks[8], (num_anchors,), jnp.float32),
        "box_w": s * jax.random.normal(ks[4], (usize, num_anchors * 4), jnp.float32),
        "box_b": 0.1 * jax.random.normal(ks[9], (num_anchors * 4,), jnp.float32),
    }


# ----------------------------------------------------------------------------
# Pure-JAX reference (mirrors the kernel's bf16 cast points)
# ----------------------------------------------------------------------------
def _ref_forward(params, x_nhwc):
    f32, bf = jnp.float32, jnp.bfloat16

    def cast(v):
        return v.astype(bf).astype(f32)

    def conv(x, w, b):
        y = jax.lax.conv_general_dilated(
            x, cast(w), (1, 1), "SAME",
            dimension_numbers=("NHWC", "HWIO", "NHWC"))
        return jnp.maximum(y + b, 0.0)

    x = cast(x_nhwc)
    a1 = cast(conv(x, params["bb1_w"], params["bb1_b"]))
    a2 = conv(a1, params["bb2_w"], params["bb2_b"])
    feat = cast(a2)                                   # kernel stores bf16
    a3 = cast(conv(cast(a2), params["rpn_w"], params["rpn_b"]))
    obj = jnp.einsum("bhwc,co->bhwo", a3, cast(params["cls_w"])) + params["cls_b"]
    box = jnp.einsum("bhwc,co->bhwo", a3, cast(params["box_w"])) + params["box_b"]
    return {"features": feat, "objectness": obj, "bbox_deltas": box}


# ----------------------------------------------------------------------------
# Test
# ----------------------------------------------------------------------------
if __name__ == "__main__":
    key = jax.random.PRNGKey(0)
    k_param, k_x = jax.random.split(key)

    B, H, W, C = 2, 16, 16, 3            # small RGB batch (NHWC)
    usize, num_anchors = 32, 3

    x = jax.random.uniform(k_x, (B, H, W, C), jnp.float32)
    params = init_params(k_param, in_ch=C, usize=usize, num_anchors=num_anchors)

    fwd = jax.jit(functools.partial(fasterrcnn_forward, tile_h=8))  # 2 row tiles
    out = fwd(params, x)
    jax.block_until_ready(out)

    ref = _ref_forward(params, x)
    for name in ("features", "objectness", "bbox_deltas"):
        a = out[name].astype(jnp.float32)
        b = ref[name].astype(jnp.float32)
        assert a.shape == b.shape, (name, a.shape, b.shape)
        err = float(jnp.max(jnp.abs(a - b)))
        scale = float(jnp.max(jnp.abs(b))) + 1e-6
        assert err <= 2e-2 * scale, (name, err, scale)

    print("KERNEL_OK")
</pallas_src>

<mosaic_0001>
module attributes {stable_mosaic.version = 11 : i64} {
  func.func @_fused_rcnn_kernel(%arg0: i32, %arg1: i32, %arg2: memref<1x1x352x3xbf16, #tpu.memory_space<vmem>>, %arg3: memref<27x32xbf16, #tpu.memory_space<vmem>>, %arg4: memref<1x32xf32, #tpu.memory_space<vmem>>, %arg5: memref<288x32xbf16, #tpu.memory_space<vmem>>, %arg6: memref<1x32xf32, #tpu.memory_space<vmem>>, %arg7: memref<288x32xbf16, #tpu.memory_space<vmem>>, %arg8: memref<1x32xf32, #tpu.memory_space<vmem>>, %arg9: memref<32x16xbf16, #tpu.memory_space<vmem>>, %arg10: memref<1x16xf32, #tpu.memory_space<vmem>>, %arg11: memref<1x128x32xbf16, #tpu.memory_space<vmem>>, %arg12: memref<1x128x16xf32, #tpu.memory_space<vmem>>) attributes {dimension_semantics = [#tpu.dimension_semantics<parallel>, #tpu.dimension_semantics<parallel>], iteration_bounds = array<i64: 2, 2>, scalar_prefetch = 0 : i64, scratch_operands = 0 : i64, tpu.core_type = #tpu.core_type<tc>, window_params = [{transform_indices = @transform_0, window_bounds = array<i64: 1, 1, 352, 3>}, {pipeline_mode = #tpu.pipeline_mode<synchronous>, transform_indices = @transform_1, window_bounds = array<i64: 27, 32>}, {pipeline_mode = #tpu.pipeline_mode<synchronous>, transform_indices = @transform_2, window_bounds = array<i64: 1, 32>}, {pipeline_mode = #tpu.pipeline_mode<synchronous>, transform_indices = @transform_3, window_bounds = array<i64: 288, 32>}, {pipeline_mode = #tpu.pipeline_mode<synchronous>, transform_indices = @transform_4, window_bounds = array<i64: 1, 32>}, {pipeline_mode = #tpu.pipeline_mode<synchronous>, transform_indices = @transform_5, window_bounds = array<i64: 288, 32>}, {pipeline_mode = #tpu.pipeline_mode<synchronous>, transform_indices = @transform_6, window_bounds = array<i64: 1, 32>}, {pipeline_mode = #tpu.pipeline_mode<synchronous>, transform_indices = @transform_7, window_bounds = array<i64: 32, 16>}, {pipeline_mode = #tpu.pipeline_mode<synchronous>, transform_indices = @transform_8, window_bounds = array<i64: 1, 16>}, {transform_indices = @transform_9, window_bounds = array<i64: 1, 128, 32>}, {transform_indices = @transform_10, window_bounds = array<i64: 1, 128, 16>}]} {
    %c0 = arith.constant 0 : index
    %c0_0 = arith.constant 0 : index
    %c0_1 = arith.constant 0 : index
    %c0_2 = arith.constant 0 : index
    %0 = vector.load %arg2[%c0, %c0_0, %c0_1, %c0_2] : memref<1x1x352x3xbf16, #tpu.memory_space<vmem>>, vector<1x1x352x3xbf16>
    %1 = vector.shape_cast %0 : vector<1x1x352x3xbf16> to vector<352x3xbf16>
    %2 = vector.extract_strided_slice %1 {offsets = [19, 0], sizes = [268, 3], strides = [1, 1]} : vector<352x3xbf16> to vector<268x3xbf16>
    %3 = vector.extract_strided_slice %1 {offsets = [20, 0], sizes = [268, 3], strides = [1, 1]} : vector<352x3xbf16> to vector<268x3xbf16>
    %4 = vector.extract_strided_slice %1 {offsets = [21, 0], sizes = [268, 3], strides = [1, 1]} : vector<352x3xbf16> to vector<268x3xbf16>
    %5 = vector.extract_strided_slice %1 {offsets = [41, 0], sizes = [268, 3], strides = [1, 1]} : vector<352x3xbf16> to vector<268x3xbf16>
    %6 = vector.extract_strided_slice %1 {offsets = [42, 0], sizes = [268, 3], strides = [1, 1]} : vector<352x3xbf16> to vector<268x3xbf16>
    %7 = vector.extract_strided_slice %1 {offsets = [43, 0], sizes = [268, 3], strides = [1, 1]} : vector<352x3xbf16> to vector<268x3xbf16>
    %8 = vector.extract_strided_slice %1 {offsets = [63, 0], sizes = [268, 3], strides = [1, 1]} : vector<352x3xbf16> to vector<268x3xbf16>
    %9 = vector.extract_strided_slice %1 {offsets = [64, 0], sizes = [268, 3], strides = [1, 1]} : vector<352x3xbf16> to vector<268x3xbf16>
    %10 = vector.extract_strided_slice %1 {offsets = [65, 0], sizes = [268, 3], strides = [1, 1]} : vector<352x3xbf16> to vector<268x3xbf16>
    %11 = tpu.concatenate %2, %3, %4, %5, %6, %7, %8, %9, %10 in 1 : vector<268x3xbf16>, vector<268x3xbf16>, vector<268x3xbf16>, vector<268x3xbf16>, vector<268x3xbf16>, vector<268x3xbf16>, vector<268x3xbf16>, vector<268x3xbf16>, vector<268x3xbf16> -> vector<268x27xbf16>
    %c0_3 = arith.constant 0 : index
    %c0_4 = arith.constant 0 : index
    %12 = vector.load %arg3[%c0_3, %c0_4] : memref<27x32xbf16, #tpu.memory_space<vmem>>, vector<27x32xbf16>
    %cst = arith.constant dense<0.000000e+00> : vector<268x32xf32>
    %13 = tpu.matmul %11, %12, %cst {dimension_numbers = #tpu.dot_dimension_numbers<[1], [0], [0], [1], [0, 0, 1, 1], [], []>} : vector<268x27xbf16>, vector<27x32xbf16>, vector<268x32xf32> -> vector<268x32xf32>
    %c0_5 = arith.constant 0 : index
    %c0_6 = arith.constant 0 : index
    %14 = vector.load %arg4[%c0_5, %c0_6] : memref<1x32xf32, #tpu.memory_space<vmem>>, vector<1x32xf32>
    %15 = vector.broadcast %14 : vector<1x32xf32> to vector<268x32xf32>
    %16 = arith.addf %13, %15 : vector<268x32xf32>
    %cst_7 = arith.constant 0.000000e+00 : f32
    %17 = vector.broadcast %cst_7 : f32 to vector<268x32xf32>
    %18 = arith.maximumf %16, %17 : vector<268x32xf32>
    %19 = tpu.iota {dimensions = array<i32: 0>} : vector<268x1xi32>
    %c42_i32 = arith.constant 42 : i32
    %20 = vector.broadcast %c42_i32 : i32 to vector<268x1xi32>
    %21 = arith.addi %19, %20 : vector<268x1xi32>
    %22 = arith.sitofp %21 : vector<268x1xi32> to vector<268x1xf32>
    %cst_8 = arith.constant 5.000000e-01 : f32
    %23 = vector.broadcast %cst_8 : f32 to vector<268x1xf32>
    %24 = arith.addf %22, %23 : vector<268x1xf32>
    %cst_9 = arith.constant 0.0454545468 : f32
    %25 = vector.broadcast %cst_9 : f32 to vector<268x1xf32>
    %26 = arith.mulf %24, %25 : vector<268x1xf32>
    %27 = math.floor %26 : vector<268x1xf32>
    %28 = arith.fptosi %27 : vector<268x1xf32> to vector<268x1xi32>
    %c22_i32 = arith.constant 22 : i32
    %29 = vector.broadcast %c22_i32 : i32 to vector<268x1xi32>
    %30 = arith.muli %28, %29 : vector<268x1xi32>
    %31 = arith.subi %21, %30 : vector<268x1xi32>
    %c8_i32 = arith.constant 8 : i32
    %32 = arith.muli %arg1, %c8_i32 : i32
    %c4_i32 = arith.constant 4 : i32
    %33 = arith.subi %32, %c4_i32 : i32
    %34 = vector.broadcast %33 : i32 to vector<268x1xi32>
    %35 = arith.addi %34, %28 : vector<268x1xi32>
    %c3_i32 = arith.constant 3 : i32
    %36 = vector.broadcast %c3_i32 : i32 to vector<268x1xi32>
    %37 = arith.subi %31, %36 : vector<268x1xi32>
    %c0_i32 = arith.constant 0 : i32
    %38 = vector.broadcast %c0_i32 : i32 to vector<268x1xi32>
    %39 = arith.cmpi sge, %35, %38 : vector<268x1xi32>
    %c16_i32 = arith.constant 16 : i32
    %40 = vector.broadcast %c16_i32 : i32 to vector<268x1xi32>
    %41 = arith.cmpi slt, %35, %40 : vector<268x1xi32>
    %42 = arith.andi %39, %41 : vector<268x1xi1>
    %c0_i32_10 = arith.constant 0 : i32
    %43 = vector.broadcast %c0_i32_10 : i32 to vector<268x1xi32>
    %44 = arith.cmpi sge, %37, %43 : vector<268x1xi32>
    %c16_i32_11 = arith.constant 16 : i32
    %45 = vector.broadcast %c16_i32_11 : i32 to vector<268x1xi32>
    %46 = arith.cmpi slt, %37, %45 : vector<268x1xi32>
    %47 = arith.andi %44, %46 : vector<268x1xi1>
    %48 = arith.andi %42, %47 : vector<268x1xi1>
    %cst_12 = arith.constant 0.000000e+00 : f32
    %49 = vector.shape_cast %48 : vector<268x1xi1> to vector<268x1xi1>
    %50 = vector.broadcast %49 : vector<268x1xi1> to vector<268x32xi1>
    %51 = vector.broadcast %cst_12 : f32 to vector<268x32xf32>
    %52 = arith.select %50, %18, %51 : vector<268x32xi1>, vector<268x32xf32>
    %53 = arith.truncf %52 : vector<268x32xf32> to vector<268x32xbf16>
    %54 = vector.extract_strided_slice %53 {offsets = [0, 0], sizes = [222, 32], strides = [1, 1]} : vector<268x32xbf16> to vector<222x32xbf16>
    %55 = vector.extract_strided_slice %53 {offsets = [1, 0], sizes = [222, 32], strides = [1, 1]} : vector<268x32xbf16> to vector<222x32xbf16>
    %56 = vector.extract_strided_slice %53 {offsets = [2, 0], sizes = [222, 32], strides = [1, 1]} : vector<268x32xbf16> to vector<222x32xbf16>
    %57 = vector.extract_strided_slice %53 {offsets = [22, 0], sizes = [222, 32], strides = [1, 1]} : vector<268x32xbf16> to vector<222x32xbf16>
    %58 = vector.extract_strided_slice %53 {offsets = [23, 0], sizes = [222, 32], strides = [1, 1]} : vector<268x32xbf16> to vector<222x32xbf16>
    %59 = vector.extract_strided_slice %53 {offsets = [24, 0], sizes = [222, 32], strides = [1, 1]} : vector<268x32xbf16> to vector<222x32xbf16>
    %60 = vector.extract_strided_slice %53 {offsets = [44, 0], sizes = [222, 32], strides = [1, 1]} : vector<268x32xbf16> to vector<222x32xbf16>
    %61 = vector.extract_strided_slice %53 {offsets = [45, 0], sizes = [222, 32], strides = [1, 1]} : vector<268x32xbf16> to vector<222x32xbf16>
    %62 = vector.extract_strided_slice %53 {offsets = [46, 0], sizes = [222, 32], strides = [1, 1]} : vector<268x32xbf16> to vector<222x32xbf16>
    %63 = tpu.concatenate %54, %55, %56, %57, %58, %59, %60, %61, %62 in 1 : vector<222x32xbf16>, vector<222x32xbf16>, vector<222x32xbf16>, vector<222x32xbf16>, vector<222x32xbf16>, vector<222x32xbf16>, vector<222x32xbf16>, vector<222x32xbf16>, vector<222x32xbf16> -> vector<222x288xbf16>
    %c0_13 = arith.constant 0 : index
    %c0_14 = arith.constant 0 : index
    %64 = vector.load %arg5[%c0_13, %c0_14] : memref<288x32xbf16, #tpu.memory_space<vmem>>, vector<288x32xbf16>
    %cst_15 = arith.constant dense<0.000000e+00> : vector<222x32xf32>
    %65 = tpu.matmul %63, %64, %cst_15 {dimension_numbers = #tpu.dot_dimension_numbers<[1], [0], [0], [1], [0, 0, 1, 1], [], []>} : vector<222x288xbf16>, vector<288x32xbf16>, vector<222x32xf32> -> vector<222x32xf32>
    %c0_16 = arith.constant 0 : index
    %c0_17 = arith.constant 0 : index
    %66 = vector.load %arg6[%c0_16, %c0_17] : memref<1x32xf32, #tpu.memory_space<vmem>>, vector<1x32xf32>
    %67 = vector.broadcast %66 : vector<1x32xf32> to vector<222x32xf32>
    %68 = arith.addf %65, %67 : vector<222x32xf32>
    %cst_18 = arith.constant 0.000000e+00 : f32
    %69 = vector.broadcast %cst_18 : f32 to vector<222x32xf32>
    %70 = arith.maximumf %68, %69 : vector<222x32xf32>
    %71 = tpu.iota {dimensions = array<i32: 0>} : vector<222x1xi32>
    %c65_i32 = arith.constant 65 : i32
    %72 = vector.broadcast %c65_i32 : i32 to vector<222x1xi32>
    %73 = arith.addi %71, %72 : vector<222x1xi32>
    %74 = arith.sitofp %73 : vector<222x1xi32> to vector<222x1xf32>
    %cst_19 = arith.constant 5.000000e-01 : f32
    %75 = vector.broadcast %cst_19 : f32 to vector<222x1xf32>
    %76 = arith.addf %74, %75 : vector<222x1xf32>
    %cst_20 = arith.constant 0.0454545468 : f32
    %77 = vector.broadcast %cst_20 : f32 to vector<222x1xf32>
    %78 = arith.mulf %76, %77 : vector<222x1xf32>
    %79 = math.floor %78 : vector<222x1xf32>
    %80 = arith.fptosi %79 : vector<222x1xf32> to vector<222x1xi32>
    %c22_i32_21 = arith.constant 22 : i32
    %81 = vector.broadcast %c22_i32_21 : i32 to vector<222x1xi32>
    %82 = arith.muli %80, %81 : vector<222x1xi32>
    %83 = arith.subi %73, %82 : vector<222x1xi32>
    %c8_i32_22 = arith.constant 8 : i32
    %84 = arith.muli %arg1, %c8_i32_22 : i32
    %c4_i32_23 = arith.constant 4 : i32
    %85 = arith.subi %84, %c4_i32_23 : i32
    %86 = vector.broadcast %85 : i32 to vector<222x1xi32>
    %87 = arith.addi %86, %80 : vector<222x1xi32>
    %c3_i32_24 = arith.constant 3 : i32
    %88 = vector.broadcast %c3_i32_24 : i32 to vector<222x1xi32>
    %89 = arith.subi %83, %88 : vector<222x1xi32>
    %c0_i32_25 = arith.constant 0 : i32
    %90 = vector.broadcast %c0_i32_25 : i32 to vector<222x1xi32>
    %91 = arith.cmpi sge, %87, %90 : vector<222x1xi32>
    %c16_i32_26 = arith.constant 16 : i32
    %92 = vector.broadcast %c16_i32_26 : i32 to vector<222x1xi32>
    %93 = arith.cmpi slt, %87, %92 : vector<222x1xi32>
    %94 = arith.andi %91, %93 : vector<222x1xi1>
    %c0_i32_27 = arith.constant 0 : i32
    %95 = vector.broadcast %c0_i32_27 : i32 to vector<222x1xi32>
    %96 = arith.cmpi sge, %89, %95 : vector<222x1xi32>
    %c16_i32_28 = arith.constant 16 : i32
    %97 = vector.broadcast %c16_i32_28 : i32 to vector<222x1xi32>
    %98 = arith.cmpi slt, %89, %97 : vector<222x1xi32>
    %99 = arith.andi %96, %98 : vector<222x1xi1>
    %100 = arith.andi %94, %99 : vector<222x1xi1>
    %cst_29 = arith.constant 0.000000e+00 : f32
    %101 = vector.shape_cast %100 : vector<222x1xi1> to vector<222x1xi1>
    %102 = vector.broadcast %101 : vector<222x1xi1> to vector<222x32xi1>
    %103 = vector.broadcast %cst_29 : f32 to vector<222x32xf32>
    %104 = arith.select %102, %70, %103 : vector<222x32xi1>, vector<222x32xf32>
    %105 = arith.truncf %104 : vector<222x32xf32> to vector<222x32xbf16>
    %106 = vector.extract_strided_slice %105 {offsets = [0, 0], sizes = [176, 32], strides = [1, 1]} : vector<222x32xbf16> to vector<176x32xbf16>
    %107 = vector.extract_strided_slice %105 {offsets = [1, 0], sizes = [176, 32], strides = [1, 1]} : vector<222x32xbf16> to vector<176x32xbf16>
    %108 = vector.extract_strided_slice %105 {offsets = [2, 0], sizes = [176, 32], strides = [1, 1]} : vector<222x32xbf16> to vector<176x32xbf16>
    %109 = vector.extract_strided_slice %105 {offsets = [22, 0], sizes = [176, 32], strides = [1, 1]} : vector<222x32xbf16> to vector<176x32xbf16>
    %110 = vector.extract_strided_slice %105 {offsets = [23, 0], sizes = [176, 32], strides = [1, 1]} : vector<222x32xbf16> to vector<176x32xbf16>
    %111 = vector.extract_strided_slice %105 {offsets = [24, 0], sizes = [176, 32], strides = [1, 1]} : vector<222x32xbf16> to vector<176x32xbf16>
    %112 = vector.extract_strided_slice %105 {offsets = [44, 0], sizes = [176, 32], strides = [1, 1]} : vector<222x32xbf16> to vector<176x32xbf16>
    %113 = vector.extract_strided_slice %105 {offsets = [45, 0], sizes = [176, 32], strides = [1, 1]} : vector<222x32xbf16> to vector<176x32xbf16>
    %114 = vector.extract_strided_slice %105 {offsets = [46, 0], sizes = [176, 32], strides = [1, 1]} : vector<222x32xbf16> to vector<176x32xbf16>
    %115 = tpu.concatenate %106, %107, %108, %109, %110, %111, %112, %113, %114 in 1 : vector<176x32xbf16>, vector<176x32xbf16>, vector<176x32xbf16>, vector<176x32xbf16>, vector<176x32xbf16>, vector<176x32xbf16>, vector<176x32xbf16>, vector<176x32xbf16>, vector<176x32xbf16> -> vector<176x288xbf16>
    %c0_30 = arith.constant 0 : index
    %c0_31 = arith.constant 0 : index
    %116 = vector.load %arg7[%c0_30, %c0_31] : memref<288x32xbf16, #tpu.memory_space<vmem>>, vector<288x32xbf16>
    %cst_32 = arith.constant dense<0.000000e+00> : vector<176x32xf32>
    %117 = tpu.matmul %115, %116, %cst_32 {dimension_numbers = #tpu.dot_dimension_numbers<[1], [0], [0], [1], [0, 0, 1, 1], [], []>} : vector<176x288xbf16>, vector<288x32xbf16>, vector<176x32xf32> -> vector<176x32xf32>
    %c0_33 = arith.constant 0 : index
    %c0_34 = arith.constant 0 : index
    %118 = vector.load %arg8[%c0_33, %c0_34] : memref<1x32xf32, #tpu.memory_space<vmem>>, vector<1x32xf32>
    %119 = vector.broadcast %118 : vector<1x32xf32> to vector<176x32xf32>
    %120 = arith.addf %117, %119 : vector<176x32xf32>
    %cst_35 = arith.constant 0.000000e+00 : f32
    %121 = vector.broadcast %cst_35 : f32 to vector<176x32xf32>
    %122 = arith.maximumf %120, %121 : vector<176x32xf32>
    %123 = arith.truncf %122 : vector<176x32xf32> to vector<176x32xbf16>
    %c0_36 = arith.constant 0 : index
    %c0_37 = arith.constant 0 : index
    %124 = vector.load %arg9[%c0_36, %c0_37] : memref<32x16xbf16, #tpu.memory_space<vmem>>, vector<32x16xbf16>
    %cst_38 = arith.constant dense<0.000000e+00> : vector<176x16xf32>
    %125 = tpu.matmul %123, %124, %cst_38 {dimension_numbers = #tpu.dot_dimension_numbers<[1], [0], [0], [1], [0, 0, 1, 1], [], []>} : vector<176x32xbf16>, vector<32x16xbf16>, vector<176x16xf32> -> vector<176x16xf32>
    %c0_39 = arith.constant 0 : index
    %c0_40 = arith.constant 0 : index
    %126 = vector.load %arg10[%c0_39, %c0_40] : memref<1x16xf32, #tpu.memory_space<vmem>>, vector<1x16xf32>
    %127 = vector.broadcast %126 : vector<1x16xf32> to vector<176x16xf32>
    %128 = arith.addf %125, %127 : vector<176x16xf32>
    %129 = vector.extract_strided_slice %104 {offsets = [26, 0], sizes = [16, 32], strides = [1, 1]} : vector<222x32xf32> to vector<16x32xf32>
    %130 = arith.truncf %129 : vector<16x32xf32> to vector<16x32xbf16>
    %c0_41 = arith.constant 0 : index
    %c0_42 = arith.constant 0 : index
    %c0_43 = arith.constant 0 : index
    %131 = vector.load %arg11[%c0_41, %c0_42, %c0_43] : memref<1x128x32xbf16, #tpu.memory_space<vmem>>, vector<1x16x32xbf16>
    %132 = vector.shape_cast %131 : vector<1x16x32xbf16> to vector<16x32xbf16>
    %133 = vector.shape_cast %130 : vector<16x32xbf16> to vector<1x16x32xbf16>
    tpu.vector_store %arg11[%c0_41, %c0_42, %c0_43], %133 {strides = array<i32>} : memref<1x128x32xbf16, #tpu.memory_space<vmem>>, vector<1x16x32xbf16>,
    %134 = vector.extract_strided_slice %128 {offsets = [3, 0], sizes = [16, 16], strides = [1, 1]} : vector<176x16xf32> to vector<16x16xf32>
    %c0_44 = arith.constant 0 : index
    %c0_45 = arith.constant 0 : index
    %c0_46 = arith.constant 0 : index
    %135 = vector.load %arg12[%c0_44, %c0_45, %c0_46] : memref<1x128x16xf32, #tpu.memory_space<vmem>>, vector<1x16x16xf32>
    %136 = vector.shape_cast %135 : vector<1x16x16xf32> to vector<16x16xf32>
    %137 = vector.shape_cast %134 : vector<16x16xf32> to vector<1x16x16xf32>
    tpu.vector_store %arg12[%c0_44, %c0_45, %c0_46], %137 {strides = array<i32>} : memref<1x128x16xf32, #tpu.memory_space<vmem>>, vector<1x16x16xf32>,
    %138 = vector.extract_strided_slice %104 {offsets = [48, 0], sizes = [16, 32], strides = [1, 1]} : vector<222x32xf32> to vector<16x32xf32>
    %139 = arith.truncf %138 : vector<16x32xf32> to vector<16x32xbf16>
    %c0_47 = arith.constant 0 : index
    %c16 = arith.constant 16 : index
    %c0_48 = arith.constant 0 : index
    %140 = vector.load %arg11[%c0_47, %c16, %c0_48] : memref<1x128x32xbf16, #tpu.memory_space<vmem>>, vector<1x16x32xbf16>
    %141 = vector.shape_cast %140 : vector<1x16x32xbf16> to vector<16x32xbf16>
    %142 = vector.shape_cast %139 : vector<16x32xbf16> to vector<1x16x32xbf16>
    tpu.vector_store %arg11[%c0_47, %c16, %c0_48], %142 {strides = array<i32>} : memref<1x128x32xbf16, #tpu.memory_space<vmem>>, vector<1x16x32xbf16>,
    %143 = vector.extract_strided_slice %128 {offsets = [25, 0], sizes = [16, 16], strides = [1, 1]} : vector<176x16xf32> to vector<16x16xf32>
    %c0_49 = arith.constant 0 : index
    %c16_50 = arith.constant 16 : index
    %c0_51 = arith.constant 0 : index
    %144 = vector.load %arg12[%c0_49, %c16_50, %c0_51] : memref<1x128x16xf32, #tpu.memory_space<vmem>>, vector<1x16x16xf32>
    %145 = vector.shape_cast %144 : vector<1x16x16xf32> to vector<16x16xf32>
    %146 = vector.shape_cast %143 : vector<16x16xf32> to vector<1x16x16xf32>
    tpu.vector_store %arg12[%c0_49, %c16_50, %c0_51], %146 {strides = array<i32>} : memref<1x128x16xf32, #tpu.memory_space<vmem>>, vector<1x16x16xf32>,
    %147 = vector.extract_strided_slice %104 {offsets = [70, 0], sizes = [16, 32], strides = [1, 1]} : vector<222x32xf32> to vector<16x32xf32>
    %148 = arith.truncf %147 : vector<16x32xf32> to vector<16x32xbf16>
    %c0_52 = arith.constant 0 : index
    %c32 = arith.constant 32 : index
    %c0_53 = arith.constant 0 : index
    %149 = vector.load %arg11[%c0_52, %c32, %c0_53] : memref<1x128x32xbf16, #tpu.memory_space<vmem>>, vector<1x16x32xbf16>
    %150 = vector.shape_cast %149 : vector<1x16x32xbf16> to vector<16x32xbf16>
    %151 = vector.shape_cast %148 : vector<16x32xbf16> to vector<1x16x32xbf16>
    tpu.vector_store %arg11[%c0_52, %c32, %c0_53], %151 {strides = array<i32>} : memref<1x128x32xbf16, #tpu.memory_space<vmem>>, vector<1x16x32xbf16>,
    %152 = vector.extract_strided_slice %128 {offsets = [47, 0], sizes = [16, 16], strides = [1, 1]} : vector<176x16xf32> to vector<16x16xf32>
    %c0_54 = arith.constant 0 : index
    %c32_55 = arith.constant 32 : index
    %c0_56 = arith.constant 0 : index
    %153 = vector.load %arg12[%c0_54, %c32_55, %c0_56] : memref<1x128x16xf32, #tpu.memory_space<vmem>>, vector<1x16x16xf32>
    %154 = vector.shape_cast %153 : vector<1x16x16xf32> to vector<16x16xf32>
    %155 = vector.shape_cast %152 : vector<16x16xf32> to vector<1x16x16xf32>
    tpu.vector_store %arg12[%c0_54, %c32_55, %c0_56], %155 {strides = array<i32>} : memref<1x128x16xf32, #tpu.memory_space<vmem>>, vector<1x16x16xf32>,
    %156 = vector.extract_strided_slice %104 {offsets = [92, 0], sizes = [16, 32], strides = [1, 1]} : vector<222x32xf32> to vector<16x32xf32>
    %157 = arith.truncf %156 : vector<16x32xf32> to vector<16x32xbf16>
    %c0_57 = arith.constant 0 : index
    %c48 = arith.constant 48 : index
    %c0_58 = arith.constant 0 : index
    %158 = vector.load %arg11[%c0_57, %c48, %c0_58] : memref<1x128x32xbf16, #tpu.memory_space<vmem>>, vector<1x16x32xbf16>
    %159 = vector.shape_cast %158 : vector<1x16x32xbf16> to vector<16x32xbf16>
    %160 = vector.shape_cast %157 : vector<16x32xbf16> to vector<1x16x32xbf16>
    tpu.vector_store %arg11[%c0_57, %c48, %c0_58], %160 {strides = array<i32>} : memref<1x128x32xbf16, #tpu.memory_space<vmem>>, vector<1x16x32xbf16>,
    %161 = vector.extract_strided_slice %128 {offsets = [69, 0], sizes = [16, 16], strides = [1, 1]} : vector<176x16xf32> to vector<16x16xf32>
    %c0_59 = arith.constant 0 : index
    %c48_60 = arith.constant 48 : index
    %c0_61 = arith.constant 0 : index
    %162 = vector.load %arg12[%c0_59, %c48_60, %c0_61] : memref<1x128x16xf32, #tpu.memory_space<vmem>>, vector<1x16x16xf32>
    %163 = vector.shape_cast %162 : vector<1x16x16xf32> to vector<16x16xf32>
    %164 = vector.shape_cast %161 : vector<16x16xf32> to vector<1x16x16xf32>
    tpu.vector_store %arg12[%c0_59, %c48_60, %c0_61], %164 {strides = array<i32>} : memref<1x128x16xf32, #tpu.memory_space<vmem>>, vector<1x16x16xf32>,
    %165 = vector.extract_strided_slice %104 {offsets = [114, 0], sizes = [16, 32], strides = [1, 1]} : vector<222x32xf32> to vector<16x32xf32>
    %166 = arith.truncf %165 : vector<16x32xf32> to vector<16x32xbf16>
    %c0_62 = arith.constant 0 : index
    %c64 = arith.constant 64 : index
    %c0_63 = arith.constant 0 : index
    %167 = vector.load %arg11[%c0_62, %c64, %c0_63] : memref<1x128x32xbf16, #tpu.memory_space<vmem>>, vector<1x16x32xbf16>
    %168 = vector.shape_cast %167 : vector<1x16x32xbf16> to vector<16x32xbf16>
    %169 = vector.shape_cast %166 : vector<16x32xbf16> to vector<1x16x32xbf16>
    tpu.vector_store %arg11[%c0_62, %c64, %c0_63], %169 {strides = array<i32>} : memref<1x128x32xbf16, #tpu.memory_space<vmem>>, vector<1x16x32xbf16>,
    %170 = vector.extract_strided_slice %128 {offsets = [91, 0], sizes = [16, 16], strides = [1, 1]} : vector<176x16xf32> to vector<16x16xf32>
    %c0_64 = arith.constant 0 : index
    %c64_65 = arith.constant 64 : index
    %c0_66 = arith.constant 0 : index
    %171 = vector.load %arg12[%c0_64, %c64_65, %c0_66] : memref<1x128x16xf32, #tpu.memory_space<vmem>>, vector<1x16x16xf32>
    %172 = vector.shape_cast %171 : vector<1x16x16xf32> to vector<16x16xf32>
    %173 = vector.shape_cast %170 : vector<16x16xf32> to vector<1x16x16xf32>
    tpu.vector_store %arg12[%c0_64, %c64_65, %c0_66], %173 {strides = array<i32>} : memref<1x128x16xf32, #tpu.memory_space<vmem>>, vector<1x16x16xf32>,
    %174 = vector.extract_strided_slice %104 {offsets = [136, 0], sizes = [16, 32], strides = [1, 1]} : vector<222x32xf32> to vector<16x32xf32>
    %175 = arith.truncf %174 : vector<16x32xf32> to vector<16x32xbf16>
    %c0_67 = arith.constant 0 : index
    %c80 = arith.constant 80 : index
    %c0_68 = arith.constant 0 : index
    %176 = vector.load %arg11[%c0_67, %c80, %c0_68] : memref<1x128x32xbf16, #tpu.memory_space<vmem>>, vector<1x16x32xbf16>
    %177 = vector.shape_cast %176 : vector<1x16x32xbf16> to vector<16x32xbf16>
    %178 = vector.shape_cast %175 : vector<16x32xbf16> to vector<1x16x32xbf16>
    tpu.vector_store %arg11[%c0_67, %c80, %c0_68], %178 {strides = array<i32>} : memref<1x128x32xbf16, #tpu.memory_space<vmem>>, vector<1x16x32xbf16>,
    %179 = vector.extract_strided_slice %128 {offsets = [113, 0], sizes = [16, 16], strides = [1, 1]} : vector<176x16xf32> to vector<16x16xf32>
    %c0_69 = arith.constant 0 : index
    %c80_70 = arith.constant 80 : index
    %c0_71 = arith.constant 0 : index
    %180 = vector.load %arg12[%c0_69, %c80_70, %c0_71] : memref<1x128x16xf32, #tpu.memory_space<vmem>>, vector<1x16x16xf32>
    %181 = vector.shape_cast %180 : vector<1x16x16xf32> to vector<16x16xf32>
    %182 = vector.shape_cast %179 : vector<16x16xf32> to vector<1x16x16xf32>
    tpu.vector_store %arg12[%c0_69, %c80_70, %c0_71], %182 {strides = array<i32>} : memref<1x128x16xf32, #tpu.memory_space<vmem>>, vector<1x16x16xf32>,
    %183 = vector.extract_strided_slice %104 {offsets = [158, 0], sizes = [16, 32], strides = [1, 1]} : vector<222x32xf32> to vector<16x32xf32>
    %184 = arith.truncf %183 : vector<16x32xf32> to vector<16x32xbf16>
    %c0_72 = arith.constant 0 : index
    %c96 = arith.constant 96 : index
    %c0_73 = arith.constant 0 : index
    %185 = vector.load %arg11[%c0_72, %c96, %c0_73] : memref<1x128x32xbf16, #tpu.memory_space<vmem>>, vector<1x16x32xbf16>
    %186 = vector.shape_cast %185 : vector<1x16x32xbf16> to vector<16x32xbf16>
    %187 = vector.shape_cast %184 : vector<16x32xbf16> to vector<1x16x32xbf16>
    tpu.vector_store %arg11[%c0_72, %c96, %c0_73], %187 {strides = array<i32>} : memref<1x128x32xbf16, #tpu.memory_space<vmem>>, vector<1x16x32xbf16>,
    %188 = vector.extract_strided_slice %128 {offsets = [135, 0], sizes = [16, 16], strides = [1, 1]} : vector<176x16xf32> to vector<16x16xf32>
    %c0_74 = arith.constant 0 : index
    %c96_75 = arith.constant 96 : index
    %c0_76 = arith.constant 0 : index
    %189 = vector.load %arg12[%c0_74, %c96_75, %c0_76] : memref<1x128x16xf32, #tpu.memory_space<vmem>>, vector<1x16x16xf32>
    %190 = vector.shape_cast %189 : vector<1x16x16xf32> to vector<16x16xf32>
    %191 = vector.shape_cast %188 : vector<16x16xf32> to vector<1x16x16xf32>
    tpu.vector_store %arg12[%c0_74, %c96_75, %c0_76], %191 {strides = array<i32>} : memref<1x128x16xf32, #tpu.memory_space<vmem>>, vector<1x16x16xf32>,
    %192 = vector.extract_strided_slice %104 {offsets = [180, 0], sizes = [16, 32], strides = [1, 1]} : vector<222x32xf32> to vector<16x32xf32>
    %193 = arith.truncf %192 : vector<16x32xf32> to vector<16x32xbf16>
    %c0_77 = arith.constant 0 : index
    %c112 = arith.constant 112 : index
    %c0_78 = arith.constant 0 : index
    %194 = vector.load %arg11[%c0_77, %c112, %c0_78] : memref<1x128x32xbf16, #tpu.memory_space<vmem>>, vector<1x16x32xbf16>
    %195 = vector.shape_cast %194 : vector<1x16x32xbf16> to vector<16x32xbf16>
    %196 = vector.shape_cast %193 : vector<16x32xbf16> to vector<1x16x32xbf16>
    tpu.vector_store %arg11[%c0_77, %c112, %c0_78], %196 {strides = array<i32>} : memref<1x128x32xbf16, #tpu.memory_space<vmem>>, vector<1x16x32xbf16>,
    %197 = vector.extract_strided_slice %128 {offsets = [157, 0], sizes = [16, 16], strides = [1, 1]} : vector<176x16xf32> to vector<16x16xf32>
    %c0_79 = arith.constant 0 : index
    %c112_80 = arith.constant 112 : index
    %c0_81 = arith.constant 0 : index
    %198 = vector.load %arg12[%c0_79, %c112_80, %c0_81] : memref<1x128x16xf32, #tpu.memory_space<vmem>>, vector<1x16x16xf32>
    %199 = vector.shape_cast %198 : vector<1x16x16xf32> to vector<16x16xf32>
    %200 = vector.shape_cast %197 : vector<16x16xf32> to vector<1x16x16xf32>
    tpu.vector_store %arg12[%c0_79, %c112_80, %c0_81], %200 {strides = array<i32>} : memref<1x128x16xf32, #tpu.memory_space<vmem>>, vector<1x16x16xf32>,
    return
  }
  func.func @transform_0(%arg0: i32, %arg1: i32) -> (i32, i32, i32, i32) {
    %c0_i32 = arith.constant 0 : i32
    %c0_i32_0 = arith.constant 0 : i32
    %c0_i32_1 = arith.constant 0 : i32
    return %arg0, %arg1, %c0_i32, %c0_i32_0 : i32, i32, i32, i32
  }
  func.func @transform_1(%arg0: i32, %arg1: i32) -> (i32, i32) {
    %c0_i32 = arith.constant 0 : i32
    %c0_i32_0 = arith.constant 0 : i32
    %c0_i32_1 = arith.constant 0 : i32
    return %c0_i32, %c0_i32_0 : i32, i32
  }
  func.func @transform_2(%arg0: i32, %arg1: i32) -> (i32, i32) {
    %c0_i32 = arith.constant 0 : i32
    %c0_i32_0 = arith.constant 0 : i32
    %c0_i32_1 = arith.constant 0 : i32
    return %c0_i32, %c0_i32_0 : i32, i32
  }
  func.func @transform_3(%arg0: i32, %arg1: i32) -> (i32, i32) {
    %c0_i32 = arith.constant 0 : i32
    %c0_i32_0 = arith.constant 0 : i32
    %c0_i32_1 = arith.constant 0 : i32
    return %c0_i32, %c0_i32_0 : i32, i32
  }
  func.func @transform_4(%arg0: i32, %arg1: i32) -> (i32, i32) {
    %c0_i32 = arith.constant 0 : i32
    %c0_i32_0 = arith.constant 0 : i32
    %c0_i32_1 = arith.constant 0 : i32
    return %c0_i32, %c0_i32_0 : i32, i32
  }
  func.func @transform_5(%arg0: i32, %arg1: i32) -> (i32, i32) {
    %c0_i32 = arith.constant 0 : i32
    %c0_i32_0 = arith.constant 0 : i32
    %c0_i32_1 = arith.constant 0 : i32
    return %c0_i32, %c0_i32_0 : i32, i32
  }
  func.func @transform_6(%arg0: i32, %arg1: i32) -> (i32, i32) {
    %c0_i32 = arith.constant 0 : i32
    %c0_i32_0 = arith.constant 0 : i32
    %c0_i32_1 = arith.constant 0 : i32
    return %c0_i32, %c0_i32_0 : i32, i32
  }
  func.func @transform_7(%arg0: i32, %arg1: i32) -> (i32, i32) {
    %c0_i32 = arith.constant 0 : i32
    %c0_i32_0 = arith.constant 0 : i32
    %c0_i32_1 = arith.constant 0 : i32
    return %c0_i32, %c0_i32_0 : i32, i32
  }
  func.func @transform_8(%arg0: i32, %arg1: i32) -> (i32, i32) {
    %c0_i32 = arith.constant 0 : i32
    %c0_i32_0 = arith.constant 0 : i32
    %c0_i32_1 = arith.constant 0 : i32
    return %c0_i32, %c0_i32_0 : i32, i32
  }
  func.func @transform_9(%arg0: i32, %arg1: i32) -> (i32, i32, i32) {
    %c0_i32 = arith.constant 0 : i32
    %c0_i32_0 = arith.constant 0 : i32
    return %arg0, %arg1, %c0_i32 : i32, i32, i32
  }
  func.func @transform_10(%arg0: i32, %arg1: i32) -> (i32, i32, i32) {
    %c0_i32 = arith.constant 0 : i32
    %c0_i32_0 = arith.constant 0 : i32
    return %arg0, %arg1, %c0_i32 : i32, i32, i32
  }
}

</mosaic_0001>

<bundles_post_ra>
// kernel: fasterrcnn_forward.1
= control target key start
LH: loop header
LB: loop body
LE: loop exit
PB: predicated region body
PF: predicated region fallthrough
CT: control target
= control target key end

     0   :  { %s13610_s0 = inlined_call_operand.vmem [shape: bf16[2,2,352,3], index: 0, kind: input, shape index: {}]   ;;  %s13611_s1 = inlined_call_operand.vmem [shape: bf16[27,32], index: 1, kind: input, shape index: {}]   ;;  %s13612_s2 = inlined_call_operand.vmem [shape: f32[1,32], index: 2, kind: input, shape index: {}]   ;;  %s13613_s3 = inlined_call_operand.vmem [shape: bf16[288,32], index: 3, kind: input, shape index: {}]   ;;  %s13614_s4 = inlined_call_operand.vmem [shape: f32[1,32], index: 4, kind: input, shape index: {}]   ;;  %s13615_s5 = inlined_call_operand.vmem [shape: bf16[288,32], index: 5, kind: input, shape index: {}]   ;;  %s13616_s6 = inlined_call_operand.vmem [shape: f32[1,32], index: 6, kind: input, shape index: {}]   ;;  %s13617_s7 = inlined_call_operand.vmem [shape: bf16[32,16], index: 7, kind: input, shape index: {}]   ;;  %s13618_s8 = inlined_call_operand.vmem [shape: f32[1,16], index: 8, kind: input, shape index: {}]   ;;  %s13619_s9 = inlined_call_operand.hbm [shape: bf16[2,256,32], index: 9, kind: output, shape index: {0}]   ;;  %s13620_s10 = inlined_call_operand.vmem [shape: f32[2,256,16], index: 10, kind: output, shape index: {1}]  }
   0x1   :  { %13754 = sst [smem:[#allocation38_spill]] %s13610_s0 }
   0x2   :  { %13755 = sst [smem:[#allocation39_spill]] %s13611_s1 }
   0x3   :  { %16 = vsyncpa [#allocation3], 0 }
   0x4   :  { %18 = vsyncpa [#allocation3 + $0x1], 0  ;;  %s7426_s13 = smov 0   ;;  %s7428_s14 = smov 0  }
   0x5   :  { %s7430_s15 = smov 0   ;;  %s7432_s16 = smov 0  }
   0x6   :  { %s7434_s17 = smov 0   ;;  %s7436_s18 = smov 0  }
   0x7   :  { %s7438_s19 = smov 0   ;;  %s7440_s20 = smov 0  }
   0x8 LB: > { %13756 = sst [smem:[#allocation5_spill]] %s7349_s19  ;;  %s6237_s21 = sadd.s32 4294967295, %s7353_s20   ;;  %s7353_s20 = sphi %s7440_s20, %s24_s20   ;;  %s7349_s19 = sphi %s7438_s19, %s14605_s19   ;;  %s7345_s18 = sphi %s7436_s18, %s14610_s18   ;;  %s7341_s17 = sphi %s7434_s17, %s14603_s17   ;;  %s7337_s16 = sphi %s7432_s16, %s14609_s16   ;;  %s7333_s15 = sphi %s7430_s15, %s14608_s15   ;;  %s7329_s14 = sphi %s7428_s14, %s14607_s14   ;;  %s7325_s13 = sphi %s7426_s13, %s14606_s13  }
   0x9   : > { %s6238_s22 = sadd.s32 4294967294, %s7353_s20   ;;  %s33_s23 = sadd.s32 1, %s7345_s18 }
   0xa   : > { %p34_p0 = scmp.ge.s32.totalorder %s33_s23, 2  ;;  %s36_s24 = sadd.s32 1, %s7349_s19 }
   0xb   : > { %p251_p1 = scmp.ne.s32.totalorder %s7333_s15, %s7329_s14  ;;  %p252_p2 = scmp.eq.s32.totalorder %s6237_s21, 3 }
   0xc   : > { %s14612_s23 = smov (%p34_p0, %s33_s23), 0  ;;  %s14614_s24 = smov (!%p34_p0, %s36_s24), %s7349_s19 }
   0xd   : > { %13757 = sst [smem:[#allocation6_spill]] %s14612_s23  ;;  %s237_s25 = ssub.s32 %s7345_s18, %s14612_s23 }
   0xe   : > { %p7477_p3 = por %p252_p2, %p251_p1  ;;  %p38_p4 = scmp.ge.s32.totalorder %s14614_s24, 2 }
   0xf   : > { %p257_p5 = scmp.ne.s32.totalorder %s7329_s14, %s7325_s13  ;;  %p258_p6 = scmp.eq.s32.totalorder %s6238_s22, 3 }
  0x10   : > { %p6241_p7 = scmp.ge.s32.totalorder %s7353_s20, 1  ;;  %s14616_s24 = smov (%p38_p4, %s14614_s24), 0 }
  0x11   : > { %13759 = sst [smem:[#allocation7_spill]] %s14616_s24  ;;  %p7486_p8 = por %p258_p6, %p257_p5 }
  0x12   : > { %p340_p9 = scmp.lt.s32.totalorder %s7353_s20, 5  ;;  %s236_s28 = ssub.s32 %s7349_s19, %s14616_s24 }
  0x13   : > { %s241_s29 = sadd.s32 1, %s7333_s15  ;;  %s238_s30 = sor.u32 %s237_s25, %s236_s28 }
  0x14   : > { %p341_p10 = pnand %p6241_p7, %p340_p9  ;;  %p239_p11 = scmp.eq.s32.totalorder %s238_s30, 0 }
  0x16   : > { %s7495_s11 = scalar_select %p239_p11, %s7333_s15, %s241_s29  }
  0x17   : > { %344 = sbr.rel (%p341_p10) target bundleno = 1651 (0x673), region = 56 }
  0x1e   : > { %p391_p12 = scmp.lt.s32.totalorder %s7341_s17, 1  ;;  %p393_p13 = scmp.lt.s32.totalorder %s7337_s16, 1  ;;  %vm13633_vm0 = vcmask 1046528   ;;  %vm13631_vm1 = vcmask 1040384   ;;  %vm13630_vm2 = vsmask.f32 7424 }
  0x1f   : > { %s13761_s0 = sld [smem:[#allocation38_spill]]  ;;  %s7358_s30 = smov 12   ;;  %vm13629_vm3 = vsmask.f32 256  ;;  %vm1081_vm4 = vcmask 1045504   ;;  %vm13628_vm6 = vcmask 1044480  }
  0x20   : > { %s7500_s12 = scalar_select %p391_p12, %s7341_s17, 1  ;;  %vm13632_vm5 = vsmask.f32 1280  ;;  %vm13679_vm7 = vmmov 0   ;;  %vm13635_vm8 = vcmask 23552   ;;  %vm13636_vm9 = vcmask 48128  }
  0x21   : > { %s394_s21 = scalar_select %p393_p13, %s7337_s16, 1  ;;  %vm13637_vm10 = vcmask 72704   ;;  %vm1443_vm11 = vcmask 97280   ;;  %vm1478_vm12 = vcmask 121856   ;;  %vm1513_vm13 = vcmask 146432  }
  0x22   : > { %s6964_s22 = smul.u32 88, %s7500_s12  ;;  %s13624_s25 = smov 21   ;;  %vm1548_vm14 = vcmask 171008   ;;  %vm13634_vm15 = vcmask 195584  }
  0x23   : > { %s6963_s23 = smul.u32 44, %s394_s21  ;;  %s7359_s21 = smov 3  }
  0x24   : > { %s13626_s28 = smov 24   ;;  %s13762_s1 = sld [smem:[#allocation39_spill]] }
  0x25   : > { %s397_s24 = sadd.s32 %s6964_s22, %s6963_s23  ;;  %s7355_s23 = smov 15  }
  0x26   : > { %s6243_s19 = sshll.u32 %s397_s24, 2  ;;  %s7357_s24 = smov 9  }
  0x27   : > { %s7507_s29 = scalar_lea.vmem %s13761_s0, %s6243_s19  ;;  %s7356_s19 = smov 6  }
  0x28   : > { %v417_v0 = vld [vmem:[%s7507_s29 + $0x1c] sm:$0xf]  ;;  %v418_v1 = vld [vmem:[%s7507_s29 + $0x20] sm:$0xf]  ;;  %v415_v3 = vld [vmem:[%s7507_s29 + $0x14] sm:$0xf] }
  0x29   : > { %v7511_v2 = vcombine.low %v417_v0, %v418_v1  ;;  %v416_v4 = vld [vmem:[%s7507_s29 + $0x18] sm:$0xf]  ;;  %v414_v5 = vld [vmem:[%s7507_s29 + $0x10] sm:$0xf]  ;;  %v7523_v9 = vld [vmem:[%s7507_s29 + $0x8] sm:$0xff]   ;;  %s7360_s22 = smov 18  }
  0x2a   : > { %v7518_v6 = vcombine.low %v416_v4, %v417_v0  ;;  %v6265_v7 = vcombine.low %v415_v3, %v416_v4  ;;  %v7520_v8 = vcombine.low %v414_v5, %v415_v3  ;;  %v419_v10 = vld [vmem:[%s7507_s29 + $0x24] sm:$0xf]  ;;  %v420_v11 = vld [vmem:[%s7507_s29 + $0x28] sm:$0xf]  ;;  %v421_v13 = vld [vmem:[%s7507_s29 + $0x2c] sm:$0xf] }
  0x2b   : > { %1041 = vrot.lane.b32.xlu1 %v7511_v2, %s7355_s23  ;;  %v878_v12 = vshrl.u32 %v7511_v2, 16  ;;  %v711_v15 = vrot.slane %v7523_v9, 1  ;;  %v539_v20 = vshrl.u32 %v7523_v9, 16  ;;  %v541_v21 = vshll.u32 %v7523_v9, 16  ;;  %v7544_v29 = vld [vmem:[%s7507_s29 + $0x30] sm:$0xf] }
  0x2c   : > { %1039 = vrot.lane.b32.xlu0 %v6265_v7, %s7355_s23  ;;  %v802_v14 = vrot.slane %v6265_v7, 7  ;;  %v712_v16 = vrot.slane %v7520_v8, 1  ;;  %v871_v17 = vshrl.u32 %v6265_v7, 16  ;;  %v874_v18 = vshll.u32 %v6265_v7, 16  ;;  %v423_v4 = vld [vmem:[%s7507_s29 + $0x34] sm:$0xf] }
  0x2d   : > { %v714_v19 = vrot.slane %v7518_v6, 1  ;;  %v546_v24 = vshll.u32 %v7520_v8, 16  ;;  %v7537_v25 = vcombine.low %v418_v1, %v419_v10  ;;  %v7539_v26 = vcombine.low %v420_v11, %v421_v13  ;;  %s6478_s0 = sshll.u32 %s7341_s17, 5  ;;  %s14601_s17 = sand.u32 1, %s7329_s14  }
  0x2e   : > { %v713_v22 = vsel %vm13633_vm0, %v711_v15, %v712_v16  ;;  %v873_v23 = vrot.slane %v871_v17, 7  ;;  %v803_v27 = vrot.slane %v7511_v2, 7  ;;  %v543_v28 = vrot.slane %v541_v21, 1 }
  0x2f   : > { %746 = vrot.lane.b32.xlu1 %v713_v22, %s7356_s19  ;;  %v715_v31 = vsel %vm13633_vm0, %v712_v16, %v714_v19  ;;  %v7550_v32 = vrot.slane %v878_v12, 7  ;;  %v881_v33 = vshll.u32 %v7511_v2, 16  ;;  %v548_v35 = vrot.slane %v546_v24, 1 }
  0x30   : > { %835 = vrot.lane.b32.xlu0 %v802_v14, %s7357_s24  ;;  %v876_v30 = vor.u32 %v874_v18, %v873_v23  ;;  %v544_v34 = vor.u32 %v543_v28, %v539_v20  ;;  %v550_v36 = vshrl.u32 %v7520_v8, 16  ;;  %v554_v37 = vshll.u32 %v7518_v6, 16 }
  0x31   : > { %v7555_v38 = vcombine.low %v419_v10, %v420_v11  ;;  %v7558_v39 = vcombine.low %v421_v13, %v7544_v29  ;;  %v562_v40 = vshll.u32 %v7537_v25, 16  ;;  %v566_v41 = vshrl.u32 %v7537_v25, 16  ;;  %v424_v10 = vld [vmem:[%s7507_s29 + $0x38] sm:$0xf] }
  0x32   : > { %v804_v42 = vsel %vm13631_vm1, %v802_v14, %v803_v27  ;;  %v883_v43 = vor.u32 %v881_v33, %v7550_v32  ;;  %v570_v44 = vshll.u32 %v7539_v26, 16  ;;  %v574_v45 = vshrl.u32 %v7539_v26, 16 }
  0x33   : > { %748 = vrot.lane.b32.xlu1 %v715_v31, %s7356_s19  ;;  %v549_v46 = vsel %vm13630_vm2, %v544_v34, %v548_v35  ;;  %v552_v47 = vor.u32 %v550_v36, %v548_v35  ;;  %v556_v48 = vrot.slane %v554_v37, 1  ;;  %v1083_v49 = vrot.slane %v7555_v38, 2  ;;  %v426_v35 = vld [vmem:[%s7507_s29 + $0x40] sm:$0xf] }
  0x34   : > { %1005 = vrot.lane.b32.xlu0 %v876_v30, %s7358_s30  ;;  %v1085_v50 = vrot.slane %v7558_v39, 2  ;;  %v1155_v51 = vrot.slane %v566_v41, 6  ;;  %v1156_v52 = vrot.slane %v562_v40, 7  ;;  %v884_v53 = vsel %vm13629_vm3, %v873_v23, %v883_v43 }
  0x35   : > { %v1158_v54 = vrot.slane %v574_v45, 6  ;;  %v1159_v55 = vrot.slane %v570_v44, 7  ;;  %v557_v56 = vsel %vm13630_vm2, %v552_v47, %v556_v48  ;;  %v1082_v57 = vrot.slane %v7511_v2, 2  ;;  %v425_v2 = vld [vmem:[%s7507_s29 + $0x3c] sm:$0xf] }
  0x36   : > { %v1086_v58 = vsel %vm1081_vm4, %v1083_v49, %v1085_v50  ;;  %v1157_v59 = vor.u32 %v1156_v52, %v1155_v51  ;;  %v1271_v63 = vrot.slane %v7537_v25, 7  ;;  %v1272_v0 = vrot.slane %v7539_v26, 7 }
  0x37   : > { %837 = vrot.lane.b32.xlu1 %v804_v42, %s7357_s24  ;;  %v1160_v60 = vor.u32 %v1159_v55, %v1158_v54  ;;  %v1084_v61 = vsel %vm1081_vm4, %v1082_v57, %v1083_v49  ;;  %v886_v1 = vshrl.u32 %v7555_v38, 16  ;;  %v558_v3 = vshrl.u32 %v7518_v6, 16  ;;  %v7198_v57 = vld [vmem:[%s13762_s1] sm:$0xff]  }
  0x38   : > { %673 = vrot.lane.b32.xlu0 %v549_v46, %s7359_s21  ;;  %v564_v5 = vrot.slane %v562_v40, 1  ;;  %v716_v7 = vrot.slane %v7537_v25, 1  ;;  %v1273_v11 = vsel %vm13631_vm1, %v1271_v63, %v1272_v0  ;;  %v889_v13 = vshll.u32 %v7555_v38, 16 }
  0x39   : > { %v1161_v62 = vsel %vm13632_vm5, %v1157_v59, %v1160_v60  ;;  %v888_v12 = vrot.slane %v886_v1, 7  ;;  %v560_v14 = vor.u32 %v558_v3, %v556_v48  ;;  %v7603_v15 = vcombine.low %v7544_v29, %v423_v4  ;;  %v7199_v3 = vld [vmem:[%s13762_s1 + $0x8] sm:$0x3f]  }
  0x3a   : > { %v717_v16 = vsel %vm13633_vm0, %v714_v19, %v716_v7  ;;  %v805_v17 = vrot.slane %v7555_v38, 7  ;;  %v7611_v20 = vcombine.low %v423_v4, %v424_v10  ;;  %v894_v33 = vshrl.u32 %v7558_v39, 16 }
  0x3b   : > { %1007 = vrot.lane.b32.xlu1 %v884_v53, %s7358_s30  ;;  %v891_v18 = vor.u32 %v889_v13, %v888_v12  ;;  %v565_v21 = vsel %vm13630_vm2, %v560_v14, %v564_v5  ;;  %v578_v22 = vshll.u32 %v7603_v15, 16  ;;  %v582_v23 = vshrl.u32 %v7603_v15, 16 }
  0x3c   : > { %675 = vrot.lane.b32.xlu0 %v557_v56, %s7359_s21  ;;  %v1087_v24 = vrot.slane %v7611_v20, 2  ;;  %v806_v28 = vsel %vm13631_vm1, %v803_v27, %v805_v17  ;;  %v718_v27 = vrot.slane %v7539_v26, 1  ;;  %v7640_v37 = vrot.slane %v894_v33, 7 }
  0x3d   : > { %v892_v19 = vsel %vm13629_vm3, %v7550_v32, %v891_v18  ;;  %v1162_v29 = vrot.slane %v582_v23, 6  ;;  %v1163_v30 = vrot.slane %v578_v22, 7  ;;  %v1274_v32 = vrot.slane %v7603_v15, 7 }
  0x3e   : > { %v1088_v31 = vsel %vm1081_vm4, %v1085_v50, %v1087_v24  ;;  %v897_v40 = vshll.u32 %v7558_v39, 16  ;;  %v568_v43 = vor.u32 %v566_v41, %v564_v5  ;;  %v572_v46 = vrot.slane %v570_v44, 1 }
  0x3f   : > { %1119 = vrot.lane.b32.xlu1 %v1086_v58, %s7360_s22  ;;  %v1164_v34 = vor.u32 %v1163_v30, %v1162_v29  ;;  %v1275_v36 = vsel %vm13631_vm1, %v1272_v0, %v1274_v32  ;;  %v7648_v47 = vcombine.low %v424_v10, %v425_v2  ;;  %v7651_v48 = vcombine.low %v425_v2, %v426_v35 }
  0x40   : > { %1117 = vrot.lane.b32.xlu0 %v1084_v61, %s7360_s22  ;;  %v899_v49 = vor.u32 %v897_v40, %v7640_v37  ;;  %v573_v50 = vsel %vm13630_vm2, %v568_v43, %v572_v46  ;;  %v807_v51 = vrot.slane %v7558_v39, 7  ;;  %v576_v0 = vor.u32 %v574_v45, %v572_v46 }
  0x41   : > { %v1165_v42 = vsel %vm13632_vm5, %v1160_v60, %v1164_v34  ;;  %v586_v41 = vshll.u32 %v7648_v47, 16  ;;  %v590_v44 = vshrl.u32 %v7648_v47, 16  ;;  %v1089_v52 = vrot.slane %v7651_v48, 2 }
  0x42   : > { %v900_v53 = vsel %vm13629_vm3, %v888_v12, %v899_v49  ;;  %v808_v54 = vsel %vm13631_vm1, %v805_v17, %v807_v51  ;;  %v902_v60 = vshrl.u32 %v7611_v20, 16  ;;  %v720_v1 = vrot.slane %v7603_v15, 1 }
  0x43   : > { %1239 = vrot.lane.b32.xlu1 %v1161_v62, %s13624_s25  ;;  %v1166_v55 = vrot.slane %v590_v44, 6  ;;  %v1167_v56 = vrot.slane %v586_v41, 7  ;;  %v1090_v58 = vsel %vm1081_vm4, %v1087_v24, %v1089_v52  ;;  %v427_v62 = vld [vmem:[%s7507_s29 + $0x44] sm:$0xf]  ;;  %v580_v10 = vrot.slane %v578_v22, 1 }
  0x44   : > { %1237 = vrot.lane.b32.xlu0 %v1157_v59, %s13624_s25  ;;  %v1276_v59 = vrot.slane %v7648_v47, 7  ;;  %v904_v5 = vrot.slane %v902_v60, 7  ;;  %v7695_v12 = vcombine.low %v426_v35, %v427_v62  ;;  %v7364_v13 = vmov 65535  }
  0x45   : > { %v1168_v61 = vor.u32 %v1167_v56, %v1166_v55  ;;  %v1830_v14 = vsel %vm13628_vm6, 4294967295, %v7364_v13  ;;  %v721_v17 = vsel %vm13633_vm0, %v718_v27, %v720_v1  ;;  %v581_v22 = vsel %vm13630_vm2, %v576_v0, %v580_v10 }
  0x46   : > { %v1277_v4 = vsel %vm13631_vm1, %v1274_v32, %v1276_v59  ;;  %v594_v24 = vshll.u32 %v7695_v12, 16  ;;  %v1278_v2 = vrot.slane %v7695_v12, 7  ;;  %v722_v40 = vrot.slane %v7648_v47, 1 }
  0x47   : > { %1306 = vrot.lane.b32.xlu1 %v1273_v11, %s13626_s28  ;;  %v1169_v45 = vsel %vm13632_vm5, %v1164_v34, %v1168_v61  ;;  %v428_v11 = vld [vmem:[%s7507_s29 + $0x48] sm:$0xf]  ;;  %v913_v43 = vshll.u32 %v7651_v48, 16  ;;  %v588_v49 = vrot.slane %v586_v41, 1  ;;  %v811_v55 = vrot.slane %v7651_v48, 7 }
  0x48   : > { %1304 = vrot.lane.b32.xlu0 %v1271_v63, %s13626_s28  ;;  %v13639_v63 = vmov 0.0   ;;  %v1171_v33 = vrot.slane %v594_v24, 7  ;;  %v596_v13 = vrot.slane %v594_v24, 1  ;;  %vm1629_vm6 = vsmask.f32 6400 }
  0x49   : > { %6747 = vmatprep.subr.bf16.mxu0 %v13639_v63  ;;  %6751 = vmatprep.mubr.msk.bf16.mxu0 %vm13679_vm7, %v13639_v63 }
  0x4a   : > { %6748 = vmatpush3.bf16.msra.mxu0 %v7198_v57 }
  0x4b   : > { %750 = vrot.lane.b32.xlu1 %v717_v16, %s7356_s19  ;;  %6749 = vmatprep.subr.bf16.mxu0 %v13639_v63 }
  0x4c   : > { %677 = vrot.lane.b32.xlu0 %v565_v21, %s7359_s21  ;;  %v7704_v21 = vcombine.low %v427_v62, %v428_v11 }
  0x4e   : > { %v1091_v30 = vrot.slane %v7704_v21, 2  ;;  %v918_v0 = vshrl.u32 %v7704_v21, 16 }
  0x4f   : > { %1009 = vrot.lane.b32.xlu1 %v892_v19, %s7358_s30  ;;  %v809_v19 = vrot.slane %v7611_v20, 7 }
  0x50   : > { %839 = vrot.lane.b32.xlu0 %v806_v28, %s7357_s24  ;;  %v598_v28 = vshrl.u32 %v7695_v12, 16  ;;  %v1092_v34 = vsel %vm1081_vm4, %v1089_v52, %v1091_v30 }
  0x52   : > { %v1170_v32 = vrot.slane %v598_v28, 6 }
  0x53   : > { %1121 = vrot.lane.b32.xlu1 %v1088_v31, %s7360_s22  ;;  %v810_v31 = vsel %vm13631_vm1, %v807_v51, %v809_v19 }
  0x54   : > { %1043 = vrot.lane.b32.xlu0 %v7555_v38, %s7355_s23  ;;  %v719_v38 = vsel %vm13633_vm0, %v716_v7, %v718_v27  ;;  %v905_v7 = vshll.u32 %v7611_v20, 16  ;;  %v910_v27 = vshrl.u32 %v7651_v48, 16  ;;  %v1172_v35 = vor.u32 %v1171_v33, %v1170_v32 }
  0x56   : > { %v907_v18 = vor.u32 %v905_v7, %v904_v5  ;;  %v1173_v46 = vsel %vm13632_vm5, %v1168_v61, %v1172_v35  ;;  %v920_v7 = vrot.slane %v918_v0, 7 }
  0x57   : > { %1308 = vrot.lane.b32.xlu1 %v1275_v36, %s13626_s28  ;;  %s13764_s28 = smov 21   ;;  %v429_v36 = vld [vmem:[%s7507_s29 + $0x4c] sm:$0xf] }
  0x58   : > { %1241 = vrot.lane.b32.xlu0 %v1165_v42, %s13624_s25  ;;  %s13763_s25 = smov 24   ;;  %v908_v29 = vsel %vm13629_vm3, %v7640_v37, %v907_v18  ;;  %v1279_v37 = vsel %vm13631_vm1, %v1276_v59, %v1278_v2  ;;  %v912_v42 = vrot.slane %v910_v27, 7  ;;  %v7736_v51 = vcombine.low %v428_v11, %v429_v36 }
  0x59   : > { %v592_v11 = vor.u32 %v590_v44, %v588_v49 }
  0x5a   : > { %v915_v52 = vor.u32 %v913_v43, %v912_v42  ;;  %v606_v41 = vshrl.u32 %v7736_v51, 16  ;;  %v1280_v62 = vrot.slane %v7736_v51, 7 }
  0x5b   : > { %752 = vrot.lane.b32.xlu1 %v719_v38, %s7356_s19  ;;  %v584_v38 = vor.u32 %v582_v23, %v580_v10  ;;  %v602_v23 = vshll.u32 %v7736_v51, 16  ;;  %v597_v18 = vsel %vm13630_vm2, %v592_v11, %v596_v13 }
  0x5c   : > { %679 = vrot.lane.b32.xlu0 %v573_v50, %s7359_s21  ;;  %v430_v50 = vld [vmem:[%s7507_s29 + $0x50] sm:$0xf]  ;;  %v916_v56 = vsel %vm13629_vm3, %v904_v5, %v915_v52  ;;  %v1174_v59 = vrot.slane %v606_v41, 6  ;;  %v724_v5 = vrot.slane %v7695_v12, 1 }
  0x5d   : > { %v1175_v60 = vrot.slane %v602_v23, 7 }
  0x5f   : > { %1011 = vrot.lane.b32.xlu1 %v900_v53, %s7358_s30  ;;  %v7741_v53 = vcombine.low %v429_v36, %v430_v50 }
  0x60   : > { %841 = vrot.lane.b32.xlu0 %v808_v54, %s7357_s24  ;;  %v589_v54 = vsel %vm13630_vm2, %v584_v38, %v588_v49  ;;  %v604_v38 = vrot.slane %v602_v23, 1  ;;  %v434_v49 = vld [vmem:[%s7507_s29 + $0x60] sm:$0xf] }
  0x61   : > { %v1093_v57 = vrot.slane %v7741_v53, 2 }
  0x63   : > { %1123 = vrot.lane.b32.xlu1 %v1090_v58, %s7360_s22  ;;  %v812_v58 = vsel %vm13631_vm1, %v809_v19, %v811_v55  ;;  %v1094_v61 = vsel %vm1081_vm4, %v1091_v30, %v1093_v57 }
  0x64   : > { %1045 = vrot.lane.b32.xlu0 %v7558_v39, %s7355_s23  ;;  %v1831_v39 = vsel %vm1081_vm4, %v1830_v14, 0  ;;  %v432_v14 = vld [vmem:[%s7507_s29 + $0x58] sm:$0xf] }
  0x65   : > { %v1833_v16 = vand.u32 %v7199_v3, %v1831_v39  ;;  %v431_v3 = vld [vmem:[%s7507_s29 + $0x54] sm:$0xf] }
  0x66   : > { %v7770_v39 = vcombine.low %v430_v50, %v431_v3 }
  0x67   : > { %1310 = vrot.lane.b32.xlu1 %v1277_v4, %s13763_s25  ;;  %6750 = vmatpush3.bf16.msra.mxu0 %v1833_v16  ;;  %v1281_v4 = vsel %vm13631_vm1, %v1278_v2, %v1280_v62  ;;  %v926_v2 = vshrl.u32 %v7741_v53, 16 }
  0x68   : > { %1243 = vrot.lane.b32.xlu0 %v1169_v45, %s13764_s28  ;;  %v921_v45 = vshll.u32 %v7704_v21, 16  ;;  %v610_v44 = vshll.u32 %v7770_v39, 16  ;;  %v614_v19 = vshrl.u32 %v7770_v39, 16  ;;  %v728_v11 = vrot.slane %v7770_v39, 1 }
  0x6a   : > { %v923_v16 = vor.u32 %v921_v45, %v920_v7  ;;  %v1179_v32 = vrot.slane %v610_v44, 7  ;;  %v435_v45 = vld [vmem:[%s7507_s29 + $0x64] sm:$0xf] }
  0x6b   : > { %754 = vrot.lane.b32.xlu1 %v721_v17, %s7356_s19  ;;  %v7775_v17 = vcombine.low %v431_v3, %v432_v14 }
  0x6c   : > { %681 = vrot.lane.b32.xlu0 %v581_v22, %s7359_s21  ;;  %v813_v22 = vrot.slane %v7704_v21, 7  ;;  %v924_v24 = vsel %vm13629_vm3, %v912_v42, %v923_v16  ;;  %v929_v42 = vshll.u32 %v7741_v53, 16 }
  0x6d   : > { %v934_v3 = vshrl.u32 %v7775_v17, 16 }
  0x6e   : > { %v814_v30 = vsel %vm13631_vm1, %v811_v55, %v813_v22  ;;  %v815_v55 = vrot.slane %v7741_v53, 7 }
  0x6f   : > { %1013 = vrot.lane.b32.xlu1 %v908_v29, %s7358_s30  ;;  %v1095_v29 = vrot.slane %v7775_v17, 2 }
  0x70   : > { %843 = vrot.lane.b32.xlu0 %v810_v31, %s7357_s24  ;;  %v1178_v31 = vrot.slane %v614_v19, 6 }
  0x71   : > { %v1096_v33 = vsel %vm1081_vm4, %v1093_v57, %v1095_v29 }
  0x72   : > { %v1180_v27 = vor.u32 %v1179_v32, %v1178_v31 }
  0x73   : > { %1125 = vrot.lane.b32.xlu1 %v1092_v34, %s7360_s22  ;;  %v1282_v34 = vrot.slane %v7770_v39, 7 }
  0x74   : > { %1047 = vrot.lane.b32.xlu0 %v7611_v20, %s7355_s23  ;;  %v723_v20 = vsel %vm13633_vm0, %v720_v1, %v722_v40  ;;  %v1176_v1 = vor.u32 %v1175_v60, %v1174_v59  ;;  %v816_v59 = vsel %vm13631_vm1, %v813_v22, %v815_v55  ;;  %v436_v22 = vld [vmem:[%s7507_s29 + $0x68] sm:$0xf] }
  0x75   : > { %v1283_v36 = vsel %vm13631_vm1, %v1280_v62, %v1282_v34  ;;  %v7866_v32 = vcombine.low %v435_v45, %v436_v22 }
  0x76   : > { %v1177_v10 = vsel %vm13632_vm5, %v1172_v35, %v1176_v1  ;;  %v433_v35 = vld [vmem:[%s7507_s29 + $0x5c] sm:$0xf]  ;;  %v1181_v43 = vsel %vm13632_vm5, %v1176_v1, %v1180_v27 }
  0x77   : > { %1312 = vrot.lane.b32.xlu1 %v1279_v37, %s13763_s25  ;;  %v726_v37 = vrot.slane %v7736_v51, 1  ;;  %v7808_v50 = vcombine.low %v432_v14, %v433_v35  ;;  %v7814_v52 = vcombine.low %v433_v35, %v434_v49  ;;  %v937_v14 = vshll.u32 %v7775_v17, 16 }
  0x78   : > { %1245 = vrot.lane.b32.xlu0 %v1173_v46, %s13764_s28  ;;  %v600_v46 = vor.u32 %v598_v28, %v596_v13  ;;  %v7848_v13 = vrot.slane %v934_v3, 7  ;;  %v437_v3 = vld [vmem:[%s7507_s29 + $0x6c] sm:$0xf] }
  0x79   : > { %v618_v28 = vshll.u32 %v7808_v50, 16  ;;  %v622_v23 = vshrl.u32 %v7808_v50, 16  ;;  %v1284_v1 = vrot.slane %v7808_v50, 7 }
  0x7a   : > { %v939_v31 = vor.u32 %v937_v14, %v7848_v13 }
  0x7b   : > { %756 = vrot.lane.b32.xlu1 %v723_v20, %s7356_s19  ;;  %v1182_v60 = vrot.slane %v622_v23, 6 }
  0x7c   : > { %683 = vrot.lane.b32.xlu0 %v589_v54, %s7359_s21  ;;  %v605_v54 = vsel %vm13630_vm2, %v600_v46, %v604_v38 }
  0x7f   : > { %1015 = vrot.lane.b32.xlu1 %v916_v56, %s7358_s30 }
  0x80   : > { %845 = vrot.lane.b32.xlu0 %v812_v58, %s7357_s24  ;;  %v1097_v58 = vrot.slane %v7814_v52, 2 }
  0x82   : > { %v1098_v0 = vsel %vm1081_vm4, %v1095_v29, %v1097_v58 }
  0x83   : > { %1127 = vrot.lane.b32.xlu1 %v1094_v61, %s7360_s22  ;;  %v1183_v61 = vrot.slane %v618_v28, 7 }
  0x84   : > { %1049 = vrot.lane.b32.xlu0 %v7651_v48, %s7355_s23  ;;  %v725_v48 = vsel %vm13633_vm0, %v722_v40, %v724_v5  ;;  %v7801_v40 = vrot.slane %v926_v2, 7 }
  0x86   : > { %v931_v20 = vor.u32 %v929_v42, %v7801_v40 }
  0x87   : > { %1314 = vrot.lane.b32.xlu1 %v1281_v4, %s13763_s25 }
  0x88   : > { %1247 = vrot.lane.b32.xlu0 %v1177_v10, %s13764_s28  ;;  %v932_v57 = vsel %vm13629_vm3, %v920_v7, %v931_v20  ;;  %v1285_v10 = vsel %vm13631_vm1, %v1282_v34, %v1284_v1 }
  0x8b   : > { %758 = vrot.lane.b32.xlu1 %v725_v48, %s7356_s19 }
  0x8c   : > { %685 = vrot.lane.b32.xlu0 %v597_v18, %s7359_s21  ;;  %v608_v18 = vor.u32 %v606_v41, %v604_v38 }
  0x8f   : > { %1017 = vrot.lane.b32.xlu1 %v924_v24, %s7358_s30  ;;  %v7858_v24 = vcombine.low %v434_v49, %v435_v45  ;;  %v730_v45 = vrot.slane %v7808_v50, 1 }
  0x90   : > { %847 = vrot.lane.b32.xlu0 %v814_v30, %s7357_s24  ;;  %v729_v30 = vsel %vm13633_vm0, %v726_v37, %v728_v11 }
  0x91   : > { %v626_v34 = vshll.u32 %v7858_v24, 16  ;;  %v630_v2 = vshrl.u32 %v7858_v24, 16 }
  0x93   : > { %1129 = vrot.lane.b32.xlu1 %v1096_v33, %s7360_s22  ;;  %v817_v33 = vrot.slane %v7775_v17, 7  ;;  %v1186_v46 = vrot.slane %v630_v2, 6  ;;  %v1187_v38 = vrot.slane %v626_v34, 7 }
  0x94   : > { %1051 = vrot.lane.b32.xlu0 %v7704_v21, %s7355_s23  ;;  %v727_v21 = vsel %vm13633_vm0, %v724_v5, %v726_v37  ;;  %v7838_v5 = vor.u32 %v1183_v61, %v1182_v60  ;;  %v1099_v37 = vrot.slane %v7866_v32, 2 }
  0x95   : > { %v7898_v60 = vor.u32 %v1187_v38, %v1186_v46 }
  0x96   : > { %v1185_v16 = vsel %vm13632_vm5, %v1180_v27, %v7838_v5  ;;  %v1100_v20 = vsel %vm1081_vm4, %v1097_v58, %v1099_v37 }
  0x97   : > { %1316 = vrot.lane.b32.xlu1 %v1283_v36, %s13763_s25  ;;  %v940_v36 = vsel %vm13629_vm3, %v7801_v40, %v939_v31 }
  0x98   : > { %1249 = vrot.lane.b32.xlu0 %v1181_v43, %s13764_s28  ;;  %v818_v43 = vsel %vm13631_vm1, %v815_v55, %v817_v33  ;;  %v942_v55 = vshrl.u32 %v7814_v52, 16 }
  0x9b   : > { %760 = vrot.lane.b32.xlu1 %v727_v21, %s7356_s19 }
  0x9c   : > { %687 = vrot.lane.b32.xlu0 %v605_v54, %s7359_s21  ;;  %v1286_v54 = vrot.slane %v7858_v24, 7 }
  0x9d   : > { %v7822_v56 = vpop.permute.xlu1 %1041 }
  0x9e   : > { %v7831_v62 = vpop.permute.xlu0 %1039 }
  0x9f   : > { %1019 = vrot.lane.b32.xlu1 %v932_v57, %s7358_s30 }
  0xa0   : > { %849 = vrot.lane.b32.xlu0 %v816_v59, %s7357_s24 }
  0xa1   : > { %v747_v4 = vpop.permute.xlu1 %746 }
  0xa2   : > { %v836_v7 = vpop.permute.xlu0 %835 }
  0xa3   : > { %1131 = vrot.lane.b32.xlu1 %v1098_v0, %s7360_s22 }
  0xa4   : > { %1053 = vrot.lane.b32.xlu0 %v7741_v53, %s7355_s23  ;;  %v612_v53 = vrot.slane %v610_v44, 1 }
  0xa5   : > { %v749_v48 = vpop.permute.xlu1 %748 }
  0xa6   : > { %v1006_v29 = vpop.permute.xlu0 %1005  ;;  %v613_v44 = vsel %vm13630_vm2, %v608_v18, %v612_v53  ;;  %v616_v58 = vor.u32 %v614_v19, %v612_v53  ;;  %v945_v19 = vshll.u32 %v7814_v52, 16  ;;  %v7928_v18 = vld [vmem:[%s7507_s29 + $0x70] sm:$0xf]  ;;  %v7930_v53 = vcombine.low %v436_v22, %v437_v3 }
  0xa7   : > { %1318 = vrot.lane.b32.xlu1 %v1285_v10, %s13763_s25  ;;  %v7918_v10 = vrot.slane %v942_v55, 7 }
  0xa8   : > { %1251 = vrot.lane.b32.xlu0 %v1185_v16, %s13764_s28  ;;  %v1189_v16 = vsel %vm13632_vm5, %v7838_v5, %v7898_v60  ;;  %v819_v5 = vrot.slane %v7814_v52, 7 }
  0xa9   : > { %v838_v41 = vpop.permute.xlu1 %837  ;;  %v947_v31 = vor.u32 %v945_v19, %v7918_v10 }
  0xaa   : > { %v674_v27 = vpop.permute.xlu0 %673 }
  0xab   : > { %762 = vrot.lane.b32.xlu1 %v729_v30, %s7356_s19  ;;  %v1340_v35 = vsel %vm13635_vm8, %v7523_v9, %v674_v27 }
  0xac   : > { %689 = vrot.lane.b32.xlu0 %v613_v44, %s7359_s21  ;;  %v1375_v9 = vsel %vm13636_vm9, %v1340_v35, %v747_v4  ;;  %v7908_v4 = vrot.slane %v618_v28, 1 }
  0xad   : > { %v1008_v42 = vpop.permute.xlu1 %1007 }
  0xae   : > { %v676_v49 = vpop.permute.xlu0 %675  ;;  %v621_v30 = vsel %vm13630_vm2, %v616_v58, %v7908_v4 }
  0xaf   : > { %v1342_v40 = vsel %vm13635_vm8, %v7520_v8, %v676_v49  ;;  %1021 = vrot.lane.b32.xlu1 %v940_v36, %s7358_s30  ;;  %v1410_v8 = vsel %vm13637_vm10, %v1375_v9, %v836_v7  ;;  %v1287_v7 = vsel %vm13631_vm1, %v1284_v1, %v1286_v54  ;;  %v638_v36 = vshrl.u32 %v7930_v53, 16 }
  0xb0   : > { %v1377_v21 = vsel %vm13636_vm9, %v1342_v40, %v749_v48  ;;  %851 = vrot.lane.b32.xlu0 %v818_v43, %s7357_s24  ;;  %v1445_v14 = vsel %vm1443_vm11, %v1410_v8, %v1006_v29  ;;  %v820_v9 = vsel %vm13631_vm1, %v817_v33, %v819_v5 }
  0xb1   : > { %v1412_v57 = vsel %vm13637_vm10, %v1377_v21, %v838_v41  ;;  %v1120_v59 = vpop.permute.xlu1 %1119  ;;  %v1480_v22 = vsel %vm1478_vm12, %v1445_v14, %v7831_v62  ;;  %v7947_v41 = vcombine.low %v437_v3, %v7928_v18  ;;  %v950_v14 = vshrl.u32 %v7866_v32, 16 }
  0xb2   : > { %v1447_v61 = vsel %vm1443_vm11, %v1412_v57, %v1008_v42  ;;  %v1118_v0 = vpop.permute.xlu0 %1117 }
  0xb3   : > { %1133 = vrot.lane.b32.xlu1 %v1100_v20, %s7360_s22  ;;  %v1482_v28 = vsel %vm1478_vm12, %v1447_v61, %v7822_v56  ;;  %v731_v56 = vsel %vm13633_vm0, %v728_v11, %v730_v45  ;;  %v1515_v44 = vsel %vm1513_vm13, %v1480_v22, %v1118_v0  ;;  %v634_v11 = vshll.u32 %v7930_v53, 16 }
  0xb4   : > { %1055 = vrot.lane.b32.xlu0 %v7775_v17, %s7355_s23  ;;  %v1517_v29 = vsel %vm1513_vm13, %v1482_v28, %v1120_v59  ;;  %v948_v20 = vsel %vm13629_vm3, %v7848_v13, %v947_v31  ;;  %v1101_v55 = vrot.slane %v7947_v41, 2  ;;  %v1190_v61 = vrot.slane %v638_v36, 6 }
  0xb5   : > { %v1240_v48 = vpop.permute.xlu1 %1239  ;;  %v1191_v17 = vrot.slane %v634_v11, 7  ;;  %vm13638_vm3 = vcmask 220160   ;;  %v1288_v28 = vrot.slane %v7930_v53, 7  ;;  %v732_v22 = vrot.slane %v7858_v24, 1 }
  0xb6   : > { %v1238_v1 = vpop.permute.xlu0 %1237  ;;  %v1552_v27 = vsel %vm1548_vm14, %v1517_v29, %v1240_v48  ;;  %v1102_v19 = vsel %vm1081_vm4, %v1099_v37, %v1101_v55  ;;  %v8000_v31 = vrot.slane %v950_v14, 7 }
  0xb7   : > { %1320 = vrot.lane.b32.xlu1 %v1287_v7, %s13763_s25  ;;  %v1550_v42 = vsel %vm1548_vm14, %v1515_v44, %v1238_v1  ;;  %v1289_v37 = vsel %vm13631_vm1, %v1286_v54, %v1288_v28  ;;  %v953_v44 = vshll.u32 %v7866_v32, 16  ;;  %v628_v54 = vrot.slane %v626_v34, 1 }
  0xb8   : > { %1253 = vrot.lane.b32.xlu0 %v1189_v16, %s13764_s28  ;;  %v7983_v16 = vor.u32 %v1191_v17, %v1190_v61  ;;  %v821_v34 = vrot.slane %v7866_v32, 7 }
  0xb9   : > { %v1307_v35 = vpop.permute.xlu1 %1306 }
  0xba   : > { %v1587_v62 = vsel %vm13634_vm15, %v1552_v27, %v1307_v35  ;;  %v1305_v43 = vpop.permute.xlu0 %1304  ;;  %v1193_v35 = vsel %vm13632_vm5, %v7898_v60, %v7983_v16  ;;  %v955_v60 = vor.u32 %v953_v44, %v8000_v31 }
  0xbb   : > { %v1637_v46 = vshrl.u32 %v1587_v62, 16  ;;  %v1640_v38 = vshll.u32 %v1587_v62, 16  ;;  %v1585_v49 = vsel %vm13634_vm15, %v1550_v42, %v1305_v43  ;;  %764 = vrot.lane.b32.xlu1 %v731_v56, %s7356_s19  ;;  %v439_v56 = vld [vmem:[%s7507_s29 + $0x74] sm:$0xf]  ;;  %v624_v42 = vor.u32 %v622_v23, %v7908_v4  ;;  %v440_v62 = vld [vmem:[%s7507_s29 + $0x78] sm:$0xf] }
  0xbc   : > { %v1630_v40 = vshrl.u32 %v1585_v49, 16  ;;  %v1633_v21 = vshll.u32 %v1585_v49, 16  ;;  %691 = vrot.lane.b32.xlu0 %v621_v30, %s7359_s21  ;;  %v8015_v43 = vcombine.low %v7928_v18, %v439_v56  ;;  %v733_v23 = vsel %vm13633_vm0, %v730_v45, %v732_v22 }
  0xbd   : > { %v1639_v57 = vrot.slane %v1637_v46, 1  ;;  %v1642_v59 = vrot.slane %v1640_v38, 2  ;;  %v751_v8 = vpop.permute.xlu1 %750  ;;  %v8028_v4 = vcombine.low %v439_v56, %v440_v62 }
  0xbe   : > { %v1632_v0 = vrot.slane %v1630_v40, 1  ;;  %v1635_v33 = vrot.slane %v1633_v21, 2  ;;  %v678_v3 = vpop.permute.xlu0 %677  ;;  %v642_v40 = vshll.u32 %v8015_v43, 16  ;;  %v646_v21 = vshrl.u32 %v8015_v43, 16 }
  0xbf   : > { %v7970_v58 = vor.u32 %v1642_v59, %v1639_v57  ;;  %v1344_v13 = vsel %vm13635_vm8, %v7518_v6, %v678_v3  ;;  %1023 = vrot.lane.b32.xlu1 %v948_v20, %s7358_s30  ;;  %v1103_v17 = vrot.slane %v8028_v4, 2 }
  0xc0   : > { %v1636_v7 = vor.u32 %v1635_v33, %v1632_v0  ;;  %853 = vrot.lane.b32.xlu0 %v820_v9, %s7357_s24  ;;  %v1379_v6 = vsel %vm13636_vm9, %v1344_v13, %v751_v8  ;;  %v629_v9 = vsel %vm13630_vm2, %v624_v42, %v628_v54  ;;  %v822_v8 = vsel %vm13631_vm1, %v819_v5, %v821_v34 }
  0xc1   : > { %v1010_v48 = vpop.permute.xlu1 %1009  ;;  %vm13765_vm2 = vsmask.f32 256  ;;  %v1194_v13 = vrot.slane %v646_v21, 6 }
  0xc2   : > { %v840_v1 = vpop.permute.xlu0 %839  ;;  %v1644_v30 = vsel %vm1629_vm6, %v1636_v7, %v7970_v58  ;;  %v956_v61 = vsel %vm13765_vm2, %v7918_v10, %v955_v60  ;;  %v1195_v7 = vrot.slane %v642_v40, 7  ;;  %v1104_v10 = vsel %vm1081_vm4, %v1101_v55, %v1103_v17 }
  0xc3   : > { %v1414_v29 = vsel %vm13637_vm10, %v1379_v6, %v840_v1  ;;  %6752 = vmatmul.mubr.msk.bf16.vlgmr.msra.gmra.mrb[0].mxu0 %vm13638_vm3, %v1644_v30  ;;  %1135 = vrot.lane.b32.xlu1 %v1102_v19, %s7360_s22  ;;  %v958_v6 = vshrl.u32 %v7947_v41, 16  ;;  %vm13766_vm2 = vsmask.f32 7424 }
  0xc4   : > { %1057 = vrot.lane.b32.xlu0 %v7814_v52, %s7355_s23  ;;  %6755 = vmatprep.mubr.msk.bf16.mxu0 %vm13679_vm7, %v13639_v63  ;;  %v1449_v46 = vsel %vm1443_vm11, %v1414_v29, %v1010_v48  ;;  %v1290_v48 = vrot.slane %v8015_v43, 7  ;;  %v8063_v56 = vor.u32 %v1195_v7, %v1194_v13 }
  0xc5   : > { %v1122_v27 = vpop.permute.xlu1 %1121  ;;  %v8081_v42 = vrot.slane %v958_v6, 7 }
  0xc6   : > { %v1044_v38 = vpop.permute.xlu0 %1043 }
  0xc7   : > { %v1484_v49 = vsel %vm1478_vm12, %v1449_v46, %v1044_v38  ;;  %1322 = vrot.lane.b32.xlu1 %v1289_v37, %s13763_s25  ;;  %v441_v37 = vld [vmem:[%s7507_s29 + $0x7c] sm:$0xf]  ;;  %v961_v46 = vshll.u32 %v7947_v41, 16  ;;  %v1197_v38 = vsel %vm13632_vm5, %v7983_v16, %v8063_v56 }
  0xc8   : > { %1255 = vrot.lane.b32.xlu0 %v1193_v35, %s13764_s28  ;;  %v1519_v20 = vsel %vm1513_vm13, %v1484_v49, %v1122_v27  ;;  %v1291_v27 = vsel %vm13631_vm1, %v1288_v28, %v1290_v48  ;;  %v734_v35 = vrot.slane %v7930_v53, 1  ;;  %v632_v49 = vor.u32 %v630_v2, %v628_v54  ;;  %v442_v28 = vld [vmem:[%s7507_s29 + $0x80] sm:$0xf] }
  0xc9   : > { %v1309_v18 = vpop.permute.xlu1 %1308  ;;  %v8094_v60 = vcombine.low %v440_v62, %v441_v37  ;;  %v963_v16 = vor.u32 %v961_v46, %v8081_v42  ;;  %v8107_v54 = vcombine.low %v441_v37, %v442_v28 }
  0xca   : > { %v1242_v57 = vpop.permute.xlu0 %1241  ;;  %v735_v2 = vsel %vm13633_vm0, %v732_v22, %v734_v35 }
  0xcb   : > { %v1554_v59 = vsel %vm1548_vm14, %v1519_v20, %v1242_v57  ;;  %766 = vrot.lane.b32.xlu1 %v733_v23, %s7356_s19  ;;  %v636_v23 = vrot.slane %v634_v11, 1  ;;  %v823_v11 = vrot.slane %v7947_v41, 7  ;;  %v1105_v13 = vrot.slane %v8107_v54, 2 }
  0xcc   : > { %v1589_v45 = vsel %vm13634_vm15, %v1554_v59, %v1309_v18  ;;  %693 = vrot.lane.b32.xlu0 %v629_v9, %s7359_s21  ;;  %v650_v59 = vshll.u32 %v8094_v60, 16 }
  0xcd   : > { %v1645_v0 = vshrl.u32 %v1589_v45, 16  ;;  %v1648_v33 = vshll.u32 %v1589_v45, 16  ;;  %v753_v3 = vpop.permute.xlu1 %752  ;;  %v637_v57 = vsel %vm13766_vm2, %v632_v49, %v636_v23  ;;  %v654_v45 = vshrl.u32 %v8094_v60, 16 }
  0xce   : > { %v680_v19 = vpop.permute.xlu0 %679  ;;  %vm13767_vm2 = vsmask.f32 256 }
  0xcf   : > { %v1647_v14 = vrot.slane %v1645_v0, 1  ;;  %v1650_v52 = vrot.slane %v1648_v33, 2  ;;  %v1346_v5 = vsel %vm13635_vm8, %v7537_v25, %v680_v19  ;;  %1025 = vrot.lane.b32.xlu1 %v956_v61, %s7358_s30  ;;  %v824_v33 = vsel %vm13631_vm1, %v821_v34, %v823_v11 }
  0xd0   : > { %855 = vrot.lane.b32.xlu0 %v822_v8, %s7357_s24  ;;  %v1381_v25 = vsel %vm13636_vm9, %v1346_v5, %v753_v3  ;;  %v964_v3 = vsel %vm13767_vm2, %v8000_v31, %v963_v16  ;;  %v1199_v5 = vrot.slane %v650_v59, 7  ;;  %v1106_v31 = vsel %vm1081_vm4, %v1103_v17, %v1105_v13 }
  0xd1   : > { %v8061_v1 = vor.u32 %v1650_v52, %v1647_v14  ;;  %v1012_v30 = vpop.permute.xlu1 %1011  ;;  %v1198_v52 = vrot.slane %v654_v45, 6  ;;  %v644_v16 = vrot.slane %v642_v40, 1  ;;  %v825_v40 = vrot.slane %v8028_v4, 7 }
  0xd2   : > { %v842_v29 = vpop.permute.xlu0 %841  ;;  %vm13768_vm2 = vsmask.f32 7424 }
  0xd3   : > { %v1416_v44 = vsel %vm13637_vm10, %v1381_v25, %v842_v29  ;;  %v1652_v55 = vsel %vm1629_vm6, %v7970_v58, %v8061_v1  ;;  %1137 = vrot.lane.b32.xlu1 %v1104_v10, %s7360_s22  ;;  %v966_v25 = vshrl.u32 %v8028_v4, 16 }
  0xd4   : > { %1059 = vrot.lane.b32.xlu0 %v7866_v32, %s7355_s23  ;;  %6756 = vmatmul.mubr.msk.bf16.gmra.mrb[4].mxu0 %vm13638_vm3, %v1652_v55  ;;  %v1451_v18 = vsel %vm1443_vm11, %v1416_v44, %v1012_v30  ;;  %v1292_v30 = vrot.slane %v8094_v60, 7  ;;  %v8142_v44 = vor.u32 %v1199_v5, %v1198_v52 }
  0xd5   : > { %v1124_v58 = vpop.permute.xlu1 %1123  ;;  %6759 = vmatprep.mubr.msk.bf16.mxu0 %vm13679_vm7, %v13639_v63  ;;  %v8160_v49 = vrot.slane %v966_v25, 7 }
  0xd6   : > { %v1046_v9 = vpop.permute.xlu0 %1045 }
  0xd7   : > { %v1486_v20 = vsel %vm1478_vm12, %v1451_v18, %v1046_v9  ;;  %1324 = vrot.lane.b32.xlu1 %v1291_v27, %s13763_s25  ;;  %v443_v27 = vld [vmem:[%s7507_s29 + $0x84] sm:$0xf]  ;;  %v969_v18 = vshll.u32 %v8028_v4, 16 }
  0xd8   : > { %1257 = vrot.lane.b32.xlu0 %v1197_v38, %s13764_s28  ;;  %v1521_v8 = vsel %vm1513_vm13, %v1486_v20, %v1124_v58  ;;  %v1293_v58 = vsel %vm13631_vm1, %v1290_v48, %v1292_v30  ;;  %v736_v38 = vrot.slane %v8015_v43, 1  ;;  %v1201_v20 = vsel %vm13632_vm5, %v8063_v56, %v8142_v44  ;;  %v444_v48 = vld [vmem:[%s7507_s29 + $0x88] sm:$0xf] }
  0xd9   : > { %v1311_v62 = vpop.permute.xlu1 %1310  ;;  %v971_v56 = vor.u32 %v969_v18, %v8160_v49 }
  0xda   : > { %v1244_v61 = vpop.permute.xlu0 %1243 }
  0xdb   : > { %v1556_v0 = vsel %vm1548_vm14, %v1521_v8, %v1244_v61  ;;  %768 = vrot.lane.b32.xlu1 %v735_v2, %s7356_s19  ;;  %v640_v2 = vor.u32 %v638_v36, %v636_v23  ;;  %v737_v36 = vsel %vm13633_vm0, %v734_v35, %v736_v38  ;;  %v8186_v23 = vcombine.low %v443_v27, %v444_v48 }
  0xdc   : > { %v1591_v22 = vsel %vm13634_vm15, %v1556_v0, %v1311_v62  ;;  %695 = vrot.lane.b32.xlu0 %v637_v57, %s7359_s21 }
  0xdd   : > { %v1653_v7 = vshrl.u32 %v1591_v22, 16  ;;  %v1656_v19 = vshll.u32 %v1591_v22, 16  ;;  %v755_v14 = vpop.permute.xlu1 %754  ;;  %v645_v61 = vsel %vm13768_vm2, %v640_v2, %v644_v16  ;;  %vm13769_vm2 = vsmask.f32 256 }
  0xde   : > { %v682_v10 = vpop.permute.xlu0 %681  ;;  %v1107_v52 = vrot.slane %v8186_v23, 2 }
  0xdf   : > { %v1655_v6 = vrot.slane %v1653_v7, 1  ;;  %v1658_v32 = vrot.slane %v1656_v19, 2  ;;  %v1348_v34 = vsel %vm13635_vm8, %v7539_v26, %v682_v10  ;;  %1027 = vrot.lane.b32.xlu1 %v964_v3, %s7358_s30  ;;  %v826_v19 = vsel %vm13631_vm1, %v823_v11, %v825_v40 }
  0xe0   : > { %857 = vrot.lane.b32.xlu0 %v824_v33, %s7357_s24  ;;  %v1383_v26 = vsel %vm13636_vm9, %v1348_v34, %v755_v14  ;;  %v972_v14 = vsel %vm13769_vm2, %v8081_v42, %v971_v56  ;;  %v1108_v42 = vsel %vm1081_vm4, %v1105_v13, %v1107_v52  ;;  %vm13770_vm2 = vsmask.f32 7424 }
  0xe1   : > { %v8140_v29 = vor.u32 %v1658_v32, %v1655_v6  ;;  %v1014_v37 = vpop.permute.xlu1 %1013 }
  0xe2   : > { %v844_v55 = vpop.permute.xlu0 %843 }
  0xe3   : > { %v1418_v46 = vsel %vm13637_vm10, %v1383_v26, %v844_v55  ;;  %v1660_v17 = vsel %vm1629_vm6, %v8061_v1, %v8140_v29  ;;  %1139 = vrot.lane.b32.xlu1 %v1106_v31, %s7360_s22  ;;  %v8163_v1 = vcombine.low %v442_v28, %v443_v27  ;;  %v974_v26 = vshrl.u32 %v8107_v54, 16 }
  0xe4   : > { %1061 = vrot.lane.b32.xlu0 %v7947_v41, %s7355_s23  ;;  %6760 = vmatmul.mubr.msk.bf16.gmra.mrb[8].mxu0 %vm13638_vm3, %v1660_v17  ;;  %v1453_v62 = vsel %vm1443_vm11, %v1418_v46, %v1014_v37 }
  0xe5   : > { %v1126_v9 = vpop.permute.xlu1 %1125  ;;  %6763 = vmatprep.mubr.msk.bf16.mxu0 %vm13679_vm7, %v13639_v63  ;;  %v658_v0 = vshll.u32 %v8163_v1, 16  ;;  %v662_v22 = vshrl.u32 %v8163_v1, 16  ;;  %v1294_v37 = vrot.slane %v8163_v1, 7  ;;  %v8239_v2 = vrot.slane %v974_v26, 7 }
  0xe6   : > { %v1048_v57 = vpop.permute.xlu0 %1047 }
  0xe7   : > { %v1488_v28 = vsel %vm1478_vm12, %v1453_v62, %v1048_v57  ;;  %1326 = vrot.lane.b32.xlu1 %v1293_v58, %s13763_s25  ;;  %v1202_v32 = vrot.slane %v662_v22, 6  ;;  %v1203_v34 = vrot.slane %v658_v0, 7  ;;  %v445_v58 = vld [vmem:[%s7507_s29 + $0x8c] sm:$0xf]  ;;  %v977_v62 = vshll.u32 %v8107_v54, 16 }
  0xe8   : > { %1259 = vrot.lane.b32.xlu0 %v1201_v20, %s13764_s28  ;;  %v1523_v33 = vsel %vm1513_vm13, %v1488_v28, %v1126_v9  ;;  %v1295_v9 = vsel %vm13631_vm1, %v1292_v30, %v1294_v37  ;;  %v738_v20 = vrot.slane %v8094_v60, 1  ;;  %v648_v28 = vor.u32 %v646_v21, %v644_v16  ;;  %v8252_v30 = vld [vmem:[%s7507_s29 + $0x90] sm:$0xf] }
  0xe9   : > { %v1313_v8 = vpop.permute.xlu1 %1312  ;;  %v8221_v46 = vor.u32 %v1203_v34, %v1202_v32  ;;  %v8254_v56 = vcombine.low %v444_v48, %v445_v58  ;;  %v8268_v16 = vcombine.low %v445_v58, %v8252_v30 }
  0xea   : > { %v1246_v3 = vpop.permute.xlu0 %1245  ;;  %v739_v21 = vsel %vm13633_vm0, %v736_v38, %v738_v20 }
  0xeb   : > { %v1558_v7 = vsel %vm1548_vm14, %v1523_v33, %v1246_v3  ;;  %770 = vrot.lane.b32.xlu1 %v737_v36, %s7356_s19  ;;  %v1205_v57 = vsel %vm13632_vm5, %v8142_v44, %v8221_v46  ;;  %v652_v36 = vrot.slane %v650_v59, 1  ;;  %v827_v59 = vrot.slane %v8107_v54, 7 }
  0xec   : > { %v1593_v35 = vsel %vm13634_vm15, %v1558_v7, %v1313_v8  ;;  %697 = vrot.lane.b32.xlu0 %v645_v61, %s7359_s21  ;;  %v979_v44 = vor.u32 %v977_v62, %v8239_v2  ;;  %v666_v7 = vshll.u32 %v8254_v56, 16  ;;  %v1109_v32 = vrot.slane %v8268_v16, 2 }
  0xed   : > { %v1661_v5 = vshrl.u32 %v1593_v35, 16  ;;  %v1664_v10 = vshll.u32 %v1593_v35, 16  ;;  %v757_v6 = vpop.permute.xlu1 %756  ;;  %v653_v3 = vsel %vm13770_vm2, %v648_v28, %v652_v36  ;;  %v670_v35 = vshrl.u32 %v8254_v56, 16 }
  0xee   : > { %v684_v31 = vpop.permute.xlu0 %683  ;;  %vm13771_vm2 = vsmask.f32 256 }
  0xef   : > { %v1663_v25 = vrot.slane %v1661_v5, 1  ;;  %v1666_v41 = vrot.slane %v1664_v10, 2  ;;  %v1350_v11 = vsel %vm13635_vm8, %v7603_v15, %v684_v31  ;;  %1029 = vrot.lane.b32.xlu1 %v972_v14, %s7358_s30  ;;  %v828_v10 = vsel %vm13631_vm1, %v825_v40, %v827_v59 }
  0xf0   : > { %859 = vrot.lane.b32.xlu0 %v826_v19, %s7357_s24  ;;  %v1385_v15 = vsel %vm13636_vm9, %v1350_v11, %v757_v6  ;;  %v980_v6 = vsel %vm13771_vm2, %v8160_v49, %v979_v44  ;;  %v1207_v11 = vrot.slane %v666_v7, 7  ;;  %v1110_v49 = vsel %vm1081_vm4, %v1107_v52, %v1109_v32 }
  0xf1   : > { %v8219_v55 = vor.u32 %v1666_v41, %v1663_v25  ;;  %v1016_v27 = vpop.permute.xlu1 %1015  ;;  %v1206_v41 = vrot.slane %v670_v35, 6  ;;  %vm13772_vm2 = vsmask.f32 7424 }
  0xf2   : > { %v846_v17 = vpop.permute.xlu0 %845 }
  0xf3   : > { %v1420_v18 = vsel %vm13637_vm10, %v1385_v15, %v846_v17  ;;  %v1668_v13 = vsel %vm1629_vm6, %v8140_v29, %v8219_v55  ;;  %1141 = vrot.lane.b32.xlu1 %v1108_v42, %s7360_s22  ;;  %v982_v15 = vshrl.u32 %v8186_v23, 16 }
  0xf4   : > { %1063 = vrot.lane.b32.xlu0 %v8028_v4, %s7355_s23  ;;  %6764 = vmatmul.mubr.msk.bf16.gmra.mrb[12].mxu0 %vm13638_vm3, %v1668_v13  ;;  %v1455_v8 = vsel %vm1443_vm11, %v1420_v18, %v1016_v27  ;;  %v1296_v27 = vrot.slane %v8254_v56, 7  ;;  %v8303_v18 = vor.u32 %v1207_v11, %v1206_v41 }
  0xf5   : > { %v1128_v29 = vpop.permute.xlu1 %1127  ;;  %6767 = vmatprep.mubr.msk.bf16.mxu0 %vm13679_vm7, %v13639_v63  ;;  %v8321_v28 = vrot.slane %v982_v15, 7 }
  0xf6   : > { %v1050_v61 = vpop.permute.xlu0 %1049 }
  0xf7   : > { %v1490_v33 = vsel %vm1478_vm12, %v1455_v8, %v1050_v61  ;;  %1328 = vrot.lane.b32.xlu1 %v1295_v9, %s13763_s25  ;;  %v447_v9 = vld [vmem:[%s7507_s29 + $0x94] sm:$0xf]  ;;  %v985_v8 = vshll.u32 %v8186_v23, 16  ;;  %v1209_v61 = vsel %vm13632_vm5, %v8221_v46, %v8303_v18 }
  0xf8   : > { %1261 = vrot.lane.b32.xlu0 %v1205_v57, %s13764_s28  ;;  %v1525_v19 = vsel %vm1513_vm13, %v1490_v33, %v1128_v29  ;;  %v1297_v29 = vsel %vm13631_vm1, %v1294_v37, %v1296_v27  ;;  %v740_v57 = vrot.slane %v8163_v1, 1  ;;  %v656_v33 = vor.u32 %v654_v45, %v652_v36  ;;  %v448_v37 = vld [vmem:[%s7507_s29 + $0x98] sm:$0xf] }
  0xf9   : > { %v1315_v48 = vpop.permute.xlu1 %1314  ;;  %v8335_v44 = vcombine.low %v8252_v30, %v447_v9  ;;  %v987_v46 = vor.u32 %v985_v8, %v8321_v28  ;;  %v8348_v36 = vcombine.low %v447_v9, %v448_v37  ;;  %v449_v8 = vld [vmem:[%s7507_s29 + $0x9c] sm:$0xf] }
  0xfa   : > { %v1248_v14 = vpop.permute.xlu0 %1247  ;;  %v741_v45 = vsel %vm13633_vm0, %v738_v20, %v740_v57 }
  0xfb   : > { %v1560_v5 = vsel %vm1548_vm14, %v1525_v19, %v1248_v14  ;;  %772 = vrot.lane.b32.xlu1 %v739_v21, %s7356_s19  ;;  %v660_v21 = vrot.slane %v658_v0, 1  ;;  %v829_v0 = vrot.slane %v8186_v23, 7  ;;  %v1111_v11 = vrot.slane %v8348_v36, 2 }
  0xfc   : > { %v1595_v38 = vsel %vm13634_vm15, %v1560_v5, %v1315_v48  ;;  %699 = vrot.lane.b32.xlu0 %v653_v3, %s7359_s21 }
  0xfd   : > { %v1669_v34 = vshrl.u32 %v1595_v38, 16  ;;  %v1672_v31 = vshll.u32 %v1595_v38, 16  ;;  %v759_v25 = vpop.permute.xlu1 %758  ;;  %v661_v5 = vsel %vm13772_vm2, %v656_v33, %v660_v21  ;;  %v1211_v38 = vshrl.u32 %v8335_v44, 16 }
  0xfe   : > { %v686_v42 = vpop.permute.xlu0 %685  ;;  %vm13773_vm2 = vsmask.f32 256  ;;  %v742_v33 = vrot.slane %v8254_v56, 1 }
  0xff   : > { %v1671_v26 = vrot.slane %v1669_v34, 1  ;;  %v1674_v4 = vrot.slane %v1672_v31, 2  ;;  %v1352_v40 = vsel %vm13635_vm8, %v7648_v47, %v686_v42  ;;  %1031 = vrot.lane.b32.xlu1 %v980_v6, %s7358_s30  ;;  %v988_v41 = vsel %vm13773_vm2, %v8239_v2, %v987_v46 }
 0x100   : > { %861 = vrot.lane.b32.xlu0 %v828_v10, %s7357_s24  ;;  %v1387_v47 = vsel %vm13636_vm9, %v1352_v40, %v759_v25  ;;  %v1214_v10 = vshll.u32 %v8335_v44, 16  ;;  %v830_v25 = vsel %vm13631_vm1, %v827_v59, %v829_v0  ;;  %v1213_v40 = vrot.slane %v1211_v38, 6 }
 0x101   : > { %v8301_v17 = vor.u32 %v1674_v4, %v1671_v26  ;;  %v1018_v58 = vpop.permute.xlu1 %1017  ;;  %v1298_v2 = vrot.slane %v8335_v44, 7  ;;  %v990_v59 = vshrl.u32 %v8268_v16, 16  ;;  %v8407_v46 = vrot.slane %v666_v7, 1 }
 0x102   : > { %v848_v13 = vpop.permute.xlu0 %847  ;;  %v831_v7 = vrot.slane %v8268_v16, 7  ;;  %vm13774_vm2 = vsmask.f32 7424 }
 0x103   : > { %v1422_v62 = vsel %vm13637_vm10, %v1387_v47, %v848_v13  ;;  %v1676_v52 = vsel %vm1629_vm6, %v8219_v55, %v8301_v17  ;;  %1143 = vrot.lane.b32.xlu1 %v1110_v49, %s7360_s22  ;;  %v1216_v49 = vrot.slane %v1214_v10, 7 }
 0x104   : > { %1065 = vrot.lane.b32.xlu0 %v8107_v54, %s7355_s23  ;;  %6768 = vmatmul.mubr.msk.bf16.gmra.mrb[16].mxu0 %vm13638_vm3, %v1676_v52  ;;  %v1457_v48 = vsel %vm1443_vm11, %v1422_v62, %v1018_v58  ;;  %v1112_v54 = vsel %vm1081_vm4, %v1109_v32, %v1111_v11 }
 0x105   : > { %v1130_v55 = vpop.permute.xlu1 %1129  ;;  %6771 = vmatprep.mubr.msk.bf16.mxu0 %vm13679_vm7, %v13639_v63  ;;  %v8379_v52 = vor.u32 %v1216_v49, %v1213_v40 }
 0x106   : > { %v1052_v3 = vpop.permute.xlu0 %1051 }
 0x107   : > { %v1492_v19 = vsel %vm1478_vm12, %v1457_v48, %v1052_v3  ;;  %1330 = vrot.lane.b32.xlu1 %v1297_v29, %s13763_s25  ;;  %v8397_v48 = vrot.slane %v990_v59, 7  ;;  %v993_v3 = vshll.u32 %v8268_v16, 16 }
 0x108   : > { %1263 = vrot.lane.b32.xlu0 %v1209_v61, %s13764_s28  ;;  %v1527_v6 = vsel %vm1513_vm13, %v1492_v19, %v1130_v55  ;;  %v1299_v61 = vsel %vm13631_vm1, %v1296_v27, %v1298_v2  ;;  %v1218_v19 = vsel %vm13632_vm5, %v8303_v18, %v8379_v52  ;;  %v450_v27 = vld [vmem:[%s7507_s29 + $0xa0] sm:$0xf] }
 0x109   : > { %v1317_v14 = vpop.permute.xlu1 %1316  ;;  %v995_v18 = vor.u32 %v993_v3, %v8397_v48 }
 0x10a   : > { %v1250_v34 = vpop.permute.xlu0 %1249 }
 0x10b   : > { %v1562_v31 = vsel %vm1548_vm14, %v1527_v6, %v1250_v34  ;;  %774 = vrot.lane.b32.xlu1 %v741_v45, %s7356_s19  ;;  %v664_v45 = vor.u32 %v662_v22, %v660_v21  ;;  %v743_v22 = vsel %vm13633_vm0, %v740_v57, %v742_v33  ;;  %v6282_v21 = vcombine.low %v449_v8, %v450_v27 }
 0x10c   : > { %v1597_v20 = vsel %vm13634_vm15, %v1562_v31, %v1317_v14  ;;  %701 = vrot.lane.b32.xlu0 %v661_v5, %s7359_s21  ;;  %v8412_v14 = vcombine.low %v448_v37, %v449_v8 }
 0x10d   : > { %v1677_v42 = vshrl.u32 %v1597_v20, 16  ;;  %v1680_v26 = vshll.u32 %v1597_v20, 16  ;;  %v761_v4 = vpop.permute.xlu1 %760  ;;  %v669_v6 = vsel %vm13774_vm2, %v664_v45, %v8407_v46  ;;  %vm13775_vm2 = vsmask.f32 256 }
 0x10e   : > { %v688_v15 = vpop.permute.xlu0 %687  ;;  %v1220_v34 = vshrl.u32 %v8412_v14, 16  ;;  %v1223_v31 = vshll.u32 %v8412_v14, 16  ;;  %v1001_v45 = vshll.u32 %v8348_v36, 16 }
 0x10f   : > { %v1679_v58 = vrot.slane %v1677_v42, 1  ;;  %v1682_v47 = vrot.slane %v1680_v26, 2  ;;  %v1354_v13 = vsel %vm13635_vm8, %v7695_v12, %v688_v15  ;;  %1033 = vrot.lane.b32.xlu1 %v988_v41, %s7358_s30  ;;  %v832_v42 = vsel %vm13631_vm1, %v829_v0, %v831_v7 }
 0x110   : > { %863 = vrot.lane.b32.xlu0 %v830_v25, %s7357_s24  ;;  %v1389_v12 = vsel %vm13636_vm9, %v1354_v13, %v761_v4  ;;  %v996_v26 = vsel %vm13775_vm2, %v8321_v28, %v995_v18  ;;  %v8441_v4 = vrot.slane %v6282_v21, 2  ;;  %v1300_v28 = vrot.slane %v8412_v14, 7 }
 0x111   : > { %v8377_v9 = vor.u32 %v1682_v47, %v1679_v58  ;;  %v1020_v62 = vpop.permute.xlu1 %1019  ;;  %v1222_v58 = vrot.slane %v1220_v34, 6  ;;  %v1225_v47 = vrot.slane %v1223_v31, 7  ;;  %v6264_v0 = vcombine.low %v8252_v30, %v8252_v30 }
 0x112   : > { %v850_v29 = vpop.permute.xlu0 %849  ;;  %v1301_v30 = vsel %vm13631_vm1, %v1298_v2, %v1300_v28  ;;  %v672_v2 = vor.u32 %v670_v35, %v8407_v46  ;;  %v833_v18 = vrot.slane %v8348_v36, 7 }
 0x113   : > { %v1424_v55 = vsel %vm13637_vm10, %v1389_v12, %v850_v29  ;;  %v1684_v32 = vsel %vm1629_vm6, %v8301_v17, %v8377_v9  ;;  %1145 = vrot.lane.b32.xlu1 %v1112_v54, %s7360_s22  ;;  %v998_v12 = vshrl.u32 %v8348_v36, 16 }
 0x114   : > { %1067 = vrot.lane.b32.xlu0 %v8186_v23, %s7355_s23  ;;  %6772 = vmatmul.mubr.msk.bf16.gmra.mrb[20].mxu0 %vm13638_vm3, %v1684_v32  ;;  %v1459_v5 = vsel %vm1443_vm11, %v1424_v55, %v1020_v62  ;;  %v1114_v23 = vsel %vm1081_vm4, %v1111_v11, %v8441_v4  ;;  %v8455_v55 = vor.u32 %v1225_v47, %v1222_v58 }
 0x115   : > { %v1132_v17 = vpop.permute.xlu1 %1131  ;;  %6775 = vmatprep.mubr.msk.bf16.mxu0 %vm13679_vm7, %v13639_v63 }
 0x116   : > { %v1054_v38 = vpop.permute.xlu0 %1053 }
 0x117   : > { %v1494_v10 = vsel %vm1478_vm12, %v1459_v5, %v1054_v38  ;;  %1332 = vrot.lane.b32.xlu1 %v1299_v61, %s13763_s25  ;;  %v451_v61 = vld [vmem:[%s7507_s29 + $0xa4] sm:$0xf]  ;;  %s6245_s29 = sshll.u32 %s7500_s12, 5 }
 0x118   : > { %1265 = vrot.lane.b32.xlu0 %v1218_v19, %s13764_s28  ;;  %v1529_v20 = vsel %vm1513_vm13, %v1494_v10, %v1132_v17  ;;  %v744_v17 = vrot.slane %v6264_v0, 1  ;;  %v1000_v19 = vrot.slane %v998_v12, 7  ;;  %v6286_v38 = vcombine.low %v450_v27, %v451_v61 }
 0x119   : > { %v1319_v37 = vpop.permute.xlu1 %1318  ;;  %v6283_v21 = vcombine.low %v451_v61, %v451_v61 }
 0x11a   : > { %v1252_v25 = vpop.permute.xlu0 %1251  ;;  %v1003_v27 = vor.u32 %v1001_v45, %v1000_v19  ;;  %v1232_v34 = vshll.u32 %v6286_v38, 16 }
 0x11b   : > { %v1564_v41 = vsel %vm1548_vm14, %v1529_v20, %v1252_v25  ;;  %776 = vrot.lane.b32.xlu1 %v743_v22, %s7356_s19 }
 0x11c   : > { %v1599_v57 = vsel %vm13634_vm15, %v1564_v41, %v1319_v37  ;;  %703 = vrot.lane.b32.xlu0 %v669_v6, %s7359_s21  ;;  %v1229_v6 = vshrl.u32 %v6286_v38, 16  ;;  %v1004_v46 = vsel %vm13775_vm2, %v8397_v48, %v1003_v27  ;;  %v1115_v41 = vrot.slane %v6283_v21, 2 }
 0x11d   : > { %v1685_v40 = vshrl.u32 %v1599_v57, 16  ;;  %v1688_v49 = vshll.u32 %v1599_v57, 16  ;;  %v763_v15 = vpop.permute.xlu1 %762  ;;  %v1302_v48 = vrot.slane %v6286_v38, 7 }
 0x11e   : > { %v690_v13 = vpop.permute.xlu0 %689 }
 0x11f   : > { %v1687_v54 = vrot.slane %v1685_v40, 1  ;;  %v1690_v59 = vrot.slane %v1688_v49, 2  ;;  %v1356_v62 = vsel %vm13635_vm8, %v7736_v51, %v690_v13  ;;  %1035 = vrot.lane.b32.xlu1 %v996_v26, %s7358_s30  ;;  %v1231_v40 = vrot.slane %v1229_v6, 6 }
 0x120   : > { %865 = vrot.lane.b32.xlu0 %v832_v42, %s7357_s24  ;;  %v1391_v51 = vsel %vm13636_vm9, %v1356_v62, %v763_v15  ;;  %v1234_v49 = vrot.slane %v1232_v34, 7 }
 0x121   : > { %v1691_v29 = vor.u32 %v1690_v59, %v1687_v54  ;;  %v1022_v8 = vpop.permute.xlu1 %1021 }
 0x122   : > { %v852_v32 = vpop.permute.xlu0 %851  ;;  %v1235_v59 = vor.u32 %v1234_v49, %v1231_v40 }
 0x123   : > { %v1426_v3 = vsel %vm13637_vm10, %v1391_v51, %v852_v32  ;;  %v1692_v11 = vsel %vm1629_vm6, %v8377_v9, %v1691_v29  ;;  %1147 = vrot.lane.b32.xlu1 %v1114_v23, %s7360_s22  ;;  %v1227_v9 = vsel %vm13632_vm5, %v8379_v52, %v8455_v55  ;;  %v745_v52 = vsel %vm13633_vm0, %v742_v33, %v744_v17 }
 0x124   : > { %1069 = vrot.lane.b32.xlu0 %v8268_v16, %s7355_s23  ;;  %6776 = vmatmul.mubr.msk.bf16.gmra.mrb[24].mxu0 %vm13638_vm3, %v1692_v11  ;;  %v1461_v10 = vsel %vm1443_vm11, %v1426_v3, %v1022_v8  ;;  %v834_v33 = vsel %vm13631_vm1, %v831_v7, %v833_v18  ;;  %v1116_v16 = vsel %vm1081_vm4, %v8441_v4, %v1115_v41 }
 0x125   : > { %v1134_v5 = vpop.permute.xlu1 %1133  ;;  %6779 = vmatprep.mubr.msk.bf16.mxu0 %vm13679_vm7, %v13639_v63  ;;  %v1236_v8 = vsel %vm13632_vm5, %v8455_v55, %v1235_v59 }
 0x126   : > { %v1056_v22 = vpop.permute.xlu0 %1055 }
 0x127   : > { %v1496_v44 = vsel %vm1478_vm12, %v1461_v10, %v1056_v22  ;;  %1334 = vrot.lane.b32.xlu1 %v1301_v30, %s13763_s25 }
 0x128   : > { %1267 = vrot.lane.b32.xlu0 %v1227_v9, %s13764_s28  ;;  %v1531_v31 = vsel %vm1513_vm13, %v1496_v44, %v1134_v5 }
 0x129   : > { %v1321_v37 = vpop.permute.xlu1 %1320 }
 0x12a   : > { %v1254_v20 = vpop.permute.xlu0 %1253 }
 0x12b   : > { %v1566_v25 = vsel %vm1548_vm14, %v1531_v31, %v1254_v20  ;;  %778 = vrot.lane.b32.xlu1 %v745_v52, %s7356_s19  ;;  %s6307_s19 = sshll.u32 %s7337_s16, 3 }
 0x12c   : > { %v1601_v35 = vsel %vm13634_vm15, %v1566_v25, %v1321_v37  ;;  %705 = vrot.lane.b32.xlu0 %v672_v2, %s7359_s21  ;;  %s6308_s21 = sadd.s32 4294967292, %s6307_s19 }
 0x12d   : > { %v1693_v57 = vshrl.u32 %v1601_v35, 16  ;;  %v1696_v42 = vshll.u32 %v1601_v35, 16  ;;  %v765_v26 = vpop.permute.xlu1 %764 }
 0x12e   : > { %v692_v15 = vpop.permute.xlu0 %691 }
 0x12f   : > { %v1695_v58 = vrot.slane %v1693_v57, 1  ;;  %v1698_v47 = vrot.slane %v1696_v42, 2  ;;  %v1358_v13 = vsel %vm13635_vm8, %v7770_v39, %v692_v15  ;;  %1037 = vrot.lane.b32.xlu1 %v1004_v46, %s7358_s30  ;;  %v1303_v39 = vsel %vm13631_vm1, %v1300_v28, %v1302_v48  ;;  %s13753_s30 = sand.u32 1, %s7329_s14  }
 0x130   : > { %867 = vrot.lane.b32.xlu0 %v834_v33, %s7357_s24  ;;  %v1393_v62 = vsel %vm13636_vm9, %v1358_v13, %v765_v26  ;;  %s11363_s24 = sshll.u32 %s13753_s30, 6 }
 0x131   : > { %v1699_v7 = vor.u32 %v1698_v47, %v1695_v58  ;;  %v1024_v54 = vpop.permute.xlu1 %1023 }
 0x132   : > { %v854_v23 = vpop.permute.xlu0 %853 }
 0x133   : > { %v1428_v0 = vsel %vm13637_vm10, %v1393_v62, %v854_v23  ;;  %v1700_v12 = vsel %vm1629_vm6, %v1691_v29, %v1699_v7  ;;  %1149 = vrot.lane.b32.xlu1 %v1116_v16, %s7360_s22 }
 0x134   : > { %1071 = vrot.lane.b32.xlu0 %v8348_v36, %s7355_s23  ;;  %6780 = vmatmul.mubr.msk.bf16.gmra.mrb[28].mxu0 %vm13638_vm3, %v1700_v12  ;;  %v1463_v29 = vsel %vm1443_vm11, %v1428_v0, %v1024_v54  ;;  %s7368_s23 = smov 96  }
 0x135   : > { %v1136_v4 = vpop.permute.xlu1 %1135  ;;  %6783 = vmatprep.mubr.msk.bf16.mxu0 %vm13679_vm7, %v13639_v63 }
 0x136   : > { %v1058_v51 = vpop.permute.xlu0 %1057 }
 0x137   : > { %v1498_v32 = vsel %vm1478_vm12, %v1463_v29, %v1058_v51  ;;  %1336 = vrot.lane.b32.xlu1 %v1303_v39, %s13763_s25  ;;  %s13752_s25 = smov 64  }
 0x138   : > { %1269 = vrot.lane.b32.xlu0 %v1236_v8, %s13764_s28  ;;  %v1533_v14 = vsel %vm1513_vm13, %v1498_v32, %v1136_v4  ;;  %v2038_v4 = vlaneseq  ;;  %s7367_s28 = smov 32  }
 0x139   : > { %v1323_v36 = vpop.permute.xlu1 %1322 }
 0x13a   : > { %v1256_v28 = vpop.permute.xlu0 %1255 }
 0x13b   : > { %v1568_v61 = vsel %vm1548_vm14, %v1533_v14, %v1256_v28 }
 0x13c   : > { %v1603_v55 = vsel %vm13634_vm15, %v1568_v61, %v1323_v36  ;;  %v8554_v61 = vshrl.u32 %v2038_v4, 7 }
 0x13d   : > { %v1701_v3 = vshrl.u32 %v1603_v55, 16  ;;  %v1704_v11 = vshll.u32 %v1603_v55, 16  ;;  %v767_v30 = vpop.permute.xlu1 %766 }
 0x13e   : > { %v694_v17 = vpop.permute.xlu0 %693  ;;  %13776 = vst [vmem:[#allocation8_spill] sm:$0xff] %v8554_v61 }
 0x13f   : > { %v1703_v19 = vrot.slane %v1701_v3, 1  ;;  %v1706_v45 = vrot.slane %v1704_v11, 2  ;;  %v1360_v5 = vsel %vm13635_vm8, %v7808_v50, %v694_v17  ;;  %v8563_v17 = vadd.s32 8, %v8554_v61 }
 0x140   : > { %v1395_v10 = vsel %vm13636_vm9, %v1360_v5, %v767_v30  ;;  %v8567_v5 = vadd.s32 42, %v8554_v61 }
 0x141   : > { %v1707_v9 = vor.u32 %v1706_v45, %v1703_v19  ;;  %v1026_v38 = vpop.permute.xlu1 %1025  ;;  %13777 = vst [vmem:[#allocation9_spill] sm:$0xff] %v8563_v17 }
 0x142   : > { %v856_v22 = vpop.permute.xlu0 %855 }
 0x143   : > { %v1430_v44 = vsel %vm13637_vm10, %v1395_v10, %v856_v22  ;;  %v1708_v2 = vsel %vm1629_vm6, %v1699_v7, %v1707_v9  ;;  %v8571_v10 = vadd.s32 42, %v8563_v17 }
 0x144   : > { %6784 = vmatmul.mubr.msk.bf16.gmra.mrb[32].mxu0 %vm13638_vm3, %v1708_v2  ;;  %v1465_v18 = vsel %vm1443_vm11, %v1430_v44, %v1026_v38 }
 0x145   : > { %v1138_v52 = vpop.permute.xlu1 %1137  ;;  %6787 = vmatprep.mubr.msk.bf16.mxu0 %vm13679_vm7, %v13639_v63 }
 0x146   : > { %v1060_v27 = vpop.permute.xlu0 %1059 }
 0x147   : > { %v1500_v50 = vsel %vm1478_vm12, %v1465_v18, %v1060_v27  ;;  %v2107_v27 = vcvt.s32.f32 %v8567_v5 }
 0x148   : > { %v1535_v37 = vsel %vm1513_vm13, %v1500_v50, %v1138_v52 }
 0x149   : > { %v1325_v21 = vpop.permute.xlu1 %1324 }
 0x14a   : > { %v1258_v6 = vpop.permute.xlu0 %1257 }
 0x14b   : > { %v1570_v34 = vsel %vm1548_vm14, %v1535_v37, %v1258_v6 }
 0x14c   : > { %v1605_v31 = vsel %vm13634_vm15, %v1570_v34, %v1325_v21  ;;  %v2108_v21 = vcvt.s32.f32 %v8571_v10 }
 0x14d   : > { %v1709_v20 = vshrl.u32 %v1605_v31, 16  ;;  %v1712_v25 = vshll.u32 %v1605_v31, 16  ;;  %v769_v35 = vpop.permute.xlu1 %768 }
 0x14e   : > { %v696_v33 = vpop.permute.xlu0 %695 }
 0x14f   : > { %v1711_v46 = vrot.slane %v1709_v20, 1  ;;  %v1714_v41 = vrot.slane %v1712_v25, 2  ;;  %v1362_v57 = vsel %vm13635_vm8, %v7858_v24, %v696_v33  ;;  %v2141_v25 = vadd.f32 0.5, %v2107_v27 }
 0x150   : > { %v1397_v40 = vsel %vm13636_vm9, %v1362_v57, %v769_v35 }
 0x151   : > { %v1715_v42 = vor.u32 %v1714_v41, %v1711_v46  ;;  %v1028_v26 = vpop.permute.xlu1 %1027  ;;  %v2142_v46 = vadd.f32 0.5, %v2108_v21 }
 0x152   : > { %v858_v49 = vpop.permute.xlu0 %857 }
 0x153   : > { %v1432_v15 = vsel %vm13637_vm10, %v1397_v40, %v858_v49  ;;  %v1716_v58 = vsel %vm1629_vm6, %v1707_v9, %v1715_v42  ;;  %v2176_v49 = vmul.f32 0.045454547, %v2142_v46 }
 0x154   : > { %6788 = vmatmul.mubr.msk.bf16.gmra.mrb[36].mxu0 %vm13638_vm3, %v1716_v58  ;;  %v1467_v13 = vsel %vm1443_vm11, %v1432_v15, %v1028_v26  ;;  %v2175_v26 = vmul.f32 0.045454547, %v2141_v25  ;;  %v8587_v15 = vadd.s32 16, %v8554_v61 }
 0x155   : > { %v1140_v47 = vpop.permute.xlu1 %1139  ;;  %6791 = vmatprep.mubr.msk.bf16.mxu0 %vm13679_vm7, %v13639_v63 }
 0x156   : > { %v1062_v16 = vpop.permute.xlu0 %1061  ;;  %13778 = vst [vmem:[#allocation10_spill] sm:$0xff] %v8587_v15 }
 0x157   : > { %v1502_v24 = vsel %vm1478_vm12, %v1467_v13, %v1062_v16  ;;  %v2209_v16 = vfloor.f32 %v2175_v26 }
 0x158   : > { %v1537_v7 = vsel %vm1513_vm13, %v1502_v24, %v1140_v47  ;;  %v8591_v47 = vadd.s32 24, %v8554_v61 }
 0x159   : > { %v1327_v48 = vpop.permute.xlu1 %1326  ;;  %v6965_v4 = vtrunc.f32 %v2209_v16 }
 0x15a   : > { %v1260_v54 = vpop.permute.xlu0 %1259  ;;  %13779 = vst [vmem:[#allocation11_spill] sm:$0xff] %v8591_v47 }
 0x15b   : > { %v1572_v59 = vsel %vm1548_vm14, %v1537_v7, %v1260_v54  ;;  %v2210_v7 = vfloor.f32 %v2176_v49  ;;  %v8595_v54 = vadd.s32 42, %v8587_v15 }
 0x15c   : > { %v1607_v62 = vsel %vm13634_vm15, %v1572_v59, %v1327_v48 }
 0x15d   : > { %v1717_v23 = vshrl.u32 %v1607_v62, 16  ;;  %v1720_v0 = vshll.u32 %v1607_v62, 16  ;;  %v771_v12 = vpop.permute.xlu1 %770 }
 0x15e   : > { %v698_v39 = vpop.permute.xlu0 %697 }
 0x15f   : > { %v1719_v8 = vrot.slane %v1717_v23, 1  ;;  %v1722_v29 = vrot.slane %v1720_v0, 2  ;;  %v1364_v51 = vsel %vm13635_vm8, %v7930_v53, %v698_v39  ;;  %v8600_v23 = vadd.s32 42, %v8591_v47 }
 0x160   : > { %v1399_v14 = vsel %vm13636_vm9, %v1364_v51, %v771_v12  ;;  %v2109_v51 = vcvt.s32.f32 %v8595_v54 }
 0x161   : > { %v1723_v32 = vor.u32 %v1722_v29, %v1719_v8  ;;  %v1030_v36 = vpop.permute.xlu1 %1029  ;;  %v6967_v29 = vtrunc.f32 %v2210_v7 }
 0x162   : > { %v860_v28 = vpop.permute.xlu0 %859 }
 0x163   : > { %v1434_v55 = vsel %vm13637_vm10, %v1399_v14, %v860_v28  ;;  %v1724_v3 = vsel %vm1629_vm6, %v1715_v42, %v1723_v32 }
 0x164   : > { %6792 = vmatmul.mubr.msk.bf16.gmra.mrb[40].mxu0 %vm13638_vm3, %v1724_v3  ;;  %v1469_v30 = vsel %vm1443_vm11, %v1434_v55, %v1030_v36  ;;  %v7217_v55 = vld [vmem:[%s13613_s3 + $0x40] sm:$0xff]   ;;  %v2110_v3 = vcvt.s32.f32 %v8600_v23 }
 0x165   : > { %v1142_v11 = vpop.permute.xlu1 %1141  ;;  %6795 = vmatprep.mubr.msk.bf16.mxu0 %vm13679_vm7, %v13639_v63  ;;  %6523 = vmatprep.subr.bf16.mxu0 %v7217_v55 }
 0x166   : > { %v1064_v53 = vpop.permute.xlu0 %1063  ;;  %6947 = vmatprep.subr.bf16.mxu1 %v7217_v55 }
 0x167   : > { %v1504_v19 = vsel %vm1478_vm12, %v1469_v30, %v1064_v53  ;;  %v6966_v53 = vcvt.f32.s32 %v6965_v4 }
 0x168   : > { %v1539_v9 = vsel %vm1513_vm13, %v1504_v19, %v1142_v11 }
 0x169   : > { %v1329_v45 = vpop.permute.xlu1 %1328 }
 0x16a   : > { %v1262_v38 = vpop.permute.xlu0 %1261 }
 0x16b   : > { %v1574_v22 = vsel %vm1548_vm14, %v1539_v9, %v1262_v38  ;;  %v6968_v9 = vcvt.f32.s32 %v6967_v29  ;;  %v2143_v38 = vadd.f32 0.5, %v2109_v51  ;;  %v8652_v51 = vadd.s32 48, %v8554_v61 }
 0x16c   : > { %v1609_v44 = vsel %vm13634_vm15, %v1574_v22, %v1329_v45 }
 0x16d   : > { %v1725_v2 = vshrl.u32 %v1609_v44, 16  ;;  %v1728_v52 = vshll.u32 %v1609_v44, 16  ;;  %v773_v18 = vpop.permute.xlu1 %772  ;;  %13782 = vst [vmem:[#allocation14_spill] sm:$0xff] %v8652_v51 }
 0x16e   : > { %v700_v50 = vpop.permute.xlu0 %699 }
 0x16f   : > { %v1727_v37 = vrot.slane %v1725_v2, 1  ;;  %v1730_v6 = vrot.slane %v1728_v52, 2  ;;  %v1366_v34 = vsel %vm13635_vm8, %v8015_v43, %v700_v50  ;;  %v2144_v2 = vadd.f32 0.5, %v2110_v3 }
 0x170   : > { %v1401_v35 = vsel %vm13636_vm9, %v1366_v34, %v773_v18  ;;  %v8624_v52 = vadd.s32 40, %v8554_v61  ;;  %v7218_v18 = vld [vmem:[%s13613_s3] sm:$0xff]   ;;  %v2277_v50 = vmul.u32 22, %v6966_v53  ;;  %v2177_v34 = vmul.f32 0.045454547, %v2143_v38 }
 0x171   : > { %v1731_v31 = vor.u32 %v1730_v6, %v1727_v37  ;;  %v1032_v20 = vpop.permute.xlu1 %1031  ;;  %v2278_v6 = vmul.u32 22, %v6968_v9  ;;  %6524 = vmatpush3.bf16.msra.mxu0 %v7218_v18  ;;  %6955 = vmatpush3.bf16.msra.mxu1 %v7218_v18  ;;  %v2178_v25 = vmul.f32 0.045454547, %v2144_v2  ;;  %v8670_v38 = vadd.s32 42, %v8652_v51  ;;  %v7219_v18 = vld [vmem:[%s13613_s3 + $0x48] sm:$0xff]  }
 0x172   : > { %v862_v33 = vpop.permute.xlu0 %861  ;;  %13781 = vst [vmem:[#allocation13_spill] sm:$0xff] %v8624_v52  ;;  %v2311_v46 = vsub.s32 %v8567_v5, %v2277_v50  ;;  %v8681_v2 = vadd.s32 56, %v8554_v61  ;;  %6525 = vmatprep.subr.bf16.mxu0 %v7219_v18  ;;  %6948 = vmatprep.subr.bf16.mxu1 %v7219_v18 }
 0x173   : > { %v1436_v41 = vsel %vm13637_vm10, %v1401_v35, %v862_v33  ;;  %v1732_v57 = vsel %vm1629_vm6, %v1723_v32, %v1731_v31  ;;  %v8604_v32 = vadd.s32 32, %v8554_v61  ;;  %v8635_v35 = vadd.s32 42, %v8624_v52 }
 0x174   : > { %6796 = vmatmul.mubr.msk.bf16.gmra.mrb[44].mxu0 %vm13638_vm3, %v1732_v57  ;;  %v1471_v43 = vsel %vm1443_vm11, %v1436_v41, %v1032_v20  ;;  %v8638_v41 = vstv %s6308_s21  ;;  %v2312_v26 = vsub.s32 %v8571_v10, %v2278_v6  ;;  %v2212_v16 = vfloor.f32 %v2178_v25  ;;  %13785 = vst [vmem:[#allocation15_spill] sm:$0xff] %v8681_v2  ;;  %s11414_s21 = scalar_lea.vmem [#allocation2], %s11363_s24 }
 0x175   : > { %v1144_v42 = vpop.permute.xlu1 %1143  ;;  %6799 = vmatprep.mubr.msk.bf16.mxu0 %vm13679_vm7, %v13639_v63  ;;  %13780 = vst [vmem:[#allocation12_spill] sm:$0xff] %v8604_v32  ;;  %v8616_v22 = vadd.s32 42, %v8604_v32 }
 0x176   : > { %v1066_v40 = vpop.permute.xlu0 %1065 }
 0x177   : > { %v1506_v58 = vsel %vm1478_vm12, %v1471_v43, %v1066_v40  ;;  %v2211_v43 = vfloor.f32 %v2177_v34 }
 0x178   : > { %v1541_v24 = vsel %vm1513_vm13, %v1506_v58, %v1144_v42 }
 0x179   : > { %v1331_v13 = vpop.permute.xlu1 %1330  ;;  %v8647_v10 = vtrunc.f32 %v2211_v43 }
 0x17a   : > { %v1264_v48 = vpop.permute.xlu0 %1263 }
 0x17b   : > { %v1576_v59 = vsel %vm1548_vm14, %v1541_v24, %v1264_v48  ;;  %v2112_v24 = vcvt.s32.f32 %v8635_v35 }
 0x17c   : > { %v1611_v62 = vsel %vm13634_vm15, %v1576_v59, %v1331_v13  ;;  %v2348_v13 = vadd.s32 %v6966_v53, %v8638_v41  ;;  %v6309_v59 = vadd.s32 4294967293, %v2311_v46 }
 0x17d   : > { %v1733_v0 = vshrl.u32 %v1611_v62, 16  ;;  %v1736_v12 = vshll.u32 %v1611_v62, 16  ;;  %v775_v39 = vpop.permute.xlu1 %774  ;;  %v2349_v62 = vadd.s32 %v6968_v9, %v8638_v41  ;;  %v8667_v9 = vld [vmem:[%s13612_s2] ss:$0 sm:$0xff] }
 0x17e   : > { %v702_v8 = vpop.permute.xlu0 %701  ;;  %vm2416_vm4 = vcmp.ge.s32.totalorder %v2348_v13, 0  ;;  %vm2450_vm2 = vcmp.lt.s32.totalorder %v2348_v13, 16  ;;  %vm2518_vm1 = vcmp.ge.s32.totalorder %v6309_v59, 0  ;;  %vm2552_vm5 = vcmp.lt.s32.totalorder %v6309_v59, 16 }
 0x17f   : > { %v1735_v36 = vrot.slane %v1733_v0, 1  ;;  %v1738_v14 = vrot.slane %v1736_v12, 2  ;;  %v1368_v28 = vsel %vm13635_vm8, %v8094_v60, %v702_v8  ;;  %v6310_v12 = vadd.s32 4294967293, %v2312_v26 }
 0x180   : > { %v1403_v19 = vsel %vm13636_vm9, %v1368_v28, %v775_v39  ;;  %vm2417_vm0 = vcmp.ge.s32.totalorder %v2349_v62, 0  ;;  %v2113_v26 = vcvt.s32.f32 %v8670_v38 }
 0x181   : > { %v8612_v11 = vor.u32 %v1738_v14, %v1735_v36  ;;  %v1034_v30 = vpop.permute.xlu1 %1033  ;;  %v8654_v36 = vtrunc.f32 %v2212_v16  ;;  %v2146_v14 = vadd.f32 0.5, %v2112_v24 }
 0x182   : > { %v864_v45 = vpop.permute.xlu0 %863 }
 0x183   : > { %v1438_v60 = vsel %vm13637_vm10, %v1403_v19, %v864_v45  ;;  %v1740_v44 = vsel %vm1629_vm6, %v1731_v31, %v8612_v11  ;;  %v2111_v31 = vcvt.s32.f32 %v8616_v22 }
 0x184   : > { %6800 = vmatmul.mubr.msk.bf16.gmra.mrb[48].mxu0 %vm13638_vm3, %v1740_v44  ;;  %v1473_v21 = vsel %vm1443_vm11, %v1438_v60, %v1034_v30  ;;  %v2180_v44 = vmul.f32 0.045454547, %v2146_v14 }
 0x185   : > { %v1146_v27 = vpop.permute.xlu1 %1145  ;;  %6803 = vmatprep.mubr.msk.bf16.mxu0 %vm13679_vm7, %v13639_v63  ;;  %v2145_v40 = vadd.f32 0.5, %v2111_v31 }
 0x186   : > { %v1068_v37 = vpop.permute.xlu0 %1067 }
 0x187   : > { %v1508_v20 = vsel %vm1478_vm12, %v1473_v21, %v1068_v37  ;;  %v2179_v39 = vmul.f32 0.045454547, %v2145_v40 }
 0x188   : > { %v1543_v57 = vsel %vm1513_vm13, %v1508_v20, %v1146_v27  ;;  %v7220_v27 = vld [vmem:[%s13613_s3 + $0x8] sm:$0xff]  }
 0x189   : > { %v1333_v33 = vpop.permute.xlu1 %1332  ;;  %v2213_v53 = vfloor.f32 %v2179_v39  ;;  %6526 = vmatpush3.bf16.msra.mxu0 %v7220_v27  ;;  %6956 = vmatpush3.bf16.msra.mxu1 %v7220_v27  ;;  %v2147_v39 = vadd.f32 0.5, %v2113_v26 }
 0x18a   : > { %v1266_v42 = vpop.permute.xlu0 %1265 }
 0x18b   : > { %v1578_v49 = vsel %vm1548_vm14, %v1543_v57, %v1266_v42  ;;  %v8704_v25 = vtrunc.f32 %v2213_v53  ;;  %v2181_v27 = vmul.f32 0.045454547, %v2147_v39  ;;  %v8858_v39 = vadd.s32 88, %v8554_v61 }
 0x18c   : > { %v1613_v58 = vsel %vm13634_vm15, %v1578_v49, %v1333_v33  ;;  %vm2451_vm15 = vcmp.lt.s32.totalorder %v2349_v62, 16  ;;  %v2214_v49 = vfloor.f32 %v2180_v44 }
 0x18d   : > { %v1741_v48 = vshrl.u32 %v1613_v58, 16  ;;  %v1744_v5 = vshll.u32 %v1613_v58, 16  ;;  %v777_v7 = vpop.permute.xlu1 %776  ;;  %v8716_v58 = vadd.s32 42, %v8681_v2  ;;  %v6974_v62 = vcvt.f32.s32 %v8704_v25  ;;  %13808 = vst [vmem:[#allocation19_spill] sm:$0xff] %v8858_v39 }
 0x18e   : > { %v704_v0 = vpop.permute.xlu0 %703 }
 0x18f   : > { %v1743_v4 = vrot.slane %v1741_v48, 1  ;;  %v1746_v8 = vrot.slane %v1744_v5, 2  ;;  %v1370_v29 = vsel %vm13635_vm8, %v8163_v1, %v704_v0  ;;  %v6970_v1 = vcvt.f32.s32 %v8647_v10 }
 0x190   : > { %v1405_v3 = vsel %vm13636_vm9, %v1370_v29, %v777_v7  ;;  %vm2519_vm8 = vcmp.ge.s32.totalorder %v6310_v12, 0  ;;  %vm8675_vm9 = vmand %vm2416_vm4, %vm2450_vm2  ;;  %v8734_v29 = vtrunc.f32 %v2214_v49 }
 0x191   : > { %v8656_v28 = vor.u32 %v1746_v8, %v1743_v4  ;;  %v1036_v55 = vpop.permute.xlu1 %1035  ;;  %vm8691_vm4 = vmand %vm2518_vm1, %vm2552_vm5  ;;  %v2279_v20 = vmul.u32 22, %v6970_v1  ;;  %v2350_v10 = vadd.s32 %v6970_v1, %v8638_v41 }
 0x192   : > { %v866_v30 = vpop.permute.xlu0 %865  ;;  %vm8700_vm2 = vmand %vm2417_vm0, %vm2451_vm15  ;;  %v6976_v31 = vcvt.f32.s32 %v8734_v29 }
 0x193   : > { %v1440_v19 = vsel %vm13637_vm10, %v1405_v3, %v866_v30  ;;  %v1748_v45 = vsel %vm1629_vm6, %v8612_v11, %v8656_v28  ;;  %vm2553_vm10 = vcmp.lt.s32.totalorder %v6310_v12, 16  ;;  %v6972_v11 = vcvt.f32.s32 %v8654_v36  ;;  %vm2620_vm0 = vmand %vm8675_vm9, %vm8691_vm4 }
 0x194   : > { %6804 = vmatmul.mubr.msk.bf16.gmra.mrb[52].mxu0 %vm13638_vm3, %v1748_v45  ;;  %v1475_v37 = vsel %vm1443_vm11, %v1440_v19, %v1036_v55  ;;  %vm8710_vm1 = vmand %vm2519_vm8, %vm2553_vm10  ;;  %v2313_v59 = vsub.s32 %v8595_v54, %v2279_v20  ;;  %vm13792_vm8 = vcmask 195584   ;;  %v2114_v36 = vcvt.s32.f32 %v8716_v58 }
 0x195   : > { %v1148_v21 = vpop.permute.xlu1 %1147  ;;  %6807 = vmatprep.mubr.msk.bf16.mxu0 %vm13679_vm7, %v13639_v63  ;;  %v2280_v40 = vmul.u32 22, %v6972_v11  ;;  %vm2621_vm5 = vmand %vm8700_vm2, %vm8710_vm1  ;;  %v2281_v45 = vmul.u32 22, %v6974_v62  ;;  %vm13793_vm10 = vcmask 23552   ;;  %vm2418_vm15 = vcmp.ge.s32.totalorder %v2350_v10, 0 }
 0x196   : > { %v1869_v6 = vpop.f32.mrb[0].mxu0  ;;  %v1070_v34 = vpop.permute.xlu0 %1069  ;;  %v6311_v19 = vadd.s32 4294967293, %v2313_v59  ;;  %v2351_v60 = vadd.s32 %v6972_v11, %v8638_v41  ;;  %v2148_v50 = vadd.f32 0.5, %v2114_v36  ;;  %vm2452_vm9 = vcmp.lt.s32.totalorder %v2350_v10, 16 }
 0x197   : > { %v1870_v33 = vadd.f32 %v8667_v9, %v1869_v6  ;;  %v1510_v46 = vsel %vm1478_vm12, %v1475_v37, %v1070_v34  ;;  %v6753_v57 = vpop.f32.mrb[1].mxu0  ;;  %v2314_v8 = vsub.s32 %v8600_v23, %v2280_v40  ;;  %vm13795_vm4 = vcmask 48128  }
 0x198   : > { %v1872_v43 = vpop.f32.mrb[2].mxu0  ;;  %v1545_v5 = vsel %vm1513_vm13, %v1510_v46, %v1148_v21  ;;  %v8748_v21 = vadd.s32 64, %v8554_v61  ;;  %vm2520_vm2 = vcmp.ge.s32.totalorder %v6311_v19, 0  ;;  %vm2554_vm1 = vcmp.lt.s32.totalorder %v6311_v19, 16 }
 0x199   : > { %v2004_v13 = vmax.f32 %v1870_v33, 0.0  ;;  %v1873_v16 = vadd.f32 %v8667_v9, %v1872_v43  ;;  %v6754_v24 = vpop.f32.mrb[3].mxu0  ;;  %v1335_v48 = vpop.permute.xlu1 %1334  ;;  %v6312_v34 = vadd.s32 4294967293, %v2314_v8  ;;  %v2315_v46 = vsub.s32 %v8616_v22, %v2281_v45  ;;  %v7221_v43 = vld [vmem:[%s13613_s3 + $0x50] sm:$0xff]  }
 0x19a   : > { %v1268_v7 = vpop.permute.xlu0 %1267  ;;  %13794 = vst [vmem:[#allocation16_spill] sm:$0xff] %v8748_v21  ;;  %v2215_v57 = vfloor.f32 %v2181_v27  ;;  %v2182_v42 = vmul.f32 0.045454547, %v2148_v50  ;;  %v8764_v26 = vadd.s32 42, %v8748_v21  ;;  %v2282_v22 = vmul.u32 22, %v6976_v31  ;;  %6527 = vmatprep.subr.bf16.mxu0 %v7221_v43  ;;  %6949 = vmatprep.subr.bf16.mxu1 %v7221_v43  ;;  %v7222_v50 = vld [vmem:[%s13613_s3 + $0x10] sm:$0xff]  }
 0x19b   : > { %v2005_v0 = vmax.f32 %v1873_v16, 0.0  ;;  %v1580_v12 = vsel %vm1548_vm14, %v1545_v5, %v1268_v7  ;;  %v2722_v54 = vsel %vm2620_vm0, %v2004_v13, 0.0  ;;  %vm13797_vm0 = vcmask 72704   ;;  %6528 = vmatpush3.bf16.msra.mxu0 %v7222_v50  ;;  %6957 = vmatpush3.bf16.msra.mxu1 %v7222_v50 }
 0x19c   : > { %v1615_v4 = vsel %vm13792_vm8, %v1580_v12, %v1335_v48  ;;  %vm2453_vm8 = vcmp.lt.s32.totalorder %v2351_v60, 16  ;;  %v8787_v24 = vadd.s32 %v6974_v62, %v8638_v41  ;;  %v8801_v12 = vtrunc.f32 %v2215_v57 }
 0x19d   : > { %v2723_v14 = vsel %vm2621_vm5, %v2005_v0, 0.0  ;;  %v1749_v55 = vshrl.u32 %v1615_v4, 16  ;;  %v1752_v3 = vshll.u32 %v1615_v4, 16  ;;  %v779_v30 = vpop.permute.xlu1 %778  ;;  %vm2419_vm5 = vcmp.ge.s32.totalorder %v2351_v60, 0 }
 0x19e   : > { %v8742_v1 = vpack.c.bf16 %v2723_v14, %v2722_v54  ;;  %v706_v53 = vpop.permute.xlu0 %705  ;;  %v8799_v0 = vadd.s32 4294967293, %v2315_v46  ;;  %v2216_v4 = vfloor.f32 %v2182_v42  ;;  %v2115_v8 = vcvt.s32.f32 %v8764_v26 }
 0x19f   : > { %v1751_v23 = vrot.slane %v1749_v55, 1  ;;  %v1754_v44 = vrot.slane %v1752_v3, 2  ;;  %v1372_v18 = vsel %vm13793_vm10, %v8254_v56, %v706_v53  ;;  %v8755_v56 = vadd.s32 72, %v8554_v61  ;;  %vm8771_vm10 = vmand %vm2418_vm15, %vm2452_vm9 }
 0x1a0   : > { %v1407_v20 = vsel %vm13795_vm4, %v1372_v18, %v779_v30  ;;  %vm2521_vm4 = vcmp.ge.s32.totalorder %v6312_v34, 0  ;;  %v2316_v14 = vsub.s32 %v8635_v35, %v2282_v22  ;;  %vm2420_vm9 = vcmp.ge.s32.totalorder %v8787_v24, 0 }
 0x1a1   : > { %v8750_v37 = vor.u32 %v1754_v44, %v1751_v23  ;;  %v1038_v6 = vpop.permute.xlu1 %1037  ;;  %13796 = vst [vmem:[#allocation17_spill] sm:$0xff] %v8755_v56  ;;  %v8790_v48 = vadd.s32 42, %v8755_v56  ;;  %v6978_v23 = vcvt.f32.s32 %v8801_v12  ;;  %v8830_v27 = vtrunc.f32 %v2216_v4 }
 0x1a2   : > { %v868_v25 = vpop.permute.xlu0 %867  ;;  %v2149_v60 = vadd.f32 0.5, %v2115_v8  ;;  %v6314_v46 = vadd.s32 4294967293, %v2316_v14  ;;  %v2926_v29 = vrot.slane %v8742_v1, 1  ;;  %v2774_v59 = vshrl.u32 %v8742_v1, 16 }
 0x1a3   : > { %v1442_v11 = vsel %vm13797_vm0, %v1407_v20, %v868_v25  ;;  %v1756_v33 = vsel %vm1629_vm6, %v8656_v28, %v8750_v37  ;;  %vm2555_vm0 = vcmp.lt.s32.totalorder %v6312_v34, 16  ;;  %v2116_v45 = vcvt.s32.f32 %v8790_v48 }
 0x1a4   : > { %6808 = vmatmul.mubr.msk.bf16.gmra.mrb[56].mxu0 %vm13638_vm3, %v1756_v33  ;;  %v1477_v49 = vsel %vm1443_vm11, %v1442_v11, %v1038_v6  ;;  %vm8782_vm3 = vmand %vm2520_vm2, %vm2554_vm1  ;;  %vm2454_vm2 = vcmp.lt.s32.totalorder %v8787_v24, 16  ;;  %vm2522_vm1 = vcmp.ge.s32.totalorder %v8799_v0, 0  ;;  %v2776_v20 = vshll.u32 %v8742_v1, 16 }
 0x1a5   : > { %v1150_v40 = vpop.permute.xlu1 %1149  ;;  %6811 = vmatprep.mubr.msk.bf16.mxu0 %vm13679_vm7, %v13639_v63  ;;  %vm8795_vm11 = vmand %vm2419_vm5, %vm2453_vm8  ;;  %vm2556_vm5 = vcmp.lt.s32.totalorder %v8799_v0, 16  ;;  %vm13806_vm8 = vcmask 195584   ;;  %v2353_v25 = vadd.s32 %v6976_v31, %v8638_v41  ;;  %v2150_v57 = vadd.f32 0.5, %v2116_v45 }
 0x1a6   : > { %v1072_v13 = vpop.permute.xlu0 %1071  ;;  %vm8806_vm15 = vmand %vm2521_vm4, %vm2555_vm0  ;;  %v2283_v22 = vmul.u32 22, %v6978_v23  ;;  %v6980_v31 = vcvt.f32.s32 %v8830_v27  ;;  %v2183_v28 = vmul.f32 0.045454547, %v2149_v60  ;;  %vm2523_vm0 = vcmp.ge.s32.totalorder %v6314_v46, 0 }
 0x1a7   : > { %v1512_v5 = vsel %vm1478_vm12, %v1477_v49, %v1072_v13  ;;  %v1877_v7 = vpop.f32.mrb[4].mxu0  ;;  %vm2622_vm12 = vmand %vm8771_vm10, %vm8782_vm3  ;;  %v8851_v49 = vadd.s32 80, %v8554_v61  ;;  %vm13809_vm3 = vcmask 1046528   ;;  %vm2421_vm10 = vcmp.ge.s32.totalorder %v2353_v25, 0 }
 0x1a8   : > { %v1878_v62 = vadd.f32 %v8667_v9, %v1877_v7  ;;  %v6757_v10 = vpop.f32.mrb[5].mxu0  ;;  %v1547_v55 = vsel %vm1513_vm13, %v1512_v5, %v1150_v40  ;;  %vm2623_vm13 = vmand %vm8795_vm11, %vm8806_vm15  ;;  %v2778_v5 = vrot.slane %v2776_v20, 1  ;;  %vm2455_vm4 = vcmp.lt.s32.totalorder %v2353_v25, 16 }
 0x1a9   : > { %v1880_v36 = vpop.f32.mrb[6].mxu0  ;;  %v1337_v54 = vpop.permute.xlu1 %1336  ;;  %13807 = vst [vmem:[#allocation18_spill] sm:$0xff] %v8851_v49  ;;  %v2184_v10 = vmul.f32 0.045454547, %v2150_v57  ;;  %v8872_v14 = vadd.s32 42, %v8851_v49  ;;  %vm2557_vm11 = vcmp.lt.s32.totalorder %v6314_v46, 16  ;;  %vm8893_vm15 = vmand %vm2522_vm1, %vm2556_vm5  ;;  %v2217_v24 = vfloor.f32 %v2183_v28 }
 0x1aa   : > { %v2006_v3 = vmax.f32 %v1878_v62, 0.0  ;;  %v1881_v30 = vadd.f32 %v8667_v9, %v1880_v36  ;;  %v6758_v53 = vpop.f32.mrb[7].mxu0  ;;  %v1270_v19 = vpop.permute.xlu0 %1269  ;;  %v2284_v0 = vmul.u32 22, %v6980_v31  ;;  %v8922_v20 = vadd.s32 %v6978_v23, %v8638_v41  ;;  %v7223_v28 = vld [vmem:[%s13613_s3 + $0x58] sm:$0xff]  }
 0x1ab   : > { %v1582_v35 = vsel %vm1548_vm14, %v1547_v55, %v1270_v19  ;;  %vm13810_vm14 = vcmask 220160   ;;  %v2218_v19 = vfloor.f32 %v2184_v10  ;;  %v8931_v57 = vtrunc.f32 %v2217_v24  ;;  %6529 = vmatprep.subr.bf16.mxu0 %v7223_v28  ;;  %6950 = vmatprep.subr.bf16.mxu1 %v7223_v28 }
 0x1ac   : > { %v2007_v44 = vmax.f32 %v1881_v30, 0.0  ;;  %v1617_v18 = vsel %vm13806_vm8, %v1582_v35, %v1337_v54  ;;  %v2724_v11 = vsel %vm2622_vm12, %v2006_v3, 0.0  ;;  %v2779_v3 = vor.u32 %v2778_v5, %v2774_v59  ;;  %vm13820_vm5 = vmmov %vm13810_vm14  ;;  %v7224_v5 = vld [vmem:[%s13613_s3 + $0x18] sm:$0xff]  }
 0x1ad   : > { %v1757_v6 = vshrl.u32 %v1617_v18, 16  ;;  %v1760_v34 = vshll.u32 %v1617_v18, 16  ;;  %v2317_v30 = vsub.s32 %v8670_v38, %v2283_v22  ;;  %vm13815_vm12 = vsmask.f32 7424  ;;  %6530 = vmatpush3.bf16.msra.mxu0 %v7224_v5  ;;  %6958 = vmatpush3.bf16.msra.mxu1 %v7224_v5 }
 0x1ae   : > { %v2725_v33 = vsel %vm2623_vm13, %v2007_v44, 0.0  ;;  %v8908_v18 = vadd.s32 42, %v8858_v39  ;;  %v2318_v12 = vsub.s32 %v8716_v58, %v2284_v0  ;;  %v8943_v22 = vadd.s32 %v6980_v31, %v8638_v41 }
 0x1af   : > { %v8844_v42 = vpack.c.bf16 %v2725_v33, %v2724_v11  ;;  %v1759_v43 = vrot.slane %v1757_v6, 1  ;;  %v1762_v40 = vrot.slane %v1760_v34, 2  ;;  %v2117_v6 = vcvt.s32.f32 %v8872_v14 }
 0x1b0   : > { %v8924_v25 = vadd.s32 4294967293, %v2317_v30  ;;  %v2118_v23 = vcvt.s32.f32 %v8908_v18  ;;  %vm13693_vm8 = vcmask 1043456   ;;  %v6316_v10 = vadd.s32 4294967293, %v2318_v12 }
 0x1b1   : > { %v1763_v13 = vor.u32 %v1762_v40, %v1759_v43  ;;  %v2927_v16 = vrot.slane %v8844_v42, 1  ;;  %v2781_v7 = vshll.u32 %v8844_v42, 16  ;;  %v2785_v62 = vshrl.u32 %v8844_v42, 16 }
 0x1b2   : > { %v8933_v43 = vtrunc.f32 %v2218_v19  ;;  %v8973_v53 = vadd.s32 96, %v8554_v61  ;;  %v3112_v19 = vrot.slane %v8844_v42, 4  ;;  %v9020_v28 = vadd.s32 104, %v8554_v61 }
 0x1b3   : > { %v2928_v4 = vsel %vm13809_vm3, %v2926_v29, %v2927_v16  ;;  %v1764_v8 = vsel %vm1629_vm6, %v8750_v37, %v1763_v13  ;;  %v8865_v36 = vrot.slane %v2781_v7, 1  ;;  %v8867_v54 = vrot.slane %v2781_v7, 4  ;;  %vm8882_vm6 = vmand %vm2420_vm9, %vm2454_vm2  ;;  %v7226_v37 = vld [vmem:[%s13613_s3 + $0x20] sm:$0xff]  }
 0x1b4   : > { %2953 = vrot.lane.b32.xlu1 %v2928_v4, %s13752_s25  ;;  %6812 = vmatmul.mubr.msk.bf16.gmra.mrb[60].mxu0 %vm13810_vm14, %v1764_v8  ;;  %v8876_v55 = vrot.slane %v2785_v62, 3  ;;  %vm8903_vm9 = vmand %vm2421_vm10, %vm2455_vm4  ;;  %v2151_v29 = vadd.f32 0.5, %v2117_v6  ;;  %vm2422_vm3 = vcmp.ge.s32.totalorder %v8922_v20, 0  ;;  %vm2456_vm14 = vcmp.lt.s32.totalorder %v8922_v20, 16  ;;  %v7225_v8 = vld [vmem:[%s13613_s3 + $0x60] sm:$0xff]   ;;  %13821 = vst [vmem:[#allocation20_spill] sm:$0xff] %v8973_v53 }
 0x1b5   : > { %6815 = vmatprep.mubr.msk.bf16.mxu0 %vm13679_vm7, %v13639_v63  ;;  %v2784_v44 = vsel %vm13815_vm12, %v2779_v3, %v8865_v36  ;;  %vm8914_vm2 = vmand %vm2523_vm0, %vm2557_vm11  ;;  %vm2524_vm10 = vcmp.ge.s32.totalorder %v8924_v25, 0  ;;  %v6984_v7 = vcvt.f32.s32 %v8933_v43  ;;  %vm2558_vm4 = vcmp.lt.s32.totalorder %v8924_v25, 16  ;;  %6531 = vmatprep.subr.bf16.mxu0 %v7225_v8  ;;  %13825 = vst [vmem:[#allocation21_spill] sm:$0xff] %v9020_v28  ;;  %v7231_v43 = vld [vmem:[%s13613_s3 + $0x78] sm:$0xff]  }
 0x1b6   : > { %v3044_v45 = vor.u32 %v8867_v54, %v8876_v55  ;;  %vm2624_vm13 = vmand %vm8882_vm6, %vm8893_vm15  ;;  %v2152_v4 = vadd.f32 0.5, %v2118_v23  ;;  %v2984_v3 = vrot.slane %v8844_v42, 3  ;;  %vm2423_vm6 = vcmp.ge.s32.totalorder %v8943_v22, 0  ;;  %6951 = vmatprep.subr.bf16.mxu1 %v7225_v8  ;;  %6532 = vmatpush3.bf16.msra.mxu0 %v7226_v37  ;;  %v7227_v23 = vld [vmem:[%s13613_s3 + $0x68] sm:$0xff]   ;;  %v7230_v54 = vld [vmem:[%s13613_s3 + $0x30] sm:$0xff]  }
 0x1b7   : > { %v1885_v35 = vpop.f32.mrb[8].mxu0  ;;  %vm2625_vm1 = vmand %vm8903_vm9, %vm8914_vm2  ;;  %v2185_v30 = vmul.f32 0.045454547, %v2151_v29  ;;  %vm2457_vm0 = vcmp.lt.s32.totalorder %v8943_v22, 16  ;;  %v8986_v0 = vmul.u32 22, %v6984_v7  ;;  %vm13822_vm11 = vcmask 1044480   ;;  %6959 = vmatpush3.bf16.msra.mxu1 %v7226_v37  ;;  %6533 = vmatprep.subr.bf16.mxu0 %v7227_v23 }
 0x1b8   : > { %v1886_v27 = vadd.f32 %v8667_v9, %v1885_v35  ;;  %2884 = vrot.lane.b32.xlu1 %v2784_v44, %s7367_s28  ;;  %v6761_v60 = vpop.f32.mrb[9].mxu0  ;;  %vm9015_vm15 = vmand %vm2422_vm3, %vm2456_vm14  ;;  %vm2525_vm12 = vcmp.ge.s32.totalorder %v6316_v10, 0  ;;  %vm2559_vm9 = vcmp.lt.s32.totalorder %v6316_v10, 16  ;;  %vm13692_vm2 = vsmask.f32 4352  ;;  %6952 = vmatprep.subr.bf16.mxu1 %v7227_v23 }
 0x1b9   : > { %v1888_v34 = vpop.f32.mrb[10].mxu0  ;;  %v2320_v8 = vsub.s32 %v8790_v48, %v8986_v0  ;;  %vm9053_vm3 = vmand %vm2525_vm12, %vm2559_vm9  ;;  %v2787_v0 = vor.u32 %v2785_v62, %v8865_v36 }
 0x1ba   : > { %v2008_v11 = vmax.f32 %v1886_v27, 0.0  ;;  %v1889_v33 = vadd.f32 %v8667_v9, %v1888_v34  ;;  %v6762_v46 = vpop.f32.mrb[11].mxu0  ;;  %v2186_v34 = vmul.f32 0.045454547, %v2152_v4 }
 0x1bc   : > { %v2009_v40 = vmax.f32 %v1889_v33, 0.0  ;;  %6816 = vmatmul.mubr.msk.bf16.gmra.mrb[64].mxu0 %vm13820_vm5, %v1763_v13  ;;  %v2726_v58 = vsel %vm2624_vm13, %v2008_v11, 0.0  ;;  %v6982_v13 = vcvt.f32.s32 %v8931_v57  ;;  %v2219_v11 = vfloor.f32 %v2185_v30  ;;  %vm9026_vm13 = vmand %vm2524_vm10, %vm2558_vm4 }
 0x1bd   : > { %v9001_v33 = vadd.s32 42, %v8973_v53  ;;  %vm9042_vm5 = vmand %vm2423_vm6, %vm2457_vm0  ;;  %v2220_v37 = vfloor.f32 %v2186_v34  ;;  %vm13833_vm4 = vsmask.f32 7424  ;;  %vm13708_vm6 = vcmask 1041408  }
 0x1be   : > { %v2727_v31 = vsel %vm2625_vm1, %v2009_v40, 0.0  ;;  %v2285_v38 = vmul.u32 22, %v6982_v13  ;;  %v7228_v40 = vld [vmem:[%s13613_s3 + $0x28] sm:$0xff]   ;;  %vm13828_vm1 = vcmask 1046528   ;;  %v9057_v30 = vtrunc.f32 %v2219_v11  ;;  %vm2626_vm14 = vmand %vm9015_vm15, %vm9026_vm13 }
 0x1bf   : > { %v8961_v59 = vpack.c.bf16 %v2727_v31, %v2726_v58  ;;  %6534 = vmatpush3.bf16.msra.mxu0 %v7228_v40  ;;  %6960 = vmatpush3.bf16.msra.mxu1 %v7228_v40  ;;  %vm2627_vm10 = vmand %vm9042_vm5, %vm9053_vm3  ;;  %v9097_v34 = vtrunc.f32 %v2220_v37  ;;  %vm13835_vm5 = vcmask 1044480  }
 0x1c0   : > { %v2319_v20 = vsub.s32 %v8764_v26, %v2285_v38  ;;  %v7229_v38 = vld [vmem:[%s13613_s3 + $0x70] sm:$0xff]  }
 0x1c1   : > { %v2985_v24 = vrot.slane %v8961_v59, 3  ;;  %v3113_v35 = vrot.slane %v8961_v59, 4  ;;  %v8979_v44 = vshll.u32 %v8961_v59, 16  ;;  %v8989_v27 = vshrl.u32 %v8961_v59, 16  ;;  %6535 = vmatprep.subr.bf16.mxu0 %v7229_v38  ;;  %6953 = vmatprep.subr.bf16.mxu1 %v7229_v38 }
 0x1c2   : > { %v2929_v6 = vrot.slane %v8961_v59, 1  ;;  %v6317_v36 = vadd.s32 4294967293, %v2319_v20  ;;  %v6988_v29 = vcvt.f32.s32 %v9097_v34  ;;  %v3171_v37 = vrot.slane %v8961_v59, 6 }
 0x1c3   : > { %v2986_v60 = vsel %vm13822_vm11, %v2984_v3, %v2985_v24  ;;  %v3114_v50 = vsel %vm13693_vm8, %v3112_v19, %v3113_v35  ;;  %v3045_v46 = vrot.slane %v8989_v27, 3  ;;  %v3046_v12 = vrot.slane %v8979_v44, 4  ;;  %6536 = vmatpush3.bf16.msra.mxu0 %v7230_v54  ;;  %6961 = vmatpush3.bf16.msra.mxu1 %v7230_v54 }
 0x1c4   : > { %3013 = vrot.lane.b32.xlu1 %v2986_v60, %s7368_s23  ;;  %3141 = vrot.lane.b32.xlu0 %v3114_v50, %s7367_s28  ;;  %v2930_v4 = vsel %vm13828_vm1, %v2927_v16, %v2929_v6  ;;  %v2791_v26 = vrot.slane %v8979_v44, 1  ;;  %v2119_v19 = vcvt.s32.f32 %v9001_v33  ;;  %v2356_v60 = vadd.s32 %v6982_v13, %v8638_v41 }
 0x1c5   : > { %v9031_v58 = vor.u32 %v3046_v12, %v3045_v46  ;;  %v9077_v50 = vadd.s32 42, %v9020_v28  ;;  %v2357_v13 = vadd.s32 %v6984_v7, %v8638_v41  ;;  %v9100_v46 = vadd.s32 4294967293, %v2320_v8  ;;  %6537 = vmatprep.subr.bf16.mxu0 %v7231_v43  ;;  %6954 = vmatprep.subr.bf16.mxu1 %v7231_v43 }
 0x1c6   : > { %v2792_v57 = vsel %vm13833_vm4, %v2787_v0, %v2791_v26  ;;  %v6986_v12 = vcvt.f32.s32 %v9057_v30  ;;  %v2153_v23 = vadd.f32 0.5, %v2119_v19  ;;  %vm2424_vm0 = vcmp.ge.s32.totalorder %v2356_v60, 0 }
 0x1c7   : > { %v1893_v31 = vpop.f32.mrb[12].mxu0  ;;  %v9065_v48 = vsel %vm13692_vm2, %v3044_v45, %v9031_v58  ;;  %vm2458_vm11 = vcmp.lt.s32.totalorder %v2356_v60, 16  ;;  %v2120_v40 = vcvt.s32.f32 %v9077_v50  ;;  %vm2526_vm12 = vcmp.ge.s32.totalorder %v6317_v36, 0 }
 0x1c8   : > { %v1894_v3 = vadd.f32 %v8667_v9, %v1893_v31  ;;  %2955 = vrot.lane.b32.xlu1 %v2930_v4, %s13752_s25  ;;  %v6765_v16 = vpop.f32.mrb[13].mxu0  ;;  %vm2560_vm9 = vcmp.lt.s32.totalorder %v6317_v36, 16  ;;  %v7232_v31 = vld [vmem:[%s13613_s3 + $0x38] sm:$0xff]   ;;  %vm2425_vm1 = vcmp.ge.s32.totalorder %v2357_v13, 0  ;;  %vm2459_vm4 = vcmp.lt.s32.totalorder %v2357_v13, 16  ;;  %vm9160_vm3 = vmand %vm2424_vm0, %vm2458_vm11 }
 0x1c9   : > { %v1896_v10 = vpop.f32.mrb[14].mxu0  ;;  %vm2527_vm15 = vcmp.ge.s32.totalorder %v9100_v46, 0  ;;  %vm2561_vm13 = vcmp.lt.s32.totalorder %v9100_v46, 16  ;;  %v2287_v5 = vmul.u32 22, %v6986_v12  ;;  %v2187_v25 = vmul.f32 0.045454547, %v2153_v23  ;;  %6538 = vmatpush3.bf16.msra.mxu0 %v7232_v31  ;;  %6962 = vmatpush3.bf16.msra.mxu1 %v7232_v31  ;;  %vm9190_vm0 = vmand %vm2425_vm1, %vm2459_vm4 }
 0x1ca   : > { %v2010_v55 = vmax.f32 %v1894_v3, 0.0  ;;  %v1897_v45 = vadd.f32 %v8667_v9, %v1896_v10  ;;  %v6766_v62 = vpop.f32.mrb[15].mxu0  ;;  %v2154_v16 = vadd.f32 0.5, %v2120_v40  ;;  %v9138_v10 = vadd.s32 112, %v8554_v61  ;;  %vm9206_vm11 = vmand %vm2527_vm15, %vm2561_vm13 }
 0x1cb   : > { %v3228_v40 = vrot.slane %v8989_v27, 6  ;;  %v3229_v43 = vrot.slane %v8979_v44, 7  ;;  %v2358_v13 = vadd.s32 %v6986_v12, %v8638_v41  ;;  %vm13846_vm1 = vsmask.f32 7424 }
 0x1cc   : > { %v2011_v11 = vmax.f32 %v1897_v45, 0.0  ;;  %2886 = vrot.lane.b32.xlu1 %v2792_v57, %s7367_s28  ;;  %v2728_v7 = vsel %vm2626_vm14, %v2010_v55, 0.0  ;;  %13834 = vst [vmem:[#allocation22_spill] sm:$0xff] %v9138_v10  ;;  %v2288_v45 = vmul.u32 22, %v6988_v29  ;;  %vm9170_vm14 = vmand %vm2526_vm12, %vm2560_vm9  ;;  %vm13847_vm4 = vsmask.f32 1280 }
 0x1cd   : > { %vm2628_vm12 = vmand %vm9160_vm3, %vm9170_vm14  ;;  %vm2426_vm15 = vcmp.ge.s32.totalorder %v2358_v13, 0  ;;  %vm2460_vm13 = vcmp.lt.s32.totalorder %v2358_v13, 16  ;;  %vm13849_vm3 = vcmask 1044480  }
 0x1ce   : > { %v2729_v20 = vsel %vm2627_vm10, %v2011_v11, 0.0  ;;  %v2221_v11 = vfloor.f32 %v2187_v25  ;;  %vm13841_vm10 = vcmask 1046528   ;;  %v2321_v25 = vsub.s32 %v8872_v14, %v2287_v5  ;;  %vm2629_vm9 = vmand %vm9190_vm0, %vm9206_vm11 }
 0x1cf   : > { %v9120_v4 = vpack.c.bf16 %v2729_v20, %v2728_v7  ;;  %vm9296_vm14 = vmand %vm2426_vm15, %vm2460_vm13 }
 0x1d0   : > { %v9220_v46 = vtrunc.f32 %v2221_v11 }
 0x1d1   : > { %v2987_v8 = vrot.slane %v9120_v4, 3  ;;  %v3172_v3 = vrot.slane %v9120_v4, 6  ;;  %v13641_v22 = vrot.slane %v9120_v4, 1  ;;  %v9132_v19 = vshll.u32 %v9120_v4, 16 }
 0x1d2   : > { %v9135_v38 = vshrl.u32 %v9120_v4, 16  ;;  %v3115_v55 = vrot.slane %v9120_v4, 4  ;;  %v13855_v13 = vrot.slane %v9120_v4, 1 }
 0x1d3   : > { %v2988_v0 = vsel %vm13835_vm5, %v2985_v24, %v2987_v8  ;;  %v3173_v54 = vsel %vm13708_vm6, %v3171_v37, %v3172_v3  ;;  %v3232_v57 = vrot.slane %v9132_v19, 7  ;;  %v9156_v24 = vadd.s32 120, %v8554_v61 }
 0x1d4   : > { %3015 = vrot.lane.b32.xlu1 %v2988_v0, %s7368_s23  ;;  %3200 = vrot.lane.b32.xlu0 %v3173_v54, %s13752_s25  ;;  %v3231_v62 = vrot.slane %v9135_v38, 6  ;;  %v3049_v7 = vrot.slane %v9135_v38, 3  ;;  %v3050_v20 = vrot.slane %v9132_v19, 4  ;;  %v2932_v60 = vsel %vm13841_vm10, %v2929_v6, %v13641_v22 }
 0x1d5   : > { %13836 = vst [vmem:[#allocation23_spill] sm:$0xff] %v9156_v24  ;;  %v2188_v37 = vmul.f32 0.045454547, %v2154_v16  ;;  %v9181_v0 = vadd.s32 42, %v9138_v10  ;;  %v3116_v36 = vsel %vm13693_vm8, %v3113_v35, %v3115_v55  ;;  %v2799_v6 = vrot.slane %v9132_v19, 1 }
 0x1d6   : > { %v9195_v14 = vor.u32 %v3232_v57, %v3231_v62  ;;  %v9197_v5 = vor.u32 %v3050_v20, %v3049_v7  ;;  %v2322_v62 = vsub.s32 %v8908_v18, %v2288_v45  ;;  %v9215_v57 = vadd.s32 42, %v9156_v24 }
 0x1d7   : > { %v1901_v54 = vpop.f32.mrb[16].mxu0  ;;  %v3230_v20 = vor.u32 %v3229_v43, %v3228_v40  ;;  %v2121_v44 = vcvt.s32.f32 %v9181_v0  ;;  %v2222_v45 = vfloor.f32 %v2188_v37  ;;  %v2359_v40 = vadd.s32 %v6988_v29, %v8638_v41 }
 0x1d8   : > { %v1902_v16 = vadd.f32 %v8667_v9, %v1901_v54  ;;  %2957 = vrot.lane.b32.xlu1 %v2932_v60, %s13752_s25  ;;  %3143 = vrot.lane.b32.xlu0 %v3116_v36, %s7367_s28  ;;  %v6769_v22 = vpop.f32.mrb[17].mxu0  ;;  %v9225_v60 = vsel %vm13692_vm2, %v9031_v58, %v9197_v5  ;;  %v6320_v63 = vadd.s32 4294967293, %v2322_v62  ;;  %v2122_v43 = vcvt.s32.f32 %v9215_v57 }
 0x1d9   : > { %v1904_v7 = vpop.f32.mrb[18].mxu0  ;;  %v2795_v22 = vor.u32 %v8989_v27, %v2791_v26  ;;  %v3234_v58 = vsel %vm13847_vm4, %v3230_v20, %v9195_v14  ;;  %v6319_v26 = vadd.s32 4294967293, %v2321_v25  ;;  %v13644_v54 = vcvt.f32.s32 %v9220_v46 }
 0x1da   : > { %v2012_v30 = vmax.f32 %v1902_v16, 0.0  ;;  %v1905_v18 = vadd.f32 %v8667_v9, %v1904_v7  ;;  %v6770_v12 = vpop.f32.mrb[19].mxu0  ;;  %v2155_v36 = vadd.f32 0.5, %v2121_v44  ;;  %v9256_v34 = vtrunc.f32 %v2222_v45  ;;  %v7233_v7 = vld [vmem:[%s13613_s3 + $0x80] sm:$0xff]  }
 0x1db   : > { %v2800_v27 = vsel %vm13846_vm1, %v2795_v22, %v2799_v6  ;;  %vm2528_vm5 = vcmp.ge.s32.totalorder %v6319_v26, 0  ;;  %vm2562_vm10 = vcmp.lt.s32.totalorder %v6319_v26, 16  ;;  %vm2427_vm0 = vcmp.ge.s32.totalorder %v2359_v40, 0  ;;  %6819 = vmatprep.subr.bf16.mxu0 %v7233_v7 }
 0x1dc   : > { %v2013_v11 = vmax.f32 %v1905_v18, 0.0  ;;  %2888 = vrot.lane.b32.xlu1 %v2800_v27, %s7367_s28  ;;  %3292 = vrot.lane.b32.xlu0 %v3234_v58, %s7368_s23  ;;  %v2730_v25 = vsel %vm2628_vm12, %v2012_v30, 0.0  ;;  %vm2461_vm11 = vcmp.lt.s32.totalorder %v2359_v40, 16  ;;  %vm2529_vm1 = vcmp.ge.s32.totalorder %v6320_v63, 0 }
 0x1dd   : > { %v2156_v29 = vadd.f32 0.5, %v2122_v43  ;;  %v2289_v31 = vmul.u32 22, %v13644_v54  ;;  %v9263_v62 = vadd.s32 128, %v8554_v61  ;;  %v2189_v18 = vmul.f32 0.045454547, %v2155_v36  ;;  %vm9324_vm15 = vmand %vm2427_vm0, %vm2461_vm11 }
 0x1de   : > { %v2731_v37 = vsel %vm2629_vm9, %v2013_v11, 0.0  ;;  %v6992_v58 = vcvt.f32.s32 %v9256_v34  ;;  %v9292_v43 = vadd.s32 136, %v8554_v61  ;;  %vm2563_vm12 = vcmp.lt.s32.totalorder %v6320_v63, 16  ;;  %vm9307_vm9 = vmand %vm2528_vm5, %vm2562_vm10 }
 0x1df   : > { %v9254_v16 = vpack.c.bf16 %v2731_v37, %v2730_v25  ;;  %13848 = vst [vmem:[#allocation24_spill] sm:$0xff] %v9263_v62  ;;  %v9301_v25 = vadd.s32 42, %v9263_v62  ;;  %vm13856_vm4 = vcmask 1046528   ;;  %v2323_v7 = vsub.s32 %v9001_v33, %v2289_v31  ;;  %vm9338_vm13 = vmand %vm2529_vm1, %vm2563_vm12 }
 0x1e0   : > { %13850 = vst [vmem:[#allocation25_spill] sm:$0xff] %v9292_v43  ;;  %v2290_v40 = vmul.u32 22, %v6992_v58  ;;  %vm2630_vm5 = vmand %vm9296_vm14, %vm9307_vm9  ;;  %v13861_v19 = vcvt.f32.s32 %v9220_v46  ;;  %vm13862_vm0 = vsmask.f32 7424  ;;  %vm13863_vm11 = vsmask.f32 1280 }
 0x1e1   : > { %v13643_v35 = vrot.slane %v9254_v16, 6  ;;  %v13642_v23 = vrot.slane %v9254_v16, 3  ;;  %v2933_v22 = vrot.slane %v9254_v16, 1  ;;  %v9270_v20 = vshll.u32 %v9254_v16, 16  ;;  %vm2631_vm10 = vmand %vm9324_vm15, %vm9338_vm13 }
 0x1e2   : > { %v9273_v30 = vshrl.u32 %v9254_v16, 16  ;;  %v3117_v27 = vrot.slane %v9254_v16, 4  ;;  %vm13867_vm9 = vcmask 1044480  }
 0x1e3   : > { %v3175_v12 = vsel %vm13708_vm6, %v3172_v3, %v13643_v35  ;;  %v2990_v44 = vsel %vm13849_vm3, %v2987_v8, %v13642_v23  ;;  %v3236_v11 = vrot.slane %v9270_v20, 7  ;;  %v2190_v3 = vmul.f32 0.045454547, %v2156_v29 }
 0x1e4   : > { %3202 = vrot.lane.b32.xlu0 %v3175_v12, %s13752_s25  ;;  %3017 = vrot.lane.b32.xlu1 %v2990_v44, %s7368_s23  ;;  %v3235_v45 = vrot.slane %v9273_v30, 6  ;;  %v3053_v37 = vrot.slane %v9273_v30, 3  ;;  %v3054_v36 = vrot.slane %v9270_v20, 4  ;;  %v2934_v29 = vsel %vm13856_vm4, %v13855_v13, %v2933_v22 }
 0x1e5   : > { %v2223_v12 = vfloor.f32 %v2189_v18  ;;  %v3118_v26 = vsel %vm13693_vm8, %v3115_v55, %v3117_v27  ;;  %v2807_v35 = vrot.slane %v9270_v20, 1  ;;  %v2224_v18 = vfloor.f32 %v2190_v3 }
 0x1e6   : > { %v9329_v54 = vor.u32 %v3236_v11, %v3235_v45  ;;  %v9331_v13 = vor.u32 %v3054_v36, %v3053_v37  ;;  %v9343_v45 = vadd.s32 42, %v9292_v43  ;;  %v2803_v37 = vor.u32 %v9135_v38, %v2799_v6 }
 0x1e7   : > { %v1909_v44 = vpop.f32.mrb[20].mxu0  ;;  %v2123_v36 = vcvt.s32.f32 %v9301_v25  ;;  %v2360_v38 = vadd.s32 %v13861_v19, %v8638_v41  ;;  %v9362_v6 = vtrunc.f32 %v2223_v12  ;;  %v2324_v12 = vsub.s32 %v9077_v50, %v2290_v40 }
 0x1e8   : > { %v1910_v33 = vadd.f32 %v8667_v9, %v1909_v44  ;;  %2959 = vrot.lane.b32.xlu1 %v2934_v29, %s13752_s25  ;;  %3145 = vrot.lane.b32.xlu0 %v3118_v26, %s7367_s28  ;;  %v6773_v31 = vpop.f32.mrb[21].mxu0  ;;  %v9352_v63 = vsel %vm13692_vm2, %v9197_v5, %v9331_v13  ;;  %v2808_v5 = vsel %vm13862_vm0, %v2803_v37, %v2807_v35  ;;  %v6321_v26 = vadd.s32 4294967293, %v2323_v7 }
 0x1e9   : > { %v1912_v11 = vpop.f32.mrb[22].mxu0  ;;  %v9378_v23 = vtrunc.f32 %v2224_v18  ;;  %v2124_v31 = vcvt.s32.f32 %v9343_v45  ;;  %v2157_v55 = vadd.f32 0.5, %v2123_v36  ;;  %vm2428_vm1 = vcmp.ge.s32.totalorder %v2360_v38, 0 }
 0x1ea   : > { %v2014_v29 = vmax.f32 %v1910_v33, 0.0  ;;  %v1913_v3 = vadd.f32 %v8667_v9, %v1912_v11  ;;  %v6774_v44 = vpop.f32.mrb[23].mxu0  ;;  %v3238_v9 = vsel %vm13863_vm11, %v9195_v14, %v9329_v54  ;;  %v2361_v33 = vadd.s32 %v6992_v58, %v8638_v41 }
 0x1eb   : > { %v6994_v58 = vcvt.f32.s32 %v9362_v6  ;;  %vm2462_vm3 = vcmp.lt.s32.totalorder %v2360_v38, 16  ;;  %vm2530_vm12 = vcmp.ge.s32.totalorder %v6321_v26, 0  ;;  %vm2564_vm4 = vcmp.lt.s32.totalorder %v6321_v26, 16 }
 0x1ec   : > { %v2015_v46 = vmax.f32 %v1913_v3, 0.0  ;;  %2890 = vrot.lane.b32.xlu1 %v2808_v5, %s7367_s28  ;;  %3294 = vrot.lane.b32.xlu0 %v3238_v9, %s7368_s23  ;;  %v2732_v14 = vsel %vm2630_vm5, %v2014_v29, 0.0  ;;  %v6322_v50 = vadd.s32 4294967293, %v2324_v12  ;;  %vm2429_vm15 = vcmp.ge.s32.totalorder %v2361_v33, 0  ;;  %vm9419_vm5 = vmand %vm2428_vm1, %vm2462_vm3 }
 0x1ed   : > { %v6996_v40 = vcvt.f32.s32 %v9378_v23  ;;  %v2158_v18 = vadd.f32 0.5, %v2124_v31  ;;  %v2191_v37 = vmul.f32 0.045454547, %v2157_v55  ;;  %v9393_v36 = vadd.s32 144, %v8554_v61  ;;  %vm9428_vm0 = vmand %vm2530_vm12, %vm2564_vm4 }
 0x1ee   : > { %v2733_v7 = vsel %vm2631_vm10, %v2015_v46, 0.0  ;;  %vm2463_vm14 = vcmp.lt.s32.totalorder %v2361_v33, 16  ;;  %v2291_v44 = vmul.u32 22, %v6994_v58  ;;  %v13865_v19 = vrot.slane %v9254_v16, 6  ;;  %vm2632_vm12 = vmand %vm9419_vm5, %vm9428_vm0 }
 0x1ef   : > { %v9387_v11 = vpack.c.bf16 %v2733_v7, %v2732_v14  ;;  %13864 = vst [vmem:[#allocation26_spill] sm:$0xff] %v9393_v36  ;;  %v13866_v5 = vrot.slane %v9254_v16, 3  ;;  %vm2531_vm13 = vcmp.ge.s32.totalorder %v6322_v50, 0  ;;  %v2192_v55 = vmul.f32 0.045454547, %v2158_v18  ;;  %vm9449_vm1 = vmand %vm2429_vm15, %vm2463_vm14 }
 0x1f0   : > { %vm2565_vm10 = vcmp.lt.s32.totalorder %v6322_v50, 16  ;;  %v2292_v7 = vmul.u32 22, %v6996_v40  ;;  %v2325_v18 = vsub.s32 %v9181_v0, %v2291_v44  ;;  %v9434_v38 = vadd.s32 152, %v8554_v61 }
 0x1f1   : > { %v13646_v8 = vrot.slane %v9387_v11, 6  ;;  %v13645_v34 = vrot.slane %v9387_v11, 3  ;;  %v9396_v29 = vshll.u32 %v9387_v11, 16  ;;  %v9399_v3 = vshrl.u32 %v9387_v11, 16  ;;  %vm9466_vm3 = vmand %vm2531_vm13, %vm2565_vm10 }
 0x1f2   : > { %v13647_v46 = vrot.slane %v9387_v11, 4  ;;  %v13648_v12 = vrot.slane %v9387_v11, 1  ;;  %13872 = vst [vmem:[#allocation27_spill] sm:$0xff] %v9434_v38  ;;  %vm13873_vm11 = vcmask 1046528   ;;  %vm2633_vm4 = vmand %vm9449_vm1, %vm9466_vm3  ;;  %vm13879_vm15 = vsmask.f32 7424 }
 0x1f3   : > { %v3177_v6 = vsel %vm13708_vm6, %v13865_v19, %v13646_v8  ;;  %v2992_v9 = vsel %vm13867_vm9, %v13866_v5, %v13645_v34  ;;  %v3239_v23 = vrot.slane %v9399_v3, 6  ;;  %v3240_v31 = vrot.slane %v9396_v29, 7 }
 0x1f4   : > { %3204 = vrot.lane.b32.xlu0 %v3177_v6, %s13752_s25  ;;  %3019 = vrot.lane.b32.xlu1 %v2992_v9, %s7368_s23  ;;  %v2225_v19 = vfloor.f32 %v2191_v37  ;;  %v9424_v5 = vadd.s32 42, %v9393_v36  ;;  %v3057_v9 = vrot.slane %v9399_v3, 3  ;;  %v3120_v37 = vsel %vm13693_vm8, %v3117_v27, %v13647_v46  ;;  %v9459_v27 = vld [vmem:[%s13612_s2] ss:$0 sm:$0xff] }
 0x1f5   : > { %v2936_v26 = vsel %vm13873_vm11, %v2933_v22, %v13648_v12  ;;  %v9454_v8 = vor.u32 %v3240_v31, %v3239_v23  ;;  %v2362_v23 = vadd.s32 %v6994_v58, %v8638_v41  ;;  %v2226_v31 = vfloor.f32 %v2192_v55 }
 0x1f6   : > { %v3058_v12 = vrot.slane %v9396_v29, 4  ;;  %v2125_v50 = vcvt.s32.f32 %v9424_v5  ;;  %v9485_v36 = vadd.s32 42, %v9434_v38  ;;  %vm13880_vm14 = vsmask.f32 1280 }
 0x1f7   : > { %v1917_v34 = vpop.f32.mrb[24].mxu0  ;;  %vm2430_vm9 = vcmp.ge.s32.totalorder %v2362_v23, 0  ;;  %vm2464_vm13 = vcmp.lt.s32.totalorder %v2362_v23, 16  ;;  %v9520_v14 = vadd.s32 160, %v8554_v61  ;;  %vm13884_vm0 = vcmask 1044480  }
 0x1f8   : > { %v1918_v46 = vadd.f32 %v9459_v27, %v1917_v34  ;;  %3147 = vrot.lane.b32.xlu0 %v3120_v37, %s7367_s28  ;;  %2961 = vrot.lane.b32.xlu1 %v2936_v26, %s13752_s25  ;;  %v6777_v22 = vpop.f32.mrb[25].mxu0  ;;  %v2811_v34 = vor.u32 %v9273_v30, %v2807_v35  ;;  %v2326_v37 = vsub.s32 %v9215_v57, %v2292_v7  ;;  %v9476_v26 = vtrunc.f32 %v2225_v19 }
 0x1f9   : > { %v1920_v44 = vpop.f32.mrb[26].mxu0  ;;  %v9487_v20 = vor.u32 %v3058_v12, %v3057_v9  ;;  %v13878_v57 = vrot.slane %v9396_v29, 1  ;;  %v3242_v30 = vsel %vm13880_vm14, %v9329_v54, %v9454_v8  ;;  %v2363_v12 = vadd.s32 %v6996_v40, %v8638_v41  ;;  %13881 = vst [vmem:[#allocation28_spill] sm:$0xff] %v9520_v14 }
 0x1fa   : > { %v2016_v22 = vmax.f32 %v1918_v46, 0.0  ;;  %v1921_v58 = vadd.f32 %v9459_v27, %v1920_v44  ;;  %v6778_v55 = vpop.f32.mrb[27].mxu0  ;;  %v6323_v46 = vadd.s32 4294967293, %v2325_v18  ;;  %v9502_v19 = vtrunc.f32 %v2226_v31 }
 0x1fb   : > { %v2816_v35 = vsel %vm13879_vm15, %v2811_v34, %v13878_v57  ;;  %v9507_v9 = vsel %vm13692_vm2, %v9331_v13, %v9487_v20  ;;  %v6324_v0 = vadd.s32 4294967293, %v2326_v37  ;;  %v2159_v44 = vadd.f32 0.5, %v2125_v50 }
 0x1fc   : > { %v2017_v7 = vmax.f32 %v1921_v58, 0.0  ;;  %2892 = vrot.lane.b32.xlu1 %v2816_v35, %s7367_s28  ;;  %3296 = vrot.lane.b32.xlu0 %v3242_v30, %s7368_s23  ;;  %v2734_v54 = vsel %vm2632_vm12, %v2016_v22, 0.0  ;;  %v6998_v33 = vcvt.f32.s32 %v9476_v26  ;;  %v2126_v40 = vcvt.s32.f32 %v9485_v36  ;;  %vm9551_vm12 = vmand %vm2430_vm9, %vm2464_vm13 }
 0x1fd   : > { %vm2532_vm10 = vcmp.ge.s32.totalorder %v6323_v46, 0  ;;  %vm2566_vm11 = vcmp.lt.s32.totalorder %v6323_v46, 16  ;;  %vm2431_vm1 = vcmp.ge.s32.totalorder %v2363_v12, 0  ;;  %vm2465_vm3 = vcmp.lt.s32.totalorder %v2363_v12, 16 }
 0x1fe   : > { %v2735_v18 = vsel %vm2633_vm4, %v2017_v7, 0.0  ;;  %v7000_v13 = vcvt.f32.s32 %v9502_v19  ;;  %vm2533_vm5 = vcmp.ge.s32.totalorder %v6324_v0, 0  ;;  %v2193_v37 = vmul.f32 0.045454547, %v2159_v44  ;;  %vm9561_vm15 = vmand %vm2532_vm10, %vm2566_vm11 }
 0x1ff   : > { %v9516_v31 = vpack.c.bf16 %v2735_v18, %v2734_v54  ;;  %v2293_v22 = vmul.u32 22, %v6998_v33  ;;  %v2160_v58 = vadd.f32 0.5, %v2126_v40  ;;  %v13882_v55 = vrot.slane %v9387_v11, 6  ;;  %vm9579_vm9 = vmand %vm2431_vm1, %vm2465_vm3 }
 0x200   : > { %v13883_v35 = vrot.slane %v9387_v11, 3  ;;  %v2294_v18 = vmul.u32 22, %v7000_v13  ;;  %v9547_v40 = vadd.s32 42, %v9520_v14  ;;  %vm2567_vm4 = vcmp.lt.s32.totalorder %v6324_v0, 16  ;;  %vm2634_vm10 = vmand %vm9551_vm12, %vm9561_vm15 }
 0x201   : > { %v13651_v6 = vrot.slane %v9516_v31, 6  ;;  %v13650_v34 = vrot.slane %v9516_v31, 3  ;;  %v9525_v26 = vshll.u32 %v9516_v31, 16  ;;  %v9528_v50 = vshrl.u32 %v9516_v31, 16  ;;  %vm9591_vm13 = vmand %vm2533_vm5, %vm2567_vm4 }
 0x202   : > { %v2194_v23 = vmul.f32 0.045454547, %v2160_v58  ;;  %v13890_v14 = vrot.slane %v9516_v31, 4  ;;  %v13892_v43 = vrot.slane %v9516_v31, 1  ;;  %v13893_v46 = vrot.slane %v9387_v11, 1  ;;  %vm2635_vm11 = vmand %vm9579_vm9, %vm9591_vm13 }
 0x203   : > { %v3179_v57 = vsel %vm13708_vm6, %v13882_v55, %v13651_v6  ;;  %v2994_v30 = vsel %vm13884_vm0, %v13883_v35, %v13650_v34  ;;  %v3243_v44 = vrot.slane %v9528_v50, 6  ;;  %v3244_v54 = vrot.slane %v9525_v26, 7 }
 0x204   : > { %3206 = vrot.lane.b32.xlu0 %v3179_v57, %s13752_s25  ;;  %3021 = vrot.lane.b32.xlu1 %v2994_v30, %s7368_s23  ;;  %v2227_v35 = vfloor.f32 %v2193_v37  ;;  %v9556_v57 = vadd.s32 168, %v8554_v61  ;;  %v3061_v30 = vrot.slane %v9528_v50, 3  ;;  %v2327_v6 = vsub.s32 %v9301_v25, %v2293_v22 }
 0x205   : > { %v3062_v19 = vrot.slane %v9525_v26, 4  ;;  %v13891_v37 = vrot.slane %v9387_v11, 4  ;;  %vm13894_vm14 = vcmask 1046528   ;;  %v9583_v22 = vor.u32 %v3244_v54, %v3243_v44 }
 0x206   : > { %13887 = vst [vmem:[#allocation29_spill] sm:$0xff] %v9556_v57  ;;  %v2938_v62 = vsel %vm13894_vm14, %v13893_v46, %v13892_v43  ;;  %v13659_v58 = vrot.slane %v9525_v26, 1  ;;  %v2328_v12 = vsub.s32 %v9343_v45, %v2294_v18  ;;  %v2127_v44 = vcvt.s32.f32 %v9547_v40 }
 0x207   : > { %v1925_v7 = vpop.f32.mrb[28].mxu0  ;;  %v3122_v38 = vsel %vm13693_vm8, %v13891_v37, %v13890_v14  ;;  %v9597_v54 = vor.u32 %v3062_v19, %v3061_v30  ;;  %v9603_v46 = vtrunc.f32 %v2227_v35  ;;  %v9606_v0 = vadd.s32 42, %v9556_v57 }
 0x208   : > { %v1926_v24 = vadd.f32 %v9459_v27, %v1925_v7  ;;  %3149 = vrot.lane.b32.xlu0 %v3122_v38, %s7367_s28  ;;  %2963 = vrot.lane.b32.xlu1 %v2938_v62, %s13752_s25  ;;  %v6781_v14 = vpop.f32.mrb[29].mxu0  ;;  %v13899_v7 = vrot.slane %v9396_v29, 1  ;;  %v2364_v62 = vadd.s32 %v6998_v33, %v8638_v41  ;;  %v2228_v18 = vfloor.f32 %v2194_v23 }
 0x209   : > { %v1928_v37 = vpop.f32.mrb[30].mxu0  ;;  %v9616_v29 = vsel %vm13692_vm2, %v9487_v20, %v9597_v54  ;;  %vm13900_vm1 = vsmask.f32 1280  ;;  %vm13901_vm3 = vsmask.f32 7424  ;;  %v6325_v33 = vadd.s32 4294967293, %v2327_v6 }
 0x20a   : > { %v2819_v38 = vor.u32 %v9399_v3, %v13899_v7  ;;  %v2018_v14 = vmax.f32 %v1926_v24, 0.0  ;;  %v1929_v45 = vadd.f32 %v9459_v27, %v1928_v37  ;;  %v6782_v19 = vpop.f32.mrb[31].mxu0  ;;  %v3246_v24 = vsel %vm13900_vm1, %v9454_v8, %v9583_v22 }
 0x20b   : > { %v2365_v35 = vadd.s32 %v7000_v13, %v8638_v41  ;;  %v6326_v20 = vadd.s32 4294967293, %v2328_v12  ;;  %v2161_v23 = vadd.f32 0.5, %v2127_v44  ;;  %vm2432_vm5 = vcmp.ge.s32.totalorder %v2364_v62, 0 }
 0x20c   : > { %v2824_v3 = vsel %vm13901_vm3, %v2819_v38, %v13659_v58  ;;  %v2019_v30 = vmax.f32 %v1929_v45, 0.0  ;;  %3298 = vrot.lane.b32.xlu0 %v3246_v24, %s7368_s23  ;;  %vm2466_vm0 = vcmp.lt.s32.totalorder %v2364_v62, 16  ;;  %v2128_v25 = vcvt.s32.f32 %v9606_v0 }
 0x20d   : > { %2894 = vrot.lane.b32.xlu1 %v2824_v3, %s7367_s28  ;;  %v2736_v8 = vsel %vm2634_vm10, %v2018_v14, 0.0  ;;  %v7002_v13 = vcvt.f32.s32 %v9603_v46  ;;  %v9638_v43 = vtrunc.f32 %v2228_v18  ;;  %vm2534_vm4 = vcmp.ge.s32.totalorder %v6325_v33, 0  ;;  %vm9678_vm10 = vmand %vm2432_vm5, %vm2466_vm0 }
 0x20e   : > { %v2737_v6 = vsel %vm2635_vm11, %v2019_v30, 0.0  ;;  %vm2568_vm14 = vcmp.lt.s32.totalorder %v6325_v33, 16  ;;  %vm2433_vm9 = vcmp.ge.s32.totalorder %v2365_v35, 0  ;;  %vm2467_vm13 = vcmp.lt.s32.totalorder %v2365_v35, 16 }
 0x20f   : > { %v9640_v37 = vpack.c.bf16 %v2737_v6, %v2736_v8  ;;  %vm2535_vm1 = vcmp.ge.s32.totalorder %v6326_v20, 0  ;;  %v2195_v12 = vmul.f32 0.045454547, %v2161_v23  ;;  %v9643_v44 = vadd.s32 176, %v8554_v61  ;;  %vm9688_vm11 = vmand %vm2534_vm4, %vm2568_vm14 }
 0x210   : > { %v2162_v7 = vadd.f32 0.5, %v2128_v25  ;;  %v9648_v38 = vadd.s32 184, %v8554_v61  ;;  %v2295_v45 = vmul.u32 22, %v7002_v13  ;;  %v7004_v19 = vcvt.f32.s32 %v9638_v43  ;;  %vm9706_vm5 = vmand %vm2433_vm9, %vm2467_vm13 }
 0x211   : > { %13902 = vst [vmem:[#allocation30_spill] sm:$0xff] %v9643_v44  ;;  %v13658_v34 = vrot.slane %v9640_v37, 6  ;;  %v13657_v55 = vrot.slane %v9640_v37, 3  ;;  %v9651_v46 = vshll.u32 %v9640_v37, 16  ;;  %v9654_v14 = vshrl.u32 %v9640_v37, 16  ;;  %vm2636_vm4 = vmand %vm9678_vm10, %vm9688_vm11 }
 0x212   : > { %13903 = vst [vmem:[#allocation31_spill] sm:$0xff] %v9648_v38  ;;  %v13904_v18 = vrot.slane %v9516_v31, 6  ;;  %v13905_v3 = vrot.slane %v9516_v31, 3  ;;  %vm13906_vm12 = vcmask 1044480   ;;  %vm2569_vm15 = vcmp.lt.s32.totalorder %v6326_v20, 16 }
 0x213   : > { %v3247_v8 = vrot.slane %v9654_v14, 6  ;;  %v3248_v6 = vrot.slane %v9651_v46, 7  ;;  %v9674_v43 = vadd.s32 42, %v9643_v44  ;;  %v2329_v58 = vsub.s32 %v9424_v5, %v2295_v45  ;;  %vm9718_vm0 = vmand %vm2535_vm1, %vm2569_vm15 }
 0x214   : > { %v3181_v24 = vsel %vm13708_vm6, %v13904_v18, %v13658_v34  ;;  %v2996_v30 = vsel %vm13906_vm12, %v13905_v3, %v13657_v55  ;;  %v2229_v3 = vfloor.f32 %v2195_v12  ;;  %v2196_v55 = vmul.f32 0.045454547, %v2162_v7  ;;  %vm2637_vm14 = vmand %vm9706_vm5, %vm9718_vm0 }
 0x215   : > { %3208 = vrot.lane.b32.xlu0 %v3181_v24, %s13752_s25  ;;  %3023 = vrot.lane.b32.xlu1 %v2996_v30, %s7368_s23  ;;  %v9683_v24 = vadd.s32 42, %v9648_v38  ;;  %v3065_v30 = vrot.slane %v9654_v14, 3  ;;  %v2296_v62 = vmul.u32 22, %v7004_v19  ;;  %v3066_v25 = vrot.slane %v9651_v46, 4 }
 0x216   : > { %v13911_v12 = vrot.slane %v9640_v37, 4  ;;  %v13912_v7 = vrot.slane %v9516_v31, 4  ;;  %v13913_v44 = vrot.slane %v9640_v37, 1  ;;  %v13914_v33 = vrot.slane %v9516_v31, 1 }
 0x217   : > { %v1933_v23 = vpop.f32.mrb[32].mxu0  ;;  %vm13915_vm3 = vcmask 1046528   ;;  %v9710_v45 = vor.u32 %v3248_v6, %v3247_v8  ;;  %v2366_v35 = vadd.s32 %v7002_v13, %v8638_v41  ;;  %v2129_v8 = vcvt.s32.f32 %v9674_v43 }
 0x218   : > { %v3124_v38 = vsel %vm13693_vm8, %v13912_v7, %v13911_v12  ;;  %v2940_v57 = vsel %vm13915_vm3, %v13914_v33, %v13913_v44  ;;  %v1934_v28 = vadd.f32 %v9459_v27, %v1933_v23  ;;  %v6785_v12 = vpop.f32.mrb[33].mxu0  ;;  %v9724_v6 = vor.u32 %v3066_v25, %v3065_v30 }
 0x219   : > { %3151 = vrot.lane.b32.xlu0 %v3124_v38, %s7367_s28  ;;  %2965 = vrot.lane.b32.xlu1 %v2940_v57, %s13752_s25  ;;  %v1936_v7 = vpop.f32.mrb[34].mxu0  ;;  %v13920_v23 = vrot.slane %v9525_v26, 1  ;;  %v7005_v33 = vtrunc.f32 %v2229_v3  ;;  %v2230_v57 = vfloor.f32 %v2196_v55  ;;  %v2130_v12 = vcvt.s32.f32 %v9683_v24 }
 0x21a   : > { %v2020_v20 = vmax.f32 %v1934_v28, 0.0  ;;  %v1937_v13 = vadd.f32 %v9459_v27, %v1936_v7  ;;  %v6786_v10 = vpop.f32.mrb[35].mxu0  ;;  %v9736_v25 = vadd.s32 192, %v8554_v61  ;;  %v9741_v26 = vsel %vm13692_vm2, %v9597_v54, %v9724_v6 }
 0x21b   : > { %v2827_v38 = vor.u32 %v9528_v50, %v13920_v23  ;;  %vm13922_vm9 = vsmask.f32 1280  ;;  %v13923_v50 = vrot.slane %v9651_v46, 1  ;;  %vm13924_vm13 = vsmask.f32 7424 }
 0x21c   : > { %13921 = vst [vmem:[#allocation32_spill] sm:$0xff] %v9736_v25  ;;  %v3250_v28 = vsel %vm13922_vm9, %v9583_v22, %v9710_v45  ;;  %v6327_v55 = vadd.s32 4294967293, %v2329_v58  ;;  %v2330_v3 = vsub.s32 %v9485_v36, %v2296_v62  ;;  %v2021_v30 = vmax.f32 %v1937_v13, 0.0 }
 0x21d   : > { %v2832_v10 = vsel %vm13924_vm13, %v2827_v38, %v13923_v50  ;;  %3300 = vrot.lane.b32.xlu0 %v3250_v28, %s7368_s23  ;;  %v2367_v54 = vadd.s32 %v7004_v19, %v8638_v41  ;;  %v2163_v5 = vadd.f32 0.5, %v2129_v8  ;;  %vm2434_vm1 = vcmp.ge.s32.totalorder %v2366_v35, 0 }
 0x21e   : > { %2896 = vrot.lane.b32.xlu1 %v2832_v10, %s7367_s28  ;;  %vm2468_vm12 = vcmp.lt.s32.totalorder %v2366_v35, 16  ;;  %v7006_v44 = vcvt.f32.s32 %v7005_v33  ;;  %v9757_v7 = vtrunc.f32 %v2230_v57  ;;  %v2738_v22 = vsel %vm2636_vm4, %v2020_v20, 0.0 }
 0x21f   : > { %v2739_v36 = vsel %vm2637_vm14, %v2021_v30, 0.0  ;;  %v2164_v58 = vadd.f32 0.5, %v2130_v12  ;;  %v9765_v62 = vadd.s32 42, %v9736_v25  ;;  %vm2536_vm15 = vcmp.ge.s32.totalorder %v6327_v55, 0  ;;  %vm9803_vm11 = vmand %vm2434_vm1, %vm2468_vm12 }
 0x220   : > { %v9767_v23 = vpack.c.bf16 %v2739_v36, %v2738_v22  ;;  %vm2570_vm3 = vcmp.lt.s32.totalorder %v6327_v55, 16  ;;  %v6328_v19 = vadd.s32 4294967293, %v2330_v3  ;;  %vm2435_vm5 = vcmp.ge.s32.totalorder %v2367_v54, 0 }
 0x221   : > { %vm2469_vm0 = vcmp.lt.s32.totalorder %v2367_v54, 16  ;;  %v2197_v8 = vmul.f32 0.045454547, %v2163_v5  ;;  %v9770_v38 = vadd.s32 200, %v8554_v61  ;;  %v2297_v33 = vmul.u32 22, %v7006_v44  ;;  %vm9810_vm9 = vmand %vm2536_vm15, %vm2570_vm3 }
 0x222   : > { %v13666_v34 = vrot.slane %v9767_v23, 6  ;;  %v13665_v18 = vrot.slane %v9767_v23, 3  ;;  %v7008_v57 = vcvt.f32.s32 %v9757_v7  ;;  %v9776_v12 = vshll.u32 %v9767_v23, 16  ;;  %vm9830_vm1 = vmand %vm2435_vm5, %vm2469_vm0 }
 0x223   : > { %13925 = vst [vmem:[#allocation33_spill] sm:$0xff] %v9770_v38  ;;  %v9779_v20 = vshrl.u32 %v9767_v23, 16  ;;  %v2198_v13 = vmul.f32 0.045454547, %v2164_v58  ;;  %v2131_v28 = vcvt.s32.f32 %v9765_v62  ;;  %v13926_v50 = vrot.slane %v9640_v37, 6  ;;  %vm2638_vm15 = vmand %vm9803_vm11, %vm9810_vm9 }
 0x224   : > { %v13927_v3 = vrot.slane %v9640_v37, 3  ;;  %vm13928_vm10 = vcmask 1044480   ;;  %v3252_v36 = vrot.slane %v9776_v12, 7  ;;  %v2231_v58 = vfloor.f32 %v2197_v8 }
 0x225   : > { %v3183_v10 = vsel %vm13708_vm6, %v13926_v50, %v13666_v34  ;;  %v3251_v22 = vrot.slane %v9779_v20, 6  ;;  %v9799_v50 = vadd.s32 42, %v9770_v38  ;;  %vm2537_vm4 = vcmp.ge.s32.totalorder %v6328_v19, 0 }
 0x226   : > { %v2998_v30 = vsel %vm13928_vm10, %v13927_v3, %v13665_v18  ;;  %3210 = vrot.lane.b32.xlu0 %v3183_v10, %s13752_s25  ;;  %vm2571_vm14 = vcmp.lt.s32.totalorder %v6328_v19, 16  ;;  %v2331_v10 = vsub.s32 %v9547_v40, %v2297_v33  ;;  %v2298_v18 = vmul.u32 22, %v7008_v57 }
 0x227   : > { %3025 = vrot.lane.b32.xlu1 %v2998_v30, %s7368_s23  ;;  %v9815_v8 = vadd.s32 %v7006_v44, %v8638_v41  ;;  %v2232_v34 = vfloor.f32 %v2198_v13  ;;  %v2165_v35 = vadd.f32 0.5, %v2131_v28  ;;  %v3069_v7 = vrot.slane %v9779_v20, 3  ;;  %v1941_v5 = vpop.f32.mrb[36].mxu0  ;;  %vm9842_vm12 = vmand %vm2537_vm4, %vm2571_vm14 }
 0x228   : > { %v13933_v38 = vrot.slane %v9767_v23, 4  ;;  %v13934_v25 = vrot.slane %v9640_v37, 4  ;;  %v13935_v55 = vrot.slane %v9767_v23, 1  ;;  %v13936_v33 = vrot.slane %v9640_v37, 1  ;;  %vm2639_vm3 = vmand %vm9830_vm1, %vm9842_vm12 }
 0x229   : > { %vm13937_vm13 = vcmask 1046528   ;;  %v9834_v13 = vor.u32 %v3252_v36, %v3251_v22  ;;  %v1942_v39 = vadd.f32 %v9459_v27, %v1941_v5  ;;  %v9846_v54 = vtrunc.f32 %v2231_v58 }
 0x22a   : > { %v3126_v40 = vsel %vm13693_vm8, %v13934_v25, %v13933_v38  ;;  %v2942_v53 = vsel %vm13937_vm13, %v13936_v33, %v13935_v55  ;;  %v6789_v25 = vpop.f32.mrb[37].mxu0  ;;  %v2132_v22 = vcvt.s32.f32 %v9799_v50  ;;  %v3070_v36 = vrot.slane %v9776_v12, 4 }
 0x22b   : > { %3153 = vrot.lane.b32.xlu0 %v3126_v40, %s7367_s28  ;;  %2967 = vrot.lane.b32.xlu1 %v2942_v53, %s13752_s25  ;;  %v1944_v55 = vpop.f32.mrb[38].mxu0  ;;  %v13942_v5 = vrot.slane %v9651_v46, 1  ;;  %v6329_v33 = vadd.s32 4294967293, %v2331_v10  ;;  %v2332_v53 = vsub.s32 %v9606_v0, %v2298_v18  ;;  %v9855_v19 = vadd.s32 208, %v8554_v61 }
 0x22c   : > { %v2022_v25 = vmax.f32 %v1942_v39, 0.0  ;;  %v1945_v58 = vadd.f32 %v9459_v27, %v1944_v55  ;;  %v6790_v28 = vpop.f32.mrb[39].mxu0  ;;  %v9862_v49 = vtrunc.f32 %v2232_v34  ;;  %v9864_v46 = vor.u32 %v3070_v36, %v3069_v7 }
 0x22d   : > { %v2835_v40 = vor.u32 %v9654_v14, %v13942_v5  ;;  %13943 = vst [vmem:[#allocation34_spill] sm:$0xff] %v9855_v19  ;;  %vm13944_vm5 = vsmask.f32 1280  ;;  %v13945_v0 = vrot.slane %v9776_v12, 1  ;;  %vm13946_vm0 = vsmask.f32 7424 }
 0x22e   : > { %v3254_v39 = vsel %vm13944_vm5, %v9710_v45, %v9834_v13  ;;  %v2369_v18 = vadd.s32 %v7008_v57, %v8638_v41  ;;  %v2199_v10 = vmul.f32 0.045454547, %v2165_v35  ;;  %v2023_v34 = vmax.f32 %v1945_v58, 0.0 }
 0x22f   : > { %v2840_v14 = vsel %vm13946_vm0, %v2835_v40, %v13945_v0  ;;  %3302 = vrot.lane.b32.xlu0 %v3254_v39, %s7368_s23  ;;  %vm2436_vm10 = vcmp.ge.s32.totalorder %v9815_v8, 0  ;;  %v7010_v7 = vcvt.f32.s32 %v9846_v54  ;;  %v2166_v28 = vadd.f32 0.5, %v2132_v22 }
 0x230   : > { %2898 = vrot.lane.b32.xlu1 %v2840_v14, %s7367_s28  ;;  %vm2470_vm4 = vcmp.lt.s32.totalorder %v9815_v8, 16  ;;  %v6330_v45 = vadd.s32 4294967293, %v2332_v53  ;;  %v9883_v36 = vadd.s32 42, %v9855_v19  ;;  %v9888_v57 = vsel %vm13692_vm2, %v9724_v6, %v9864_v46 }
 0x231   : > { %v2740_v35 = vsel %vm2638_vm15, %v2022_v25, 0.0  ;;  %v2741_v54 = vsel %vm2639_vm3, %v2023_v34, 0.0  ;;  %vm2538_vm14 = vcmp.ge.s32.totalorder %v6329_v33, 0  ;;  %v7012_v22 = vcvt.f32.s32 %v9862_v49  ;;  %vm9940_vm1 = vmand %vm2436_vm10, %vm2470_vm4 }
 0x232   : > { %v9901_v55 = vpack.c.bf16 %v2741_v54, %v2740_v35  ;;  %vm2572_vm13 = vcmp.lt.s32.totalorder %v6329_v33, 16  ;;  %vm2437_vm5 = vcmp.ge.s32.totalorder %v2369_v18, 0  ;;  %v2233_v6 = vfloor.f32 %v2199_v10 }
 0x233   : > { %vm2471_vm0 = vcmp.lt.s32.totalorder %v2369_v18, 16  ;;  %v2299_v3 = vmul.u32 22, %v7010_v7  ;;  %v2200_v5 = vmul.f32 0.045454547, %v2166_v28  ;;  %v9904_v30 = vadd.s32 216, %v8554_v61  ;;  %vm9948_vm15 = vmand %vm2538_vm14, %vm2572_vm13 }
 0x234   : > { %v13673_v44 = vrot.slane %v9901_v55, 6  ;;  %v13672_v38 = vrot.slane %v9901_v55, 3  ;;  %vm2539_vm11 = vcmp.ge.s32.totalorder %v6330_v45, 0  ;;  %v2133_v40 = vcvt.s32.f32 %v9883_v36  ;;  %vm9969_vm10 = vmand %vm2437_vm5, %vm2471_vm0 }
 0x235   : > { %13947 = vst [vmem:[#allocation35_spill] sm:$0xff] %v9904_v30  ;;  %v9911_v53 = vshll.u32 %v9901_v55, 16  ;;  %v9914_v25 = vshrl.u32 %v9901_v55, 16  ;;  %v2300_v58 = vmul.u32 22, %v7012_v22  ;;  %v13948_v39 = vrot.slane %v9767_v23, 6  ;;  %vm2640_vm14 = vmand %vm9940_vm1, %vm9948_vm15 }
 0x236   : > { %v13949_v14 = vrot.slane %v9767_v23, 3  ;;  %vm13950_vm9 = vcmask 1044480   ;;  %v9927_v28 = vtrunc.f32 %v2233_v6  ;;  %v2234_v49 = vfloor.f32 %v2200_v5 }
 0x237   : > { %v3185_v0 = vsel %vm13708_vm6, %v13948_v39, %v13673_v44  ;;  %v3255_v35 = vrot.slane %v9914_v25, 6  ;;  %v3256_v54 = vrot.slane %v9911_v53, 7  ;;  %v9934_v39 = vadd.s32 42, %v9904_v30  ;;  %v1949_v19 = vpop.f32.mrb[40].mxu0 }
 0x238   : > { %v3000_v10 = vsel %vm13950_vm9, %v13949_v14, %v13672_v38  ;;  %3212 = vrot.lane.b32.xlu0 %v3185_v0, %s13752_s25  ;;  %vm2573_vm12 = vcmp.lt.s32.totalorder %v6330_v45, 16  ;;  %v2167_v6 = vadd.f32 0.5, %v2133_v40  ;;  %v3073_v0 = vrot.slane %v9914_v25, 3 }
 0x239   : > { %3027 = vrot.lane.b32.xlu1 %v3000_v10, %s7368_s23  ;;  %v3074_v10 = vrot.slane %v9911_v53, 4  ;;  %v13955_v38 = vrot.slane %v9901_v55, 4  ;;  %v13956_v8 = vrot.slane %v9767_v23, 4  ;;  %v2333_v34 = vsub.s32 %v9674_v43, %v2299_v3  ;;  %vm9985_vm4 = vmand %vm2539_vm11, %vm2573_vm12 }
 0x23a   : > { %v9959_v40 = vadd.s32 %v7010_v7, %v8638_v41  ;;  %v2334_v30 = vsub.s32 %v9683_v24, %v2300_v58  ;;  %v13957_v33 = vrot.slane %v9901_v55, 1  ;;  %v13958_v56 = vrot.slane %v9767_v23, 1  ;;  %v9978_v24 = vpop.permute.xlu1 %2953  ;;  %vm2641_vm13 = vmand %vm9969_vm10, %vm9985_vm4 }
 0x23b   : > { %v3128_v44 = vsel %vm13693_vm8, %v13956_v8, %v13955_v38  ;;  %vm13959_vm3 = vcmask 1046528   ;;  %v9973_v38 = vor.u32 %v3256_v54, %v3255_v35  ;;  %v13681_v43 = vrot.slane %v9911_v53, 1 }
 0x23c   : > { %v2944_v21 = vsel %vm13959_vm3, %v13958_v56, %v13957_v33  ;;  %v9976_v7 = vor.u32 %v3074_v10, %v3073_v0  ;;  %v1950_v3 = vadd.f32 %v9459_v27, %v1949_v19  ;;  %3155 = vrot.lane.b32.xlu0 %v3128_v44, %s7367_s28  ;;  %v6793_v56 = vpop.f32.mrb[41].mxu0  ;;  %v7014_v58 = vcvt.f32.s32 %v9927_v28 }
 0x23d   : > { %2969 = vrot.lane.b32.xlu1 %v2944_v21, %s13752_s25  ;;  %v9990_v35 = vtrunc.f32 %v2234_v49  ;;  %v2134_v54 = vcvt.s32.f32 %v9934_v39  ;;  %v1952_v0 = vpop.f32.mrb[42].mxu0  ;;  %v13964_v19 = vrot.slane %v9776_v12, 1  ;;  %v2201_v10 = vmul.f32 0.045454547, %v2167_v6 }
 0x23e   : > { %v2067_v21 = vadd.s32 224, %v8554_v61  ;;  %v10000_v45 = vsel %vm13692_vm2, %v9864_v46, %v9976_v7  ;;  %v2024_v8 = vmax.f32 %v1950_v3, 0.0  ;;  %v1953_v49 = vadd.f32 %v9459_v27, %v1952_v0  ;;  %v6794_v28 = vpop.f32.mrb[43].mxu0 }
 0x23f   : > { %v2843_v44 = vor.u32 %v9779_v20, %v13964_v19  ;;  %v2371_v12 = vadd.s32 %v7012_v22, %v8638_v41  ;;  %vm13965_vm5 = vsmask.f32 1280  ;;  %vm13966_vm0 = vsmask.f32 7424 }
 0x240   : > { %v3258_v46 = vsel %vm13965_vm5, %v9834_v13, %v9973_v38  ;;  %v6331_v33 = vadd.s32 4294967293, %v2333_v34  ;;  %v10019_v3 = vadd.s32 4294967293, %v2334_v30  ;;  %v2025_v56 = vmax.f32 %v1953_v49, 0.0 }
 0x241   : > { %v2848_v6 = vsel %vm13966_vm0, %v2843_v44, %v13681_v43  ;;  %3304 = vrot.lane.b32.xlu0 %v3258_v46, %s7368_s23  ;;  %v2301_v22 = vmul.u32 22, %v7014_v58  ;;  %v13682_v0 = vcvt.f32.s32 %v9990_v35  ;;  %v2168_v19 = vadd.f32 0.5, %v2134_v54  ;;  %v10028_v44 = vpop.permute.xlu1 %2884 }
 0x242   : > { %2900 = vrot.lane.b32.xlu1 %v2848_v6, %s7367_s28  ;;  %vm2438_vm11 = vcmp.ge.s32.totalorder %v9959_v40, 0  ;;  %vm2472_vm9 = vcmp.lt.s32.totalorder %v9959_v40, 16  ;;  %v2235_v13 = vfloor.f32 %v2201_v10  ;;  %v10026_v28 = vadd.s32 42, %v2067_v21  ;;  %v10054_v6 = vpop.permute.xlu0 %3141 }
 0x243   : > { %v2742_v30 = vsel %vm2640_vm14, %v2024_v8, 0.0  ;;  %v2743_v34 = vsel %vm2641_vm13, %v2025_v56, 0.0  ;;  %vm2439_vm12 = vcmp.ge.s32.totalorder %v2371_v12, 0  ;;  %v2068_v54 = vadd.s32 232, %v8554_v61  ;;  %vm10088_vm14 = vmand %vm2438_vm11, %vm2472_vm9 }
 0x244   : > { %v10041_v10 = vpack.c.bf16 %v2743_v34, %v2742_v30  ;;  %vm2540_vm3 = vcmp.ge.s32.totalorder %v6331_v33, 0  ;;  %vm2574_vm5 = vcmp.lt.s32.totalorder %v6331_v33, 16  ;;  %vm2473_vm0 = vcmp.lt.s32.totalorder %v2371_v12, 16 }
 0x245   : > { %vm2541_vm7 = vcmp.ge.s32.totalorder %v10019_v3, 0  ;;  %v2335_v14 = vsub.s32 %v9765_v62, %v2301_v22  ;;  %v2302_v5 = vmul.u32 22, %v13682_v0  ;;  %v2202_v2 = vmul.f32 0.045454547, %v2168_v19  ;;  %v10052_v46 = vpop.permute.xlu1 %3013  ;;  %vm10102_vm11 = vmand %vm2439_vm12, %vm2473_vm0 }
 0x246   : > { %v13683_v18 = vrot.slane %v10041_v10, 6  ;;  %v13684_v21 = vrot.slane %v10041_v10, 3  ;;  %v10049_v8 = vtrunc.f32 %v2235_v13  ;;  %v2135_v49 = vcvt.s32.f32 %v10026_v28  ;;  %vm10112_vm9 = vmand %vm2540_vm3, %vm2574_vm5 }
 0x247   : > { %vm13694_vm1 = vcmask 261120   ;;  %v13688_v56 = vrot.slane %v10041_v10, 4  ;;  %v10058_v62 = vshll.u32 %v10041_v10, 16  ;;  %v10061_v22 = vshrl.u32 %v10041_v10, 16  ;;  %v1957_v52 = vpop.f32.mrb[44].mxu0 }
 0x248   : > { %v10063_v19 = vadd.s32 42, %v2068_v54  ;;  %v13967_v13 = vrot.slane %v9901_v55, 6  ;;  %v13968_v34 = vrot.slane %v9901_v55, 3  ;;  %vm13969_vm15 = vcmask 1044480   ;;  %v6797_v15 = vpop.f32.mrb[45].mxu0 }
 0x249   : > { %vm2575_vm10 = vcmp.lt.s32.totalorder %v10019_v3, 16  ;;  %v3259_v54 = vrot.slane %v10061_v22, 6  ;;  %v3260_v0 = vrot.slane %v10058_v62, 7  ;;  %vm13710_vm4 = vcmask 523264   ;;  %v10126_v47 = vpop.permute.xlu1 %2955 }
 0x24a   : > { %v3187_v30 = vsel %vm13708_vm6, %v13967_v13, %v13683_v18  ;;  %v3002_v20 = vsel %vm13969_vm15, %v13968_v34, %v13684_v21  ;;  %v10082_v13 = vadd.s32 %v7014_v58, %v8638_v41  ;;  %v2236_v18 = vfloor.f32 %v2202_v2  ;;  %v3201_v58 = vpop.permute.xlu0 %3200  ;;  %vm10135_vm3 = vmand %vm2541_vm7, %vm2575_vm10 }
 0x24b   : > { %3214 = vrot.lane.b32.xlu0 %v3187_v30, %s13752_s25  ;;  %3029 = vrot.lane.b32.xlu1 %v3002_v20, %s7368_s23  ;;  %v2336_v30 = vsub.s32 %v9799_v50, %v2302_v5  ;;  %v2169_v20 = vadd.f32 0.5, %v2135_v49  ;;  %v3077_v21 = vrot.slane %v10061_v22, 3  ;;  %v3078_v43 = vrot.slane %v10058_v62, 4  ;;  %vm2642_vm7 = vmand %vm10088_vm14, %vm10112_vm9 }
 0x24c   : > { %vm13709_vm13 = vcmask 785408   ;;  %v13972_v2 = vrot.slane %v9901_v55, 4  ;;  %v10106_v50 = vadd.s32 4294967293, %v2335_v14  ;;  %v2136_v49 = vcvt.s32.f32 %v10063_v19  ;;  %vm2643_vm15 = vmand %vm10102_vm11, %vm10135_vm3 }
 0x24d   : > { %v13978_v12 = vrot.slane %v9901_v55, 1  ;;  %vm13979_vm12 = vcmask 1046528   ;;  %v10121_v17 = vor.u32 %v3260_v0, %v3259_v54  ;;  %v13697_v14 = vrot.slane %v10058_v62, 1 }
 0x24e   : > { %v3130_v51 = vsel %vm13693_vm8, %v13972_v2, %v13688_v56  ;;  %v13977_v2 = vrot.slane %v10041_v10, 1  ;;  %v10124_v5 = vor.u32 %v3078_v43, %v3077_v21  ;;  %v1958_v33 = vadd.f32 %v9459_v27, %v1957_v52 }
 0x24f   : > { %3157 = vrot.lane.b32.xlu0 %v3130_v51, %s7367_s28  ;;  %v13982_v43 = vcvt.f32.s32 %v9990_v35  ;;  %v10145_v54 = vtrunc.f32 %v2236_v18  ;;  %v1960_v51 = vpop.f32.mrb[46].mxu0  ;;  %v13983_v15 = vrot.slane %v9911_v53, 1  ;;  %v2203_v3 = vmul.f32 0.045454547, %v2169_v20 }
 0x250   : > { %v2946_v56 = vsel %vm13979_vm12, %v13978_v12, %v13977_v2  ;;  %v10150_v2 = vadd.s32 4294967293, %v2336_v30  ;;  %v10155_v12 = vsel %vm13692_vm2, %v9976_v7, %v10124_v5  ;;  %v2026_v35 = vmax.f32 %v1958_v33, 0.0 }
 0x251   : > { %2971 = vrot.lane.b32.xlu1 %v2946_v56, %s13752_s25  ;;  %v10142_v21 = vadd.s32 %v13982_v43, %v8638_v41  ;;  %v2851_v56 = vor.u32 %v9914_v25, %v13983_v15  ;;  %13984 = vst [vmem:[#allocation36_spill] sm:$0xff] %v10155_v12  ;;  %v1961_v18 = vadd.f32 %v9459_v27, %v1960_v51  ;;  %v6798_v43 = vpop.f32.mrb[47].mxu0  ;;  %vm2474_vm0 = vcmp.lt.s32.totalorder %v10082_v13, 16  ;;  %v10168_v25 = vpop.permute.xlu0 %3143 }
 0x252   : > { %v2170_v53 = vadd.f32 0.5, %v2136_v49  ;;  %vm13985_vm10 = vsmask.f32 1280  ;;  %vm13986_vm12 = vsmask.f32 7424  ;;  %vm2542_vm2 = vcmp.ge.s32.totalorder %v10106_v50, 0  ;;  %v10193_v43 = vpop.permute.xlu1 %2886 }
 0x253   : > { %v3262_v7 = vsel %vm13985_vm10, %v9973_v38, %v10121_v17  ;;  %v2856_v30 = vsel %vm13986_vm12, %v2851_v56, %v13697_v14  ;;  %vm2576_vm8 = vcmp.lt.s32.totalorder %v10106_v50, 16  ;;  %v13987_v20 = vcvt.f32.s32 %v10049_v8 }
 0x254   : > { %v2027_v33 = vmax.f32 %v1961_v18, 0.0  ;;  %3306 = vrot.lane.b32.xlu0 %v3262_v7, %s7368_s23  ;;  %vm2441_vm5 = vcmp.ge.s32.totalorder %v10142_v21, 0  ;;  %v13698_v38 = vcvt.f32.s32 %v10145_v54  ;;  %v2069_v51 = vadd.s32 240, %v8554_v61  ;;  %vm10277_vm3 = vmand %vm2542_vm2, %vm2576_vm8 }
 0x255   : > { %v2303_v49 = vmul.u32 22, %v13987_v20  ;;  %2902 = vrot.lane.b32.xlu1 %v2856_v30, %s7367_s28  ;;  %v3351_v15 = vsel %vm13694_vm1, %v8742_v1, %v10028_v44  ;;  %vm2475_vm10 = vcmp.lt.s32.totalorder %v10142_v21, 16  ;;  %vm2543_vm12 = vcmp.ge.s32.totalorder %v10150_v2, 0 }
 0x256   : > { %v2237_v56 = vfloor.f32 %v2203_v3  ;;  %v3452_v18 = vsel %vm13694_vm1, %v9065_v48, %v10054_v6  ;;  %v2744_v7 = vsel %vm2642_vm7, %v2026_v35, 0.0  ;;  %v2745_v1 = vsel %vm2643_vm15, %v2027_v33, 0.0  ;;  %v3293_v48 = vpop.permute.xlu0 %3292  ;;  %v10226_v20 = vpop.permute.xlu1 %3015  ;;  %vm10299_vm2 = vmand %vm2441_vm5, %vm2475_vm10 }
 0x257   : > { %v2204_v44 = vmul.f32 0.045454547, %v2170_v53  ;;  %v3493_v3 = vsel %vm13710_vm4, %v3452_v18, %v3201_v58  ;;  %v10206_v30 = vpack.c.bf16 %v2745_v1, %v2744_v7  ;;  %vm2577_vm1 = vcmp.lt.s32.totalorder %v10150_v2, 16 }
 0x258   : > { %v2337_v6 = vsub.s32 %v9883_v36, %v2303_v49  ;;  %v3380_v32 = vsel %vm13710_vm4, %v3351_v15, %v9978_v24  ;;  %v3521_v34 = vsel %vm13709_vm13, %v3493_v3, %v3293_v48  ;;  %v2304_v40 = vmul.u32 22, %v13698_v38  ;;  %v7234_v36 = vld [vmem:[%s13613_s3 + $0x88] sm:$0xff]   ;;  %v7256_v3 = vld [vmem:[%s13613_s3 + $0x80] sm:$0xff]   ;;  %vm10317_vm5 = vmand %vm2543_vm12, %vm2577_vm1 }
 0x259   : > { %v10215_v0 = vadd.s32 42, %v2069_v51  ;;  %v3409_v58 = vsel %vm13709_vm13, %v3380_v32, %v10052_v46  ;;  %3787 = vmatprep.mubr.bf16.mxu0 %v3521_v34  ;;  %v13696_v35 = vrot.slane %v10206_v30, 6  ;;  %v13695_v53 = vrot.slane %v10206_v30, 3 }
 0x25a   : > { %v10224_v24 = vtrunc.f32 %v2237_v56  ;;  %3788 = vmatmul.mubr.bf16.vlgmr.msra.gmra.mrb[68].mxu0 %v3409_v58  ;;  %v13699_v49 = vrot.slane %v10206_v30, 4  ;;  %v10230_v33 = vshll.u32 %v10206_v30, 16  ;;  %v10233_v46 = vshrl.u32 %v10206_v30, 16 }
 0x25b   : > { %v2238_v51 = vfloor.f32 %v2204_v44  ;;  %v13988_v15 = vrot.slane %v10041_v10, 6  ;;  %v13989_v56 = vrot.slane %v10041_v10, 3  ;;  %vm13990_vm14 = vcmask 1044480   ;;  %6820 = vmatpush3.bf16.msra.mxu0 %v7256_v3  ;;  %v1965_v44 = vpop.f32.mrb[48].mxu0 }
 0x25c   : > { %v13700_v1 = vrot.slane %v10206_v30, 1  ;;  %v3263_v48 = vrot.slane %v10233_v46, 6  ;;  %v3264_v32 = vrot.slane %v10230_v33, 7  ;;  %v13991_v34 = vcvt.f32.s32 %v10049_v8  ;;  %6821 = vmatprep.subr.bf16.mxu0 %v7234_v36  ;;  %v6801_v21 = vpop.f32.mrb[49].mxu0 }
 0x25d   : > { %v3189_v18 = vsel %vm13708_vm6, %v13988_v15, %v13696_v35  ;;  %v3004_v7 = vsel %vm13990_vm14, %v13989_v56, %v13695_v53  ;;  %v2137_v15 = vcvt.s32.f32 %v10215_v0  ;;  %vm13992_vm11 = vcmp.ge.s32.totalorder %v10082_v13, 0 }
 0x25e   : > { %3216 = vrot.lane.b32.xlu0 %v3189_v18, %s13752_s25  ;;  %3031 = vrot.lane.b32.xlu1 %v3004_v7, %s7368_s23  ;;  %v10257_v58 = vadd.s32 %v13991_v34, %v8638_v41  ;;  %vm10264_vm9 = vmand %vm13992_vm11, %vm2474_vm0  ;;  %v10268_v18 = vadd.s32 4294967293, %v2337_v6  ;;  %v2338_v7 = vsub.s32 %v9934_v39, %v2304_v40  ;;  %v3081_v3 = vrot.slane %v10233_v46, 3  ;;  %v3203_v34 = vpop.permute.xlu0 %3202  ;;  %v10308_v39 = vpop.permute.xlu1 %2957 }
 0x25f   : > { %v3082_v8 = vrot.slane %v10230_v33, 4  ;;  %v13997_v6 = vrot.slane %v10041_v10, 4  ;;  %vm13998_vm7 = vcmask 1043456   ;;  %v10287_v40 = vtrunc.f32 %v2238_v51  ;;  %6822 = vmatpush3.bf16.msra.mxu0 %v7234_v36  ;;  %vm2644_vm10 = vmand %vm10264_vm9, %vm10277_vm3 }
 0x260   : > { %v2070_v35 = vadd.s32 248, %v8554_v61  ;;  %v13999_v50 = vrot.slane %v10041_v10, 1  ;;  %vm14000_vm8 = vcmask 1046528   ;;  %v1966_v52 = vadd.f32 %v9459_v27, %v1965_v44  ;;  %v1968_v44 = vpop.f32.mrb[50].mxu0  ;;  %vm2645_vm11 = vmand %vm10299_vm2, %vm10317_vm5 }
 0x261   : > { %v3132_v53 = vsel %vm13998_vm7, %v13997_v6, %v13699_v49  ;;  %v10303_v6 = vor.u32 %v3264_v32, %v3263_v48  ;;  %v10306_v49 = vor.u32 %v3082_v8, %v3081_v3  ;;  %v14005_v36 = vrot.slane %v9120_v4, 7 }
 0x262   : > { %v2948_v14 = vsel %vm14000_vm8, %v13999_v50, %v13700_v1  ;;  %3159 = vrot.lane.b32.xlu0 %v3132_v53, %s7367_s28  ;;  %v14006_v32 = vrot.slane %v8961_v59, 7  ;;  %vm14007_vm0 = vcmask 1040384   ;;  %v14008_v27 = vcvt.f32.s32 %v10145_v54 }
 0x263   : > { %2973 = vrot.lane.b32.xlu1 %v2948_v14, %s13752_s25  ;;  %v2171_v14 = vadd.f32 0.5, %v2137_v15  ;;  %v14009_v8 = vrot.slane %v10058_v62, 1  ;;  %v10334_v50 = vadd.s32 4294967293, %v2338_v7  ;;  %v14010_v21 = vrot.slane %v9254_v16, 7  ;;  %vm14012_vm1 = vmmov %vm14007_vm0  ;;  %v10356_v62 = vld [vmem:[%s13612_s2] ss:$0 sm:$0xff]  ;;  %v10368_v7 = vpop.permute.xlu0 %3145 }
 0x264   : > { %v3322_v3 = vsel %vm14007_vm0, %v14006_v32, %v14005_v36  ;;  %v10329_v53 = vadd.s32 %v14008_v27, %v8638_v41  ;;  %v14011_v1 = vmov %v14005_v36  ;;  %vm14013_vm15 = vsmask.f32 4352 }
 0x265   : > { %v2859_v2 = vor.u32 %v10061_v22, %v14009_v8  ;;  %v10341_v51 = vsel %vm14012_vm1, %v14011_v1, %v14010_v21  ;;  %v10346_v54 = vsel %vm14013_vm15, %v10124_v5, %v10306_v49  ;;  %v14015_v15 = vmov 0.0   ;;  %v6802_v1 = vpop.f32.mrb[51].mxu0 }
 0x266   : > { %14014 = vst [vmem:[#allocation37_spill] sm:$0xff] %v10346_v54  ;;  %6851 = vmatprep.subr.bf16.mxu0 %v14015_v15  ;;  %v2028_v36 = vmax.f32 %v1966_v52, 0.0  ;;  %v1969_v22 = vadd.f32 %v10356_v62, %v1968_v44  ;;  %vm2476_vm14 = vcmp.lt.s32.totalorder %v10257_v58, 16  ;;  %v10362_v52 = vadd.s32 42, %v2070_v35 }
 0x267   : > { %vm14016_vm7 = vsmask.f32 1280  ;;  %v14017_v27 = vrot.slane %v10230_v33, 1  ;;  %vm14018_vm8 = vsmask.f32 7424  ;;  %v14019_v35 = vcvt.f32.s32 %v10224_v24  ;;  %v1973_v5 = vpop.f32.mrb[52].mxu0 }
 0x268   : > { %v3266_v32 = vsel %vm14016_vm7, %v10121_v17, %v10303_v6  ;;  %v13703_v21 = vcvt.f32.s32 %v10287_v40  ;;  %v2029_v1 = vmax.f32 %v1969_v22, 0.0  ;;  %vm2443_vm15 = vcmp.ge.s32.totalorder %v10329_v53, 0 }
 0x269   : > { %v2864_v44 = vsel %vm14018_vm8, %v2859_v2, %v14017_v27  ;;  %v2305_v8 = vmul.u32 22, %v14019_v35  ;;  %3308 = vrot.lane.b32.xlu0 %v3266_v32, %s7368_s23  ;;  %vm2477_vm7 = vcmp.lt.s32.totalorder %v10329_v53, 16  ;;  %v2205_v17 = vmul.f32 0.045454547, %v2171_v14  ;;  %v10394_v32 = vpop.permute.xlu1 %2888 }
 0x26a   : > { %2904 = vrot.lane.b32.xlu1 %v2864_v44, %s7367_s28  ;;  %vm14020_vm8 = vcmask 261120   ;;  %vm2545_vm0 = vcmp.ge.s32.totalorder %v10334_v50, 0  ;;  %vm2579_vm1 = vcmp.lt.s32.totalorder %v10334_v50, 16  ;;  %v2071_v27 = vadd.s32 256, %v8554_v61 }
 0x26b   : > { %v3353_v2 = vsel %vm14020_vm8, %v8844_v42, %v10193_v43  ;;  %vm14021_vm12 = vmmov %vm14020_vm8  ;;  %v2746_v14 = vsel %vm2644_vm10, %v2028_v36, 0.0  ;;  %v2747_v42 = vsel %vm2645_vm11, %v2029_v1, 0.0  ;;  %v2138_v43 = vcvt.s32.f32 %v10362_v52 }
 0x26c   : > { %v3455_v22 = vsel %vm14021_vm12, %v9225_v60, %v10168_v25  ;;  %v10408_v35 = vpack.c.bf16 %v2747_v42, %v2746_v14  ;;  %v3295_v60 = vpop.permute.xlu0 %3294  ;;  %v2339_v25 = vsub.s32 %v10026_v28, %v2305_v8  ;;  %v10413_v56 = vmul.u32 22, %v13703_v21  ;;  %vm14022_vm9 = vmmov %vm14020_vm8 }
 0x26d   : > { %v3495_v44 = vsel %vm13710_vm4, %v3455_v22, %v3203_v34  ;;  %v3382_v38 = vsel %vm13710_vm4, %v3353_v2, %v10126_v47  ;;  %v2239_v48 = vfloor.f32 %v2205_v17  ;;  %v2072_v36 = vadd.s32 264, %v8554_v61  ;;  %v10425_v22 = vpop.permute.xlu1 %3017 }
 0x26e   : > { %v3524_v13 = vsel %vm13709_vm13, %v3495_v44, %v3295_v60  ;;  %v3412_v34 = vsel %vm13709_vm13, %v3382_v38, %v10226_v20  ;;  %v13702_v1 = vrot.slane %v10408_v35, 6  ;;  %v13701_v28 = vrot.slane %v10408_v35, 3 }
 0x26f   : > { %3795 = vmatprep.mubr.bf16.mxu0 %v3524_v13  ;;  %v10423_v8 = vadd.s32 42, %v2071_v27  ;;  %v13706_v14 = vrot.slane %v10408_v35, 4  ;;  %v10429_v47 = vshll.u32 %v10408_v35, 16  ;;  %v10432_v17 = vshrl.u32 %v10408_v35, 16 }
 0x270   : > { %3796 = vmatmul.mubr.bf16.gmra.mrb[72].mxu0 %v3412_v34  ;;  %v2172_v2 = vadd.f32 0.5, %v2138_v43  ;;  %v14023_v20 = vrot.slane %v10206_v30, 6  ;;  %v14024_v42 = vrot.slane %v10206_v30, 3  ;;  %vm14025_vm3 = vcmask 1044480  }
 0x271   : > { %6823 = vmatprep.mubr.msk.bf16.mxu0 %vm14022_vm9, %v3322_v3  ;;  %v13705_v60 = vrot.slane %v10408_v35, 1  ;;  %v3267_v3 = vrot.slane %v10432_v17, 6  ;;  %v3268_v43 = vrot.slane %v10429_v47, 7  ;;  %v14026_v38 = vcvt.f32.s32 %v10224_v24  ;;  %vm10497_vm9 = vmand %vm2443_vm15, %vm2477_vm7 }
 0x272   : > { %v3191_v27 = vsel %vm13708_vm6, %v14023_v20, %v13702_v1  ;;  %v3006_v44 = vsel %vm14025_vm3, %v14024_v42, %v13701_v28  ;;  %v10456_v20 = vadd.s32 42, %v2072_v36  ;;  %vm14027_vm2 = vcmp.ge.s32.totalorder %v10257_v58, 0  ;;  %vm10515_vm15 = vmand %vm2545_vm0, %vm2579_vm1 }
 0x273   : > { %3218 = vrot.lane.b32.xlu0 %v3191_v27, %s13752_s25  ;;  %3033 = vrot.lane.b32.xlu1 %v3006_v44, %s7368_s23  ;;  %v10454_v34 = vadd.s32 %v14026_v38, %v8638_v41  ;;  %vm10462_vm5 = vmand %vm14027_vm2, %vm2476_vm14  ;;  %v10466_v27 = vadd.s32 4294967293, %v2339_v25  ;;  %v2139_v44 = vcvt.s32.f32 %v10423_v8  ;;  %v3085_v28 = vrot.slane %v10432_v17, 3  ;;  %v3205_v38 = vpop.permute.xlu0 %3204 }
 0x274   : > { %v3086_v24 = vrot.slane %v10429_v47, 4  ;;  %vm14030_vm10 = vcmp.lt.s32.totalorder %v10268_v18, 16  ;;  %vm14031_vm12 = vcmp.ge.s32.totalorder %v10268_v18, 0  ;;  %v14034_v58 = vrot.slane %v10206_v30, 4 }
 0x275   : > { %vm10475_vm11 = vmand %vm14031_vm12, %vm14030_vm10  ;;  %vm14035_vm14 = vcmask 1043456   ;;  %v2340_v1 = vsub.s32 %v10063_v19, %v10413_v56  ;;  %v10486_v21 = vtrunc.f32 %v2239_v48  ;;  %v2206_v13 = vmul.f32 0.045454547, %v2172_v2  ;;  %v10506_v48 = vpop.permute.xlu1 %2959 }
 0x276   : > { %v3134_v25 = vsel %vm14035_vm14, %v14034_v58, %v13706_v14  ;;  %v14036_v18 = vrot.slane %v10206_v30, 1  ;;  %vm14037_vm8 = vcmask 1046528   ;;  %v10501_v58 = vor.u32 %v3268_v43, %v3267_v3  ;;  %vm2646_vm1 = vmand %vm10462_vm5, %vm10475_vm11 }
 0x277   : > { %v10504_v56 = vor.u32 %v3086_v24, %v3085_v28  ;;  %v1974_v2 = vadd.f32 %v10356_v62, %v1973_v5  ;;  %3161 = vrot.lane.b32.xlu0 %v3134_v25, %s7367_s28  ;;  %v14042_v28 = vrot.slane %v9387_v11, 7  ;;  %v14043_v3 = vrot.slane %v9254_v16, 7  ;;  %vm2647_vm14 = vmand %vm10497_vm9, %vm10515_vm15 }
 0x278   : > { %v2950_v61 = vsel %vm14037_vm8, %v14036_v18, %v13705_v60  ;;  %v6805_v18 = vpop.f32.mrb[53].mxu0  ;;  %vm14044_vm7 = vcmask 1040384   ;;  %v14045_v5 = vrot.slane %v9516_v31, 7  ;;  %v2140_v25 = vcvt.s32.f32 %v10456_v20 }
 0x279   : > { %2975 = vrot.lane.b32.xlu1 %v2950_v61, %s13752_s25  ;;  %v3326_v43 = vsel %vm14044_vm7, %v14043_v3, %v14042_v28  ;;  %v14046_v24 = vmov %v14042_v28  ;;  %vm14047_vm3 = vmmov %vm14044_vm7  ;;  %v1976_v18 = vpop.f32.mrb[54].mxu0  ;;  %v14048_v50 = vrot.slane %v10230_v33, 1  ;;  %v14049_v14 = vcvt.f32.s32 %v10287_v40 }
 0x27a   : > { %v3328_v61 = vsel %vm14047_vm3, %v14046_v24, %v14045_v5  ;;  %v2173_v12 = vadd.f32 0.5, %v2139_v44  ;;  %vm14050_vm0 = vsmask.f32 4352  ;;  %v2030_v3 = vmax.f32 %v1974_v2, 0.0  ;;  %v10581_v24 = vpop.permute.xlu1 %2890 }
 0x27b   : > { %v2867_v60 = vor.u32 %v10233_v46, %v14048_v50  ;;  %v10536_v19 = vadd.s32 %v14049_v14, %v8638_v41  ;;  %v10541_v28 = vsel %vm14050_vm0, %v10306_v49, %v10504_v56  ;;  %v1977_v33 = vadd.f32 %v10356_v62, %v1976_v18  ;;  %v6806_v46 = vpop.f32.mrb[55].mxu0  ;;  %v10557_v49 = vpop.permute.xlu0 %3147 }
 0x27c   : > { %vm14051_vm2 = vcmask 261120   ;;  %vm2444_vm10 = vcmp.ge.s32.totalorder %v10454_v34, 0  ;;  %vm2478_vm12 = vcmp.lt.s32.totalorder %v10454_v34, 16  ;;  %v2240_v40 = vfloor.f32 %v2206_v13 }
 0x27d   : > { %6824 = vmatmul.mubr.msk.bf16.vlgmr.msra.gmra.mrb[76].mxu0 %vm14051_vm2, %v10341_v51  ;;  %vm14052_vm8 = vmmov %vm14051_vm2  ;;  %vm14053_vm7 = vsmask.f32 1280  ;;  %v14054_v51 = vrot.slane %v10429_v47, 1  ;;  %vm14055_vm3 = vsmask.f32 7424  ;;  %v10566_v13 = vadd.s32 4294967293, %v2340_v1 }
 0x27e   : > { %6827 = vmatprep.mubr.msk.bf16.mxu0 %vm14052_vm8, %v3326_v43  ;;  %v3270_v14 = vsel %vm14053_vm7, %v10303_v6, %v10501_v58  ;;  %v7026_v2 = vcvt.f32.s32 %v10486_v21  ;;  %v2031_v5 = vmax.f32 %v1977_v33, 0.0  ;;  %v3329_v43 = vrot.slane %v9640_v37, 7  ;;  %vm14056_vm0 = vmmov %vm14052_vm8 }
 0x27f   : > { %v2872_v44 = vsel %vm14055_vm3, %v2867_v60, %v14054_v51  ;;  %3310 = vrot.lane.b32.xlu0 %v3270_v14, %s7368_s23  ;;  %vm2580_vm2 = vcmp.lt.s32.totalorder %v10466_v27, 16  ;;  %v2174_v6 = vadd.f32 0.5, %v2140_v25  ;;  %v3355_v60 = vsel %vm14052_vm8, %v8961_v59, %v10394_v32  ;;  %vm14059_vm11 = vmmov %vm14052_vm8 }
 0x280   : > { %2906 = vrot.lane.b32.xlu1 %v2872_v44, %s7367_s28  ;;  %vm2445_vm7 = vcmp.ge.s32.totalorder %v10536_v19, 0  ;;  %vm2479_vm3 = vcmp.lt.s32.totalorder %v10536_v19, 16  ;;  %v2207_v1 = vmul.f32 0.045454547, %v2173_v12  ;;  %v3458_v21 = vsel %vm14056_vm0, %v9352_v63, %v10368_v7  ;;  %v3297_v63 = vpop.permute.xlu0 %3296  ;;  %vm14060_vm9 = vmmov %vm14052_vm8 }
 0x281   : > { %v2748_v25 = vsel %vm2646_vm1, %v2030_v3, 0.0  ;;  %v2749_v59 = vsel %vm2647_vm14, %v2031_v5, 0.0  ;;  %v10593_v32 = vtrunc.f32 %v2240_v40  ;;  %v3497_v12 = vsel %vm13710_vm4, %v3458_v21, %v3205_v38  ;;  %v10611_v40 = vpop.permute.xlu1 %3019  ;;  %vm10644_vm14 = vmand %vm2444_vm10, %vm2478_vm12 }
 0x282   : > { %v10596_v18 = vpack.c.bf16 %v2749_v59, %v2748_v25  ;;  %vm2547_vm0 = vcmp.ge.s32.totalorder %v10566_v13, 0  ;;  %v2307_v7 = vmul.u32 22, %v7026_v2  ;;  %v3527_v42 = vsel %vm13709_vm13, %v3497_v12, %v3297_v63 }
 0x283   : > { %v3384_v36 = vsel %vm13710_vm4, %v3355_v60, %v10308_v39  ;;  %v14057_v54 = vrot.slane %v9516_v31, 7  ;;  %vm14058_vm5 = vcmask 1040384   ;;  %v2208_v50 = vmul.f32 0.045454547, %v2174_v6  ;;  %3803 = vmatprep.mubr.bf16.mxu1 %v3527_v42 }
 0x284   : > { %v3415_v38 = vsel %vm13709_vm13, %v3384_v36, %v10425_v22  ;;  %v3192_v3 = vrot.slane %v10596_v18, 6  ;;  %v3007_v33 = vrot.slane %v10596_v18, 3  ;;  %v2241_v46 = vfloor.f32 %v2207_v1 }
 0x285   : > { %v3330_v53 = vsel %vm14058_vm5, %v14057_v54, %v3329_v43  ;;  %3804 = vmatmul.mubr.bf16.vlgmr.msra.gmra.mrb[0].mxu1 %v3415_v38  ;;  %6828 = vmatmul.mubr.msk.bf16.gmra.mrb[80].mxu0 %vm14059_vm11, %v3328_v61  ;;  %v13707_v39 = vrot.slane %v10596_v18, 4  ;;  %v10616_v14 = vshll.u32 %v10596_v18, 16  ;;  %v10619_v51 = vshrl.u32 %v10596_v18, 16  ;;  %v3207_v54 = vpop.permute.xlu0 %3206 }
 0x286   : > { %v7028_v22 = vcvt.f32.s32 %v10593_v32  ;;  %6831 = vmatprep.mubr.msk.bf16.mxu0 %vm14060_vm9, %v3330_v53  ;;  %v14061_v44 = vrot.slane %v10408_v35, 6  ;;  %v14062_v61 = vrot.slane %v10408_v35, 3  ;;  %vm14063_vm15 = vcmask 1044480  }
 0x287   : > { %v2951_v60 = vrot.slane %v10596_v18, 1  ;;  %vm2581_vm1 = vcmp.lt.s32.totalorder %v10566_v13, 16  ;;  %v3271_v1 = vrot.slane %v10619_v51, 6  ;;  %v3272_v21 = vrot.slane %v10616_v14, 7 }
 0x288   : > { %v3193_v5 = vsel %vm13708_vm6, %v14061_v44, %v3192_v3  ;;  %v3008_v6 = vsel %vm14063_vm15, %v14062_v61, %v3007_v33  ;;  %v2341_v25 = vsub.s32 %v10215_v0, %v2307_v7  ;;  %v2242_v59 = vfloor.f32 %v2208_v50 }
 0x289   : > { %3220 = vrot.lane.b32.xlu0 %v3193_v5, %s13752_s25  ;;  %3035 = vrot.lane.b32.xlu1 %v3008_v6, %s7368_s23  ;;  %v3331_v12 = vrot.slane %v9767_v23, 7  ;;  %v10649_v63 = vtrunc.f32 %v2241_v46  ;;  %v3089_v42 = vrot.slane %v10619_v51, 3  ;;  %v3090_v36 = vrot.slane %v10616_v14, 4  ;;  %v1981_v46 = vpop.f32.mrb[56].mxu0 }
 0x28a   : > { %vm14066_vm8 = vcmp.ge.s32.totalorder %v10466_v27, 0  ;;  %v14069_v34 = vrot.slane %v10408_v35, 4  ;;  %vm14070_vm10 = vcmask 1043456   ;;  %v3333_v53 = vrot.slane %v9901_v55, 7 }
 0x28b   : > { %vm10657_vm5 = vmand %vm14066_vm8, %vm2580_vm2  ;;  %v10668_v50 = vadd.s32 %v7026_v2, %v8638_v41  ;;  %v2308_v38 = vmul.u32 22, %v7028_v22  ;;  %v14071_v27 = vrot.slane %v10408_v35, 1  ;;  %vm14072_vm12 = vcmask 1046528  }
 0x28c   : > { %v3136_v7 = vsel %vm14070_vm10, %v14069_v34, %v13707_v39  ;;  %vm10679_vm2 = vmand %vm2445_vm7, %vm2479_vm3  ;;  %v10683_v61 = vor.u32 %v3272_v21, %v3271_v1  ;;  %v2879_v2 = vrot.slane %v10616_v14, 1  ;;  %v10686_v6 = vor.u32 %v3090_v36, %v3089_v42  ;;  %v10688_v34 = vpop.permute.xlu1 %2961 }
 0x28d   : > { %v2952_v44 = vsel %vm14072_vm12, %v14071_v27, %v2951_v60  ;;  %v1982_v39 = vadd.f32 %v10356_v62, %v1981_v46  ;;  %3163 = vrot.lane.b32.xlu0 %v3136_v7, %s7367_s28  ;;  %v6809_v27 = vpop.f32.mrb[57].mxu0  ;;  %vm10697_vm7 = vmand %vm2547_vm0, %vm2581_vm1  ;;  %v10701_v14 = vadd.s32 4294967293, %v2341_v25  ;;  %v10703_v1 = vtrunc.f32 %v2242_v59 }
 0x28e   : > { %2977 = vrot.lane.b32.xlu1 %v2952_v44, %s13752_s25  ;;  %v1984_v21 = vpop.f32.mrb[58].mxu0  ;;  %vm14077_vm3 = vcmask 1040384   ;;  %v14078_v36 = vrot.slane %v10429_v47, 1  ;;  %v7030_v46 = vcvt.f32.s32 %v10649_v63  ;;  %vm14079_vm0 = vsmask.f32 4352  ;;  %vm2648_vm11 = vmand %vm10644_vm14, %vm10657_vm5 }
 0x28f   : > { %v3332_v42 = vsel %vm14077_vm3, %v3329_v43, %v3331_v12  ;;  %v10715_v13 = vsel %vm14079_vm0, %v10504_v56, %v10686_v6  ;;  %v2032_v25 = vmax.f32 %v1982_v39, 0.0  ;;  %v1985_v59 = vadd.f32 %v10356_v62, %v1984_v21  ;;  %v6810_v47 = vpop.f32.mrb[59].mxu0  ;;  %vm14080_vm15 = vmmov %vm14077_vm3  ;;  %v10731_v56 = vpop.permute.xlu0 %3149 }
 0x290   : > { %v2875_v7 = vor.u32 %v10432_v17, %v14078_v36  ;;  %6832 = vmatmul.mubr.msk.bf16.gmra.mrb[84].mxu0 %vm14060_vm9, %v3332_v42  ;;  %v3334_v17 = vsel %vm14080_vm15, %v3331_v12, %v3333_v53  ;;  %vm2446_vm1 = vcmp.ge.s32.totalorder %v10668_v50, 0  ;;  %vm2480_vm8 = vcmp.lt.s32.totalorder %v10668_v50, 16  ;;  %vm2649_vm10 = vmand %vm10679_vm2, %vm10697_vm7 }
 0x291   : > { %vm14081_vm12 = vmmov %vm14060_vm9  ;;  %vm14082_vm3 = vsmask.f32 1280  ;;  %vm14083_vm0 = vsmask.f32 7424  ;;  %v2342_v12 = vsub.s32 %v10362_v52, %v2308_v38  ;;  %v2379_v44 = vadd.s32 %v7028_v22, %v8638_v41  ;;  %v10754_v38 = vpop.permute.xlu1 %2892 }
 0x292   : > { %6835 = vmatprep.mubr.msk.bf16.mxu0 %vm14081_vm12, %v3334_v17  ;;  %v3274_v43 = vsel %vm14082_vm3, %v10501_v58, %v10683_v61  ;;  %v2880_v39 = vsel %vm14083_vm0, %v2875_v7, %v2879_v2  ;;  %v2033_v27 = vmax.f32 %v1985_v59, 0.0  ;;  %v3335_v21 = vrot.slane %v10041_v10, 7  ;;  %vm14084_vm15 = vmmov %vm14081_vm12 }
 0x293   : > { %3312 = vrot.lane.b32.xlu0 %v3274_v43, %s7368_s23  ;;  %2908 = vrot.lane.b32.xlu1 %v2880_v39, %s7367_s28  ;;  %vm2548_vm9 = vcmp.ge.s32.totalorder %v10701_v14, 0  ;;  %v7032_v42 = vcvt.f32.s32 %v10703_v1  ;;  %v3357_v58 = vsel %vm14084_vm15, %v9120_v4, %v10581_v24  ;;  %v3337_v36 = vrot.slane %v10206_v30, 7  ;;  %vm14085_vm3 = vmmov %vm14084_vm15 }
 0x294   : > { %vm2582_vm12 = vcmp.lt.s32.totalorder %v10701_v14, 16  ;;  %v2309_v52 = vmul.u32 22, %v7030_v46  ;;  %v3461_v22 = vsel %vm14085_vm3, %v9507_v9, %v10557_v49  ;;  %v2750_v1 = vsel %vm2648_vm11, %v2032_v25, 0.0  ;;  %v3299_v9 = vpop.permute.xlu0 %3298  ;;  %vm14087_vm5 = vmmov %vm14085_vm3 }
 0x295   : > { %v2751_v4 = vsel %vm2649_vm10, %v2033_v27, 0.0  ;;  %v2883_v24 = vor.u32 %v10619_v51, %v2879_v2  ;;  %v3499_v7 = vsel %vm13710_vm4, %v3461_v22, %v3207_v54  ;;  %v6340_v49 = vadd.s32 4294967293, %v2342_v12  ;;  %v10780_v47 = vpop.permute.xlu1 %3021  ;;  %vm14089_vm11 = vmmov %vm14085_vm3 }
 0x296   : > { %v10768_v59 = vpack.c.bf16 %v2751_v4, %v2750_v1  ;;  %vm2447_vm0 = vcmp.ge.s32.totalorder %v2379_v44, 0  ;;  %v3530_v32 = vsel %vm13709_vm13, %v3499_v7, %v3299_v9  ;;  %v3386_v0 = vsel %vm13710_vm4, %v3357_v58, %v10506_v48  ;;  %vm10806_vm3 = vmand %vm2446_vm1, %vm2480_vm8 }
 0x297   : > { %2910 = vrot.lane.b32.xlu1 %v2883_v24, %s7367_s28  ;;  %vm14086_vm14 = vcmask 1040384   ;;  %v2310_v19 = vmul.u32 22, %v7032_v42  ;;  %3811 = vmatprep.mubr.bf16.mxu1 %v3530_v32  ;;  %v3418_v51 = vsel %vm13709_vm13, %v3386_v0, %v10611_v40  ;;  %vm2481_vm7 = vcmp.lt.s32.totalorder %v2379_v44, 16  ;;  %v1989_v24 = vpop.f32.mrb[60].mxu0 }
 0x298   : > { %v3336_v5 = vsel %vm14086_vm14, %v3333_v53, %v3335_v21  ;;  %v3194_v54 = vrot.slane %v10768_v59, 6  ;;  %v3009_v2 = vrot.slane %v10768_v59, 3  ;;  %v3094_v25 = vshrl.u32 %v10768_v59, 16  ;;  %3812 = vmatmul.mubr.bf16.gmra.mrb[4].mxu1 %v3418_v51  ;;  %vm14088_vm2 = vmmov %vm14086_vm14  ;;  %v3209_v22 = vpop.permute.xlu0 %3208  ;;  %v6813_v44 = vpop.f32.mrb[61].mxu0 }
 0x299   : > { %6836 = vmatmul.mubr.msk.bf16.gmra.mrb[88].mxu0 %vm14087_vm5, %v3336_v5  ;;  %v3338_v48 = vsel %vm14088_vm2, %v3335_v21, %v3337_v36  ;;  %v3097_v53 = vshll.u32 %v10768_v59, 16  ;;  %v2343_v40 = vsub.s32 %v10423_v8, %v2309_v52  ;;  %vm14090_vm10 = vcmask 1044480   ;;  %vm10819_vm5 = vmand %vm2548_vm9, %vm2582_vm12  ;;  %v10840_v32 = vpop.permute.xlu1 %2963 }
 0x29a   : > { %6839 = vmatprep.mubr.msk.bf16.mxu0 %vm14089_vm11, %v3338_v48  ;;  %v3195_v17 = vsel %vm13708_vm6, %v3192_v3, %v3194_v54  ;;  %v3010_v43 = vsel %vm14090_vm10, %v3007_v33, %v3009_v2  ;;  %v3137_v39 = vrot.slane %v10768_v59, 4  ;;  %v3275_v12 = vrot.slane %v3094_v25, 6  ;;  %vm10833_vm8 = vmand %vm2447_vm0, %vm2481_vm7 }
 0x29b   : > { %3222 = vrot.lane.b32.xlu0 %v3195_v17, %s13752_s25  ;;  %3037 = vrot.lane.b32.xlu1 %v3010_v43, %s7368_s23  ;;  %vm2549_vm15 = vcmp.ge.s32.totalorder %v6340_v49, 0  ;;  %v3276_v8 = vrot.slane %v3097_v53, 7  ;;  %v3096_v27 = vrot.slane %v3094_v25, 3  ;;  %v3099_v21 = vrot.slane %v3097_v53, 4  ;;  %vm14102_vm0 = vmmov %vm14088_vm2 }
 0x29c   : > { %vm2583_vm14 = vcmp.lt.s32.totalorder %v6340_v49, 16  ;;  %v3339_v33 = vrot.slane %v10408_v35, 7  ;;  %v2380_v58 = vadd.s32 %v7030_v46, %v8638_v41  ;;  %v2344_v52 = vsub.s32 %v10456_v20, %v2310_v19  ;;  %v1992_v19 = vpop.f32.mrb[62].mxu0  ;;  %vm2650_vm7 = vmand %vm10806_vm3, %vm10819_vm5 }
 0x29d   : > { %v3341_v1 = vrot.slane %v10596_v18, 7  ;;  %v10824_v4 = vor.u32 %v3099_v21, %v3096_v27  ;;  %v14095_v63 = vrot.slane %v10596_v18, 4  ;;  %vm14096_vm1 = vcmask 1043456   ;;  %vm10849_vm9 = vmand %vm2549_vm15, %vm2583_vm14  ;;  %v6814_v48 = vpop.f32.mrb[63].mxu0 }
 0x29e   : > { %v10837_v14 = vor.u32 %v3276_v8, %v3275_v12  ;;  %v6341_v7 = vadd.s32 4294967293, %v2343_v40  ;;  %v2381_v9 = vadd.s32 %v7032_v42, %v8638_v41  ;;  %v1990_v0 = vadd.f32 %v10356_v62, %v1989_v24  ;;  %vm14103_vm10 = vmmov %vm14102_vm0  ;;  %v10891_v8 = vpop.permute.xlu1 %2894  ;;  %v1997_v3 = vpop.f32.mrb[64].mxu0 }
 0x29f   : > { %v3138_v20 = vsel %vm14096_vm1, %v14095_v63, %v3137_v39  ;;  %2979 = vrot.lane.b32.xlu1 %v2951_v60, %s13752_s25  ;;  %vm14101_vm12 = vsmask.f32 4352  ;;  %v3340_v51 = vsel %vm14102_vm0, %v3337_v36, %v3339_v33  ;;  %vm2448_vm2 = vcmp.ge.s32.totalorder %v2380_v58, 0  ;;  %vm2651_vm14 = vmand %vm10833_vm8, %vm10849_vm9  ;;  %v10873_v36 = vpop.permute.xlu0 %3151  ;;  %v6817_v50 = vpop.f32.mrb[65].mxu0 }
 0x2a0   : > { %3165 = vrot.lane.b32.xlu0 %v3138_v20, %s7367_s28  ;;  %v10856_v42 = vsel %vm14101_vm12, %v10686_v6, %v10824_v4  ;;  %v6342_v25 = vadd.s32 4294967293, %v2344_v52  ;;  %v2034_v60 = vmax.f32 %v1990_v0, 0.0  ;;  %v1993_v49 = vadd.f32 %v10356_v62, %v1992_v19  ;;  %vm14104_vm1 = vmmov %vm14089_vm11  ;;  %v2000_v46 = vpop.f32.mrb[66].mxu0 }
 0x2a1   : > { %6840 = vmatmul.mubr.msk.bf16.gmra.mrb[92].mxu0 %vm14089_vm11, %v3340_v51  ;;  %v3342_v6 = vsel %vm14103_vm10, %v3339_v33, %v3341_v1  ;;  %vm2482_vm15 = vcmp.lt.s32.totalorder %v2380_v58, 16  ;;  %vm14105_vm12 = vsmask.f32 1280  ;;  %vm2550_vm0 = vcmp.ge.s32.totalorder %v6341_v7, 0  ;;  %vm14106_vm10 = vmmov %vm14104_vm1 }
 0x2a2   : > { %6843 = vmatprep.mubr.msk.bf16.mxu0 %vm14104_vm1, %v3342_v6  ;;  %v3278_v53 = vsel %vm14105_vm12, %v10683_v61, %v10837_v14  ;;  %vm2584_vm6 = vcmp.lt.s32.totalorder %v6341_v7, 16  ;;  %v3359_v40 = vsel %vm14106_vm10, %v9254_v16, %v10754_v38  ;;  %v2035_v17 = vmax.f32 %v1993_v49, 0.0  ;;  %vm10884_vm1 = vmand %vm2448_vm2, %vm2482_vm15  ;;  %v3024_v51 = vpop.permute.xlu1 %3023 }
 0x2a3   : > { %vm2483_vm13 = vcmp.lt.s32.totalorder %v2381_v9, 16  ;;  %v3343_v43 = vrot.slane %v10768_v59, 7  ;;  %vm2551_vm4 = vcmp.ge.s32.totalorder %v6342_v25, 0  ;;  %vm2585_vm12 = vcmp.lt.s32.totalorder %v6342_v25, 16  ;;  %vm14109_vm11 = vmmov %vm14106_vm10  ;;  %v3301_v21 = vpop.permute.xlu0 %3300 }
 0x2a4   : > { %3314 = vrot.lane.b32.xlu0 %v3278_v53, %s7368_s23  ;;  %v3464_v61 = vsel %vm14109_vm11, %v9616_v29, %v10731_v56  ;;  %v2752_v16 = vsel %vm2650_vm7, %v2034_v60, 0.0  ;;  %v2753_v38 = vsel %vm2651_vm14, %v2035_v17, 0.0  ;;  %vm10904_vm2 = vmand %vm2550_vm0, %vm2584_vm6  ;;  %vm14112_vm15 = vcmask 523264  }
 0x2a5   : > { %v3501_v29 = vsel %vm14112_vm15, %v3464_v61, %v3209_v22  ;;  %v2771_v56 = vpack.c.bf16 %v2753_v38, %v2752_v16  ;;  %vm14113_vm11 = vcmp.ge.s32.totalorder %v2381_v9, 0  ;;  %vm14116_vm3 = vmmov %vm14112_vm15  ;;  %v1998_v52 = vadd.f32 %v10356_v62, %v1997_v3 }
 0x2a6   : > { %vm10910_vm10 = vmand %vm14113_vm11, %vm2483_vm13  ;;  %v3388_v58 = vsel %vm14116_vm3, %v3359_v40, %v10688_v34  ;;  %vm14117_vm6 = vcmask 785408   ;;  %vm14121_vm13 = vcmask 1040384   ;;  %v2001_v5 = vadd.f32 %v10356_v62, %v2000_v46  ;;  %v2966_v38 = vpop.permute.xlu1 %2965 }
 0x2a7   : > { %v3533_v24 = vsel %vm14117_vm6, %v3501_v29, %v3301_v21  ;;  %vm10920_vm5 = vmand %vm2551_vm4, %vm2585_vm12  ;;  %v3344_v20 = vsel %vm14121_vm13, %v3341_v1, %v3343_v43  ;;  %v3196_v7 = vrot.slane %v2771_v56, 6  ;;  %v3011_v34 = vrot.slane %v2771_v56, 3  ;;  %v3211_v17 = vpop.permute.xlu0 %3210 }
 0x2a8   : > { %vm14120_vm8 = vmmov %vm14117_vm6  ;;  %3819 = vmatprep.mubr.bf16.mxu1 %v3533_v24  ;;  %v3345_v9 = vrot.slane %v2771_v56, 7  ;;  %v3139_v0 = vrot.slane %v2771_v56, 4  ;;  %v2036_v44 = vmax.f32 %v1998_v52, 0.0  ;;  %vm14122_vm9 = vcmask 261120  }
 0x2a9   : > { %v3421_v63 = vsel %vm14120_vm8, %v3388_v58, %v10780_v47  ;;  %vm2652_vm4 = vmand %vm10884_vm1, %vm10904_vm2  ;;  %6844 = vmatmul.mubr.msk.bf16.gmra.mrb[96].mxu0 %vm14122_vm9, %v3344_v20  ;;  %v6818_v47 = vpop.f32.mrb[67].mxu0  ;;  %v3103_v19 = vshrl.u32 %v2771_v56, 16  ;;  %v3106_v1 = vshll.u32 %v2771_v56, 16  ;;  %vm14123_vm14 = vcmask 1041408  }
 0x2aa   : > { %3820 = vmatmul.mubr.bf16.gmra.mrb[8].mxu1 %v3421_v63  ;;  %vm2653_vm7 = vmand %vm10910_vm10, %vm10920_vm5  ;;  %v3197_v25 = vsel %vm14123_vm14, %v3194_v54, %v3196_v7  ;;  %vm14124_vm0 = vcmask 1044480   ;;  %vm14126_vm15 = vcmask 1043456   ;;  %v2037_v48 = vmax.f32 %v2001_v5, 0.0  ;;  %v2897_v20 = vpop.permute.xlu1 %2896 }
 0x2ab   : > { %v3012_v62 = vsel %vm14124_vm0, %v3009_v2, %v3011_v34  ;;  %vm14125_vm12 = vmmov %vm14121_vm13  ;;  %v3140_v49 = vsel %vm14126_vm15, %v3137_v39, %v3139_v0  ;;  %3224 = vrot.lane.b32.xlu0 %v3197_v25, %s13752_s25  ;;  %v3279_v6 = vrot.slane %v3103_v19, 6  ;;  %v3280_v53 = vrot.slane %v3106_v1, 7  ;;  %v3154_v12 = vpop.permute.xlu0 %3153 }
 0x2ac   : > { %v3346_v60 = vsel %vm14125_vm12, %v3343_v43, %v3345_v9  ;;  %3039 = vrot.lane.b32.xlu1 %v3012_v62, %s7368_s23  ;;  %vm14127_vm11 = vmmov %vm14122_vm9  ;;  %v3105_v54 = vrot.slane %v3103_v19, 3  ;;  %v3108_v40 = vrot.slane %v3106_v1, 4  ;;  %v2754_v2 = vsel %vm2652_vm4, %v2036_v44, 0.0 }
 0x2ad   : > { %6847 = vmatprep.mubr.msk.bf16.mxu0 %vm14127_vm11, %v3346_v60  ;;  %v2755_v59 = vsel %vm2653_vm7, %v2037_v48, 0.0  ;;  %v3281_v39 = vor.u32 %v3280_v53, %v3279_v6  ;;  %vm14128_vm10 = vsmask.f32 1280  ;;  %vm14129_vm3 = vsmask.f32 4352  ;;  %vm14130_vm1 = vmmov %vm14125_vm12 }
 0x2ae   : > { %v2772_v43 = vpack.c.bf16 %v2755_v59, %v2754_v2  ;;  %v3109_v61 = vor.u32 %v3108_v40, %v3105_v54  ;;  %vm14131_vm2 = vmmov %vm14123_vm14  ;;  %vm14135_vm13 = vmmov 0   ;;  %vm14136_vm4 = vcmask 523264  }
 0x2af   : > { %3167 = vrot.lane.b32.xlu0 %v3140_v49, %s7367_s28  ;;  %v3282_v16 = vsel %vm14128_vm10, %v10837_v14, %v3281_v39  ;;  %vm14132_vm6 = vmmov %vm14122_vm9  ;;  %v3303_v22 = vpop.permute.xlu0 %3302  ;;  %vm14137_vm9 = vcmask 785408  }
 0x2b0   : > { %v3347_v29 = vrot.slane %v2772_v43, 7  ;;  %v3198_v56 = vrot.slane %v2772_v43, 6  ;;  %v3284_v21 = vshrl.u32 %v2772_v43, 16  ;;  %v3287_v3 = vshll.u32 %v2772_v43, 16  ;;  %vm14133_vm5 = vmmov %vm14132_vm6 }
 0x2b1   : > { %v10960_v27 = vsel %vm14129_vm3, %v10824_v4, %v3109_v61  ;;  %v3361_v50 = vsel %vm14132_vm6, %v9387_v11, %v10891_v8  ;;  %vm14134_vm8 = vmmov %vm14133_vm5 }
 0x2b2   : > { %v3348_v33 = vsel %vm14130_vm1, %v3345_v9, %v3347_v29  ;;  %v3199_v58 = vsel %vm14131_vm2, %v3196_v7, %v3198_v56  ;;  %v3286_v52 = vrot.slane %v3284_v21, 6  ;;  %v3289_v14 = vrot.slane %v3287_v3, 7  ;;  %vm14138_vm7 = vmmov %vm14136_vm4 }
 0x2b3   : > { %3316 = vrot.lane.b32.xlu0 %v3282_v16, %s7368_s23  ;;  %6848 = vmatmul.mubr.msk.bf16.gmra.mrb[100].mxu0 %vm14133_vm5, %v3348_v33  ;;  %v3467_v24 = vsel %vm14134_vm8, %v9741_v26, %v10873_v36  ;;  %v3390_v11 = vsel %vm14138_vm7, %v3361_v50, %v10840_v32  ;;  %vm14139_vm14 = vmmov %vm14137_vm9  ;;  %v3026_v36 = vpop.permute.xlu1 %3025  ;;  %v3213_v7 = vpop.permute.xlu0 %3212  ;;  %v14161_v50 = vld [vmem:[#allocation37_spill] sm:$0xff] }
 0x2b4   : > { %6855 = vmatprep.mubr.msk.bf16.mxu0 %vm14135_vm13, %v14015_v15  ;;  %v3503_v4 = vsel %vm14136_vm4, %v3467_v24, %v3211_v17  ;;  %v3290_v63 = vor.u32 %v3289_v14, %v3286_v52  ;;  %v3424_v8 = vsel %vm14139_vm14, %v3390_v11, %v3024_v51  ;;  %vm14140_vm0 = vmmov %vm14128_vm10 }
 0x2b5   : > { %v3536_v46 = vsel %vm14137_vm9, %v3503_v4, %v3303_v22  ;;  %vm14141_vm12 = vmmov %vm14133_vm5 }
 0x2b6   : > { %3827 = vmatprep.mubr.bf16.mxu1 %v3536_v46  ;;  %v3291_v26 = vsel %vm14140_vm0, %v3281_v39, %v3290_v63  ;;  %v3363_v0 = vsel %vm14141_vm12, %v9516_v31, %v2897_v20  ;;  %vm14142_vm15 = vmmov %vm14133_vm5 }
 0x2b7   : > { %3226 = vrot.lane.b32.xlu0 %v3199_v58, %s13752_s25  ;;  %3828 = vmatmul.mubr.bf16.gmra.mrb[12].mxu1 %v3424_v8  ;;  %v2968_v34 = vpop.permute.xlu1 %2967  ;;  %v3156_v9 = vpop.permute.xlu0 %3155  ;;  %v3470_v32 = vsel %vm14142_vm15, %v9888_v57, %v3154_v12  ;;  %vm14143_vm11 = vmmov %vm14136_vm4 }
 0x2b8   : > { %v3505_v44 = vsel %vm14143_vm11, %v3470_v32, %v3213_v7  ;;  %vm14144_vm10 = vmmov %vm14137_vm9 }
 0x2b9   : > { %vm14145_vm3 = vmmov %vm14136_vm4 }
 0x2ba   : > { %v3392_v1 = vsel %vm14145_vm3, %v3363_v0, %v2966_v38  ;;  %vm14146_vm1 = vmmov %vm14137_vm9 }
 0x2bb   : > { %3318 = vrot.lane.b32.xlu0 %v3291_v26, %s7368_s23  ;;  %v3305_v5 = vpop.permute.xlu0 %3304  ;;  %v2899_v47 = vpop.permute.xlu1 %2898  ;;  %v3427_v51 = vsel %vm14146_vm1, %v3392_v1, %v3026_v36  ;;  %vm14147_vm2 = vmmov %vm14133_vm5  ;;  %v7236_v26 = vld [vmem:[%s13615_s5 + $0x88] sm:$0xff]  }
 0x2bc   : > { %v3539_v19 = vsel %vm14144_vm10, %v3505_v44, %v3305_v5  ;;  %v3365_v31 = vsel %vm14147_vm2, %v9640_v37, %v2899_v47  ;;  %vm14148_vm6 = vmmov %vm14147_vm2 }
 0x2bd   : > { %3835 = vmatprep.mubr.bf16.mxu1 %v3539_v19  ;;  %v3473_v57 = vsel %vm14148_vm6, %v10000_v45, %v3156_v9  ;;  %vm14149_vm5 = vmmov %vm14145_vm3  ;;  %v14154_v45 = vld [vmem:[#allocation36_spill] sm:$0xff] }
 0x2be   : > { %vm14150_vm8 = vmmov %vm14146_vm1 }
 0x2bf   : > { %3836 = vmatmul.mubr.bf16.gmra.mrb[16].mxu1 %v3427_v51  ;;  %v3028_v25 = vpop.permute.xlu1 %3027  ;;  %v3215_v62 = vpop.permute.xlu0 %3214  ;;  %vm14151_vm4 = vmmov %vm14145_vm3 }
 0x2c0   : > { %v3507_v48 = vsel %vm14149_vm5, %v3473_v57, %v3215_v62  ;;  %v3394_v40 = vsel %vm14151_vm4, %v3365_v31, %v2968_v34  ;;  %vm14152_vm9 = vmmov %vm14146_vm1 }
 0x2c1   : > { %v3430_v2 = vsel %vm14152_vm9, %v3394_v40, %v3028_v25  ;;  %vm14153_vm7 = vmmov %vm14147_vm2 }
 0x2c2   : > { %vm14155_vm14 = vmmov %vm14147_vm2 }
 0x2c3   : > { %v2970_v60 = vpop.permute.xlu1 %2969  ;;  %v3158_v49 = vpop.permute.xlu0 %3157  ;;  %vm14156_vm0 = vmmov %vm14145_vm3 }
 0x2c4   : > { %v3476_v61 = vsel %vm14155_vm14, %v14154_v45, %v3158_v49  ;;  %vm14157_vm12 = vmmov %vm14146_vm1 }
 0x2c5   : > { %vm14158_vm15 = vmmov %vm14156_vm0 }
 0x2c6   : > { %vm14159_vm11 = vmmov %vm14146_vm1 }
 0x2c7   : > { %v3307_v6 = vpop.permute.xlu0 %3306  ;;  %v2901_v53 = vpop.permute.xlu1 %2900  ;;  %vm14160_vm10 = vmmov %vm14147_vm2 }
 0x2c8   : > { %v3542_v54 = vsel %vm14150_vm8, %v3507_v48, %v3307_v6  ;;  %v3367_v37 = vsel %vm14153_vm7, %v9767_v23, %v2901_v53  ;;  %vm14162_vm3 = vmmov %vm14147_vm2 }
 0x2c9   : > { %3843 = vmatprep.mubr.bf16.mxu1 %v3542_v54  ;;  %v3396_v21 = vsel %vm14158_vm15, %v3367_v37, %v2970_v60  ;;  %vm14163_vm1 = vmmov %vm14156_vm0 }
 0x2ca   : > { %3844 = vmatmul.mubr.bf16.gmra.mrb[20].mxu1 %v3430_v2  ;;  %vm14164_vm2 = vmmov %vm14150_vm8 }
 0x2cb   : > { %v3030_v59 = vpop.permute.xlu1 %3029  ;;  %vm14165_vm6 = vmmov %vm14156_vm0 }
 0x2cc   : > { %v3433_v3 = vsel %vm14159_vm11, %v3396_v21, %v3030_v59  ;;  %vm14166_vm5 = vmmov %vm14164_vm2  ;;  %v14181_v59 = vld [vmem:[#allocation10_spill] sm:$0xff] }
 0x2cd   : > { %vm14167_vm8 = vmmov %vm14162_vm3 }
 0x2ce   : > { %vm14168_vm4 = vmmov %vm14162_vm3 }
 0x2cf   : > { %v2972_v39 = vpop.permute.xlu1 %2971  ;;  %vm14169_vm9 = vmmov %vm14156_vm0 }
 0x2d0   : > { %v3217_v17 = vpop.permute.xlu0 %3216  ;;  %vm14170_vm7 = vmmov %vm14164_vm2 }
 0x2d1   : > { %v3509_v16 = vsel %vm14156_vm0, %v3476_v61, %v3217_v17  ;;  %vm14171_vm14 = vmmov %vm14156_vm0  ;;  %v11042_v17 = vadd.s32 65, %v14181_v59  ;;  %v14185_v61 = vld [vmem:[#allocation8_spill] sm:$0xff] }
 0x2d2   : > { %vm14172_vm0 = vmmov %vm14164_vm2 }
 0x2d3   : > { %v2903_v29 = vpop.permute.xlu1 %2902  ;;  %vm14174_vm15 = vmmov %vm14162_vm3 }
 0x2d4   : > { %v3160_v43 = vpop.permute.xlu0 %3159  ;;  %v3369_v23 = vsel %vm14160_vm10, %v9901_v55, %v2903_v29  ;;  %v7235_v55 = vld [vmem:[%s13615_s5 + $0x80] sm:$0xff]   ;;  %vm14175_vm11 = vmmov %vm14163_vm1 }
 0x2d5   : > { %v3479_v14 = vsel %vm14162_vm3, %v14161_v50, %v3160_v43  ;;  %v3398_v20 = vsel %vm14165_vm6, %v3369_v23, %v2972_v39  ;;  %6852 = vmatpush3.bf16.msra.mxu0 %v7235_v55  ;;  %vm14176_vm10 = vmmov %vm14172_vm0 }
 0x2d6   : > { %6853 = vmatprep.subr.bf16.mxu0 %v14015_v15 }
 0x2d7   : > { %v3032_v12 = vpop.permute.xlu1 %3031 }
 0x2d8   : > { %v3436_v46 = vsel %vm14166_vm5, %v3398_v20, %v3032_v12 }
 0x2d9   : > { %6854 = vmatpush3.bf16.msra.mxu0 %v7236_v26 }
 0x2db   : > { %v3309_v38 = vpop.permute.xlu0 %3308  ;;  %v2974_v58 = vpop.permute.xlu1 %2973 }
 0x2dc   : > { %v3545_v56 = vsel %vm14157_vm12, %v3509_v16, %v3309_v38  ;;  %vm14173_vm12 = vmmov %vm14162_vm3  ;;  %v11048_v16 = vadd.s32 65, %v14185_v61 }
 0x2dd   : > { %3851 = vmatprep.mubr.bf16.mxu1 %v3545_v56  ;;  %vm14177_vm3 = vmmov %vm14163_vm1  ;;  %v4103_v56 = vcvt.s32.f32 %v11042_v17 }
 0x2de   : > { %3852 = vmatmul.mubr.bf16.gmra.mrb[24].mxu1 %v3433_v3  ;;  %vm14182_vm5 = vmmov %vm14177_vm3  ;;  %v4101_v3 = vcvt.s32.f32 %v11048_v16 }
 0x2df   : > { %v2905_v22 = vpop.permute.xlu1 %2904  ;;  %v4131_v50 = vadd.f32 0.5, %v4103_v56 }
 0x2e0   : > { %v3371_v34 = vsel %vm14167_vm8, %v10041_v10, %v2905_v22  ;;  %vm14183_vm8 = vmmov %vm14172_vm0  ;;  %v14192_v22 = vld [vmem:[#allocation12_spill] sm:$0xff] }
 0x2e1   : > { %v3400_v47 = vsel %vm14171_vm14, %v3371_v34, %v2974_v58  ;;  %v4159_v26 = vmul.f32 0.045454547, %v4131_v50 }
 0x2e5   : > { %v3219_v33 = vpop.permute.xlu0 %3218  ;;  %v3034_v11 = vpop.permute.xlu1 %3033 }
 0x2e6   : > { %v3511_v24 = vsel %vm14163_vm1, %v3479_v14, %v3219_v33  ;;  %v3439_v19 = vsel %vm14172_vm0, %v3400_v47, %v3034_v11  ;;  %vm14178_vm1 = vmmov %vm14172_vm0  ;;  %v14188_v33 = vld [vmem:[#allocation9_spill] sm:$0xff]  ;;  %v4129_v11 = vadd.f32 0.5, %v4101_v3 }
 0x2e7   : > { %v11058_v58 = vadd.s32 65, %v14188_v33 }
 0x2e8   : > { %v4157_v34 = vmul.f32 0.045454547, %v4129_v11 }
 0x2e9   : > { %v3162_v52 = vpop.permute.xlu0 %3161 }
 0x2ea   : > { %v3482_v9 = vsel %vm14168_vm4, %v10541_v28, %v3162_v52  ;;  %v4185_v47 = vfloor.f32 %v4157_v34 }
 0x2eb   : > { %v2976_v36 = vpop.permute.xlu1 %2975 }
 0x2f1   : > { %v3311_v4 = vpop.permute.xlu0 %3310 }
 0x2f2   : > { %v3548_v63 = vsel %vm14164_vm2, %v3511_v24, %v3311_v4  ;;  %v2907_v44 = vpop.permute.xlu1 %2906  ;;  %vm14179_vm2 = vmmov %vm14168_vm4 }
 0x2f3   : > { %3859 = vmatprep.mubr.bf16.mxu1 %v3548_v63  ;;  %v3373_v10 = vsel %vm14173_vm12, %v10206_v30, %v2907_v44  ;;  %vm14180_vm6 = vmmov %vm14179_vm2  ;;  %v11066_v63 = vadd.s32 65, %v14192_v22 }
 0x2f4   : > { %3860 = vmatmul.mubr.bf16.gmra.mrb[28].mxu1 %v3436_v46  ;;  %v3402_v48 = vsel %vm14177_vm3, %v3373_v10, %v2976_v36  ;;  %vm14184_vm4 = vmmov %vm14177_vm3 }
 0x2f5   : > { %vm14190_vm14 = vmmov %vm14179_vm2 }
 0x2fb   : > { %v3221_v8 = vpop.permute.xlu0 %3220  ;;  %v3036_v1 = vpop.permute.xlu1 %3035 }
 0x2fc   : > { %v3513_v0 = vsel %vm14169_vm9, %v3482_v9, %v3221_v8  ;;  %v3442_v6 = vsel %vm14178_vm1, %v3402_v48, %v3036_v1  ;;  %vm14186_vm9 = vmmov %vm14172_vm0 }
 0x2fd   : > { %vm14191_vm0 = vmmov %vm14177_vm3 }
 0x2fe   : > { %vm14193_vm12 = vmmov %vm14191_vm0 }
 0x2ff   : > { %v3164_v7 = vpop.permute.xlu0 %3163 }
 0x300   : > { %v2978_v25 = vpop.permute.xlu1 %2977  ;;  %v3485_v28 = vsel %vm14174_vm15, %v10715_v13, %v3164_v7  ;;  %vm14194_vm15 = vmmov %vm14178_vm1  ;;  %v4105_v7 = vcvt.s32.f32 %v11066_v63 }
 0x305   : > { %v3313_v32 = vpop.permute.xlu0 %3312  ;;  %v2909_v31 = vpop.permute.xlu1 %2908 }
 0x306   : > { %v3551_v5 = vsel %vm14170_vm7, %v3513_v0, %v3313_v32  ;;  %v3375_v30 = vsel %vm14179_vm2, %v10408_v35, %v2909_v31  ;;  %v14187_v35 = vld [vmem:[#allocation11_spill] sm:$0xff]  ;;  %vm14189_vm7 = vmmov %vm14179_vm2  ;;  %v4187_v32 = vfloor.f32 %v4159_v26  ;;  %v7033_v31 = vtrunc.f32 %v4185_v47 }
 0x307   : > { %3867 = vmatprep.mubr.bf16.mxu1 %v3551_v5  ;;  %v3404_v45 = vsel %vm14184_vm4, %v3375_v30, %v2978_v25  ;;  %v11052_v29 = vadd.s32 65, %v14187_v35  ;;  %v4133_v5 = vadd.f32 0.5, %v4105_v7 }
 0x308   : > { %3868 = vmatmul.mubr.bf16.gmra.mrb[32].mxu1 %v3439_v19 }
 0x309   : > { %v2911_v53 = vpop.permute.xlu1 %2910  ;;  %v4104_v12 = vcvt.s32.f32 %v11052_v29 }
 0x30a   : > { %v3377_v14 = vsel %vm14190_vm14, %v10596_v18, %v2911_v53  ;;  %v14196_v18 = vld [vmem:[#allocation13_spill] sm:$0xff] }
 0x30b   : > { %v4132_v8 = vadd.f32 0.5, %v4104_v12  ;;  %v11073_v36 = vadd.s32 65, %v14196_v18 }
 0x30d   : > { %v3223_v51 = vpop.permute.xlu0 %3222  ;;  %v3038_v2 = vpop.permute.xlu1 %3037  ;;  %v4160_v9 = vmul.f32 0.045454547, %v4132_v8  ;;  %v4106_v44 = vcvt.s32.f32 %v11073_v36 }
 0x30e   : > { %v3515_v60 = vsel %vm14175_vm11, %v3485_v28, %v3223_v51  ;;  %v3445_v38 = vsel %vm14186_vm9, %v3404_v45, %v3038_v2  ;;  %vm14195_vm11 = vmmov %vm14178_vm1  ;;  %v14197_v51 = vld [vmem:[#allocation14_spill] sm:$0xff]  ;;  %v4161_v28 = vmul.f32 0.045454547, %v4133_v5 }
 0x30f   : > { %v4188_v19 = vfloor.f32 %v4160_v9  ;;  %v11078_v25 = vadd.s32 65, %v14197_v51  ;;  %v4134_v10 = vadd.f32 0.5, %v4106_v44  ;;  %v14200_v44 = vld [vmem:[#allocation17_spill] sm:$0xff] }
 0x310   : > { %v4189_v30 = vfloor.f32 %v4161_v28 }
 0x312   : > { %v3166_v62 = vpop.permute.xlu0 %3165 }
 0x313   : > { %v3488_v13 = vsel %vm14180_vm6, %v10856_v42, %v3166_v62  ;;  %v2980_v42 = vpop.permute.xlu1 %2979  ;;  %v7037_v62 = vtrunc.f32 %v4187_v32 }
 0x314   : > { %v3406_v20 = vsel %vm14193_vm12, %v3377_v14, %v2980_v42 }
 0x316   : > { %v3315_v49 = vpop.permute.xlu0 %3314 }
 0x317   : > { %v3554_v57 = vsel %vm14176_vm10, %v3515_v60, %v3315_v49  ;;  %v14198_v60 = vld [vmem:[#allocation15_spill] sm:$0xff] }
 0x318   : > { %3875 = vmatprep.mubr.bf16.mxu1 %v3554_v57  ;;  %v11081_v49 = vadd.s32 65, %v14198_v60  ;;  %v7039_v57 = vtrunc.f32 %v4188_v19 }
 0x319   : > { %3876 = vmatmul.mubr.bf16.gmra.mrb[36].mxu1 %v3442_v6  ;;  %v4107_v6 = vcvt.s32.f32 %v11078_v25 }
 0x31a   : > { %v7040_v45 = vcvt.f32.s32 %v7039_v57 }
 0x31c   : > { %v4244_v33 = vmul.u32 22, %v7040_v45  ;;  %v4300_v7 = vadd.s32 %v7040_v45, %v8638_v41 }
 0x31d   : > { %v3225_v54 = vpop.permute.xlu0 %3224 }
 0x31e   : > { %v3517_v39 = vsel %vm14182_vm5, %v3488_v13, %v3225_v54  ;;  %v3040_v52 = vpop.permute.xlu1 %3039  ;;  %v7038_v54 = vcvt.f32.s32 %v7037_v62  ;;  %v4108_v13 = vcvt.s32.f32 %v11081_v49  ;;  %v4272_v8 = vsub.s32 %v11052_v29, %v4244_v33 }
 0x31f   : > { %v3448_v55 = vsel %vm14195_vm11, %v3406_v20, %v3040_v52  ;;  %v14199_v20 = vld [vmem:[#allocation16_spill] sm:$0xff]  ;;  %vm4384_vm4 = vcmp.lt.s32.totalorder %v4300_v7, 16 }
 0x320   : > { %v4243_v42 = vmul.u32 22, %v7038_v54  ;;  %v4136_v3 = vadd.f32 0.5, %v4108_v13  ;;  %v6379_v5 = vadd.s32 4294967293, %v4272_v8 }
 0x321   : > { %v3168_v40 = vpop.permute.xlu0 %3167 }
 0x322   : > { %v3491_v23 = vsel %vm14189_vm7, %v10960_v27, %v3168_v40  ;;  %v4102_v27 = vcvt.s32.f32 %v11058_v58  ;;  %v4162_v40 = vmul.f32 0.045454547, %v4134_v10  ;;  %v4271_v50 = vsub.s32 %v11042_v17, %v4243_v42 }
 0x323   : > { %v4164_v22 = vmul.f32 0.045454547, %v4136_v3  ;;  %vm4440_vm12 = vcmp.ge.s32.totalorder %v6379_v5, 0 }
 0x324   : > { %v4130_v0 = vadd.f32 0.5, %v4102_v27  ;;  %v4190_v56 = vfloor.f32 %v4162_v40  ;;  %v6378_v18 = vadd.s32 4294967293, %v4271_v50 }
 0x325   : > { %v3317_v43 = vpop.permute.xlu0 %3316  ;;  %v4192_v9 = vfloor.f32 %v4164_v22 }
 0x326   : > { %v3557_v37 = vsel %vm14183_vm8, %v3517_v39, %v3317_v43  ;;  %v4158_v1 = vmul.f32 0.045454547, %v4130_v0  ;;  %v7034_v43 = vcvt.f32.s32 %v7033_v31  ;;  %v7043_v14 = vtrunc.f32 %v4190_v56 }
 0x327   : > { %3883 = vmatprep.mubr.bf16.mxu1 %v3557_v37  ;;  %vm4439_vm6 = vcmp.ge.s32.totalorder %v6378_v18, 0  ;;  %vm4467_vm5 = vcmp.lt.s32.totalorder %v6378_v18, 16  ;;  %vm4356_vm8 = vcmp.ge.s32.totalorder %v4300_v7, 0  ;;  %v11106_v10 = vtrunc.f32 %v4192_v9 }
 0x328   : > { %3884 = vmatmul.mubr.bf16.gmra.mrb[40].mxu1 %v3445_v38  ;;  %v4186_v48 = vfloor.f32 %v4158_v1  ;;  %v4135_v38 = vadd.f32 0.5, %v4107_v6  ;;  %v4241_v12 = vmul.u32 22, %v7034_v43  ;;  %v7044_v17 = vcvt.f32.s32 %v7043_v14  ;;  %vm11118_vm14 = vmand %vm4439_vm6, %vm4467_vm5 }
 0x329   : > { %v3227_v21 = vpop.permute.xlu0 %3226  ;;  %vm11143_vm11 = vmand %vm4356_vm8, %vm4384_vm4 }
 0x32a   : > { %v3519_v24 = vsel %vm14191_vm0, %v3491_v23, %v3227_v21  ;;  %v7035_v61 = vtrunc.f32 %v4186_v48  ;;  %v7041_v21 = vtrunc.f32 %v4189_v30  ;;  %v4163_v23 = vmul.f32 0.045454547, %v4135_v38 }
 0x32b   : > { %v4269_v11 = vsub.s32 %v11048_v16, %v4241_v12  ;;  %v11100_v16 = vadd.s32 65, %v14200_v44  ;;  %v4246_v1 = vmul.u32 22, %v7044_v17  ;;  %v7048_v38 = vcvt.f32.s32 %v11106_v10  ;;  %v14410_v10 = vld [vmem:[#allocation33_spill] sm:$0xff] }
 0x32c   : > { %v7036_v52 = vcvt.f32.s32 %v7035_v61  ;;  %v4191_v26 = vfloor.f32 %v4163_v23  ;;  %v11155_v42 = vadd.s32 %v7044_v17, %v8638_v41 }
 0x32d   : > { %v3319_v4 = vpop.permute.xlu0 %3318  ;;  %v6539_v53 = vpop.f32.mrb[68].mxu0  ;;  %v6376_v32 = vadd.s32 4294967293, %v4269_v11  ;;  %v4110_v48 = vcvt.s32.f32 %v11100_v16  ;;  %v4274_v13 = vsub.s32 %v11073_v36, %v4246_v1 }
 0x32e   : > { %v3560_v46 = vsel %vm14194_vm15, %v3519_v24, %v3319_v4  ;;  %v6540_v2 = vpop.f32.mrb[69].mxu0  ;;  %v4299_v24 = vadd.s32 %v7038_v54, %v8638_v41  ;;  %v7042_v4 = vcvt.f32.s32 %v7041_v21  ;;  %v4242_v27 = vmul.u32 22, %v7036_v52 }
 0x32f   : > { %3891 = vmatprep.mubr.bf16.mxu1 %v3560_v46  ;;  %v11085_v59 = vadd.f32 %v6540_v2, %v6539_v53  ;;  %v6542_v39 = vpop.f32.mrb[70].mxu0  ;;  %v11092_v46 = vadd.s32 65, %v14199_v20  ;;  %v11103_v47 = vtrunc.f32 %v4191_v26  ;;  %vm4437_vm7 = vcmp.ge.s32.totalorder %v6376_v32, 0  ;;  %v7242_v26 = vld [vmem:[%s13615_s5 + $0x10] sm:$0xff]  }
 0x330   : > { %3892 = vmatmul.mubr.bf16.gmra.mrb[44].mxu1 %v3448_v55  ;;  %v6543_v37 = vpop.f32.mrb[71].mxu0  ;;  %v4297_v55 = vadd.s32 %v7034_v43, %v8638_v41  ;;  %vm4355_vm10 = vcmp.ge.s32.totalorder %v4299_v24, 0  ;;  %v4245_v34 = vmul.u32 22, %v7042_v4  ;;  %vm4383_vm3 = vcmp.lt.s32.totalorder %v4299_v24, 16 }
 0x331   : > { %v11087_v35 = vadd.f32 %v6543_v37, %v6542_v39  ;;  %v4109_v0 = vcvt.s32.f32 %v11092_v46  ;;  %v4270_v29 = vsub.s32 %v11058_v58, %v4242_v27  ;;  %vm11110_vm9 = vmand %vm4355_vm10, %vm4383_vm3  ;;  %v4298_v57 = vadd.s32 %v7036_v52, %v8638_v41  ;;  %v14207_v39 = vld [vmem:[#allocation18_spill] sm:$0xff]  ;;  %v11139_v37 = vld [vmem:[%s13614_s4] ss:$0 sm:$0xff] }
 0x332   : > { %vm4353_vm1 = vcmp.ge.s32.totalorder %v4297_v55, 0  ;;  %vm4381_vm2 = vcmp.lt.s32.totalorder %v4297_v55, 16  ;;  %v4273_v62 = vsub.s32 %v11066_v63, %v4245_v34  ;;  %vm4465_vm0 = vcmp.lt.s32.totalorder %v6376_v32, 16 }
 0x333   : > { %v4137_v28 = vadd.f32 0.5, %v4109_v0  ;;  %v6377_v53 = vadd.s32 4294967293, %v4270_v29  ;;  %v7046_v54 = vcvt.f32.s32 %v11103_v47  ;;  %vm11125_vm15 = vmand %vm4353_vm1, %vm4381_vm2  ;;  %v11130_v30 = vadd.s32 %v7042_v4, %v8638_v41 }
 0x334   : > { %v11134_v43 = vadd.s32 65, %v14207_v39  ;;  %vm4468_vm10 = vcmp.lt.s32.totalorder %v6379_v5, 16  ;;  %v11147_v61 = vadd.s32 4294967293, %v4273_v62  ;;  %vm4354_vm1 = vcmp.ge.s32.totalorder %v4298_v57, 0  ;;  %vm11160_vm6 = vmand %vm4437_vm7, %vm4465_vm0  ;;  %v7237_v62 = vld [vmem:[%s13615_s5 + $0x40] sm:$0xff]  }
 0x335   : > { %v4165_v36 = vmul.f32 0.045454547, %v4137_v28  ;;  %vm4382_vm2 = vcmp.lt.s32.totalorder %v4298_v57, 16  ;;  %v4138_v56 = vadd.f32 0.5, %v4110_v48  ;;  %vm4438_vm5 = vcmp.ge.s32.totalorder %v6377_v53, 0  ;;  %vm11168_vm4 = vmand %vm4440_vm12, %vm4468_vm10  ;;  %v7238_v57 = vld [vmem:[%s13615_s5] sm:$0xff]   ;;  %6639 = vmatprep.subr.bf16.mxu1 %v7237_v62 }
 0x336   : > { %vm4466_vm8 = vcmp.lt.s32.totalorder %v6377_v53, 16  ;;  %v4247_v12 = vmul.u32 22, %v7046_v54  ;;  %v3790_v52 = vadd.f32 %v11085_v59, %v11139_v37  ;;  %vm4385_vm7 = vcmp.lt.s32.totalorder %v11130_v30, 16  ;;  %vm11180_vm0 = vmand %vm4354_vm1, %vm4382_vm2  ;;  %6640 = vmatpush3.bf16.msra.mxu1 %v7238_v57 }
 0x337   : > { %v11174_v50 = vadd.s32 4294967293, %v4274_v13  ;;  %v4111_v14 = vcvt.s32.f32 %v11134_v43  ;;  %v4248_v20 = vmul.u32 22, %v7048_v38  ;;  %v4193_v11 = vfloor.f32 %v4165_v36  ;;  %vm11192_vm3 = vmand %vm4438_vm5, %vm4466_vm8 }
 0x338   : > { %v3793_v27 = vadd.f32 %v11087_v35, %v11139_v37  ;;  %v4166_v18 = vmul.f32 0.045454547, %v4138_v56  ;;  %vm4521_vm2 = vmand %vm11125_vm15, %vm11160_vm6  ;;  %v4275_v9 = vsub.s32 %v11078_v25, %v4247_v12  ;;  %v14218_v35 = vld [vmem:[#allocation19_spill] sm:$0xff]  ;;  %vm4386_vm8 = vcmp.lt.s32.totalorder %v11155_v42, 16 }
 0x339   : > { %v11203_v0 = vadd.s32 65, %v14218_v35  ;;  %vm4524_vm5 = vmand %vm11143_vm11, %vm11168_vm4  ;;  %v4139_v5 = vadd.f32 0.5, %v4111_v14  ;;  %vm4442_vm12 = vcmp.ge.s32.totalorder %v11174_v50, 0  ;;  %v4276_v25 = vsub.s32 %v11081_v49, %v4248_v20 }
 0x33a   : > { %vm4522_vm1 = vmand %vm11180_vm0, %vm11192_vm3  ;;  %v11216_v47 = vtrunc.f32 %v4193_v11  ;;  %vm4470_vm10 = vcmp.lt.s32.totalorder %v11174_v50, 16  ;;  %v11220_v1 = vadd.s32 %v7046_v54, %v8638_v41  ;;  %v11258_v39 = vadd.s32 %v7048_v38, %v8638_v41 }
 0x33b   : > { %vm14219_vm11 = vmand %vm11110_vm9, %vm11118_vm14  ;;  %v4167_v54 = vmul.f32 0.045454547, %v4139_v5  ;;  %vm5917_vm9 = vcmask 1042432   ;;  %vm5918_vm14 = vcmask 1046532   ;;  %v11260_v45 = vadd.s32 4294967293, %v4276_v25 }
 0x33c   : > { %v7050_v36 = vcvt.f32.s32 %v11216_v47  ;;  %vm14222_vm15 = vcmp.ge.s32.totalorder %v11130_v30, 0  ;;  %vm14225_vm6 = vcmp.lt.s32.totalorder %v11147_v61, 16  ;;  %vm14226_vm4 = vcmp.ge.s32.totalorder %v11147_v61, 0 }
 0x33d   : > { %vm11275_vm3 = vmand %vm14222_vm15, %vm4385_vm7  ;;  %vm13751_vm7 = vcmask 257024  }
 0x33e   : > { %vm11287_vm0 = vmand %vm14226_vm4, %vm14225_vm6  ;;  %v11319_v35 = vmul.u32 22, %v7050_v36  ;;  %vm14236_vm6 = vsmask.f32 7424 }
 0x343   : > { %v6545_v19 = vpop.f32.mrb[72].mxu0 }
 0x344   : > { %v6546_v51 = vpop.f32.mrb[73].mxu0 }
 0x345   : > { %v6547_v60 = vadd.f32 %v6546_v51, %v6545_v19  ;;  %v6548_v31 = vpop.f32.mrb[74].mxu0  ;;  %v4194_v51 = vfloor.f32 %v4166_v18 }
 0x346   : > { %v6549_v6 = vpop.f32.mrb[75].mxu0 }
 0x347   : > { %v6550_v40 = vadd.f32 %v6549_v6, %v6548_v31  ;;  %v3798_v21 = vadd.f32 %v6547_v60, %v11139_v37  ;;  %v11232_v60 = vadd.s32 4294967293, %v4275_v9  ;;  %v4112_v31 = vcvt.s32.f32 %v11203_v0 }
 0x349   : > { %v3801_v22 = vadd.f32 %v6550_v40, %v11139_v37  ;;  %v4140_v59 = vadd.f32 0.5, %v4112_v31  ;;  %vm4443_vm4 = vcmp.ge.s32.totalorder %v11232_v60, 0 }
 0x34b   : > { %v4168_v5 = vmul.f32 0.045454547, %v4140_v59 }
 0x350   : > { %v6825_v33 = vpop.f32.mrb[76].mxu0 }
 0x351   : > { %v3943_v24 = vadd.f32 %v6825_v33, %v3798_v21  ;;  %v3934_v4 = vpop.f32.mrb[77].mxu0  ;;  %v11266_v33 = vtrunc.f32 %v4194_v51 }
 0x352   : > { %v3935_v55 = vadd.f32 %v3934_v4, %v3790_v52  ;;  %v6826_v8 = vpop.f32.mrb[78].mxu0  ;;  %v14221_v52 = vld [vmem:[#allocation20_spill] sm:$0xff] }
 0x353   : > { %v4047_v7 = vmax.f32 %v3943_v24, 0.0  ;;  %v3946_v17 = vadd.f32 %v6826_v8, %v3801_v22  ;;  %v3937_v34 = vpop.f32.mrb[79].mxu0  ;;  %v11269_v23 = vadd.s32 65, %v14221_v52  ;;  %v14229_v8 = vld [vmem:[#allocation21_spill] sm:$0xff] }
 0x354   : > { %v4045_v32 = vmax.f32 %v3935_v55, 0.0  ;;  %v3938_v44 = vadd.f32 %v3937_v34, %v3793_v27  ;;  %v4195_v55 = vfloor.f32 %v4167_v54  ;;  %v11292_v27 = vadd.s32 65, %v14229_v8 }
 0x355   : > { %v4048_v29 = vmax.f32 %v3946_v17, 0.0  ;;  %v4607_v28 = vsel %vm14219_vm11, %v4047_v7, 0.0  ;;  %vm4525_vm11 = vmand %vm11275_vm3, %vm11287_vm0  ;;  %vm4444_vm3 = vcmp.ge.s32.totalorder %v11260_v45, 0  ;;  %vm4472_vm0 = vcmp.lt.s32.totalorder %v11260_v45, 16  ;;  %v14252_v45 = vld [vmem:[#allocation23_spill] sm:$0xff] }
 0x356   : > { %v4046_v19 = vmax.f32 %v3938_v44, 0.0  ;;  %v4605_v58 = vsel %vm4521_vm2, %v4045_v32, 0.0  ;;  %v4113_v32 = vcvt.s32.f32 %v11269_v23  ;;  %v4114_v62 = vcvt.s32.f32 %v11292_v27 }
 0x357   : > { %v11230_v49 = vsel %vm4524_vm5, %v4048_v29, 0.0  ;;  %vm14233_vm5 = vcmask 1046528   ;;  %v11356_v54 = vtrunc.f32 %v4195_v55 }
 0x358   : > { %v11244_v48 = vpack.c.bf16 %v11230_v49, %v4607_v28  ;;  %v4606_v6 = vsel %vm4522_vm1, %v4046_v19, 0.0  ;;  %v6551_v63 = vpop.f32.mrb[0].mxu1  ;;  %v11251_v53 = vpop.f32.mrb[80].mxu0  ;;  %vm14230_vm1 = vcmp.ge.s32.totalorder %v11155_v42, 0  ;;  %v7239_v28 = vld [vmem:[%s13615_s5 + $0x48] sm:$0xff]   ;;  %v6482_v57 = vpack.c.bf16 %v11230_v49, %v11230_v49 }
 0x359   : > { %v11253_v40 = vpack.c.bf16 %v4606_v6, %v4605_v58  ;;  %v6552_v2 = vpop.f32.mrb[1].mxu1  ;;  %v3950_v13 = vpop.f32.mrb[81].mxu0  ;;  %vm11298_vm2 = vmand %vm14230_vm1, %vm4386_vm8  ;;  %vm4471_vm1 = vcmp.lt.s32.totalorder %v11232_v60, 16  ;;  %v7240_v49 = vld [vmem:[%s13615_s5 + $0x8] sm:$0xff]   ;;  %6641 = vmatprep.subr.bf16.mxu1 %v7239_v28  ;;  %v4142_v59 = vadd.f32 0.5, %v4114_v62 }
 0x35a   : > { %14220 = vst [vmem:[#allocation36_spill] sm:$0xff] %v11244_v48  ;;  %v6553_v56 = vadd.f32 %v6552_v2, %v6551_v63  ;;  %v6554_v21 = vpop.f32.mrb[2].mxu1  ;;  %v11263_v3 = vpop.f32.mrb[82].mxu0  ;;  %v4774_v12 = vrot.slane %v11244_v48, 1  ;;  %v4655_v22 = vshll.u32 %v11244_v48, 16  ;;  %v4659_v17 = vshrl.u32 %v11244_v48, 16  ;;  %vm11312_vm8 = vmand %vm4442_vm12, %vm4470_vm10  ;;  %6642 = vmatpush3.bf16.msra.mxu1 %v7240_v49 }
 0x35b   : > { %v6555_v38 = vpop.f32.mrb[3].mxu1  ;;  %v3953_v14 = vpop.f32.mrb[83].mxu0  ;;  %v4773_v24 = vrot.slane %v11253_v40, 1  ;;  %v4650_v4 = vshll.u32 %v11253_v40, 16  ;;  %v4648_v18 = vshrl.u32 %v11253_v40, 16  ;;  %vm4359_vm12 = vcmp.ge.s32.totalorder %v11220_v1, 0  ;;  %vm4526_vm15 = vmand %vm11298_vm2, %vm11312_vm8 }
 0x35c   : > { %v3806_v20 = vadd.f32 %v6553_v56, %v11139_v37  ;;  %v6556_v11 = vadd.f32 %v6555_v38, %v6554_v21  ;;  %v11327_v50 = vrot.slane %v4655_v22, 1  ;;  %v11331_v29 = vrot.slane %v4659_v17, 3  ;;  %vm11489_vm8 = vmand %vm4443_vm4, %vm4471_vm1 }
 0x35d   : > { %v4775_v61 = vsel %vm14233_vm5, %v4773_v24, %v4774_v12  ;;  %v4652_v7 = vrot.slane %v4650_v4, 1  ;;  %vm4387_vm10 = vcmp.lt.s32.totalorder %v11220_v1, 16  ;;  %v11341_v31 = vrot.slane %v4655_v22, 4 }
 0x35e   : > { %v3951_v34 = vadd.f32 %v3950_v13, %v3806_v20  ;;  %v3809_v9 = vadd.f32 %v6556_v11, %v11139_v37  ;;  %4796 = vrot.lane.b32.xlu1 %v4775_v61, %s13752_s25  ;;  %v7052_v63 = vcvt.f32.s32 %v11266_v33  ;;  %vm4360_vm5 = vcmp.ge.s32.totalorder %v11258_v39, 0  ;;  %v7241_v20 = vld [vmem:[%s13615_s5 + $0x50] sm:$0xff]   ;;  %vm11466_vm2 = vmand %vm4359_vm12, %vm4387_vm10 }
 0x35f   : > { %v4653_v44 = vor.u32 %v4652_v7, %v4648_v18  ;;  %v4141_v21 = vadd.f32 0.5, %v4113_v32  ;;  %v4866_v52 = vor.u32 %v11341_v31, %v11331_v29  ;;  %v4277_v4 = vsub.s32 %v11092_v46, %v11319_v35  ;;  %6643 = vmatprep.subr.bf16.mxu1 %v7241_v20  ;;  %vm4527_vm4 = vmand %vm11466_vm2, %vm11489_vm8 }
 0x360   : > { %v4049_v25 = vmax.f32 %v3951_v34, 0.0  ;;  %v3954_v19 = vadd.f32 %v3953_v14, %v3809_v9  ;;  %v4196_v22 = vfloor.f32 %v4168_v5  ;;  %v6451_v30 = vrot.slane %v6482_v57, 9  ;;  %6644 = vmatpush3.bf16.msra.mxu1 %v7242_v26 }
 0x361   : > { %v4658_v6 = vsel %vm14236_vm6, %v4653_v44, %v11327_v50  ;;  %vm4388_vm6 = vcmp.lt.s32.totalorder %v11258_v39, 16  ;;  %v4918_v61 = vrot.slane %v11244_v48, 4  ;;  %v11405_v46 = vmul.u32 22, %v7052_v63 }
 0x362   : > { %v4609_v2 = vsel %vm4525_vm11, %v4049_v25, 0.0  ;;  %v4050_v13 = vmax.f32 %v3954_v19, 0.0  ;;  %4739 = vrot.lane.b32.xlu1 %v4658_v6, %s7367_s28  ;;  %vm11383_vm11 = vmor %vm5917_vm9, %vm5918_vm14  ;;  %v7054_v18 = vcvt.f32.s32 %v11356_v54  ;;  %v11408_v7 = vmul.f32 0.045454547, %v4141_v21  ;;  %v7243_v21 = vld [vmem:[%s13615_s5 + $0x58] sm:$0xff]  }
 0x363   : > { %v11333_v51 = vpop.f32.mrb[84].mxu0  ;;  %v6483_v38 = vpack.c.bf16 %v4609_v2, %v4609_v2  ;;  %v4819_v5 = vrot.slane %v11244_v48, 3  ;;  %v11422_v19 = vtrunc.f32 %v4196_v22  ;;  %v11424_v62 = vmul.f32 0.045454547, %v4142_v59  ;;  %6645 = vmatprep.subr.bf16.mxu1 %v7243_v21  ;;  %vm11502_vm12 = vmand %vm4360_vm5, %vm4388_vm6 }
 0x364   : > { %v11349_v58 = vpop.f32.mrb[85].mxu0  ;;  %v4610_v24 = vsel %vm4526_vm15, %v4050_v13, 0.0  ;;  %vm14240_vm9 = vcmask 1043456   ;;  %vm14241_vm14 = vcmask 1044480   ;;  %v4251_v1 = vmul.u32 22, %v7054_v18  ;;  %vm11522_vm15 = vmand %vm4444_vm3, %vm4472_vm0 }
 0x365   : > { %v11370_v56 = vpop.f32.mrb[86].mxu0  ;;  %v5922_v11 = vrot.slane %v6483_v38, 5  ;;  %v11397_v55 = vpack.c.bf16 %v4610_v24, %v4609_v2  ;;  %v6484_v8 = vpack.c.bf16 %v4610_v24, %v4610_v24  ;;  %v7244_v38 = vld [vmem:[%s13615_s5 + $0x18] sm:$0xff]   ;;  %v4197_v33 = vfloor.f32 %v11408_v7  ;;  %vm4528_vm6 = vmand %vm11502_vm12, %vm11522_vm15 }
 0x366   : > { %v11376_v14 = vpop.f32.mrb[87].mxu0  ;;  %6646 = vmatpush3.bf16.msra.mxu1 %v7244_v38  ;;  %vm14248_vm10 = vcmask 1046528   ;;  %v4279_v21 = vsub.s32 %v11134_v43, %v4251_v1  ;;  %v11537_v38 = vadd.s32 65, %v14252_v45  ;;  %v7247_v43 = vld [vmem:[%s13615_s5 + $0x68] sm:$0xff]   ;;  %v11600_v31 = vadd.s32 %v7054_v18, %v8638_v41  ;;  %v7250_v18 = vld [vmem:[%s13615_s5 + $0x30] sm:$0xff]  }
 0x367   : > { %14239 = vst [vmem:[#allocation37_spill] sm:$0xff] %v11397_v55  ;;  %v5923_v34 = vsel %vm11383_vm11, %v6451_v30, %v5922_v11  ;;  %v5924_v9 = vrot.slane %v5922_v11, 4  ;;  %v5925_v42 = vrot.slane %v6484_v8, 5  ;;  %v13716_v35 = vrot.slane %v11397_v55, 4  ;;  %v7245_v8 = vld [vmem:[%s13615_s5 + $0x60] sm:$0xff]  }
 0x368   : > { %5930 = vst.msk [vmem:[%s11414_s21] sm:$0xf] %vm13751_vm7, %v5923_v34  ;;  %v4820_v25 = vrot.slane %v11397_v55, 3  ;;  %v13715_v2 = vrot.slane %v11397_v55, 1  ;;  %v11435_v13 = vshll.u32 %v11397_v55, 16  ;;  %v11454_v30 = vadd.s32 %v7050_v36, %v8638_v41  ;;  %6647 = vmatprep.subr.bf16.mxu1 %v7245_v8 }
 0x369   : > { %v5926_v28 = vsel %vm11383_vm11, %v5924_v9, %v5925_v42  ;;  %v4920_v49 = vsel %vm14240_vm9, %v4918_v61, %v13716_v35  ;;  %v11457_v11 = vshrl.u32 %v11397_v55, 16  ;;  %v11473_v61 = vadd.s32 4294967293, %v4277_v4 }
 0x36a   : > { %5931 = vst.msk [vmem:[%s11414_s21 + $0x4] sm:$0xf] %vm13751_vm7, %v5926_v28  ;;  %4941 = vrot.lane.b32.xlu0 %v4920_v49, %s7367_s28  ;;  %v4821_v59 = vsel %vm14241_vm14, %v4819_v5, %v4820_v25  ;;  %v4278_v34 = vsub.s32 %v11100_v16, %v11405_v46  ;;  %v11480_v9 = vadd.s32 %v7052_v63, %v8638_v41  ;;  %v7056_v46 = vcvt.f32.s32 %v11422_v19  ;;  %v7246_v63 = vld [vmem:[%s13615_s5 + $0x20] sm:$0xff]   ;;  %v14249_v19 = vld [vmem:[#allocation22_spill] sm:$0xff] }
 0x36b   : > { %v6557_v32 = vpop.f32.mrb[4].mxu1  ;;  %4842 = vrot.lane.b32.xlu1 %v4821_v59, %s7368_s23  ;;  %v13714_v7 = vrot.slane %v11435_v13, 1  ;;  %v4198_v5 = vfloor.f32 %v11424_v62  ;;  %v11514_v28 = vadd.s32 65, %v14249_v19  ;;  %v4868_v62 = vrot.slane %v11435_v13, 4  ;;  %6648 = vmatpush3.bf16.msra.mxu1 %v7246_v63 }
 0x36c   : > { %v11418_v44 = vpop.f32.mrb[88].mxu0  ;;  %v6558_v57 = vpop.f32.mrb[5].mxu1  ;;  %v4661_v8 = vor.u32 %v4659_v17, %v11327_v50  ;;  %vm4361_vm1 = vcmp.ge.s32.totalorder %v11454_v30, 0  ;;  %vm4389_vm5 = vcmp.lt.s32.totalorder %v11454_v30, 16  ;;  %vm4445_vm3 = vcmp.ge.s32.totalorder %v11473_v61, 0  ;;  %6649 = vmatprep.subr.bf16.mxu1 %v7247_v43 }
 0x36d   : > { %v11428_v6 = vpop.f32.mrb[89].mxu0  ;;  %v6559_v24 = vadd.f32 %v6558_v57, %v6557_v32  ;;  %v6560_v20 = vpop.f32.mrb[6].mxu1  ;;  %v4777_v32 = vsel %vm14248_vm10, %v4774_v12, %v13715_v2  ;;  %v4867_v12 = vrot.slane %v11457_v11, 3  ;;  %vm4473_vm0 = vcmp.lt.s32.totalorder %v11473_v61, 16 }
 0x36e   : > { %v11445_v22 = vpop.f32.mrb[90].mxu0  ;;  %v6561_v47 = vpop.f32.mrb[7].mxu1  ;;  %v4252_v17 = vmul.u32 22, %v7056_v46  ;;  %v11560_v50 = vtrunc.f32 %v4197_v33  ;;  %v4115_v1 = vcvt.s32.f32 %v11514_v28  ;;  %vm14253_vm9 = vsmask.f32 7424 }
 0x36f   : > { %v11471_v36 = vpop.f32.mrb[91].mxu0  ;;  %v3814_v42 = vadd.f32 %v6559_v24, %v11139_v37  ;;  %v6562_v16 = vadd.f32 %v6561_v47, %v6560_v20  ;;  %4798 = vrot.lane.b32.xlu1 %v4777_v32, %s13752_s25  ;;  %v11547_v47 = vor.u32 %v4868_v62, %v4867_v12  ;;  %v4666_v33 = vsel %vm14253_vm9, %v4661_v8, %v13714_v7 }
 0x370   : > { %vm4362_vm14 = vcmp.ge.s32.totalorder %v11480_v9, 0  ;;  %vm14254_vm10 = vsmask.f32 4352  ;;  %vm4390_vm2 = vcmp.lt.s32.totalorder %v11480_v9, 16  ;;  %v4116_v19 = vcvt.s32.f32 %v11537_v38 }
 0x371   : > { %v3959_v39 = vadd.f32 %v11251_v53, %v3814_v42  ;;  %v3817_v57 = vadd.f32 %v6562_v16, %v11139_v37  ;;  %v11533_v53 = vadd.s32 4294967293, %v4278_v34  ;;  %v11562_v34 = vtrunc.f32 %v4198_v5  ;;  %v7248_v42 = vld [vmem:[%s13615_s5 + $0x28] sm:$0xff]  }
 0x372   : > { %v11584_v26 = vsel %vm14254_vm10, %v4866_v52, %v11547_v47  ;;  %v11602_v52 = vadd.s32 4294967293, %v4279_v21  ;;  %6650 = vmatpush3.bf16.msra.mxu1 %v7248_v42  ;;  %v4280_v49 = vsub.s32 %v11203_v0, %v4252_v17  ;;  %v11614_v54 = vadd.s32 %v7056_v46, %v8638_v41  ;;  %vm11669_vm10 = vmand %vm4361_vm1, %vm4389_vm5 }
 0x373   : > { %v4051_v24 = vmax.f32 %v3959_v39, 0.0  ;;  %v3962_v59 = vadd.f32 %v11263_v3, %v3817_v57  ;;  %14255 = vst [vmem:[#allocation10_spill] sm:$0xff] %v11584_v26  ;;  %4741 = vrot.lane.b32.xlu1 %v4666_v33, %s7367_s28  ;;  %vm4446_vm8 = vcmp.ge.s32.totalorder %v11533_v53, 0  ;;  %v7249_v39 = vld [vmem:[%s13615_s5 + $0x70] sm:$0xff]   ;;  %v5083_v12 = vrot.slane %v11397_v55, 7  ;;  %vm11690_vm1 = vmand %vm4445_vm3, %vm4473_vm0 }
 0x374   : > { %v11540_v20 = vpop.f32.mrb[92].mxu0  ;;  %v13718_v62 = vcvt.f32.s32 %v11560_v50  ;;  %v13719_v21 = vcvt.f32.s32 %v11562_v34  ;;  %v4143_v45 = vadd.f32 0.5, %v4115_v1  ;;  %6651 = vmatprep.subr.bf16.mxu1 %v7249_v39  ;;  %v4964_v0 = vrot.slane %v11397_v55, 6  ;;  %vm11700_vm5 = vmand %vm4362_vm14, %vm4390_vm2 }
 0x375   : > { %v11556_v3 = vpop.f32.mrb[93].mxu0  ;;  %v4611_v16 = vsel %vm4527_vm4, %v4051_v24, 0.0  ;;  %v4052_v63 = vmax.f32 %v3962_v59, 0.0  ;;  %vm4474_vm4 = vcmp.lt.s32.totalorder %v11533_v53, 16  ;;  %vm14256_vm12 = vcmask 1040384   ;;  %vm4529_vm2 = vmand %vm11669_vm10, %vm11690_vm1 }
 0x376   : > { %v11573_v32 = vpop.f32.mrb[94].mxu0  ;;  %v6485_v4 = vpack.c.bf16 %v4611_v16, %v4611_v16  ;;  %6652 = vmatpush3.bf16.msra.mxu1 %v7250_v18  ;;  %vm14257_vm15 = vcmask 1041408   ;;  %v7252_v18 = vld [vmem:[%s13615_s5 + $0x38] sm:$0xff]   ;;  %vm14259_vm9 = vcmask 261120   ;;  %v4253_v30 = vmul.u32 22, %v13718_v62  ;;  %vm11722_vm14 = vmand %vm4446_vm8, %vm4474_vm4 }
 0x377   : > { %v11587_v5 = vpop.f32.mrb[95].mxu0  ;;  %v4612_v29 = vsel %vm4528_vm6, %v4052_v63, 0.0  ;;  %vm14258_vm6 = vcmask 1044480   ;;  %v4254_v17 = vmul.u32 22, %v13719_v21  ;;  %v4171_v48 = vmul.f32 0.045454547, %v4143_v45 }
 0x378   : > { %5944 = vst.msk [vmem:[%s11414_s21 + $0x8] sm:$0xf] %vm13751_vm7, %v6485_v4  ;;  %v11610_v60 = vpack.c.bf16 %v4612_v29, %v4611_v16  ;;  %v6486_v57 = vpack.c.bf16 %v4612_v29, %v4612_v29  ;;  %v4144_v16 = vadd.f32 0.5, %v4116_v19  ;;  %vm14269_vm3 = vcmask 1043456  }
 0x379   : > { %vm14272_vm0 = vcmask 1046528   ;;  %vm4391_vm4 = vcmp.lt.s32.totalorder %v11600_v31, 16  ;;  %vm4392_vm8 = vcmp.lt.s32.totalorder %v11614_v54, 16  ;;  %v14280_v7 = vcvt.f32.s32 %v11560_v50 }
 0x37a   : > { %5945 = vst.msk [vmem:[%s11414_s21 + $0xc] sm:$0xf] %vm13751_vm7, %v6486_v57  ;;  %v13711_v24 = vrot.slane %v11610_v60, 7  ;;  %v13713_v46 = vrot.slane %v11610_v60, 6  ;;  %v13712_v59 = vrot.slane %v11610_v60, 3  ;;  %v11632_v42 = vshll.u32 %v11610_v60, 16 }
 0x37b   : > { %v11635_v1 = vshrl.u32 %v11610_v60, 16  ;;  %v7251_v57 = vld [vmem:[%s13615_s5 + $0x78] sm:$0xff]   ;;  %v14267_v61 = vrot.slane %v11610_v60, 4  ;;  %v4172_v21 = vmul.f32 0.045454547, %v4144_v16 }
 0x37c   : > { %v11628_v43 = vpop.f32.mrb[96].mxu0  ;;  %v5085_v4 = vsel %vm14256_vm12, %v5083_v12, %v13711_v24  ;;  %v4966_v29 = vsel %vm14257_vm15, %v4964_v0, %v13713_v46  ;;  %v4823_v39 = vsel %vm14258_vm6, %v4820_v25, %v13712_v59  ;;  %v5013_v59 = vrot.slane %v11632_v42, 7  ;;  %6653 = vmatprep.subr.bf16.mxu1 %v7251_v57 }
 0x37d   : > { %v6563_v8 = vpop.f32.mrb[8].mxu1  ;;  %v11637_v33 = vpop.f32.mrb[97].mxu0  ;;  %6856 = vmatmul.mubr.msk.bf16.vlgmr.msra.gmra.mrb[104].mxu0 %vm14259_vm9, %v5085_v4  ;;  %4987 = vrot.lane.b32.xlu0 %v4966_v29, %s13752_s25  ;;  %v5012_v25 = vrot.slane %v11635_v1, 6  ;;  %v11663_v46 = vadd.s32 4294967293, %v4280_v49  ;;  %vm5959_vm12 = vcmask 1044484   ;;  %v5009_v4 = vrot.slane %v11457_v11, 6  ;;  %vm4530_vm9 = vmand %vm11700_vm5, %vm11722_vm14 }
 0x37e   : > { %v6564_v63 = vpop.f32.mrb[9].mxu1  ;;  %v11657_v24 = vpop.f32.mrb[98].mxu0  ;;  %4844 = vrot.lane.b32.xlu1 %v4823_v39, %s7368_s23  ;;  %v5010_v29 = vrot.slane %v11435_v13, 7  ;;  %6859 = vmatprep.mubr.msk.bf16.mxu0 %vm14135_vm13, %v14015_v15  ;;  %v14262_v49 = vld [vmem:[#allocation24_spill] sm:$0xff]  ;;  %vm4447_vm15 = vcmp.ge.s32.totalorder %v11602_v52, 0  ;;  %vm4475_vm6 = vcmp.lt.s32.totalorder %v11602_v52, 16 }
 0x37f   : > { %v6565_v12 = vadd.f32 %v6564_v63, %v6563_v8  ;;  %v6566_v0 = vpop.f32.mrb[10].mxu1  ;;  %v11674_v63 = vpop.f32.mrb[99].mxu0  ;;  %v11683_v2 = vadd.s32 65, %v14262_v49  ;;  %v14268_v49 = vrot.slane %v11397_v55, 4  ;;  %v11714_v57 = vor.u32 %v5013_v59, %v5012_v25  ;;  %6654 = vmatpush3.bf16.msra.mxu1 %v7252_v18 }
 0x380   : > { %v6567_v8 = vpop.f32.mrb[11].mxu1  ;;  %v4871_v59 = vrot.slane %v11635_v1, 3  ;;  %6899 = vmatprep.subr.bf16.mxu1 %v14015_v15  ;;  %v14276_v25 = vrot.slane %v11435_v13, 1  ;;  %v4199_v13 = vfloor.f32 %v4171_v48  ;;  %vm4476_vm10 = vcmp.lt.s32.totalorder %v11663_v46, 16 }
 0x381   : > { %v3822_v19 = vadd.f32 %v6565_v12, %v11139_v37  ;;  %v6568_v35 = vadd.f32 %v6567_v8, %v6566_v0  ;;  %v4922_v62 = vsel %vm14269_vm3, %v14268_v49, %v14267_v61  ;;  %v14270_v0 = vrot.slane %v11610_v60, 1 }
 0x382   : > { %v14271_v8 = vrot.slane %v11397_v55, 1  ;;  %4943 = vrot.lane.b32.xlu0 %v4922_v62, %s7367_s28  ;;  %v13720_v49 = vrot.slane %v11632_v42, 1  ;;  %v4117_v53 = vcvt.s32.f32 %v11683_v2  ;;  %v14275_v62 = vld [vmem:[#allocation25_spill] sm:$0xff]  ;;  %vm14277_vm3 = vsmask.f32 1280 }
 0x383   : > { %v3967_v9 = vadd.f32 %v11349_v58, %v3822_v19  ;;  %v3825_v26 = vadd.f32 %v6568_v35, %v11139_v37  ;;  %v5011_v58 = vor.u32 %v5010_v29, %v5009_v4  ;;  %v4281_v35 = vsub.s32 %v11269_v23, %v4253_v30 }
 0x384   : > { %v4779_v45 = vsel %vm14272_vm0, %v14271_v8, %v14270_v0  ;;  %v11740_v16 = vadd.s32 65, %v14275_v62  ;;  %v4669_v0 = vor.u32 %v11457_v11, %v14276_v25  ;;  %v4872_v4 = vrot.slane %v11632_v42, 4 }
 0x385   : > { %4800 = vrot.lane.b32.xlu1 %v4779_v45, %s13752_s25  ;;  %v4053_v19 = vmax.f32 %v3967_v9, 0.0  ;;  %v3970_v18 = vadd.f32 %v11376_v14, %v3825_v26  ;;  %v5015_v23 = vsel %vm14277_vm3, %v5011_v58, %v11714_v57  ;;  %v4282_v14 = vsub.s32 %v11292_v27, %v4254_v17 }
 0x386   : > { %v4200_v11 = vfloor.f32 %v4172_v21  ;;  %5061 = vrot.lane.b32.xlu0 %v5015_v23, %s7368_s23  ;;  %vm14278_vm3 = vsmask.f32 7424  ;;  %v11767_v8 = vpop.f32.mrb[100].mxu0  ;;  %v11769_v45 = vor.u32 %v4872_v4, %v4871_v59  ;;  %vm4448_vm0 = vcmp.ge.s32.totalorder %v11663_v46, 0 }
 0x387   : > { %v4613_v26 = vsel %vm4529_vm2, %v4053_v19, 0.0  ;;  %v4054_v29 = vmax.f32 %v3970_v18, 0.0  ;;  %v4674_v30 = vsel %vm14278_vm3, %v4669_v0, %v13720_v49  ;;  %14279 = vst [vmem:[#allocation8_spill] sm:$0xff] %v11767_v8  ;;  %v11772_v48 = vpop.f32.mrb[101].mxu0  ;;  %v11779_v21 = vadd.s32 %v14280_v7, %v8638_v41 }
 0x388   : > { %v6487_v27 = vpack.c.bf16 %v4613_v26, %v4613_v26  ;;  %v11786_v39 = vpop.f32.mrb[102].mxu0  ;;  %v4145_v9 = vadd.f32 0.5, %v4117_v53  ;;  %v4118_v59 = vcvt.s32.f32 %v11740_v16  ;;  %vm14282_vm1 = vsmask.f32 4352 }
 0x389   : > { %4743 = vrot.lane.b32.xlu1 %v4674_v30, %s7367_s28  ;;  %v4614_v17 = vsel %vm4530_vm9, %v4054_v29, 0.0  ;;  %14281 = vst [vmem:[#allocation11_spill] sm:$0xff] %v11786_v39  ;;  %v11792_v58 = vsel %vm14282_vm1, %v11547_v47, %v11769_v45  ;;  %v11796_v19 = vpop.f32.mrb[103].mxu0  ;;  %v11798_v12 = vadd.s32 4294967293, %v4281_v35  ;;  %v14283_v61 = vcvt.f32.s32 %v11562_v34  ;;  %v14289_v29 = vld [vmem:[#allocation26_spill] sm:$0xff] }
 0x38a   : > { %v11794_v62 = vpack.c.bf16 %v4614_v17, %v4613_v26  ;;  %v6488_v50 = vpack.c.bf16 %v4614_v17, %v4614_v17  ;;  %v6457_v53 = vrot.slane %v6487_v27, 11  ;;  %vm14284_vm5 = vcmask 1040384   ;;  %v6569_v23 = vpop.f32.mrb[12].mxu1 }
 0x38b   : > { %v11803_v18 = vadd.s32 %v14283_v61, %v8638_v41  ;;  %vm11807_vm14 = vmor %vm14284_vm5, %vm5959_vm12  ;;  %v11811_v47 = vadd.s32 4294967293, %v4282_v14  ;;  %v11813_v0 = vtrunc.f32 %v4199_v13  ;;  %v11815_v4 = vtrunc.f32 %v4200_v11  ;;  %v6570_v30 = vpop.f32.mrb[13].mxu1 }
 0x38c   : > { %v11817_v35 = vrot.slane %v6488_v50, 7  ;;  %v13721_v34 = vrot.slane %v11794_v62, 7  ;;  %v11823_v27 = vshll.u32 %v11794_v62, 16  ;;  %v11826_v14 = vshrl.u32 %v11794_v62, 16  ;;  %vm14288_vm12 = vmmov %vm14284_vm5  ;;  %v6572_v49 = vpop.f32.mrb[14].mxu1 }
 0x38d   : > { %v4173_v13 = vmul.f32 0.045454547, %v4145_v9  ;;  %v4146_v11 = vadd.f32 0.5, %v4118_v59  ;;  %v6571_v17 = vadd.f32 %v6570_v30, %v6569_v23  ;;  %v14287_v50 = vrot.slane %v11610_v60, 7 }
 0x38e   : > { %v5964_v7 = vsel %vm11807_vm14, %v6457_v53, %v11817_v35  ;;  %v11837_v26 = vadd.s32 65, %v14289_v29  ;;  %vm14290_vm2 = vcmp.ge.s32.totalorder %v11600_v31, 0  ;;  %vm14293_vm3 = vcmask 261120  }
 0x38f   : > { %v5087_v61 = vsel %vm14288_vm12, %v14287_v50, %v13721_v34  ;;  %5970 = vst.msk [vmem:[%s11414_s21 + $0x10] sm:$0xf] %vm13751_vm7, %v5964_v7  ;;  %vm11845_vm9 = vmand %vm14290_vm2, %vm4391_vm4  ;;  %v14294_v59 = vrot.slane %v11794_v62, 6  ;;  %v14295_v53 = vrot.slane %v11610_v60, 6  ;;  %vm14296_vm1 = vcmask 1041408   ;;  %v6573_v50 = vpop.f32.mrb[15].mxu1 }
 0x390   : > { %6860 = vmatmul.mubr.msk.bf16.gmra.mrb[108].mxu0 %vm14293_vm3, %v5087_v61  ;;  %v14297_v29 = vrot.slane %v11794_v62, 3  ;;  %v14298_v30 = vrot.slane %v11610_v60, 3  ;;  %vm14299_vm5 = vcmask 1044480   ;;  %v13723_v31 = vrot.slane %v11794_v62, 4  ;;  %vm11867_vm4 = vmand %vm4447_vm15, %vm4475_vm6 }
 0x391   : > { %v4968_v23 = vsel %vm14296_vm1, %v14295_v53, %v14294_v59  ;;  %v3830_v55 = vadd.f32 %v6571_v17, %v11139_v37  ;;  %v6574_v59 = vadd.f32 %v6573_v50, %v6572_v49  ;;  %v5016_v53 = vrot.slane %v11826_v14, 6  ;;  %6863 = vmatprep.mubr.msk.bf16.mxu0 %vm14135_vm13, %v14015_v15  ;;  %vm4531_vm15 = vmand %vm11845_vm9, %vm11867_vm4 }
 0x392   : > { %v4825_v7 = vsel %vm14299_vm5, %v14298_v30, %v14297_v29  ;;  %4989 = vrot.lane.b32.xlu0 %v4968_v23, %s13752_s25  ;;  %v5017_v29 = vrot.slane %v11823_v27, 7  ;;  %vm14302_vm12 = vcmp.ge.s32.totalorder %v11614_v54, 0  ;;  %v7062_v52 = vcvt.f32.s32 %v11813_v0 }
 0x393   : > { %4846 = vrot.lane.b32.xlu1 %v4825_v7, %s7368_s23  ;;  %vm11879_vm2 = vmand %vm14302_vm12, %vm4392_vm8  ;;  %v4201_v49 = vfloor.f32 %v4173_v13  ;;  %v4875_v30 = vrot.slane %v11826_v14, 3  ;;  %v3975_v7 = vadd.f32 %v11333_v51, %v3830_v55  ;;  %v3833_v50 = vadd.f32 %v6574_v59, %v11139_v37 }
 0x394   : > { %vm11894_vm8 = vmand %vm4448_vm0, %vm4476_vm10  ;;  %v4174_v34 = vmul.f32 0.045454547, %v4146_v11  ;;  %v4876_v0 = vrot.slane %v11823_v27, 4  ;;  %v14307_v51 = vrot.slane %v11610_v60, 4  ;;  %vm14308_vm6 = vcmask 1043456  }
 0x395   : > { %v14309_v46 = vrot.slane %v11794_v62, 1  ;;  %v14310_v13 = vrot.slane %v11610_v60, 1  ;;  %vm14311_vm0 = vcmask 1046528   ;;  %v11913_v11 = vor.u32 %v5017_v29, %v5016_v53  ;;  %vm4532_vm1 = vmand %vm11879_vm2, %vm11894_vm8 }
 0x396   : > { %v4924_v55 = vsel %vm14308_vm6, %v14307_v51, %v13723_v31  ;;  %v13727_v23 = vrot.slane %v11823_v27, 1  ;;  %v4055_v39 = vmax.f32 %v3975_v7, 0.0  ;;  %v3978_v8 = vadd.f32 %v11370_v56, %v3833_v50 }
 0x397   : > { %v4781_v59 = vsel %vm14311_vm0, %v14310_v13, %v14309_v46  ;;  %4945 = vrot.lane.b32.xlu0 %v4924_v55, %s7367_s28  ;;  %vm4365_vm10 = vcmp.ge.s32.totalorder %v11779_v21, 0  ;;  %vm4393_vm3 = vcmp.lt.s32.totalorder %v11779_v21, 16  ;;  %v4119_v51 = vcvt.s32.f32 %v11837_v26 }
 0x398   : > { %4802 = vrot.lane.b32.xlu1 %v4781_v59, %s13752_s25  ;;  %v11922_v31 = vor.u32 %v4876_v0, %v4875_v30  ;;  %v14312_v53 = vrot.slane %v11632_v42, 1  ;;  %v4255_v29 = vmul.u32 22, %v7062_v52  ;;  %v11933_v7 = vtrunc.f32 %v4201_v49 }
 0x399   : > { %v4615_v30 = vsel %vm4531_vm15, %v4055_v39, 0.0  ;;  %v4056_v50 = vmax.f32 %v3978_v8, 0.0  ;;  %vm4366_vm6 = vcmp.ge.s32.totalorder %v11803_v18, 0  ;;  %vm4394_vm0 = vcmp.lt.s32.totalorder %v11803_v18, 16  ;;  %v14316_v8 = vld [vmem:[#allocation27_spill] sm:$0xff] }
 0x39a   : > { %v4677_v56 = vor.u32 %v11635_v1, %v14312_v53  ;;  %v4202_v42 = vfloor.f32 %v4174_v34  ;;  %vm14313_vm5 = vsmask.f32 4352  ;;  %v6489_v0 = vpack.c.bf16 %v4615_v30, %v4615_v30 }
 0x39b   : > { %v11945_v1 = vsel %vm14313_vm5, %v11769_v45, %v11922_v31  ;;  %vm14314_vm12 = vsmask.f32 1280  ;;  %vm14315_vm9 = vsmask.f32 7424  ;;  %v11954_v61 = vadd.s32 65, %v14316_v8 }
 0x39c   : > { %v5019_v9 = vsel %vm14314_vm12, %v11714_v57, %v11913_v11  ;;  %v4682_v39 = vsel %vm14315_vm9, %v4677_v56, %v13727_v23  ;;  %v11961_v34 = vsel %vm4532_vm1, %v4056_v50, 0.0  ;;  %vm4450_vm4 = vcmp.ge.s32.totalorder %v11811_v47, 0  ;;  %v6575_v50 = vpop.f32.mrb[16].mxu1  ;;  %vm12019_vm9 = vmand %vm4365_vm10, %vm4393_vm3 }
 0x39d   : > { %5063 = vrot.lane.b32.xlu0 %v5019_v9, %s7368_s23  ;;  %4745 = vrot.lane.b32.xlu1 %v4682_v39, %s7367_s28  ;;  %v14317_v57 = vcvt.f32.s32 %v11815_v4  ;;  %v4147_v49 = vadd.f32 0.5, %v4119_v51  ;;  %v5965_v55 = vrot.slane %v11817_v35, 4  ;;  %v5966_v46 = vrot.slane %v6489_v0, 7  ;;  %v6576_v0 = vpop.f32.mrb[17].mxu1 }
 0x39e   : > { %v11970_v17 = vpack.c.bf16 %v11961_v34, %v4615_v30  ;;  %vm4478_vm2 = vcmp.lt.s32.totalorder %v11811_v47, 16  ;;  %v4283_v54 = vsub.s32 %v11514_v28, %v4255_v29  ;;  %v11975_v13 = vadd.s32 %v7062_v52, %v8638_v41 }
 0x39f   : > { %v4256_v45 = vmul.u32 22, %v14317_v57  ;;  %v13728_v59 = vcvt.f32.s32 %v11933_v7  ;;  %v11978_v53 = vtrunc.f32 %v4202_v42  ;;  %v5967_v51 = vsel %vm11807_vm14, %v5965_v55, %v5966_v46 }
 0x3a0   : > { %14318 = vst [vmem:[#allocation9_spill] sm:$0xff] %v11970_v17  ;;  %v13726_v35 = vrot.slane %v11970_v17, 7  ;;  %v13725_v56 = vrot.slane %v11970_v17, 6  ;;  %v4120_v30 = vcvt.s32.f32 %v11954_v61  ;;  %5971 = vst.msk [vmem:[%s11414_s21 + $0x14] sm:$0xf] %vm13751_vm7, %v5967_v51  ;;  %v13724_v28 = vrot.slane %v11970_v17, 3 }
 0x3a1   : > { %v11989_v52 = vshll.u32 %v11970_v17, 16  ;;  %v4284_v29 = vsub.s32 %v11537_v38, %v4256_v45  ;;  %v4175_v42 = vmul.f32 0.045454547, %v4147_v49  ;;  %vm5987_vm8 = vcmask 1045508   ;;  %v6578_v51 = vpop.f32.mrb[18].mxu1 }
 0x3a2   : > { %v14319_v9 = vrot.slane %v11794_v62, 7  ;;  %vm14320_vm15 = vcmask 1040384   ;;  %v14321_v8 = vrot.slane %v11794_v62, 6  ;;  %vm14322_vm1 = vcmask 1041408  }
 0x3a3   : > { %v4925_v55 = vrot.slane %v11970_v17, 4  ;;  %v12004_v46 = vshrl.u32 %v11970_v17, 16  ;;  %v6577_v38 = vadd.f32 %v6576_v0, %v6575_v50  ;;  %vm14323_vm5 = vcmask 261120   ;;  %v6579_v0 = vpop.f32.mrb[19].mxu1 }
 0x3a4   : > { %v5089_v39 = vsel %vm14320_vm15, %v14319_v9, %v13726_v35  ;;  %v4970_v57 = vsel %vm14322_vm1, %v14321_v8, %v13725_v56  ;;  %v14324_v45 = vrot.slane %v11794_v62, 3  ;;  %vm14325_vm12 = vcmask 1044480   ;;  %vm12050_vm1 = vmand %vm4366_vm6, %vm4394_vm0 }
 0x3a5   : > { %6864 = vmatmul.mubr.msk.bf16.gmra.mrb[112].mxu0 %vm14323_vm5, %v5089_v39  ;;  %4991 = vrot.lane.b32.xlu0 %v4970_v57, %s13752_s25  ;;  %v4782_v9 = vrot.slane %v11970_v17, 1  ;;  %v5021_v8 = vrot.slane %v11989_v52, 7  ;;  %v5020_v39 = vrot.slane %v12004_v46, 6  ;;  %v4257_v57 = vmul.u32 22, %v13728_v59  ;;  %vm12070_vm6 = vmand %vm4450_vm4, %vm4478_vm2 }
 0x3a6   : > { %v4827_v49 = vsel %vm14325_vm12, %v14324_v45, %v13724_v28  ;;  %6867 = vmatprep.mubr.msk.bf16.mxu0 %vm14135_vm13, %v14015_v15  ;;  %v4148_v28 = vadd.f32 0.5, %v4120_v30  ;;  %v3838_v21 = vadd.f32 %v6577_v38, %v11139_v37  ;;  %vm14328_vm10 = vcmp.lt.s32.totalorder %v11798_v12, 16 }
 0x3a7   : > { %4848 = vrot.lane.b32.xlu1 %v4827_v49, %s7368_s23  ;;  %vm14329_vm3 = vcmp.ge.s32.totalorder %v11798_v12, 0  ;;  %v6580_v56 = vadd.f32 %v6579_v0, %v6578_v51  ;;  %v12039_v35 = vadd.s32 4294967293, %v4283_v54  ;;  %v14332_v23 = vcvt.f32.s32 %v11815_v4  ;;  %v14337_v4 = vld [vmem:[#allocation28_spill] sm:$0xff] }
 0x3a8   : > { %vm12035_vm15 = vmand %vm14329_vm3, %vm14328_vm10  ;;  %v14335_v12 = vrot.slane %v11794_v62, 4  ;;  %vm14336_vm5 = vcmask 1043456   ;;  %v12059_v38 = vor.u32 %v5021_v8, %v5020_v39  ;;  %v4203_v51 = vfloor.f32 %v4175_v42 }
 0x3a9   : > { %v12044_v59 = vadd.s32 %v14332_v23, %v8638_v41  ;;  %v12062_v23 = vadd.s32 65, %v14337_v4  ;;  %v3983_v0 = vadd.f32 %v11428_v6, %v3838_v21  ;;  %v3841_v18 = vadd.f32 %v6580_v56, %v11139_v37  ;;  %vm4533_vm12 = vmand %vm12019_vm9, %vm12035_vm15 }
 0x3aa   : > { %v4926_v54 = vsel %vm14336_vm5, %v14335_v12, %v4925_v55  ;;  %v14340_v42 = vrot.slane %v11794_v62, 1  ;;  %vm14341_vm0 = vcmask 1046528   ;;  %v13730_v6 = vrot.slane %v11989_v52, 1  ;;  %vm4534_vm10 = vmand %vm12050_vm1, %vm12070_vm6 }
 0x3ab   : > { %4947 = vrot.lane.b32.xlu0 %v4926_v54, %s7367_s28  ;;  %v12086_v37 = vadd.s32 4294967293, %v4284_v29  ;;  %v4285_v47 = vsub.s32 %v11683_v2, %v4257_v57  ;;  %v14342_v56 = vcvt.f32.s32 %v11978_v53  ;;  %v12093_v21 = vmul.f32 0.045454547, %v4148_v28 }
 0x3ac   : > { %v4783_v8 = vsel %vm14341_vm0, %v14340_v42, %v4782_v9  ;;  %v4057_v12 = vmax.f32 %v3983_v0, 0.0  ;;  %v3986_v54 = vadd.f32 %v11471_v36, %v3841_v18  ;;  %v14343_v4 = vrot.slane %v11823_v27, 1 }
 0x3ad   : > { %4804 = vrot.lane.b32.xlu1 %v4783_v8, %s13752_s25  ;;  %v12091_v39 = vmul.u32 22, %v14342_v56  ;;  %vm4395_vm2 = vcmp.lt.s32.totalorder %v11975_v13, 16  ;;  %v4879_v29 = vrot.slane %v12004_v46, 3  ;;  %v6490_v2 = vpack.c.bf16 %v11961_v34, %v11961_v34  ;;  %v14350_v56 = vld [vmem:[#allocation29_spill] sm:$0xff] }
 0x3ae   : > { %v4685_v42 = vor.u32 %v11826_v14, %v14343_v4  ;;  %vm14344_vm3 = vsmask.f32 1280  ;;  %v12113_v27 = vtrunc.f32 %v4203_v51  ;;  %v4880_v14 = vrot.slane %v11989_v52, 4 }
 0x3af   : > { %v5023_v36 = vsel %vm14344_vm3, %v11913_v11, %v12059_v38  ;;  %v4617_v34 = vsel %vm4533_vm12, %v4057_v12, 0.0  ;;  %v4058_v28 = vmax.f32 %v3986_v54, 0.0  ;;  %vm14345_vm3 = vsmask.f32 7424 }
 0x3b0   : > { %5065 = vrot.lane.b32.xlu0 %v5023_v36, %s7368_s23  ;;  %v4690_v11 = vsel %vm14345_vm3, %v4685_v42, %v13730_v6  ;;  %vm4368_vm5 = vcmp.ge.s32.totalorder %v12044_v59, 0  ;;  %vm4396_vm0 = vcmp.lt.s32.totalorder %v12044_v59, 16  ;;  %v4121_v57 = vcvt.s32.f32 %v12062_v23 }
 0x3b1   : > { %v6491_v51 = vpack.c.bf16 %v4617_v34, %v4617_v34  ;;  %4747 = vrot.lane.b32.xlu1 %v4690_v11, %s7367_s28  ;;  %vm4452_vm4 = vcmp.ge.s32.totalorder %v12086_v37, 0  ;;  %vm4480_vm9 = vcmp.lt.s32.totalorder %v12086_v37, 16  ;;  %v14346_v50 = vcvt.f32.s32 %v11933_v7 }
 0x3b2   : > { %vm14347_vm15 = vcmask 1041408   ;;  %v4618_v18 = vsel %vm4534_vm10, %v4058_v28, 0.0  ;;  %v12147_v8 = vadd.s32 4294967293, %v4285_v47  ;;  %v12150_v12 = vadd.s32 65, %v14350_v56 }
 0x3b3   : > { %v12134_v49 = vadd.s32 %v14346_v50, %v8638_v41  ;;  %vm12138_vm12 = vmor %vm14347_vm15, %vm5987_vm8  ;;  %v12152_v7 = vor.u32 %v4880_v14, %v4879_v29  ;;  %v6461_v54 = vrot.slane %v6490_v2, 10  ;;  %v5991_v4 = vrot.slane %v6491_v51, 6  ;;  %v6581_v14 = vpop.f32.mrb[20].mxu1 }
 0x3b4   : > { %v12154_v42 = vpack.c.bf16 %v4618_v18, %v4617_v34  ;;  %v6492_v36 = vpack.c.bf16 %v4618_v18, %v4618_v18  ;;  %v4286_v30 = vsub.s32 %v11740_v16, %v12091_v39  ;;  %v13733_v45 = vcvt.f32.s32 %v12113_v27  ;;  %v6582_v51 = vpop.f32.mrb[21].mxu1  ;;  %vm14355_vm6 = vmmov %vm14347_vm15 }
 0x3b5   : > { %v4204_v28 = vfloor.f32 %v12093_v21  ;;  %v4149_v11 = vadd.f32 0.5, %v4121_v57  ;;  %v5992_v47 = vsel %vm12138_vm12, %v6461_v54, %v5991_v4  ;;  %v5993_v50 = vrot.slane %v5991_v4, 4 }
 0x3b6   : > { %v5994_v29 = vrot.slane %v6492_v36, 6  ;;  %v13729_v2 = vrot.slane %v12154_v42, 7  ;;  %5998 = vst.msk [vmem:[%s11414_s21 + $0x18] sm:$0xf] %vm13751_vm7, %v5992_v47  ;;  %v13732_v34 = vrot.slane %v12154_v42, 6  ;;  %v13731_v16 = vrot.slane %v12154_v42, 3 }
 0x3b7   : > { %v13737_v39 = vrot.slane %v12154_v42, 4  ;;  %v4122_v21 = vcvt.s32.f32 %v12150_v12  ;;  %v14351_v18 = vrot.slane %v11970_v17, 7  ;;  %vm14352_vm8 = vcmask 1040384  }
 0x3b8   : > { %v5995_v57 = vsel %vm12138_vm12, %v5993_v50, %v5994_v29  ;;  %v12177_v54 = vshll.u32 %v12154_v42, 16  ;;  %v12180_v4 = vshrl.u32 %v12154_v42, 16  ;;  %v6583_v36 = vadd.f32 %v6582_v51, %v6581_v14 }
 0x3b9   : > { %v5091_v56 = vsel %vm14352_vm8, %v14351_v18, %v13729_v2  ;;  %5999 = vst.msk [vmem:[%s11414_s21 + $0x1c] sm:$0xf] %vm13751_vm7, %v5995_v57  ;;  %vm14353_vm1 = vcmask 261120   ;;  %v14354_v47 = vrot.slane %v11970_v17, 6  ;;  %v14356_v29 = vrot.slane %v11970_v17, 3  ;;  %v6584_v2 = vpop.f32.mrb[22].mxu1 }
 0x3ba   : > { %6868 = vmatmul.mubr.msk.bf16.gmra.mrb[116].mxu0 %vm14353_vm1, %v5091_v56  ;;  %vm14357_vm10 = vcmask 1044480   ;;  %v13736_v6 = vrot.slane %v12154_v42, 1  ;;  %vm14358_vm3 = vcmp.ge.s32.totalorder %v11975_v13, 0  ;;  %v6585_v57 = vpop.f32.mrb[23].mxu1  ;;  %v5024_v51 = vrot.slane %v12180_v4, 6 }
 0x3bb   : > { %v4972_v50 = vsel %vm14355_vm6, %v14354_v47, %v13732_v34  ;;  %v4829_v18 = vsel %vm14357_vm10, %v14356_v29, %v13731_v16  ;;  %vm12200_vm15 = vmand %vm14358_vm3, %vm4395_vm2  ;;  %v5025_v56 = vrot.slane %v12177_v54, 7  ;;  %v4259_v47 = vmul.u32 22, %v13733_v45  ;;  %v12215_v13 = vld [vmem:[%s13614_s4] ss:$0 sm:$0xff]  ;;  %6871 = vmatprep.mubr.msk.bf16.mxu0 %vm14135_vm13, %v14015_v15 }
 0x3bc   : > { %4993 = vrot.lane.b32.xlu0 %v4972_v50, %s13752_s25  ;;  %4850 = vrot.lane.b32.xlu1 %v4829_v18, %s7368_s23  ;;  %v12210_v29 = vtrunc.f32 %v4204_v28  ;;  %v3846_v16 = vadd.f32 %v12215_v13, %v6583_v36  ;;  %vm14361_vm2 = vcmp.lt.s32.totalorder %v12039_v35, 16  ;;  %vm14362_vm8 = vcmp.ge.s32.totalorder %v12039_v35, 0  ;;  %vm12239_vm6 = vmand %vm4368_vm5, %vm4396_vm0 }
 0x3bd   : > { %vm12222_vm1 = vmand %vm14362_vm8, %vm14361_vm2  ;;  %v6586_v18 = vadd.f32 %v6585_v57, %v6584_v2  ;;  %v14365_v28 = vcvt.f32.s32 %v11978_v53  ;;  %v12233_v45 = vadd.s32 4294967293, %v4286_v30  ;;  %vm14368_vm10 = vcmask 1043456  }
 0x3be   : > { %v4928_v2 = vsel %vm14368_vm10, %v4925_v55, %v13737_v39  ;;  %v13734_v53 = vrot.slane %v12177_v54, 1  ;;  %v4177_v36 = vmul.f32 0.045454547, %v4149_v11  ;;  %v4150_v57 = vadd.f32 0.5, %v4122_v21  ;;  %vm12255_vm5 = vmand %vm4452_vm4, %vm4480_vm9 }
 0x3bf   : > { %v12231_v34 = vadd.s32 %v14365_v28, %v8638_v41  ;;  %v3991_v30 = vadd.f32 %v11418_v44, %v3846_v16  ;;  %v3849_v28 = vadd.f32 %v12215_v13, %v6586_v18  ;;  %vm14371_vm0 = vcmask 1046528   ;;  %vm4535_vm3 = vmand %vm12200_vm15, %vm12222_vm1 }
 0x3c0   : > { %v4785_v55 = vsel %vm14371_vm0, %v4782_v9, %v13736_v6  ;;  %v12264_v11 = vor.u32 %v5025_v56, %v5024_v51  ;;  %4949 = vrot.lane.b32.xlu0 %v4928_v2, %s7367_s28  ;;  %v14372_v44 = vrot.slane %v11989_v52, 1  ;;  %v4287_v16 = vsub.s32 %v11837_v26, %v4259_v47  ;;  %vm4536_vm8 = vmand %vm12239_vm6, %vm12255_vm5  ;;  %v14375_v47 = vld [vmem:[#allocation30_spill] sm:$0xff] }
 0x3c1   : > { %4806 = vrot.lane.b32.xlu1 %v4785_v55, %s13752_s25  ;;  %v13735_v21 = vcvt.f32.s32 %v12210_v29  ;;  %vm14373_vm4 = vsmask.f32 4352  ;;  %v4059_v51 = vmax.f32 %v3991_v30, 0.0  ;;  %v3994_v56 = vadd.f32 %v11445_v22, %v3849_v28 }
 0x3c2   : > { %v4693_v37 = vor.u32 %v12004_v46, %v14372_v44  ;;  %v12280_v9 = vsel %vm14373_vm4, %v11922_v31, %v12152_v7  ;;  %vm4397_vm2 = vcmp.lt.s32.totalorder %v12134_v49, 16  ;;  %v4883_v52 = vrot.slane %v12180_v4, 3 }
 0x3c3   : > { %v4884_v46 = vrot.slane %v12177_v54, 4  ;;  %vm14374_vm10 = vsmask.f32 7424  ;;  %v4205_v22 = vfloor.f32 %v4177_v36  ;;  %v4178_v31 = vmul.f32 0.045454547, %v4150_v57  ;;  %v14378_v57 = vld [vmem:[#allocation31_spill] sm:$0xff] }
 0x3c4   : > { %v4698_v26 = vsel %vm14374_vm10, %v4693_v37, %v13734_v53  ;;  %v12297_v18 = vadd.s32 65, %v14375_v47  ;;  %v4619_v2 = vsel %vm4535_vm3, %v4059_v51, 0.0  ;;  %v4060_v30 = vmax.f32 %v3994_v56, 0.0 }
 0x3c5   : > { %vm14376_vm9 = vsmask.f32 1280  ;;  %vm4370_vm10 = vcmp.ge.s32.totalorder %v12231_v34, 0  ;;  %v12308_v55 = vor.u32 %v4884_v46, %v4883_v52  ;;  %v6493_v36 = vpack.c.bf16 %v4619_v2, %v4619_v2  ;;  %4749 = vrot.lane.b32.xlu1 %v4698_v26, %s7367_s28 }
 0x3c6   : > { %v5027_v28 = vsel %vm14376_vm9, %v12059_v38, %v12264_v11  ;;  %vm4398_vm0 = vcmp.lt.s32.totalorder %v12231_v34, 16  ;;  %vm4454_vm4 = vcmp.ge.s32.totalorder %v12233_v45, 0  ;;  %vm4482_vm15 = vcmp.lt.s32.totalorder %v12233_v45, 16 }
 0x3c7   : > { %5067 = vrot.lane.b32.xlu0 %v5027_v28, %s7368_s23  ;;  %v4620_v38 = vsel %vm4536_vm8, %v4060_v30, 0.0  ;;  %v14377_v14 = vcvt.f32.s32 %v12113_v27  ;;  %v12326_v44 = vadd.s32 65, %v14378_v57  ;;  %vm14379_vm1 = vsmask.f32 4352 }
 0x3c8   : > { %v12331_v37 = vsel %vm14379_vm1, %v12152_v7, %v12308_v55  ;;  %v12333_v51 = vpack.c.bf16 %v4620_v38, %v4619_v2  ;;  %v6494_v35 = vpack.c.bf16 %v4620_v38, %v4620_v38  ;;  %v12335_v56 = vadd.s32 4294967293, %v4287_v16  ;;  %v6587_v16 = vpop.f32.mrb[24].mxu1 }
 0x3c9   : > { %v12323_v50 = vadd.s32 %v14377_v14, %v8638_v41  ;;  %14380 = vst [vmem:[#allocation12_spill] sm:$0xff] %v12331_v37  ;;  %v4260_v59 = vmul.u32 22, %v13735_v21  ;;  %v6465_v52 = vrot.slane %v6493_v36, 9  ;;  %v12339_v27 = vtrunc.f32 %v4205_v22  ;;  %v6588_v14 = vpop.f32.mrb[25].mxu1 }
 0x3ca   : > { %v4206_v46 = vfloor.f32 %v4178_v31  ;;  %v4123_v26 = vcvt.s32.f32 %v12297_v18  ;;  %v12342_v47 = vrot.slane %v6494_v35, 5  ;;  %v13738_v7 = vrot.slane %v12333_v51, 7 }
 0x3cb   : > { %v13740_v2 = vrot.slane %v12333_v51, 6  ;;  %v13739_v30 = vrot.slane %v12333_v51, 3  ;;  %v12349_v38 = vshll.u32 %v12333_v51, 16  ;;  %v12352_v22 = vshrl.u32 %v12333_v51, 16 }
 0x3cc   : > { %v4124_v31 = vcvt.s32.f32 %v12326_v44  ;;  %v6016_v36 = vsel %vm11383_vm11, %v6465_v52, %v12342_v47  ;;  %v14381_v57 = vrot.slane %v12154_v42, 7  ;;  %vm14382_vm6 = vcmask 1040384  }
 0x3cd   : > { %v14383_v53 = vrot.slane %v12154_v42, 6  ;;  %vm14384_vm5 = vcmask 1041408   ;;  %v4786_v6 = vrot.slane %v12333_v51, 1  ;;  %6022 = vst.msk [vmem:[%s11414_s21 + $0x20] sm:$0xf] %vm13751_vm7, %v6016_v36  ;;  %v6589_v39 = vadd.f32 %v6588_v14, %v6587_v16 }
 0x3ce   : > { %v5093_v35 = vsel %vm14382_vm6, %v14381_v57, %v13738_v7  ;;  %vm14385_vm3 = vcmask 261120   ;;  %v14386_v52 = vrot.slane %v12154_v42, 3  ;;  %vm14387_vm9 = vcmask 1044480   ;;  %v6590_v7 = vpop.f32.mrb[26].mxu1 }
 0x3cf   : > { %v4974_v21 = vsel %vm14384_vm5, %v14383_v53, %v13740_v2  ;;  %6872 = vmatmul.mubr.msk.bf16.gmra.mrb[120].mxu0 %vm14385_vm3, %v5093_v35  ;;  %v5028_v28 = vrot.slane %v12352_v22, 6  ;;  %v4288_v53 = vsub.s32 %v11954_v61, %v4260_v59  ;;  %vm14388_vm8 = vcmp.ge.s32.totalorder %v12134_v49, 0  ;;  %vm12410_vm3 = vmand %vm4370_vm10, %vm4398_vm0 }
 0x3d0   : > { %4995 = vrot.lane.b32.xlu0 %v4974_v21, %s13752_s25  ;;  %v4831_v57 = vsel %vm14387_vm9, %v14386_v52, %v13739_v30  ;;  %vm12384_vm1 = vmand %vm14388_vm8, %vm4397_vm2  ;;  %v6591_v21 = vpop.f32.mrb[27].mxu1  ;;  %v5029_v36 = vrot.slane %v12349_v38, 7  ;;  %6875 = vmatprep.mubr.msk.bf16.mxu0 %vm14135_vm13, %v14015_v15  ;;  %v7074_v14 = vcvt.f32.s32 %v12339_v27  ;;  %v4151_v35 = vadd.f32 0.5, %v4123_v26 }
 0x3d1   : > { %4852 = vrot.lane.b32.xlu1 %v4831_v57, %s7368_s23  ;;  %v4887_v61 = vrot.slane %v12352_v22, 3  ;;  %v3854_v59 = vadd.f32 %v12215_v13, %v6589_v39  ;;  %vm14391_vm2 = vcmp.lt.s32.totalorder %v12147_v8, 16  ;;  %vm14392_vm6 = vcmp.ge.s32.totalorder %v12147_v8, 0  ;;  %vm12432_vm0 = vmand %vm4454_vm4, %vm4482_vm15 }
 0x3d2   : > { %vm12399_vm5 = vmand %vm14392_vm6, %vm14391_vm2  ;;  %v6592_v52 = vadd.f32 %v6591_v21, %v6590_v7  ;;  %v12403_v57 = vtrunc.f32 %v4206_v46  ;;  %v4888_v30 = vrot.slane %v12349_v38, 4  ;;  %v14397_v39 = vrot.slane %v12333_v51, 4 }
 0x3d3   : > { %v14398_v8 = vrot.slane %v12154_v42, 4  ;;  %vm14399_vm9 = vcmask 1043456   ;;  %v14400_v46 = vrot.slane %v12154_v42, 1  ;;  %vm14401_vm8 = vcmask 1046528   ;;  %vm4537_vm10 = vmand %vm12384_vm1, %vm12399_vm5 }
 0x3d4   : > { %v12424_v21 = vor.u32 %v5029_v36, %v5028_v28  ;;  %v4152_v2 = vadd.f32 0.5, %v4124_v31  ;;  %v3999_v34 = vadd.f32 %v11556_v3, %v3854_v59  ;;  %v3857_v17 = vadd.f32 %v12215_v13, %v6592_v52  ;;  %vm4538_vm6 = vmand %vm12410_vm3, %vm12432_vm0 }
 0x3d5   : > { %v4930_v26 = vsel %vm14399_vm9, %v14398_v8, %v14397_v39  ;;  %v4787_v7 = vsel %vm14401_vm8, %v14400_v46, %v4786_v6  ;;  %v4705_v39 = vrot.slane %v12349_v38, 1  ;;  %v12438_v8 = vor.u32 %v4888_v30, %v4887_v61 }
 0x3d6   : > { %4951 = vrot.lane.b32.xlu0 %v4930_v26, %s7367_s28  ;;  %4808 = vrot.lane.b32.xlu1 %v4787_v7, %s13752_s25  ;;  %v14404_v3 = vcvt.f32.s32 %v12210_v29  ;;  %v12450_v28 = vadd.s32 4294967293, %v4288_v53  ;;  %v4179_v31 = vmul.f32 0.045454547, %v4151_v35  ;;  %v4061_v36 = vmax.f32 %v3999_v34, 0.0  ;;  %v14409_v35 = vld [vmem:[#allocation32_spill] sm:$0xff] }
 0x3d7   : > { %v4002_v59 = vadd.f32 %v11587_v5, %v3857_v17  ;;  %v14405_v30 = vrot.slane %v12177_v54, 1  ;;  %vm4399_vm15 = vcmp.lt.s32.totalorder %v12323_v50, 16  ;;  %vm14406_vm2 = vsmask.f32 4352 }
 0x3d8   : > { %v12448_v45 = vadd.s32 %v14404_v3, %v8638_v41  ;;  %v12461_v29 = vsel %vm14406_vm2, %v12308_v55, %v12438_v8  ;;  %vm14407_vm9 = vsmask.f32 1280  ;;  %vm4483_vm4 = vcmp.lt.s32.totalorder %v12335_v56, 16 }
 0x3d9   : > { %v4701_v61 = vor.u32 %v12180_v4, %v14405_v30  ;;  %v5031_v5 = vsel %vm14407_vm9, %v12264_v11, %v12424_v21  ;;  %v12472_v17 = vmul.u32 22, %v7074_v14  ;;  %v7076_v54 = vcvt.f32.s32 %v12403_v57 }
 0x3da   : > { %v4180_v4 = vmul.f32 0.045454547, %v4152_v2  ;;  %v4621_v55 = vsel %vm4537_vm10, %v4061_v36, 0.0  ;;  %v4062_v53 = vmax.f32 %v4002_v59, 0.0  ;;  %5069 = vrot.lane.b32.xlu0 %v5031_v5, %s7368_s23  ;;  %vm14408_vm2 = vsmask.f32 7424 }
 0x3db   : > { %v4706_v11 = vsel %vm14408_vm2, %v4701_v61, %v4705_v39  ;;  %v12485_v52 = vadd.s32 65, %v14409_v35  ;;  %v6495_v26 = vpack.c.bf16 %v4621_v55, %v4621_v55  ;;  %vm4372_vm9 = vcmp.ge.s32.totalorder %v12448_v45, 0 }
 0x3dc   : > { %4751 = vrot.lane.b32.xlu1 %v4706_v11, %s7367_s28  ;;  %vm4400_vm8 = vcmp.lt.s32.totalorder %v12448_v45, 16  ;;  %vm4456_vm1 = vcmp.ge.s32.totalorder %v12450_v28, 0  ;;  %v4622_v2 = vsel %vm4538_vm6, %v4062_v53, 0.0  ;;  %vm4484_vm5 = vcmp.lt.s32.totalorder %v12450_v28, 16 }
 0x3dd   : > { %v12498_v16 = vadd.s32 %v7074_v14, %v8638_v41  ;;  %v4207_v49 = vfloor.f32 %v4179_v31  ;;  %v6017_v46 = vrot.slane %v12342_v47, 4  ;;  %v6018_v7 = vrot.slane %v6495_v26, 5 }
 0x3de   : > { %v12501_v34 = vpack.c.bf16 %v4622_v2, %v4621_v55  ;;  %v6496_v3 = vpack.c.bf16 %v4622_v2, %v4622_v2  ;;  %v4289_v27 = vsub.s32 %v12062_v23, %v12472_v17  ;;  %v12507_v37 = vmul.u32 22, %v7076_v54  ;;  %v6593_v23 = vpop.f32.mrb[28].mxu1 }
 0x3df   : > { %v4208_v36 = vfloor.f32 %v4180_v4  ;;  %v4125_v59 = vcvt.s32.f32 %v12485_v52  ;;  %v6019_v14 = vsel %vm11383_vm11, %v6017_v46, %v6018_v7  ;;  %v12525_v17 = vtrunc.f32 %v4207_v49  ;;  %v6594_v55 = vpop.f32.mrb[29].mxu1 }
 0x3e0   : > { %6035 = vst.msk [vmem:[%s11414_s21 + $0x28] sm:$0xf] %vm13751_vm7, %v6496_v3  ;;  %v13744_v47 = vrot.slane %v12501_v34, 7  ;;  %v13743_v31 = vrot.slane %v12501_v34, 6  ;;  %v13742_v30 = vrot.slane %v12501_v34, 3  ;;  %v12520_v61 = vshll.u32 %v12501_v34, 16 }
 0x3e1   : > { %6023 = vst.msk [vmem:[%s11414_s21 + $0x24] sm:$0xf] %vm13751_vm7, %v6019_v14  ;;  %v12523_v5 = vshrl.u32 %v12501_v34, 16  ;;  %v12528_v4 = vadd.s32 65, %v14410_v10  ;;  %v14411_v53 = vrot.slane %v12333_v51, 7  ;;  %vm14412_vm11 = vcmask 1040384  }
 0x3e2   : > { %v14413_v35 = vrot.slane %v12333_v51, 6  ;;  %vm14414_vm3 = vcmask 1041408   ;;  %v14415_v2 = vrot.slane %v12333_v51, 3  ;;  %vm14416_vm0 = vcmask 1044480   ;;  %v6596_v3 = vpop.f32.mrb[30].mxu1 }
 0x3e3   : > { %v5095_v11 = vsel %vm14412_vm11, %v14411_v53, %v13744_v47  ;;  %v4931_v46 = vrot.slane %v12501_v34, 4  ;;  %v6595_v7 = vadd.f32 %v6594_v55, %v6593_v23  ;;  %vm14417_vm10 = vcmask 261120   ;;  %v6597_v23 = vpop.f32.mrb[31].mxu1 }
 0x3e4   : > { %v4976_v26 = vsel %vm14414_vm3, %v14413_v35, %v13743_v31  ;;  %v4833_v49 = vsel %vm14416_vm0, %v14415_v2, %v13742_v30  ;;  %6876 = vmatmul.mubr.msk.bf16.gmra.mrb[124].mxu0 %vm14417_vm10, %v5095_v11  ;;  %v4788_v14 = vrot.slane %v12501_v34, 1  ;;  %v5032_v10 = vrot.slane %v12523_v5, 6  ;;  %vm12582_vm3 = vmand %vm4372_vm9, %vm4400_vm8 }
 0x3e5   : > { %4997 = vrot.lane.b32.xlu0 %v4976_v26, %s13752_s25  ;;  %v4290_v53 = vsub.s32 %v12150_v12, %v12507_v37  ;;  %vm14418_vm6 = vcmp.ge.s32.totalorder %v12323_v50, 0  ;;  %4854 = vrot.lane.b32.xlu1 %v4833_v49, %s7368_s23  ;;  %v5033_v55 = vrot.slane %v12520_v61, 7  ;;  %v4153_v11 = vadd.f32 0.5, %v4125_v59  ;;  %vm12602_vm8 = vmand %vm4456_vm1, %vm4484_vm5  ;;  %v14434_v59 = vld [vmem:[#allocation34_spill] sm:$0xff] }
 0x3e6   : > { %vm12556_vm2 = vmand %vm14418_vm6, %vm4399_vm15  ;;  %6879 = vmatprep.mubr.msk.bf16.mxu0 %vm14135_vm13, %v14015_v15  ;;  %v4891_v26 = vrot.slane %v12523_v5, 3  ;;  %v4892_v12 = vrot.slane %v12520_v61, 4  ;;  %v3862_v37 = vadd.f32 %v12215_v13, %v6595_v7  ;;  %vm14421_vm15 = vcmp.ge.s32.totalorder %v12335_v56, 0 }
 0x3e7   : > { %vm12571_vm11 = vmand %vm14421_vm15, %vm4483_vm4  ;;  %v6598_v2 = vadd.f32 %v6597_v23, %v6596_v3  ;;  %v12575_v49 = vtrunc.f32 %v4208_v36  ;;  %v4126_v30 = vcvt.s32.f32 %v12528_v4  ;;  %v14426_v56 = vrot.slane %v12333_v51, 4 }
 0x3e8   : > { %vm14427_vm4 = vcmask 1043456   ;;  %v12591_v31 = vor.u32 %v5033_v55, %v5032_v10  ;;  %v7078_v36 = vcvt.f32.s32 %v12525_v17  ;;  %v12594_v3 = vor.u32 %v4892_v12, %v4891_v26  ;;  %vm4539_vm0 = vmand %vm12556_vm2, %vm12571_vm11 }
 0x3e9   : > { %v4932_v7 = vsel %vm14427_vm4, %v14426_v56, %v4931_v46  ;;  %v4007_v23 = vadd.f32 %v11540_v20, %v3862_v37  ;;  %v3865_v45 = vadd.f32 %v12215_v13, %v6598_v2  ;;  %vm14430_vm9 = vcmask 1046528   ;;  %vm4540_vm5 = vmand %vm12582_vm3, %vm12602_vm8 }
 0x3ea   : > { %4953 = vrot.lane.b32.xlu0 %v4932_v7, %s7367_s28  ;;  %v4789_v17 = vsel %vm14430_vm9, %v4786_v6, %v4788_v14  ;;  %v13748_v20 = vrot.slane %v12520_v61, 1  ;;  %v12618_v28 = vadd.s32 4294967293, %v4289_v27  ;;  %v12623_v10 = vadd.s32 %v7076_v54, %v8638_v41 }
 0x3eb   : > { %4810 = vrot.lane.b32.xlu1 %v4789_v17, %s13752_s25  ;;  %v4181_v55 = vmul.f32 0.045454547, %v4153_v11  ;;  %vm14431_vm1 = vsmask.f32 4352  ;;  %v4063_v26 = vmax.f32 %v4007_v23, 0.0  ;;  %v4010_v12 = vadd.f32 %v11573_v32, %v3865_v45  ;;  %v14435_v17 = vld [vmem:[#allocation35_spill] sm:$0xff] }
 0x3ec   : > { %v12628_v6 = vsel %vm14431_vm1, %v12438_v8, %v12594_v3  ;;  %v4709_v35 = vor.u32 %v12352_v22, %v4705_v39  ;;  %v4154_v27 = vadd.f32 0.5, %v4126_v30  ;;  %vm14432_vm10 = vsmask.f32 1280 }
 0x3ed   : > { %v5035_v57 = vsel %vm14432_vm10, %v12424_v21, %v12591_v31  ;;  %vm4373_vm6 = vcmp.ge.s32.totalorder %v12498_v16, 0  ;;  %v12642_v8 = vadd.s32 4294967293, %v4290_v53  ;;  %v7080_v32 = vcvt.f32.s32 %v12575_v49 }
 0x3ee   : > { %v4623_v38 = vsel %vm4539_vm0, %v4063_v26, 0.0  ;;  %v4064_v54 = vmax.f32 %v4010_v12, 0.0  ;;  %5071 = vrot.lane.b32.xlu0 %v5035_v57, %s7368_s23  ;;  %vm14433_vm2 = vsmask.f32 7424  ;;  %v12649_v39 = vmul.u32 22, %v7078_v36 }
 0x3ef   : > { %v4714_v22 = vsel %vm14433_vm2, %v4709_v35, %v13748_v20  ;;  %v6497_v47 = vpack.c.bf16 %v4623_v38, %v4623_v38  ;;  %vm4401_vm15 = vcmp.lt.s32.totalorder %v12498_v16, 16  ;;  %vm4457_vm11 = vcmp.ge.s32.totalorder %v12618_v28, 0 }
 0x3f0   : > { %4753 = vrot.lane.b32.xlu1 %v4714_v22, %s7367_s28  ;;  %vm4485_vm3 = vcmp.lt.s32.totalorder %v12618_v28, 16  ;;  %v12655_v21 = vsel %vm4540_vm5, %v4064_v54, 0.0  ;;  %vm4374_vm4 = vcmp.ge.s32.totalorder %v12623_v10, 0  ;;  %v4209_v30 = vfloor.f32 %v4181_v55 }
 0x3f1   : > { %v4182_v53 = vmul.f32 0.045454547, %v4154_v27  ;;  %6036 = vst.msk [vmem:[%s11414_s21 + $0x2c] sm:$0xf] %vm13751_vm7, %v6497_v47  ;;  %v12661_v11 = vpack.c.bf16 %v12655_v21, %v4623_v38  ;;  %vm4402_vm8 = vcmp.lt.s32.totalorder %v12623_v10, 16  ;;  %vm4458_vm9 = vcmp.ge.s32.totalorder %v12642_v8, 0 }
 0x3f2   : > { %vm4486_vm0 = vcmp.lt.s32.totalorder %v12642_v8, 16  ;;  %v4291_v37 = vsub.s32 %v12297_v18, %v12649_v39  ;;  %v12669_v50 = vadd.s32 %v7078_v36, %v8638_v41  ;;  %v12673_v2 = vmul.u32 22, %v7080_v32  ;;  %v6599_v18 = vpop.f32.mrb[32].mxu1 }
 0x3f3   : > { %v12676_v56 = vadd.s32 65, %v14434_v59  ;;  %v13747_v7 = vrot.slane %v12661_v11, 7  ;;  %v13746_v23 = vrot.slane %v12661_v11, 6  ;;  %v13745_v45 = vrot.slane %v12661_v11, 3  ;;  %v6600_v27 = vpop.f32.mrb[33].mxu1 }
 0x3f4   : > { %v12682_v55 = vadd.s32 65, %v14435_v17  ;;  %v4933_v36 = vrot.slane %v12661_v11, 4  ;;  %v12686_v26 = vshll.u32 %v12661_v11, 16  ;;  %v12688_v12 = vtrunc.f32 %v4209_v30  ;;  %v6602_v59 = vpop.f32.mrb[34].mxu1 }
 0x3f5   : > { %v4210_v35 = vfloor.f32 %v4182_v53  ;;  %v14436_v57 = vrot.slane %v12501_v34, 7  ;;  %vm14437_vm1 = vcmask 1040384   ;;  %v14438_v54 = vrot.slane %v12501_v34, 6 }
 0x3f6   : > { %vm14439_vm5 = vcmask 1041408   ;;  %v14440_v39 = vrot.slane %v12501_v34, 3  ;;  %vm14441_vm10 = vcmask 1044480   ;;  %v12706_v30 = vshrl.u32 %v12661_v11, 16 }
 0x3f7   : > { %v5097_v38 = vsel %vm14437_vm1, %v14436_v57, %v13747_v7  ;;  %v4978_v22 = vsel %vm14439_vm5, %v14438_v54, %v13746_v23  ;;  %v6601_v53 = vadd.f32 %v6600_v27, %v6599_v18  ;;  %vm14442_vm2 = vcmask 261120   ;;  %vm12718_vm1 = vmand %vm4373_vm6, %vm4401_vm15  ;;  %v6603_v18 = vpop.f32.mrb[35].mxu1 }
 0x3f8   : > { %v4835_v47 = vsel %vm14441_vm10, %v14440_v39, %v13745_v45  ;;  %6880 = vmatmul.mubr.msk.bf16.gmra.mrb[128].mxu0 %vm14442_vm2, %v5097_v38  ;;  %4999 = vrot.lane.b32.xlu0 %v4978_v22, %s13752_s25  ;;  %v4790_v17 = vrot.slane %v12661_v11, 1  ;;  %v5037_v57 = vrot.slane %v12686_v26, 7  ;;  %v4292_v54 = vsub.s32 %v12326_v44, %v12673_v2  ;;  %vm12734_vm6 = vmand %vm4457_vm11, %vm4485_vm3 }
 0x3f9   : > { %4856 = vrot.lane.b32.xlu1 %v4835_v47, %s7368_s23  ;;  %v5036_v27 = vrot.slane %v12706_v30, 6  ;;  %6883 = vmatprep.mubr.msk.bf16.mxu0 %vm14135_vm13, %v14015_v15  ;;  %v4127_v38 = vcvt.s32.f32 %v12676_v56  ;;  %v4895_v44 = vrot.slane %v12706_v30, 3  ;;  %v4896_v2 = vrot.slane %v12686_v26, 4  ;;  %vm12744_vm15 = vmand %vm4374_vm4, %vm4402_vm8 }
 0x3fa   : > { %v3870_v16 = vadd.f32 %v12215_v13, %v6601_v53  ;;  %v6604_v47 = vadd.f32 %v6603_v18, %v6602_v59  ;;  %v4128_v23 = vcvt.s32.f32 %v12682_v55  ;;  %vm14449_vm11 = vcmask 1043456   ;;  %vm12765_vm3 = vmand %vm4458_vm9, %vm4486_vm0 }
 0x3fb   : > { %v4934_v28 = vsel %vm14449_vm11, %v4931_v46, %v4933_v36  ;;  %v12753_v53 = vor.u32 %v5037_v57, %v5036_v27  ;;  %v12755_v59 = vtrunc.f32 %v4210_v35  ;;  %v12757_v18 = vor.u32 %v4896_v2, %v4895_v44  ;;  %vm4541_vm8 = vmand %vm12718_vm1, %vm12734_vm6 }
 0x3fc   : > { %v4015_v45 = vadd.f32 %v11637_v33, %v3870_v16  ;;  %v3873_v10 = vadd.f32 %v12215_v13, %v6604_v47  ;;  %4955 = vrot.lane.b32.xlu0 %v4934_v28, %s7367_s28  ;;  %vm14452_vm4 = vcmask 1046528   ;;  %v4721_v33 = vrot.slane %v12686_v26, 1  ;;  %vm4542_vm10 = vmand %vm12744_vm15, %vm12765_vm3 }
 0x3fd   : > { %v4791_v46 = vsel %vm14452_vm4, %v4788_v14, %v4790_v17  ;;  %v12781_v8 = vadd.s32 4294967293, %v4291_v37  ;;  %v12786_v35 = vadd.s32 %v7080_v32, %v8638_v41  ;;  %v4155_v57 = vadd.f32 0.5, %v4127_v38  ;;  %v12812_v37 = vpop.permute.xlu1 %4796 }
 0x3fe   : > { %4812 = vrot.lane.b32.xlu1 %v4791_v46, %s13752_s25  ;;  %vm14453_vm9 = vsmask.f32 4352  ;;  %v4065_v27 = vmax.f32 %v4015_v45, 0.0  ;;  %v4018_v44 = vadd.f32 %v11674_v63, %v3873_v10  ;;  %v14454_v2 = vrot.slane %v12520_v61, 1 }
 0x3ff   : > { %v12791_v14 = vsel %vm14453_vm9, %v12594_v3, %v12757_v18  ;;  %vm4375_vm0 = vcmp.ge.s32.totalorder %v12669_v50, 0  ;;  %vm4403_vm5 = vcmp.lt.s32.totalorder %v12669_v50, 16  ;;  %v4156_v49 = vadd.f32 0.5, %v4128_v23 }
 0x400   : > { %v4717_v16 = vor.u32 %v12523_v5, %v14454_v2  ;;  %v6498_v32 = vpack.c.bf16 %v12655_v21, %v12655_v21  ;;  %vm14455_vm2 = vsmask.f32 1280  ;;  %v12808_v61 = vadd.s32 4294967293, %v4292_v54 }
 0x401   : > { %v5039_v63 = vsel %vm14455_vm2, %v12591_v31, %v12753_v53  ;;  %v14456_v5 = vcvt.f32.s32 %v12688_v12  ;;  %v4625_v20 = vsel %vm4541_vm8, %v4065_v27, 0.0  ;;  %v4066_v21 = vmax.f32 %v4018_v44, 0.0  ;;  %vm12879_vm2 = vmand %vm4375_vm0, %vm4403_vm5 }
 0x402   : > { %5073 = vrot.lane.b32.xlu0 %v5039_v63, %s7368_s23  ;;  %vm14457_vm15 = vsmask.f32 7424  ;;  %v7084_v7 = vcvt.f32.s32 %v12755_v59  ;;  %v6499_v23 = vpack.c.bf16 %v4625_v20, %v4625_v20  ;;  %vm4376_vm11 = vcmp.ge.s32.totalorder %v12786_v35, 0 }
 0x403   : > { %v4265_v3 = vmul.u32 22, %v14456_v5  ;;  %v4722_v31 = vsel %vm14457_vm15, %v4717_v16, %v4721_v33  ;;  %vm4404_vm3 = vcmp.lt.s32.totalorder %v12786_v35, 16  ;;  %v4183_v45 = vmul.f32 0.045454547, %v4155_v57  ;;  %v12840_v16 = vpop.permute.xlu1 %4739 }
 0x404   : > { %4755 = vrot.lane.b32.xlu1 %v4722_v31, %s7367_s28  ;;  %v4626_v54 = vsel %vm4542_vm10, %v4066_v21, 0.0  ;;  %vm4459_vm1 = vcmp.ge.s32.totalorder %v12781_v8, 0  ;;  %vm4487_vm6 = vcmp.lt.s32.totalorder %v12781_v8, 16  ;;  %v4184_v39 = vmul.f32 0.045454547, %v4156_v49  ;;  %v6605_v49 = vpop.f32.mrb[36].mxu1  ;;  %vm12913_vm5 = vmand %vm4376_vm11, %vm4404_vm3 }
 0x405   : > { %v6471_v38 = vrot.slane %v6498_v32, 11  ;;  %v6052_v22 = vrot.slane %v6499_v23, 7  ;;  %v12829_v47 = vpack.c.bf16 %v4626_v54, %v4625_v20  ;;  %v6500_v28 = vpack.c.bf16 %v4626_v54, %v4626_v54  ;;  %v12849_v20 = vpop.permute.xlu0 %4941  ;;  %v6606_v21 = vpop.f32.mrb[37].mxu1  ;;  %vm12898_vm0 = vmand %vm4459_vm1, %vm4487_vm6 }
 0x406   : > { %vm4460_vm4 = vcmp.ge.s32.totalorder %v12808_v61, 0  ;;  %vm4488_vm8 = vcmp.lt.s32.totalorder %v12808_v61, 16  ;;  %v4293_v10 = vsub.s32 %v12485_v52, %v4265_v3  ;;  %v12836_v46 = vmul.u32 22, %v7084_v7  ;;  %vm4543_vm1 = vmand %vm12879_vm2, %vm12898_vm0 }
 0x407   : > { %v6053_v57 = vsel %vm11807_vm14, %v6471_v38, %v6052_v22  ;;  %v6054_v27 = vrot.slane %v6052_v22, 4  ;;  %v6055_v44 = vrot.slane %v6500_v28, 7  ;;  %v4211_v2 = vfloor.f32 %v4183_v45  ;;  %v4843_v50 = vpop.permute.xlu1 %4842  ;;  %vm12929_vm11 = vmand %vm4460_vm4, %vm4488_vm8 }
 0x408   : > { %6059 = vst.msk [vmem:[%s11414_s21 + $0x30] sm:$0xf] %vm13751_vm7, %v6053_v57  ;;  %v5098_v32 = vrot.slane %v12829_v47, 7  ;;  %v13750_v52 = vrot.slane %v12829_v47, 6  ;;  %v13749_v63 = vrot.slane %v12829_v47, 3  ;;  %v4212_v5 = vfloor.f32 %v4184_v39 }
 0x409   : > { %v6056_v3 = vsel %vm11807_vm14, %v6054_v27, %v6055_v44  ;;  %v4935_v31 = vrot.slane %v12829_v47, 4  ;;  %v12853_v23 = vshll.u32 %v12829_v47, 16  ;;  %v12856_v45 = vshrl.u32 %v12829_v47, 16  ;;  %v6608_v27 = vpop.f32.mrb[38].mxu1 }
 0x40a   : > { %6060 = vst.msk [vmem:[%s11414_s21 + $0x34] sm:$0xf] %vm13751_vm7, %v6056_v3  ;;  %v6607_v54 = vadd.f32 %v6606_v21, %v6605_v49  ;;  %v14458_v39 = vrot.slane %v12661_v11, 7  ;;  %vm14459_vm9 = vcmask 1040384   ;;  %v14460_v38 = vrot.slane %v12661_v11, 6  ;;  %v6609_v49 = vpop.f32.mrb[39].mxu1 }
 0x40b   : > { %vm14461_vm14 = vcmask 1041408   ;;  %v14462_v28 = vrot.slane %v12661_v11, 3  ;;  %vm14463_vm10 = vcmask 1044480   ;;  %vm14466_vm15 = vcmask 261120  }
 0x40c   : > { %v5099_v25 = vsel %vm14459_vm9, %v14458_v39, %v5098_v32  ;;  %v4980_v22 = vsel %vm14461_vm14, %v14460_v38, %v13750_v52  ;;  %v4792_v3 = vrot.slane %v12829_v47, 1  ;;  %v5040_v21 = vrot.slane %v12856_v45, 6  ;;  %vm4544_vm9 = vmand %vm12913_vm5, %vm12929_vm11 }
 0x40d   : > { %v4837_v57 = vsel %vm14463_vm10, %v14462_v28, %v13749_v63  ;;  %6884 = vmatmul.mubr.msk.bf16.gmra.mrb[132].mxu0 %vm14466_vm15, %v5099_v25  ;;  %5001 = vrot.lane.b32.xlu0 %v4980_v22, %s13752_s25  ;;  %v5041_v39 = vrot.slane %v12853_v23, 7  ;;  %v14467_v38 = vcvt.f32.s32 %v12688_v12  ;;  %v3878_v63 = vadd.f32 %v12215_v13, %v6607_v54  ;;  %v4988_v54 = vpop.permute.xlu0 %4987 }
 0x40e   : > { %4858 = vrot.lane.b32.xlu1 %v4837_v57, %s7368_s23  ;;  %v6610_v22 = vadd.f32 %v6609_v49, %v6608_v27  ;;  %v12903_v52 = vadd.s32 4294967293, %v4293_v10  ;;  %6887 = vmatprep.mubr.msk.bf16.mxu0 %vm14135_vm13, %v14015_v15  ;;  %v12907_v12 = vtrunc.f32 %v4211_v2  ;;  %v4294_v57 = vsub.s32 %v12528_v4, %v12836_v46 }
 0x40f   : > { %v12891_v28 = vadd.s32 %v14467_v38, %v8638_v41  ;;  %v12919_v27 = vtrunc.f32 %v4212_v5  ;;  %v4899_v10 = vrot.slane %v12856_v45, 3  ;;  %v4900_v49 = vrot.slane %v12853_v23, 4 }
 0x410   : > { %v4023_v2 = vadd.f32 %v11628_v43, %v3878_v63  ;;  %v3881_v38 = vadd.f32 %v12215_v13, %v6610_v22  ;;  %vm14474_vm3 = vcmask 1043456   ;;  %v12938_v46 = vor.u32 %v5041_v39, %v5040_v21 }
 0x411   : > { %v4936_v4 = vsel %vm14474_vm3, %v4933_v36, %v4935_v31  ;;  %vm14475_vm6 = vcmask 1046528   ;;  %v4729_v61 = vrot.slane %v12853_v23, 1  ;;  %v12954_v36 = vadd.s32 %v7084_v7, %v8638_v41  ;;  %v12967_v59 = vpop.permute.xlu0 %4943 }
 0x412   : > { %4957 = vrot.lane.b32.xlu0 %v4936_v4, %s7367_s28  ;;  %v4793_v43 = vsel %vm14475_vm6, %v4790_v17, %v4792_v3  ;;  %v12956_v63 = vor.u32 %v4900_v49, %v4899_v10  ;;  %v4067_v5 = vmax.f32 %v4023_v2, 0.0  ;;  %v4026_v21 = vadd.f32 %v11657_v24, %v3881_v38  ;;  %v12984_v10 = vpop.permute.xlu1 %4798 }
 0x413   : > { %4814 = vrot.lane.b32.xlu1 %v4793_v43, %s13752_s25  ;;  %vm4377_vm4 = vcmp.ge.s32.totalorder %v12891_v28, 0  ;;  %vm4405_vm8 = vcmp.lt.s32.totalorder %v12891_v28, 16  ;;  %v7086_v17 = vcvt.f32.s32 %v12907_v12  ;;  %v4725_v7 = vor.u32 %v12706_v30, %v4721_v33 }
 0x414   : > { %vm4461_vm14 = vcmp.ge.s32.totalorder %v12903_v52, 0  ;;  %v12973_v24 = vadd.s32 4294967293, %v4294_v57  ;;  %v7088_v39 = vcvt.f32.s32 %v12919_v27  ;;  %vm14476_vm10 = vsmask.f32 4352 }
 0x415   : > { %v12979_v22 = vsel %vm14476_vm10, %v12757_v18, %v12956_v63  ;;  %v5107_v12 = vsel %vm14466_vm15, %v11253_v40, %v12840_v16  ;;  %v4627_v26 = vsel %vm4543_vm1, %v4067_v5, 0.0  ;;  %v4068_v30 = vmax.f32 %v4026_v21, 0.0  ;;  %v14479_v18 = vld [vmem:[#allocation10_spill] sm:$0xff] }
 0x416   : > { %vm14477_vm3 = vsmask.f32 1280  ;;  %v6501_v57 = vpack.c.bf16 %v4627_v26, %v4627_v26  ;;  %vm14478_vm6 = vsmask.f32 7424  ;;  %vm4489_vm10 = vcmp.lt.s32.totalorder %v12903_v52, 16  ;;  %v13022_v21 = vpop.permute.xlu1 %4741 }
 0x417   : > { %v5043_v33 = vsel %vm14477_vm3, %v12753_v53, %v12938_v46  ;;  %v4730_v40 = vsel %vm14478_vm6, %v4725_v7, %v4729_v61  ;;  %vm4378_vm15 = vcmp.ge.s32.totalorder %v12954_v36, 0  ;;  %vm14480_vm2 = vcmask 261120  }
 0x418   : > { %5075 = vrot.lane.b32.xlu0 %v5043_v33, %s7368_s23  ;;  %v5185_v16 = vsel %vm14480_vm2, %v14479_v18, %v12849_v20  ;;  %v4628_v53 = vsel %vm4544_vm9, %v4068_v30, 0.0  ;;  %4757 = vrot.lane.b32.xlu1 %v4730_v40, %s7367_s28  ;;  %vm4406_vm0 = vcmp.lt.s32.totalorder %v12954_v36, 16  ;;  %v4267_v44 = vmul.u32 22, %v7086_v17  ;;  %v5062_v20 = vpop.permute.xlu0 %5061 }
 0x419   : > { %vm14481_vm1 = vcmask 523264   ;;  %v13012_v27 = vpack.c.bf16 %v4628_v53, %v4627_v26  ;;  %v6502_v49 = vpack.c.bf16 %v4628_v53, %v4628_v53  ;;  %vm14483_vm6 = vcmask 785408  }
 0x41a   : > { %v5129_v25 = vsel %vm14481_vm1, %v5107_v12, %v12812_v37  ;;  %vm14482_vm3 = vmmov %vm14481_vm1  ;;  %vm4462_vm5 = vcmp.ge.s32.totalorder %v12973_v24, 0  ;;  %v4268_v35 = vmul.u32 22, %v7088_v39  ;;  %v6475_v4 = vrot.slane %v6501_v57, 10  ;;  %v13072_v28 = vpop.permute.xlu1 %4844 }
 0x41b   : > { %v5217_v2 = vsel %vm14482_vm3, %v5185_v16, %v4988_v54  ;;  %v5151_v8 = vsel %vm14483_vm6, %v5129_v25, %v4843_v50  ;;  %vm14484_vm2 = vmmov %vm14483_vm6  ;;  %v13018_v43 = vrot.slane %v6502_v49, 6  ;;  %v5100_v37 = vrot.slane %v13012_v27, 7  ;;  %v6611_v54 = vpop.f32.mrb[40].mxu1 }
 0x41c   : > { %v5239_v38 = vsel %vm14484_vm2, %v5217_v2, %v5062_v20  ;;  %v4981_v5 = vrot.slane %v13012_v27, 6  ;;  %v4838_v50 = vrot.slane %v13012_v27, 3  ;;  %v4937_v7 = vrot.slane %v13012_v27, 4  ;;  %v6612_v33 = vpop.f32.mrb[41].mxu1  ;;  %vm13059_vm2 = vmand %vm4377_vm4, %vm4405_vm8 }
 0x41d   : > { %5487 = vmatprep.mubr.bf16.mxu1 %v5239_v38  ;;  %v4295_v12 = vsub.s32 %v12676_v56, %v4267_v44  ;;  %v13028_v26 = vshll.u32 %v13012_v27, 16  ;;  %v6075_v30 = vsel %vm12138_vm12, %v6475_v4, %v13018_v43  ;;  %vm14485_vm11 = vcmask 1040384   ;;  %v6614_v44 = vpop.f32.mrb[42].mxu1  ;;  %vm13079_vm4 = vmand %vm4461_vm14, %vm4489_vm10 }
 0x41e   : > { %5488 = vmatmul.mubr.bf16.vlgmr.msra.gmra.mrb[48].mxu1 %v5151_v8  ;;  %v5101_v57 = vsel %vm14485_vm11, %v5098_v32, %v5100_v37  ;;  %v14486_v40 = vrot.slane %v12829_v47, 6  ;;  %vm14487_vm9 = vcmask 1041408   ;;  %v4794_v18 = vrot.slane %v13012_v27, 1  ;;  %6081 = vst.msk [vmem:[%s11414_s21 + $0x38] sm:$0xf] %vm13751_vm7, %v6075_v30  ;;  %v6615_v2 = vpop.f32.mrb[43].mxu1  ;;  %vm13087_vm8 = vmand %vm4378_vm15, %vm4406_vm0  ;;  %v13138_v23 = vpop.permute.xlu1 %4800 }
 0x41f   : > { %v6613_v16 = vadd.f32 %v6612_v33, %v6611_v54  ;;  %vm14488_vm1 = vcmask 261120   ;;  %v14489_v53 = vrot.slane %v12829_v47, 3  ;;  %vm14490_vm3 = vcmask 1044480   ;;  %vm4545_vm15 = vmand %vm13059_vm2, %vm13079_vm4 }
 0x420   : > { %v4982_v56 = vsel %vm14487_vm9, %v14486_v40, %v4981_v5  ;;  %6888 = vmatmul.mubr.msk.bf16.gmra.mrb[136].mxu0 %vm14488_vm1, %v5101_v57  ;;  %vm4490_vm6 = vcmp.lt.s32.totalorder %v12973_v24, 16  ;;  %v4903_v25 = vshrl.u32 %v13012_v27, 16  ;;  %v4323_v20 = vadd.s32 %v7086_v17, %v8638_v41 }
 0x421   : > { %5003 = vrot.lane.b32.xlu0 %v4982_v56, %s13752_s25  ;;  %v4839_v32 = vsel %vm14490_vm3, %v14489_v53, %v4838_v50  ;;  %v5045_v8 = vrot.slane %v13028_v26, 7  ;;  %v4296_v38 = vsub.s32 %v12682_v55, %v4268_v35  ;;  %v13068_v4 = vadd.s32 %v7088_v39, %v8638_v41  ;;  %6891 = vmatprep.mubr.msk.bf16.mxu0 %vm14135_vm13, %v14015_v15  ;;  %vm13106_vm10 = vmand %vm4462_vm5, %vm4490_vm6  ;;  %v6617_v53 = vpop.f32.mrb[44].mxu1  ;;  %v14528_v41 = vld [vmem:[#allocation37_spill] sm:$0xff] }
 0x422   : > { %4860 = vrot.lane.b32.xlu1 %v4839_v32, %s7368_s23  ;;  %v3886_v54 = vadd.f32 %v12215_v13, %v6613_v16  ;;  %v6616_v30 = vadd.f32 %v6615_v2, %v6614_v44  ;;  %v5044_v55 = vrot.slane %v4903_v25, 6  ;;  %v4905_v35 = vrot.slane %v4903_v25, 3  ;;  %vm4546_vm1 = vmand %vm13087_vm8, %vm13106_vm10  ;;  %v6618_v32 = vpop.f32.mrb[45].mxu1 }
 0x423   : > { %vm14497_vm11 = vcmask 1043456   ;;  %vm14498_vm14 = vcmask 1046528   ;;  %v6402_v33 = vadd.s32 4294967293, %v4295_v12  ;;  %v4906_v57 = vrot.slane %v13028_v26, 4  ;;  %v6620_v49 = vpop.f32.mrb[46].mxu1 }
 0x424   : > { %v4938_v52 = vsel %vm14497_vm11, %v4935_v31, %v4937_v7  ;;  %v4795_v39 = vsel %vm14498_vm14, %v4792_v3, %v4794_v18  ;;  %v4031_v40 = vadd.f32 %v11772_v48, %v3886_v54  ;;  %v3889_v36 = vadd.f32 %v12215_v13, %v6616_v30  ;;  %v4990_v31 = vpop.permute.xlu0 %4989 }
 0x425   : > { %4959 = vrot.lane.b32.xlu0 %v4938_v52, %s7367_s28  ;;  %v13111_v16 = vor.u32 %v5045_v8, %v5044_v55  ;;  %v4737_v3 = vrot.slane %v13028_v26, 1  ;;  %vm4379_vm0 = vcmp.ge.s32.totalorder %v4323_v20, 0  ;;  %vm4407_vm9 = vcmp.lt.s32.totalorder %v4323_v20, 16  ;;  %v14504_v8 = vld [vmem:[#allocation36_spill] sm:$0xff]  ;;  %v6621_v55 = vpop.f32.mrb[47].mxu1 }
 0x426   : > { %4816 = vrot.lane.b32.xlu1 %v4795_v39, %s13752_s25  ;;  %v6403_v48 = vadd.s32 4294967293, %v4296_v38  ;;  %v13119_v24 = vor.u32 %v4906_v57, %v4905_v35  ;;  %v4069_v12 = vmax.f32 %v4031_v40, 0.0  ;;  %v4034_v18 = vadd.f32 %v11796_v19, %v3889_v36  ;;  %v14512_v39 = vld [vmem:[#allocation8_spill] sm:$0xff] }
 0x427   : > { %v4733_v26 = vor.u32 %v12856_v45, %v4729_v61  ;;  %vm4380_vm5 = vcmp.ge.s32.totalorder %v13068_v4, 0  ;;  %vm4463_vm3 = vcmp.ge.s32.totalorder %v6402_v33, 0  ;;  %vm4491_vm6 = vcmp.lt.s32.totalorder %v6402_v33, 16 }
 0x428   : > { %vm14501_vm11 = vsmask.f32 1280  ;;  %vm14502_vm14 = vsmask.f32 4352  ;;  %v4629_v45 = vsel %vm4545_vm15, %v4069_v12, 0.0  ;;  %v4070_v61 = vmax.f32 %v4034_v18, 0.0  ;;  %v13145_v25 = vpop.permute.xlu0 %4945  ;;  %vm13165_vm15 = vmand %vm4379_vm0, %vm4407_vm9  ;;  %v4744_v12 = vpop.permute.xlu1 %4743 }
 0x429   : > { %v5047_v44 = vsel %vm14501_vm11, %v12938_v46, %v13111_v16  ;;  %v13136_v19 = vsel %vm14502_vm14, %v12956_v63, %v13119_v24  ;;  %v6619_v2 = vadd.f32 %v6618_v32, %v6617_v53  ;;  %vm14503_vm11 = vsmask.f32 7424 }
 0x42a   : > { %5077 = vrot.lane.b32.xlu0 %v5047_v44, %s7368_s23  ;;  %v4738_v46 = vsel %vm14503_vm11, %v4733_v26, %v4737_v3  ;;  %vm14505_vm14 = vcmask 261120   ;;  %v6503_v38 = vpack.c.bf16 %v4629_v45, %v4629_v45  ;;  %vm4408_vm7 = vcmp.lt.s32.totalorder %v13068_v4, 16 }
 0x42b   : > { %v5109_v63 = vsel %vm14505_vm14, %v14504_v8, %v13022_v21  ;;  %4759 = vrot.lane.b32.xlu1 %v4738_v46, %s7367_s28  ;;  %vm4464_vm2 = vcmp.ge.s32.totalorder %v6403_v48, 0  ;;  %vm14506_vm4 = vmmov %vm14505_vm14  ;;  %v4630_v17 = vsel %vm4546_vm1, %v4070_v61, 0.0  ;;  %v3894_v30 = vadd.f32 %v12215_v13, %v6619_v2 }
 0x42c   : > { %v5188_v54 = vsel %vm14506_vm4, %v11792_v58, %v12967_v59  ;;  %vm4492_vm11 = vcmp.lt.s32.totalorder %v6403_v48, 16  ;;  %v6076_v35 = vrot.slane %v13018_v43, 4  ;;  %v6077_v58 = vrot.slane %v6503_v38, 6  ;;  %vm13172_vm14 = vmand %vm4463_vm3, %vm4491_vm6  ;;  %v5064_v40 = vpop.permute.xlu0 %5063 }
 0x42d   : > { %v4645_v59 = vpack.c.bf16 %v4630_v17, %v4629_v45  ;;  %v6622_v52 = vadd.f32 %v6621_v55, %v6620_v49  ;;  %vm14511_vm8 = vcmask 523264   ;;  %v4039_v57 = vadd.f32 %v14512_v39, %v3894_v30  ;;  %vm13182_vm10 = vmand %vm4380_vm5, %vm4408_vm7 }
 0x42e   : > { %v5219_v20 = vsel %vm14511_vm8, %v5188_v54, %v4990_v31  ;;  %vm14515_vm0 = vmmov %vm14511_vm8  ;;  %v6078_v36 = vsel %vm12138_vm12, %v6076_v35, %v6077_v58  ;;  %vm14518_vm1 = vcmask 785408   ;;  %vm14520_vm5 = vcmask 257024  }
 0x42f   : > { %v5131_v33 = vsel %vm14515_vm0, %v5109_v63, %v12984_v10  ;;  %v3897_v56 = vadd.f32 %v12215_v13, %v6622_v52  ;;  %vm13192_vm9 = vmand %vm4464_vm2, %vm4492_vm11  ;;  %v5242_v4 = vsel %vm14518_vm1, %v5219_v20, %v5064_v40  ;;  %6082 = vst.msk [vmem:[%s11414_s21 + $0x3c] sm:$0xf] %vm14520_vm5, %v6078_v36  ;;  %v4071_v18 = vmax.f32 %v4039_v57, 0.0  ;;  %v14521_v13 = vld [vmem:[#allocation11_spill] sm:$0xff] }
 0x430   : > { %vm14519_vm7 = vmmov %vm14518_vm1  ;;  %5495 = vmatprep.mubr.bf16.mxu1 %v5242_v4  ;;  %v5102_v10 = vrot.slane %v4645_v59, 7  ;;  %v4983_v0 = vrot.slane %v4645_v59, 6  ;;  %v4840_v53 = vrot.slane %v4645_v59, 3  ;;  %v4939_v26 = vrot.slane %v4645_v59, 4  ;;  %v4992_v38 = vpop.permute.xlu0 %4991 }
 0x431   : > { %v5154_v3 = vsel %vm14519_vm7, %v5131_v33, %v13072_v28  ;;  %vm4547_vm12 = vmand %vm13165_vm15, %vm13172_vm14  ;;  %v4042_v48 = vadd.f32 %v14521_v13, %v3897_v56  ;;  %v4910_v32 = vshrl.u32 %v4645_v59, 16  ;;  %v4913_v44 = vshll.u32 %v4645_v59, 16 }
 0x432   : > { %5496 = vmatmul.mubr.bf16.gmra.mrb[52].mxu1 %v5154_v3  ;;  %vm4548_vm3 = vmand %vm13182_vm10, %vm13192_vm9  ;;  %vm14522_vm6 = vcmask 1040384   ;;  %vm14523_vm2 = vcmask 1041408   ;;  %vm14524_vm4 = vcmask 1044480   ;;  %vm14525_vm11 = vcmask 261120  }
 0x433   : > { %v5103_v28 = vsel %vm14522_vm6, %v5100_v37, %v5102_v10  ;;  %v4984_v45 = vsel %vm14523_vm2, %v4981_v5, %v4983_v0  ;;  %v4841_v61 = vsel %vm14524_vm4, %v4838_v50, %v4840_v53  ;;  %v4072_v2 = vmax.f32 %v4042_v48, 0.0  ;;  %v4847_v37 = vpop.permute.xlu1 %4846  ;;  %vm14529_vm15 = vmmov %vm14525_vm11 }
 0x434   : > { %6892 = vmatmul.mubr.msk.bf16.gmra.mrb[140].mxu0 %vm14525_vm11, %v5103_v28  ;;  %5005 = vrot.lane.b32.xlu0 %v4984_v45, %s13752_s25  ;;  %vm14526_vm8 = vcmask 1043456   ;;  %v5048_v8 = vrot.slane %v4910_v32, 6  ;;  %v5049_v63 = vrot.slane %v4913_v44, 7  ;;  %v4912_v5 = vrot.slane %v4910_v32, 3  ;;  %v4948_v55 = vpop.permute.xlu0 %4947  ;;  %vm14531_vm10 = vmmov %vm14522_vm6 }
 0x435   : > { %v4940_v46 = vsel %vm14526_vm8, %v4937_v7, %v4939_v26  ;;  %4862 = vrot.lane.b32.xlu1 %v4841_v61, %s7368_s23  ;;  %6895 = vmatprep.mubr.msk.bf16.mxu0 %vm14135_vm13, %v14015_v15  ;;  %v4915_v50 = vrot.slane %v4913_v44, 4  ;;  %v4631_v49 = vsel %vm4547_vm12, %v4071_v18, 0.0  ;;  %v4632_v27 = vsel %vm4548_vm3, %v4072_v2, 0.0  ;;  %vm14532_vm9 = vmmov %vm14523_vm2 }
 0x436   : > { %v5050_v7 = vor.u32 %v5049_v63, %v5048_v8  ;;  %v4646_v54 = vpack.c.bf16 %v4632_v27, %v4631_v49  ;;  %vm14527_vm0 = vsmask.f32 1280  ;;  %v5111_v52 = vsel %vm14529_vm15, %v14528_v41, %v4744_v12  ;;  %vm14533_vm1 = vmmov %vm14525_vm11 }
 0x437   : > { %v4916_v17 = vor.u32 %v4915_v50, %v4912_v5  ;;  %vm14530_vm14 = vsmask.f32 4352  ;;  %v4803_v39 = vpop.permute.xlu1 %4802  ;;  %vm14534_vm7 = vmmov %vm14533_vm1  ;;  %vm14535_vm5 = vcmask 523264   ;;  %vm14536_vm12 = vcmask 785408  }
 0x438   : > { %4961 = vrot.lane.b32.xlu0 %v4940_v46, %s7367_s28  ;;  %v5051_v30 = vsel %vm14527_vm0, %v13111_v16, %v5050_v7  ;;  %v5104_v21 = vrot.slane %v4646_v54, 7  ;;  %v4985_v35 = vrot.slane %v4646_v54, 6  ;;  %v5053_v58 = vshrl.u32 %v4646_v54, 16  ;;  %v5066_v56 = vpop.permute.xlu0 %5065  ;;  %vm14537_vm3 = vmmov %vm14535_vm5  ;;  %s13459_s28 = sshll.u32 %s7337_s16, 4  ;;  %s6111_s16 = sshll.u32 %s11414_s21, 4  ;;  %s13489_s16 = int_to_ptr.vmem [resolvable:$true] %s6111_s16 }
 0x439   : > { %v5056_v59 = vshll.u32 %v4646_v54, 16  ;;  %v13244_v20 = vsel %vm14530_vm14, %v13119_v24, %v4916_v17  ;;  %v5191_v16 = vsel %vm14533_vm1, %v11945_v1, %v13145_v25  ;;  %v5133_v4 = vsel %vm14537_vm3, %v5111_v52, %v13138_v23  ;;  %vm14538_vm6 = vmmov %vm14536_vm12  ;;  %v14553_v17 = vld [vmem:[#allocation9_spill] sm:$0xff]  ;;  %p404_p0 = scmp.lt.s32.totalorder %s13459_s28, 31  ;;  %s6108_s12 = sadd.s32 %s6478_s0, %s13459_s28 }
 0x43a   : > { %v5105_v57 = vsel %vm14531_vm10, %v5102_v10, %v5104_v21  ;;  %v4986_v43 = vsel %vm14532_vm9, %v4983_v0, %v4985_v35  ;;  %v5055_v40 = vrot.slane %v5053_v58, 6  ;;  %v5221_v36 = vsel %vm14535_vm5, %v5191_v16, %v4992_v38  ;;  %vm14539_vm2 = vmmov %vm14527_vm0  ;;  %s13499_s21 = scalar_lea.sflag [#allocation3], %s14601_s17 }
 0x43b   : > { %v5058_v33 = vrot.slane %v5056_v59, 7  ;;  %v5245_v31 = vsel %vm14536_vm12, %v5221_v36, %v5066_v56  ;;  %v5157_v3 = vsel %vm14538_vm6, %v5133_v4, %v4847_v37  ;;  %v4746_v1 = vpop.permute.xlu1 %4745  ;;  %vm14540_vm4 = vmmov %vm14533_vm1 }
 0x43c   : > { %5079 = vrot.lane.b32.xlu0 %v5051_v30, %s7368_s23  ;;  %6896 = vmatmul.mubr.msk.bf16.gmra.mrb[144].mxu0 %vm14534_vm7, %v5105_v57  ;;  %v4994_v18 = vpop.permute.xlu0 %4993  ;;  %v5113_v53 = vsel %vm14540_vm4, %v11610_v60, %v4746_v1  ;;  %vm14541_vm11 = vmmov %vm14533_vm1 }
 0x43d   : > { %v5059_v24 = vor.u32 %v5058_v33, %v5055_v40  ;;  %5503 = vmatprep.mubr.bf16.mxu1 %v5245_v31  ;;  %v5194_v23 = vsel %vm14541_vm11, %v12280_v9, %v4948_v55  ;;  %vm14542_vm8 = vmmov %vm14537_vm3  ;;  %v14547_v9 = vld [vmem:[#allocation12_spill] sm:$0xff] }
 0x43e   : > { %5504 = vmatmul.mubr.bf16.gmra.mrb[56].mxu1 %v5157_v3  ;;  %v5223_v13 = vsel %vm14542_vm8, %v5194_v23, %v4994_v18  ;;  %vm14543_vm0 = vmmov %vm14538_vm6  ;;  %v7254_v18 = vld [vmem:[%s13617_s7 + $0x8] sm:$0xff]  }
 0x43f   : > { %v5060_v12 = vsel %vm14539_vm2, %v5050_v7, %v5059_v24  ;;  %v4849_v25 = vpop.permute.xlu1 %4848  ;;  %vm14544_vm15 = vmmov %vm14537_vm3 }
 0x440   : > { %5007 = vrot.lane.b32.xlu0 %v4986_v43, %s13752_s25  ;;  %v4950_v10 = vpop.permute.xlu0 %4949  ;;  %v5135_v32 = vsel %vm14544_vm15, %v5113_v53, %v4803_v39  ;;  %vm14545_vm14 = vmmov %vm14543_vm0  ;;  %s6479_s25 = sshll.u32 %s6108_s12, 6 }
 0x441   : > { %v5160_v44 = vsel %vm14545_vm14, %v5135_v32, %v4849_v25  ;;  %vm14546_vm10 = vmmov %vm14533_vm1 }
 0x442   : > { %vm14548_vm9 = vmmov %vm14533_vm1 }
 0x443   : > { %v4805_v0 = vpop.permute.xlu1 %4804  ;;  %v5197_v8 = vsel %vm14548_vm9, %v14547_v9, %v4950_v10  ;;  %vm14549_vm1 = vmmov %vm14537_vm3 }
 0x444   : > { %5081 = vrot.lane.b32.xlu0 %v5060_v12, %s7368_s23  ;;  %v5068_v48 = vpop.permute.xlu0 %5067  ;;  %vm14550_vm7 = vmmov %vm14543_vm0  ;;  %s405_s23 = scalar_select %p404_p0, %s13459_s28, 31 }
 0x445   : > { %v5248_v26 = vsel %vm14543_vm0, %v5223_v13, %v5068_v48  ;;  %vm14551_vm5 = vmmov %vm14549_vm1  ;;  %s7259_s28 = scalar_lea.vmem %s13489_s16, 1024 }
 0x446   : > { %5511 = vmatprep.mubr.bf16.mxu1 %v5248_v26  ;;  %vm14552_vm12 = vmmov %vm14543_vm0  ;;  %s407_s19 = sadd.s32 %s6245_s29, %s405_s23  ;;  %s13495_s29 = scalar_lea.hbm %s13619_s9, %s6479_s25 }
 0x447   : > { %v4748_v28 = vpop.permute.xlu1 %4747  ;;  %5512 = vmatmul.mubr.bf16.gmra.mrb[60].mxu1 %v5160_v44  ;;  %vm14554_vm3 = vmmov %vm14540_vm4  ;;  %s6246_s24 = sshll.u32 %s407_s19, 3  ;;  %p7260_p1 = scmp.ne.s32.totalorder %s13489_s16, %s7259_s28 }
 0x448   : > { %v4996_v61 = vpop.permute.xlu0 %4995  ;;  %v5115_v60 = vsel %vm14546_vm10, %v11794_v62, %v4748_v28  ;;  %v7253_v62 = vld [vmem:[%s13617_s7] sm:$0xff]   ;;  %vm14555_vm6 = vmmov %vm14554_vm3  ;;  %s13472_s1 = scalar_lea.vmem %s13620_s10, %s6246_s24  ;;  %s7369_s19 = smov [#allocation2]  }
 0x449   : > { %v5225_v63 = vsel %vm14549_vm1, %v5197_v8, %v4996_v61  ;;  %v5137_v5 = vsel %vm14551_vm5, %v5115_v60, %v4805_v0  ;;  %6900 = vmatpush3.bf16.msra.mxu1 %v7253_v62  ;;  %vm14556_vm2 = vmmov %vm14549_vm1  ;;  %p7261_p2 = pnand %p7260_p1, %p7477_p3  ;;  %s7263_s24 = sshll.u32 %s7369_s19, 4  ;;  %s7264_s24 = int_to_ptr.vmem [resolvable:$false] %s7263_s24 }
 0x44a   : > { %6901 = vmatprep.subr.bf16.mxu1 %v14015_v15  ;;  %vm14557_vm4 = vmmov %vm14543_vm0  ;;  %s7265_s22 = scalar_lea.vmem %s7264_s24, 2048  ;;  %p7266_p5 = scmp.lt.s32.totalorder %s13489_s16, %s7264_s24 }
 0x44b   : > { %v4851_v45 = vpop.permute.xlu1 %4850  ;;  %vm14558_vm11 = vmmov %vm14549_vm1  ;;  %p7262_p4 = pneg %p7261_p2  ;;  %p7267_p6 = scmp.lt.s32.totalorder %s7265_s22, %s7259_s28 }
 0x44c   : > { %v4952_v2 = vpop.permute.xlu0 %4951  ;;  %v5163_v50 = vsel %vm14552_vm12, %v5137_v5, %v4851_v45  ;;  %vm14559_vm8 = vmmov %vm14543_vm0 }
 0x44d   : > { %v5200_v21 = vsel %vm14555_vm6, %v12461_v29, %v4952_v2  ;;  %vm14560_vm0 = vmmov %vm14554_vm3  ;;  %6902 = vmatpush3.bf16.msra.mxu1 %v7254_v18  ;;  %p7268_p7 = por %p7267_p6, %p7266_p5 }
 0x44e   : > { %vm14561_vm15 = vmmov %vm14560_vm0 }
 0x44f   : > { %v4807_v46 = vpop.permute.xlu1 %4806  ;;  %vm14562_vm14 = vmmov %vm14549_vm1  ;;  %p7269_p9 = pnand %p7268_p7, %p7262_p4 }
 0x450   : > { %v5070_v37 = vpop.permute.xlu0 %5069  ;;  %v13289_v40 = vpop.f32.mrb[104].mxu0  ;;  %vm14563_vm10 = vmmov %vm14557_vm4 }
 0x451   : > { %v5251_v38 = vsel %vm14550_vm7, %v5225_v63, %v5070_v37  ;;  %v6857_v29 = vpop.f32.mrb[105].mxu0  ;;  %vm14564_vm9 = vmmov %vm14549_vm1 }
 0x452   : > { %5519 = vmatprep.mubr.bf16.mxu1 %v5251_v38  ;;  %v13291_v33 = vpop.f32.mrb[106].mxu0  ;;  %vm14565_vm1 = vmmov %vm14557_vm4 }
 0x453   : > { %5520 = vmatmul.mubr.bf16.gmra.mrb[64].mxu1 %v5163_v50  ;;  %v4750_v49 = vpop.permute.xlu1 %4749  ;;  %v6858_v36 = vpop.f32.mrb[107].mxu0  ;;  %vm14566_vm7 = vmmov %vm14560_vm0 }
 0x454   : > { %v5117_v30 = vsel %vm14554_vm3, %v14553_v17, %v4750_v49  ;;  %vm14567_vm5 = vmmov %vm14560_vm0 }
 0x455   : > { %v5139_v41 = vsel %vm14558_vm11, %v5117_v30, %v4807_v46  ;;  %vm14568_vm12 = vmmov %vm14556_vm2 }
 0x456   : > { %vm14569_vm3 = vmmov %vm14565_vm1 }
 0x457   : > { %v4853_v27 = vpop.permute.xlu1 %4852  ;;  %v4998_v7 = vpop.permute.xlu0 %4997  ;;  %vm14570_vm6 = vmmov %vm14556_vm2 }
 0x458   : > { %v5227_v35 = vsel %vm14556_vm2, %v5200_v21, %v4998_v7  ;;  %v5166_v52 = vsel %vm14559_vm8, %v5139_v41, %v4853_v27  ;;  %vm14571_vm2 = vmmov %vm14565_vm1 }
 0x459   : > { %vm14573_vm11 = vmmov %vm14560_vm0 }
 0x45a   : > { %vm14574_vm8 = vmmov %vm14570_vm6 }
 0x45b   : > { %v4809_v55 = vpop.permute.xlu1 %4808 }
 0x45c   : > { %v4954_v54 = vpop.permute.xlu0 %4953 }
 0x45d   : > { %v5203_v31 = vsel %vm14561_vm15, %v12628_v6, %v4954_v54  ;;  %vm14576_vm15 = vmmov %vm14570_vm6 }
 0x45f   : > { %v4752_v39 = vpop.permute.xlu1 %4751 }
 0x460   : > { %v5072_v58 = vpop.permute.xlu0 %5071  ;;  %v5119_v56 = vsel %vm14560_vm0, %v12154_v42, %v4752_v39 }
 0x461   : > { %v5254_v59 = vsel %vm14557_vm4, %v5227_v35, %v5072_v58  ;;  %v5141_v1 = vsel %vm14564_vm9, %v5119_v56, %v4809_v55  ;;  %vm14572_vm4 = vmmov %vm14560_vm0 }
 0x462   : > { %5527 = vmatprep.mubr.bf16.mxu1 %v5254_v59  ;;  %vm14575_vm0 = vmmov %vm14565_vm1 }
 0x463   : > { %5528 = vmatmul.mubr.bf16.gmra.mrb[68].mxu1 %v5166_v52  ;;  %v4855_v57 = vpop.permute.xlu1 %4854  ;;  %v13304_v6 = vpop.f32.mrb[108].mxu0  ;;  %vm14579_vm9 = vmmov %vm14572_vm4 }
 0x464   : > { %v5169_v25 = vsel %vm14565_vm1, %v5141_v1, %v4855_v57  ;;  %v6861_v53 = vpop.f32.mrb[109].mxu0  ;;  %vm14580_vm1 = vmmov %vm14570_vm6 }
 0x465   : > { %v13306_v23 = vpop.f32.mrb[110].mxu0 }
 0x466   : > { %v6862_v13 = vpop.f32.mrb[111].mxu0 }
 0x467   : > { %v4811_v24 = vpop.permute.xlu1 %4810 }
 0x46a   : > { %v5000_v43 = vpop.permute.xlu0 %4999 }
 0x46b   : > { %v5229_v4 = vsel %vm14562_vm14, %v5203_v31, %v5000_v43  ;;  %v4754_v42 = vpop.permute.xlu1 %4753  ;;  %vm14577_vm14 = vmmov %vm14575_vm0 }
 0x46c   : > { %v5121_v32 = vsel %vm14566_vm7, %v12333_v51, %v4754_v42  ;;  %vm14581_vm7 = vmmov %vm14575_vm0 }
 0x46d   : > { %v5143_v2 = vsel %vm14570_vm6, %v5121_v32, %v4811_v24 }
 0x46e   : > { %v4956_v16 = vpop.permute.xlu0 %4955 }
 0x46f   : > { %v4857_v10 = vpop.permute.xlu1 %4856  ;;  %v5206_v44 = vsel %vm14567_vm5, %v12791_v14, %v4956_v16  ;;  %vm14582_vm5 = vmmov %vm14580_vm1 }
 0x470   : > { %v5172_v60 = vsel %vm14571_vm2, %v5143_v2, %v4857_v10  ;;  %vm14586_vm2 = vmmov %vm14580_vm1 }
 0x473   : > { %v4813_v26 = vpop.permute.xlu1 %4812 }
 0x474   : > { %v5074_v3 = vpop.permute.xlu0 %5073 }
 0x475   : > { %v5257_v12 = vsel %vm14563_vm10, %v5229_v4, %v5074_v3  ;;  %vm14578_vm10 = vmmov %vm14572_vm4 }
 0x476   : > { %5535 = vmatprep.mubr.bf16.mxu1 %v5257_v12 }
 0x477   : > { %5536 = vmatmul.mubr.bf16.gmra.mrb[72].mxu1 %v5169_v25  ;;  %v4756_v46 = vpop.permute.xlu1 %4755 }
 0x478   : > { %v13316_v63 = vpop.f32.mrb[112].mxu0  ;;  %v5123_v5 = vsel %vm14572_vm4, %v12501_v34, %v4756_v46  ;;  %v13369_v46 = vld [vmem:[%s13616_s6] ss:$0 sm:$0xff] }
 0x479   : > { %v6865_v51 = vpop.f32.mrb[113].mxu0  ;;  %v5145_v62 = vsel %vm14576_vm15, %v5123_v5, %v4813_v26 }
 0x47a   : > { %v13318_v37 = vpop.f32.mrb[114].mxu0 }
 0x47b   : > { %v6866_v14 = vpop.f32.mrb[115].mxu0 }
 0x47f   : > { %v5002_v0 = vpop.permute.xlu0 %5001 }
 0x480   : > { %v5231_v28 = vsel %vm14568_vm12, %v5206_v44, %v5002_v0  ;;  %v4859_v9 = vpop.permute.xlu1 %4858  ;;  %vm14583_vm12 = vmmov %vm14575_vm0 }
 0x481   : > { %v5175_v17 = vsel %vm14577_vm14, %v5145_v62, %v4859_v9 }
 0x484   : > { %v4958_v48 = vpop.permute.xlu0 %4957 }
 0x485   : > { %v4815_v50 = vpop.permute.xlu1 %4814  ;;  %v5209_v49 = vsel %vm14573_vm11, %v12979_v22, %v4958_v48  ;;  %vm14588_vm11 = vmmov %vm14580_vm1 }
 0x48a   : > { %v5076_v45 = vpop.permute.xlu0 %5075  ;;  %v4758_v30 = vpop.permute.xlu1 %4757 }
 0x48b   : > { %v5260_v61 = vsel %vm14569_vm3, %v5231_v28, %v5076_v45  ;;  %v5125_v52 = vsel %vm14578_vm10, %v12661_v11, %v4758_v30  ;;  %vm14584_vm3 = vmmov %vm14572_vm4 }
 0x48c   : > { %5543 = vmatprep.mubr.bf16.mxu1 %v5260_v61  ;;  %v5147_v16 = vsel %vm14582_vm5, %v5125_v52, %v4815_v50  ;;  %vm14585_vm6 = vmmov %vm14584_vm3 }
 0x48d   : > { %5544 = vmatmul.mubr.bf16.gmra.mrb[76].mxu1 %v5172_v60  ;;  %v13328_v35 = vpop.f32.mrb[116].mxu0  ;;  %vm14587_vm4 = vmmov %vm14575_vm0 }
 0x48e   : > { %v6869_v34 = vpop.f32.mrb[117].mxu0 }
 0x48f   : > { %v13330_v58 = vpop.f32.mrb[118].mxu0 }
 0x490   : > { %v6870_v22 = vpop.f32.mrb[119].mxu0 }
 0x493   : > { %v5004_v8 = vpop.permute.xlu0 %5003 }
 0x494   : > { %v5233_v27 = vsel %vm14574_vm8, %v5209_v49, %v5004_v8  ;;  %v4861_v55 = vpop.permute.xlu1 %4860  ;;  %vm14589_vm8 = vmmov %vm14575_vm0 }
 0x495   : > { %v5178_v36 = vsel %vm14583_vm12, %v5147_v16, %v4861_v55 }
 0x497   : > { %v4960_v38 = vpop.permute.xlu0 %4959 }
 0x498   : > { %v4817_v41 = vpop.permute.xlu1 %4816  ;;  %v5212_v39 = vsel %vm14579_vm9, %v13136_v19, %v4960_v38 }
 0x49c   : > { %v5078_v7 = vpop.permute.xlu0 %5077 }
 0x49d   : > { %v5263_v54 = vsel %vm14575_vm0, %v5233_v27, %v5078_v7  ;;  %v4760_v56 = vpop.permute.xlu1 %4759  ;;  %vm14590_vm0 = vmmov %vm14584_vm3 }
 0x49e   : > { %5551 = vmatprep.mubr.bf16.mxu1 %v5263_v54  ;;  %v5127_v31 = vsel %vm14584_vm3, %v12829_v47, %v4760_v56  ;;  %vm14591_vm15 = vmmov %vm14590_vm0 }
 0x49f   : > { %5552 = vmatmul.mubr.bf16.gmra.mrb[80].mxu1 %v5175_v17  ;;  %v5149_v18 = vsel %vm14588_vm11, %v5127_v31, %v4817_v41  ;;  %vm14592_vm14 = vmmov %vm14590_vm0  ;;  %vm5946_vm11 = vcmask 130049  }
 0x4a0   : > { %vm14593_vm10 = vmmov %vm14590_vm0 }
 0x4a1   : > { %vm14594_vm9 = vmmov %vm14590_vm0 }
 0x4a2   : > { %v13345_v12 = vpop.f32.mrb[120].mxu0  ;;  %vm14597_vm5 = vmmov %vm14590_vm0 }
 0x4a3   : > { %v6873_v25 = vpop.f32.mrb[121].mxu0  ;;  %vm14598_vm12 = vmmov %vm14590_vm0 }
 0x4a4   : > { %v13350_v10 = vpop.f32.mrb[122].mxu0  ;;  %vm14599_vm3 = vmmov %vm14590_vm0 }
 0x4a5   : > { %v6874_v47 = vpop.f32.mrb[123].mxu0 }
 0x4a6   : > { %v5006_v21 = vpop.permute.xlu0 %5005 }
 0x4a7   : > { %v5235_v57 = vsel %vm14580_vm1, %v5212_v39, %v5006_v21  ;;  %v4863_v11 = vpop.permute.xlu1 %4862  ;;  %vm14595_vm1 = vmmov %vm14590_vm0 }
 0x4a8   : > { %v5181_v42 = vsel %vm14589_vm8, %v5149_v18, %v4863_v11  ;;  %vm5949_vm8 = vcmask 122880  }
 0x4aa   : > { %v4962_v59 = vpop.permute.xlu0 %4961 }
 0x4ab   : > { %v5215_v19 = vsel %vm14585_vm6, %v13244_v20, %v4962_v59  ;;  %vm14600_vm6 = vmmov %vm14590_vm0 }
 0x4ae   : > { %v5080_v43 = vpop.permute.xlu0 %5079 }
 0x4af   : > { %v5266_v29 = vsel %vm14581_vm7, %v5235_v57, %v5080_v43  ;;  %vm14596_vm7 = vmmov %vm14590_vm0 }
 0x4b0   : > { %5559 = vmatprep.mubr.bf16.mxu1 %v5266_v29 }
 0x4b1   : > { %5560 = vmatmul.mubr.bf16.gmra.mrb[84].mxu1 %v5178_v36 }
 0x4b2   : > { %v5008_v24 = vpop.permute.xlu0 %5007 }
 0x4b3   : > { %v5237_v4 = vsel %vm14586_vm2, %v5215_v19, %v5008_v24  ;;  %vm5934_vm2 = vcmask 130048  }
 0x4b6   : > { %v5082_v3 = vpop.permute.xlu0 %5081 }
 0x4b7   : > { %v5269_v1 = vsel %vm14587_vm4, %v5237_v4, %v5082_v3  ;;  %v13354_v20 = vpop.f32.mrb[124].mxu0  ;;  %vm5936_vm4 = vcmask 124928  }
 0x4b8   : > { %5567 = vmatprep.mubr.bf16.mxu1 %v5269_v1  ;;  %v6877_v0 = vpop.f32.mrb[125].mxu0 }
 0x4b9   : > { %5568 = vmatmul.mubr.bf16.gmra.mrb[88].mxu1 %v5181_v42  ;;  %v13356_v53 = vpop.f32.mrb[126].mxu0 }
 0x4ba   : > { %6903 = vmatprep.mubr.msk.bf16.mxu1 %vm14135_vm13, %v14015_v15  ;;  %v6878_v13 = vpop.f32.mrb[127].mxu0 }
 0x4cb   : > { %v13358_v48 = vpop.f32.mrb[128].mxu0 }
 0x4cc   : > { %v6881_v26 = vpop.f32.mrb[129].mxu0 }
 0x4cd   : > { %v13360_v32 = vpop.f32.mrb[130].mxu0 }
 0x4ce   : > { %v6882_v44 = vpop.f32.mrb[131].mxu0 }
 0x4e0   : > { %v13362_v28 = vpop.f32.mrb[132].mxu0 }
 0x4e1   : > { %v6885_v45 = vpop.f32.mrb[133].mxu0 }
 0x4e2   : > { %v13364_v61 = vpop.f32.mrb[134].mxu0 }
 0x4e3   : > { %v6886_v2 = vpop.f32.mrb[135].mxu0 }
 0x4f1   : > { %v6655_v60 = vpop.f32.mrb[48].mxu1 }
 0x4f2   : > { %v6656_v9 = vpop.f32.mrb[49].mxu1 }
 0x4f3   : > { %v6657_v8 = vadd.f32 %v6656_v9, %v6655_v60  ;;  %v6658_v51 = vpop.f32.mrb[50].mxu1  ;;  %v13371_v14 = vpop.f32.mrb[136].mxu0 }
 0x4f4   : > { %v6659_v38 = vpop.f32.mrb[51].mxu1  ;;  %v6889_v5 = vpop.f32.mrb[137].mxu0 }
 0x4f5   : > { %v5490_v50 = vadd.f32 %v6657_v8, %v13369_v46  ;;  %v6660_v49 = vadd.f32 %v6659_v38, %v6658_v51  ;;  %v13374_v27 = vpop.f32.mrb[138].mxu0 }
 0x4f6   : > { %v6890_v7 = vpop.f32.mrb[139].mxu0 }
 0x4f7   : > { %v5611_v54 = vadd.f32 %v13289_v40, %v5490_v50  ;;  %v5493_v62 = vadd.f32 %v6660_v49, %v13369_v46 }
 0x4f9   : > { %v5614_v17 = vadd.f32 %v13291_v33, %v5493_v62  ;;  %v5697_v30 = vmax.f32 %v5611_v54, 0.0 }
 0x4fb   : > { %v5698_v55 = vmax.f32 %v5614_v17, 0.0 }
 0x4fd   : > { %v5719_v21 = vpack.c.bf16 %v5698_v55, %v5697_v30 }
 0x4ff   : > { %6904 = vmatmul.mubr.msk.bf16.vlgmr.msra.gmra.mrb[92].mxu1 %vm14590_vm0, %v5719_v21  ;;  %vm5972_vm0 = vcmask 130055  }
 0x500   : > { %6907 = vmatprep.mubr.msk.bf16.mxu1 %vm14135_vm13, %v14015_v15 }
 0x505   : > { %v6661_v34 = vpop.f32.mrb[52].mxu1 }
 0x506   : > { %v6662_v22 = vpop.f32.mrb[53].mxu1 }
 0x507   : > { %v6663_v59 = vadd.f32 %v6662_v22, %v6661_v34  ;;  %v6664_v41 = vpop.f32.mrb[54].mxu1  ;;  %v13382_v52 = vpop.f32.mrb[140].mxu0 }
 0x508   : > { %v6665_v39 = vpop.f32.mrb[55].mxu1  ;;  %v6893_v40 = vpop.f32.mrb[141].mxu0 }
 0x509   : > { %v5498_v57 = vadd.f32 %v6663_v59, %v13369_v46  ;;  %v6666_v43 = vadd.f32 %v6665_v39, %v6664_v41  ;;  %v13385_v33 = vpop.f32.mrb[142].mxu0 }
 0x50a   : > { %v6894_v29 = vpop.f32.mrb[143].mxu0 }
 0x50b   : > { %v5619_v16 = vadd.f32 %v13304_v6, %v5498_v57  ;;  %v5501_v36 = vadd.f32 %v6666_v43, %v13369_v46 }
 0x50d   : > { %v5622_v56 = vadd.f32 %v13306_v23, %v5501_v36  ;;  %v5699_v24 = vmax.f32 %v5619_v16, 0.0 }
 0x50f   : > { %v5700_v31 = vmax.f32 %v5622_v56, 0.0  ;;  %v13390_v11 = vpop.f32.mrb[144].mxu0 }
 0x510   : > { %v6897_v19 = vpop.f32.mrb[145].mxu0 }
 0x511   : > { %v5720_v4 = vpack.c.bf16 %v5700_v31, %v5699_v24  ;;  %v13392_v3 = vpop.f32.mrb[146].mxu0  ;;  %v6667_v25 = vpop.f32.mrb[56].mxu1 }
 0x512   : > { %v6898_v1 = vpop.f32.mrb[147].mxu0  ;;  %v6668_v18 = vpop.f32.mrb[57].mxu1 }
 0x513   : > { %6908 = vmatmul.mubr.msk.bf16.gmra.mrb[96].mxu1 %vm14591_vm15, %v5720_v4  ;;  %v6669_v6 = vadd.f32 %v6668_v18, %v6667_v25  ;;  %v6670_v42 = vpop.f32.mrb[58].mxu1 }
 0x514   : > { %6911 = vmatprep.mubr.msk.bf16.mxu1 %vm14135_vm13, %v14015_v15  ;;  %v6671_v47 = vpop.f32.mrb[59].mxu1 }
 0x515   : > { %v5506_v23 = vadd.f32 %v6669_v6, %v13369_v46  ;;  %v6672_v0 = vadd.f32 %v6671_v47, %v6670_v42 }
 0x517   : > { %v5627_v13 = vadd.f32 %v13316_v63, %v5506_v23  ;;  %v5509_v26 = vadd.f32 %v6672_v0, %v13369_v46 }
 0x519   : > { %v5630_v44 = vadd.f32 %v13318_v37, %v5509_v26  ;;  %v5701_v45 = vmax.f32 %v5627_v13, 0.0 }
 0x51a   : > { %v6673_v9 = vpop.f32.mrb[60].mxu1 }
 0x51b   : > { %v5702_v2 = vmax.f32 %v5630_v44, 0.0  ;;  %v6674_v8 = vpop.f32.mrb[61].mxu1 }
 0x51c   : > { %v6675_v51 = vadd.f32 %v6674_v8, %v6673_v9  ;;  %v6676_v38 = vpop.f32.mrb[62].mxu1 }
 0x51d   : > { %v5721_v60 = vpack.c.bf16 %v5702_v2, %v5701_v45  ;;  %v6677_v5 = vpop.f32.mrb[63].mxu1 }
 0x51e   : > { %v5514_v50 = vadd.f32 %v6675_v51, %v13369_v46  ;;  %v6678_v63 = vadd.f32 %v6677_v5, %v6676_v38 }
 0x51f   : > { %6912 = vmatmul.mubr.msk.bf16.gmra.mrb[100].mxu1 %vm14592_vm14, %v5721_v60 }
 0x520   : > { %6915 = vmatprep.mubr.msk.bf16.mxu1 %vm14135_vm13, %v14015_v15  ;;  %v5635_v49 = vadd.f32 %v13328_v35, %v5514_v50  ;;  %v5517_v37 = vadd.f32 %v6678_v63, %v13369_v46 }
 0x522   : > { %v5638_v7 = vadd.f32 %v13330_v58, %v5517_v37  ;;  %v5703_v54 = vmax.f32 %v5635_v49, 0.0 }
 0x524   : > { %v5704_v62 = vmax.f32 %v5638_v7, 0.0 }
 0x526   : > { %v5722_v17 = vpack.c.bf16 %v5704_v62, %v5703_v54  ;;  %v6679_v30 = vpop.f32.mrb[64].mxu1 }
 0x527   : > { %v6680_v55 = vpop.f32.mrb[65].mxu1 }
 0x528   : > { %6916 = vmatmul.mubr.msk.bf16.gmra.mrb[104].mxu1 %vm14593_vm10, %v5722_v17  ;;  %v6681_v21 = vadd.f32 %v6680_v55, %v6679_v30  ;;  %v6682_v34 = vpop.f32.mrb[66].mxu1 }
 0x529   : > { %6919 = vmatprep.mubr.msk.bf16.mxu1 %vm14135_vm13, %v14015_v15  ;;  %v6683_v22 = vpop.f32.mrb[67].mxu1 }
 0x52a   : > { %v5522_v59 = vadd.f32 %v6681_v21, %v13369_v46  ;;  %v6684_v35 = vadd.f32 %v6683_v22, %v6682_v34 }
 0x52c   : > { %v5643_v41 = vadd.f32 %v13345_v12, %v5522_v59  ;;  %v5525_v58 = vadd.f32 %v6684_v35, %v13369_v46 }
 0x52e   : > { %v5646_v39 = vadd.f32 %v13350_v10, %v5525_v58  ;;  %v5705_v40 = vmax.f32 %v5643_v41, 0.0 }
 0x530   : > { %v5706_v57 = vmax.f32 %v5646_v39, 0.0 }
 0x532   : > { %v5723_v43 = vpack.c.bf16 %v5706_v57, %v5705_v40 }
 0x534   : > { %6920 = vmatmul.mubr.msk.bf16.gmra.mrb[108].mxu1 %vm14594_vm9, %v5723_v43 }
 0x535   : > { %6923 = vmatprep.mubr.msk.bf16.mxu1 %vm14135_vm13, %v14015_v15 }
 0x536   : > { %v6685_v29 = vpop.f32.mrb[68].mxu1 }
 0x537   : > { %v6686_v16 = vpop.f32.mrb[69].mxu1 }
 0x538   : > { %v6687_v36 = vadd.f32 %v6686_v16, %v6685_v29  ;;  %v6688_v56 = vpop.f32.mrb[70].mxu1 }
 0x539   : > { %v6689_v24 = vpop.f32.mrb[71].mxu1 }
 0x53a   : > { %v5530_v31 = vadd.f32 %v6687_v36, %v13369_v46  ;;  %v6690_v12 = vadd.f32 %v6689_v24, %v6688_v56 }
 0x53c   : > { %v5651_v19 = vadd.f32 %v13354_v20, %v5530_v31  ;;  %v5533_v10 = vadd.f32 %v6690_v12, %v13369_v46 }
 0x53e   : > { %v5654_v4 = vadd.f32 %v13356_v53, %v5533_v10  ;;  %v5707_v1 = vmax.f32 %v5651_v19, 0.0 }
 0x540   : > { %v5708_v25 = vmax.f32 %v5654_v4, 0.0 }
 0x542   : > { %v5724_v18 = vpack.c.bf16 %v5708_v25, %v5707_v1 }
 0x544   : > { %6924 = vmatmul.mubr.msk.bf16.gmra.mrb[112].mxu1 %vm14595_vm1, %v5724_v18 }
 0x545   : > { %6927 = vmatprep.mubr.msk.bf16.mxu1 %vm14135_vm13, %v14015_v15 }
 0x54a   : > { %v6691_v6 = vpop.f32.mrb[72].mxu1 }
 0x54b   : > { %v6692_v42 = vpop.f32.mrb[73].mxu1 }
 0x54c   : > { %v6693_v47 = vadd.f32 %v6692_v42, %v6691_v6  ;;  %v6694_v23 = vpop.f32.mrb[74].mxu1 }
 0x54d   : > { %v6695_v0 = vpop.f32.mrb[75].mxu1 }
 0x54e   : > { %v5538_v13 = vadd.f32 %v6693_v47, %v13369_v46  ;;  %v6696_v20 = vadd.f32 %v6695_v0, %v6694_v23 }
 0x550   : > { %v5659_v26 = vadd.f32 %v13358_v48, %v5538_v13  ;;  %v5541_v53 = vadd.f32 %v6696_v20, %v13369_v46 }
 0x552   : > { %v5662_v44 = vadd.f32 %v13360_v32, %v5541_v53  ;;  %v5709_v45 = vmax.f32 %v5659_v26, 0.0 }
 0x554   : > { %v5710_v2 = vmax.f32 %v5662_v44, 0.0 }
 0x556   : > { %v5725_v60 = vpack.c.bf16 %v5710_v2, %v5709_v45 }
 0x558   : > { %6928 = vmatmul.mubr.msk.bf16.gmra.mrb[116].mxu1 %vm14596_vm7, %v5725_v60 }
 0x559   : > { %6931 = vmatprep.mubr.msk.bf16.mxu1 %vm14135_vm13, %v14015_v15 }
 0x560   : > { %v6697_v9 = vpop.f32.mrb[76].mxu1 }
 0x561   : > { %v6698_v8 = vpop.f32.mrb[77].mxu1 }
 0x562   : > { %v6699_v51 = vadd.f32 %v6698_v8, %v6697_v9  ;;  %v6700_v38 = vpop.f32.mrb[78].mxu1 }
 0x563   : > { %v6701_v5 = vpop.f32.mrb[79].mxu1 }
 0x564   : > { %v5546_v50 = vadd.f32 %v6699_v51, %v13369_v46  ;;  %v6702_v48 = vadd.f32 %v6701_v5, %v6700_v38 }
 0x566   : > { %v5667_v63 = vadd.f32 %v13362_v28, %v5546_v50  ;;  %v5549_v32 = vadd.f32 %v6702_v48, %v13369_v46 }
 0x568   : > { %v5670_v49 = vadd.f32 %v13364_v61, %v5549_v32  ;;  %v5711_v37 = vmax.f32 %v5667_v63, 0.0 }
 0x56a   : > { %v5712_v7 = vmax.f32 %v5670_v49, 0.0 }
 0x56c   : > { %v5726_v54 = vpack.c.bf16 %v5712_v7, %v5711_v37 }
 0x56e   : > { %6932 = vmatmul.mubr.msk.bf16.gmra.mrb[120].mxu1 %vm14597_vm5, %v5726_v54 }
 0x56f   : > { %6935 = vmatprep.mubr.msk.bf16.mxu1 %vm14135_vm13, %v14015_v15 }
 0x572   : > { %v6703_v62 = vpop.f32.mrb[80].mxu1 }
 0x573   : > { %v6704_v17 = vpop.f32.mrb[81].mxu1 }
 0x574   : > { %v6705_v30 = vadd.f32 %v6704_v17, %v6703_v62  ;;  %v6706_v55 = vpop.f32.mrb[82].mxu1 }
 0x575   : > { %v6707_v21 = vpop.f32.mrb[83].mxu1 }
 0x576   : > { %v5554_v34 = vadd.f32 %v6705_v30, %v13369_v46  ;;  %v6708_v28 = vadd.f32 %v6707_v21, %v6706_v55 }
 0x578   : > { %v5675_v22 = vadd.f32 %v13371_v14, %v5554_v34  ;;  %v5557_v61 = vadd.f32 %v6708_v28, %v13369_v46 }
 0x57a   : > { %v5678_v59 = vadd.f32 %v13374_v27, %v5557_v61  ;;  %v5713_v35 = vmax.f32 %v5675_v22, 0.0 }
 0x57c   : > { %v5714_v41 = vmax.f32 %v5678_v59, 0.0 }
 0x57e   : > { %v5727_v58 = vpack.c.bf16 %v5714_v41, %v5713_v35 }
 0x580   : > { %6936 = vmatmul.mubr.msk.bf16.gmra.mrb[124].mxu1 %vm14598_vm12, %v5727_v58 }
 0x581   : > { %6939 = vmatprep.mubr.msk.bf16.mxu1 %vm14135_vm13, %v14015_v15 }
 0x584   : > { %v6709_v39 = vpop.f32.mrb[84].mxu1 }
 0x585   : > { %v6710_v40 = vpop.f32.mrb[85].mxu1 }
 0x586   : > { %v6711_v57 = vadd.f32 %v6710_v40, %v6709_v39  ;;  %v6712_v43 = vpop.f32.mrb[86].mxu1 }
 0x587   : > { %v6713_v29 = vpop.f32.mrb[87].mxu1 }
 0x588   : > { %v5562_v16 = vadd.f32 %v6711_v57, %v13369_v46  ;;  %v6714_v14 = vadd.f32 %v6713_v29, %v6712_v43 }
 0x58a   : > { %v5683_v36 = vadd.f32 %v13382_v52, %v5562_v16  ;;  %v5565_v27 = vadd.f32 %v6714_v14, %v13369_v46 }
 0x58c   : > { %v5686_v56 = vadd.f32 %v13385_v33, %v5565_v27  ;;  %v6715_v24 = vpop.f32.mrb[88].mxu1  ;;  %v5715_v12 = vmax.f32 %v5683_v36, 0.0 }
 0x58d   : > { %v6716_v31 = vpop.f32.mrb[89].mxu1 }
 0x58e   : > { %v5716_v19 = vmax.f32 %v5686_v56, 0.0  ;;  %v6717_v10 = vadd.f32 %v6716_v31, %v6715_v24  ;;  %v6718_v4 = vpop.f32.mrb[90].mxu1 }
 0x58f   : > { %v6719_v1 = vpop.f32.mrb[91].mxu1 }
 0x590   : > { %v5728_v25 = vpack.c.bf16 %v5716_v19, %v5715_v12  ;;  %v5570_v18 = vadd.f32 %v6717_v10, %v13369_v46  ;;  %v6720_v6 = vadd.f32 %v6719_v1, %v6718_v4 }
 0x592   : > { %v5691_v42 = vadd.f32 %v13390_v11, %v5570_v18  ;;  %v5573_v52 = vadd.f32 %v6720_v6, %v13369_v46  ;;  %6940 = vmatmul.mubr.msk.bf16.gmra.mrb[128].mxu1 %vm14599_vm3, %v5728_v25 }
 0x593   : > { %6943 = vmatprep.mubr.msk.bf16.mxu1 %vm14135_vm13, %v14015_v15  ;;  %v13467_v15 = vld [vmem:[%s13618_s8] ss:$0 sm:$0xff]  ;;  %vm5932_vm13 = vcmask 130051  }
 0x594   : > { %v5694_v33 = vadd.f32 %v13392_v3, %v5573_v52  ;;  %v5717_v47 = vmax.f32 %v5691_v42, 0.0 }
 0x596   : > { %v5718_v23 = vmax.f32 %v5694_v33, 0.0 }
 0x598   : > { %v5729_v0 = vpack.c.bf16 %v5718_v23, %v5717_v47 }
 0x59a   : > { %6944 = vmatmul.mubr.msk.bf16.gmra.mrb[132].mxu1 %vm14600_vm6, %v5729_v0 }
 0x5d2   : > { %v5820_v46 = vpop.f32.mrb[92].mxu1 }
 0x5d3   : > { %v5821_v11 = vadd.f32 %v13467_v15, %v5820_v46  ;;  %v6905_v3 = vpop.f32.mrb[93].mxu1 }
 0x5d4   : > { %v5823_v13 = vpop.f32.mrb[94].mxu1 }
 0x5d5   : > { %5933 = vst.msk [vmem:[%s13472_s1 - $0x3] sm:$0xf8] %vm5932_vm13, %v5821_v11  ;;  %v5824_v20 = vadd.f32 %v13467_v15, %v5823_v13  ;;  %v6906_v26 = vpop.f32.mrb[95].mxu1 }
 0x5d7   : > { %5935 = vst.msk [vmem:[%s13472_s1 + $0x5] sm:$0xff] %vm5934_vm2, %v5824_v20 }
 0x5e6   : > { %v5828_v53 = vpop.f32.mrb[96].mxu1 }
 0x5e7   : > { %v5829_v44 = vadd.f32 %v13467_v15, %v5828_v53  ;;  %v6909_v45 = vpop.f32.mrb[97].mxu1 }
 0x5e8   : > { %v5831_v2 = vpop.f32.mrb[98].mxu1 }
 0x5e9   : > { %5937 = vst.msk [vmem:[%s13472_s1 + $0xd] sm:$0x7] %vm5936_vm4, %v5829_v44  ;;  %v5832_v60 = vadd.f32 %v13467_v15, %v5831_v2  ;;  %v6910_v9 = vpop.f32.mrb[99].mxu1 }
 0x5eb   : > { %5947 = vst.msk [vmem:[%s13472_s1 + $0xf] sm:$0xfe] %vm5946_vm11, %v5832_v60 }
 0x5f2   : > { %v5836_v8 = vpop.f32.mrb[100].mxu1 }
 0x5f3   : > { %v5837_v51 = vadd.f32 %v13467_v15, %v5836_v8  ;;  %v6913_v38 = vpop.f32.mrb[101].mxu1 }
 0x5f4   : > { %v5839_v5 = vpop.f32.mrb[102].mxu1 }
 0x5f5   : > { %7272 = shalt.err (!%p7269_p9)
}
 0x5f6   : > { %s7273_s0 = scalar_lea.hbm %s13495_s29, 1024  ;;  %s7277_s30 = scalar_lea.hbm %s13619_s9, 4096 }
 0x5f7   : > { %p7274_p10 = scmp.ne.s32.totalorder %s13495_s29, %s7273_s0  ;;  %p7278_p13 = scmp.lt.u32.totalorder %s13495_s29, %s13619_s9 }
 0x5f8   : > { %p7279_p0 = scmp.lt.u32.totalorder %s7277_s30, %s7273_s0  ;;  %p7281_p2 = scmp.lt.u32.totalorder %s7273_s0, %s13495_s29 }
 0x5f9   : > { %p7275_p11 = pnand %p7274_p10, %p7477_p3 }
 0x5fa   : > { %p7280_p1 = por %p7279_p0, %p7278_p13 }
 0x5fb   : > { %p7276_p12 = pneg %p7275_p11 }
 0x5fc   : > { %p7282_p4 = por %p7281_p2, %p7280_p1 }
 0x5fe   : > { %p7283_p5 = pnand %p7282_p4, %p7276_p12 }
 0x600   : > { %7286 = shalt.err (!%p7283_p5)
}
 0x601   : > { %s7370_s28 = smov 4   ;;  %s14602_s19 = smov 64   ;;  %5948 = vst.msk [vmem:[%s13472_s1 + $0x17] sm:$0xff] %vm5934_vm2, %v5837_v51  ;;  %v5840_v50 = vadd.f32 %v13467_v15, %v5839_v5  ;;  %v6914_v48 = vpop.f32.mrb[103].mxu1  ;;  %vm5975_vm15 = vcmask 129024   ;;  %vm6000_vm14 = vcmask 130053  }
 0x602   : > { %7089 = dma.vmem_to_hbm [thread:$0]  (%p7477_p3), %s13489_s16, 1024, %s13495_s29, %s13499_s21, %s14602_s19, %s14602_s19, %s7370_s28   ;;  %v5844_v63 = vpop.f32.mrb[104].mxu1  ;;  %vm6003_vm10 = vcmask 126976  }
 0x603   : > { %5950 = vst.msk [vmem:[%s13472_s1 + $0x1f] sm:$0x1] %vm5949_vm8, %v5840_v50  ;;  %v5845_v32 = vadd.f32 %v13467_v15, %v5844_v63  ;;  %v6917_v49 = vpop.f32.mrb[105].mxu1 }
 0x604   : > { %5973 = vst.msk [vmem:[%s13472_s1 + $0x19] sm:$0x80] %vm5972_vm0, %v5840_v50  ;;  %v5847_v37 = vpop.f32.mrb[106].mxu1 }
 0x605   : > { %5974 = vst.msk [vmem:[%s13472_s1 + $0x21] sm:$0xff] %vm5934_vm2, %v5845_v32  ;;  %v5848_v7 = vadd.f32 %v13467_v15, %v5847_v37  ;;  %v6918_v54 = vpop.f32.mrb[107].mxu1 }
 0x607   : > { %5976 = vst.msk [vmem:[%s13472_s1 + $0x29] sm:$0x7f] %vm5975_vm15, %v5848_v7  ;;  %v5852_v62 = vpop.f32.mrb[108].mxu1 }
 0x608   : > { %v5853_v17 = vadd.f32 %v13467_v15, %v5852_v62  ;;  %v6921_v30 = vpop.f32.mrb[109].mxu1 }
 0x609   : > { %v5855_v55 = vpop.f32.mrb[110].mxu1 }
 0x60a   : > { %6001 = vst.msk [vmem:[%s13472_s1 + $0x2b] sm:$0xe0] %vm6000_vm14, %v5853_v17  ;;  %v5856_v21 = vadd.f32 %v13467_v15, %v5855_v55  ;;  %v6922_v34 = vpop.f32.mrb[111].mxu1 }
 0x60c   : > { %6002 = vst.msk [vmem:[%s13472_s1 + $0x33] sm:$0xff] %vm5934_vm2, %v5856_v21 }
 0x617   : > { %v5860_v28 = vpop.f32.mrb[112].mxu1 }
 0x618   : > { %v5861_v22 = vadd.f32 %v13467_v15, %v5860_v28  ;;  %v6925_v61 = vpop.f32.mrb[113].mxu1 }
 0x619   : > { %v5863_v59 = vpop.f32.mrb[114].mxu1 }
 0x61a   : > { %6004 = vst.msk [vmem:[%s13472_s1 + $0x3b] sm:$0x1f] %vm6003_vm10, %v5861_v22  ;;  %v5864_v35 = vadd.f32 %v13467_v15, %v5863_v59  ;;  %v6926_v41 = vpop.f32.mrb[115].mxu1 }
 0x61c   : > { %6024 = vst.msk [vmem:[%s13472_s1 + $0x3d] sm:$0xf8] %vm5932_vm13, %v5864_v35 }
 0x62b   : > { %v5868_v58 = vpop.f32.mrb[116].mxu1 }
 0x62c   : > { %v5869_v39 = vadd.f32 %v13467_v15, %v5868_v58  ;;  %v6929_v40 = vpop.f32.mrb[117].mxu1 }
 0x62d   : > { %v5871_v57 = vpop.f32.mrb[118].mxu1 }
 0x62e   : > { %6025 = vst.msk [vmem:[%s13472_s1 + $0x45] sm:$0xff] %vm5934_vm2, %v5869_v39  ;;  %v5872_v43 = vadd.f32 %v13467_v15, %v5871_v57  ;;  %v6930_v29 = vpop.f32.mrb[119].mxu1 }
 0x630   : > { %6026 = vst.msk [vmem:[%s13472_s1 + $0x4d] sm:$0x7] %vm5936_vm4, %v5872_v43 }
 0x641   : > { %v5876_v16 = vpop.f32.mrb[120].mxu1 }
 0x642   : > { %v5877_v14 = vadd.f32 %v13467_v15, %v5876_v16  ;;  %v6933_v36 = vpop.f32.mrb[121].mxu1 }
 0x643   : > { %v5879_v27 = vpop.f32.mrb[122].mxu1 }
 0x644   : > { %6037 = vst.msk [vmem:[%s13472_s1 + $0x4f] sm:$0xfe] %vm5946_vm11, %v5877_v14  ;;  %v5880_v56 = vadd.f32 %v13467_v15, %v5879_v27  ;;  %v6934_v24 = vpop.f32.mrb[123].mxu1 }
 0x646   : > { %6038 = vst.msk [vmem:[%s13472_s1 + $0x57] sm:$0xff] %vm5934_vm2, %v5880_v56 }
 0x653   : > { %v5884_v31 = vpop.f32.mrb[124].mxu1 }
 0x654   : > { %v5885_v12 = vadd.f32 %v13467_v15, %v5884_v31  ;;  %v6937_v19 = vpop.f32.mrb[125].mxu1 }
 0x655   : > { %v5887_v10 = vpop.f32.mrb[126].mxu1 }
 0x656   : > { %6039 = vst.msk [vmem:[%s13472_s1 + $0x5f] sm:$0x1] %vm5949_vm8, %v5885_v12  ;;  %v5888_v4 = vadd.f32 %v13467_v15, %v5887_v10  ;;  %v6938_v1 = vpop.f32.mrb[127].mxu1 }
 0x657   : > { %6061 = vst.msk [vmem:[%s13472_s1 + $0x59] sm:$0x80] %vm5972_vm0, %v5885_v12 }
 0x658   : > { %6062 = vst.msk [vmem:[%s13472_s1 + $0x61] sm:$0xff] %vm5934_vm2, %v5888_v4 }
 0x665   : > { %v5892_v25 = vpop.f32.mrb[128].mxu1 }
 0x666   : > { %v5893_v18 = vadd.f32 %v13467_v15, %v5892_v25  ;;  %v6941_v6 = vpop.f32.mrb[129].mxu1 }
 0x667   : > { %v5895_v42 = vpop.f32.mrb[130].mxu1 }
 0x668   : > { %6063 = vst.msk [vmem:[%s13472_s1 + $0x69] sm:$0x7f] %vm5975_vm15, %v5893_v18  ;;  %v5896_v52 = vadd.f32 %v13467_v15, %v5895_v42  ;;  %v6942_v33 = vpop.f32.mrb[131].mxu1 }
 0x66a   : > { %6083 = vst.msk [vmem:[%s13472_s1 + $0x6b] sm:$0xe0] %vm6000_vm14, %v5896_v52 }
 0x66d   : > { %v5900_v47 = vpop.f32.mrb[132].mxu1 }
 0x66e   : > { %v5901_v23 = vadd.f32 %v13467_v15, %v5900_v47  ;;  %v6945_v0 = vpop.f32.mrb[133].mxu1 }
 0x66f   : > { %v5903_v46 = vpop.f32.mrb[134].mxu1 }
 0x670   : > { %6084 = vst.msk [vmem:[%s13472_s1 + $0x73] sm:$0xff] %vm5934_vm2, %v5901_v23  ;;  %v5904_v11 = vadd.f32 %v13467_v15, %v5903_v46  ;;  %v6946_v3 = vpop.f32.mrb[135].mxu1 }
 0x672   : > { %6085 = vst.msk [vmem:[%s13472_s1 + $0x7b] sm:$0x1f] %vm6003_vm10, %v5904_v11 }
 0x673 PF: > { %p7095_p3 = scmp.ge.s32.totalorder %s7353_s20, 2  ;;  %s6130_s26 = sand.u32 1, %s7325_s13  }
 0x674   : > { %s6131_s16 = scalar_lea.sflag [#allocation3], %s6130_s26 }
 0x675   : > { %p7092_p6 = pnand %p7095_p3, %p7486_p8 }
 0x677   : > { %7320 = dma.done.wait (!%p7092_p6), %s6131_s16, 1024  }
 0x678   : > { %7322 = vsyncadd (!%p7092_p6), %s6131_s16, 4294966272  ;;  %s24_s20 = sadd.s32 1, %s7353_s20   ;;  %s14603_s17 = sld [smem:[#allocation5_spill]] }
 0x679   : > { %p21_p7 = scmp.ge.s32.totalorder %s24_s20, 6   ;;  %s14604_s1 = sld [smem:[#allocation6_spill]] }
 0x67a   : > { %s14605_s19 = sld [smem:[#allocation7_spill]]  ;;  %s14606_s13 = smov %s7329_s14 }
 0x67b   : > { %s14607_s14 = smov %s7333_s15  ;;  %s14608_s15 = smov %s7495_s11 }
 0x67c   : > { %s14609_s16 = smov %s7345_s18  ;;  %23 = sbr.rel (!%p21_p7) target bundleno = 8 (0x8), region = 103 }
 0x67f   : > { %s14610_s18 = smov %s14604_s1 }
 0x683   :  { %6148 = vsyncpa [#allocation3], 1 }
 0x684   :  { %6150 = vsyncpa [#allocation3 + $0x1], 1 }

</bundles_post_ra>
